<compile_context>
chip_gen: v5e
topology: v5e:2x2
jax: 0.10.0
libtpu: 0.0.40
codegen_flags: <defaults>
</compile_context>

<pallas_src>
import jax
import jax.numpy as jnp
from jax.experimental import pallas as pl
from jax.experimental.pallas import tpu as pltpu

IN_DIM = 8 * 8 * 12 + 1 + 4 + 64 + 2   # 839
IN_PAD = 896                            # 7 * 128, lane-aligned K for fc1
H1 = 1024
H2 = 512
OUT_DIM = 4096

TILE_N = 2048                           # fc3 output tile (lane-aligned)
N_TILES = OUT_DIM // TILE_N             # 2 grid steps total


def chessnet_kernel(x_ref, w1_ref, b1_ref, w2_ref, b2_ref, w3_ref, b3_ref,
                    o_ref, h2_ref):
    # fc1 + ReLU, fc2 + ReLU: computed once (first grid step), cached in a
    # bf16 VMEM scratch, reused for every fc3 output tile.
    @pl.when(pl.program_id(0) == 0)
    def _():
        h1 = jnp.dot(x_ref[...], w1_ref[...],
                     preferred_element_type=jnp.float32)
        h1 = jnp.maximum(h1 + b1_ref[...], 0.0)
        h2 = jnp.dot(h1.astype(jnp.bfloat16), w2_ref[...],
                     preferred_element_type=jnp.float32)
        h2_ref[...] = jnp.maximum(h2 + b2_ref[...], 0.0).astype(jnp.bfloat16)

    # fc3 on this 2048-wide output tile (no activation).
    o = jnp.dot(h2_ref[...], w3_ref[...],
                preferred_element_type=jnp.float32)
    o_ref[...] = (o + b3_ref[...]).astype(o_ref.dtype)


def prepare_params(w1, b1, w2, b2, w3, b3):
    """One-time weight prep: bf16 cast + zero-pad fc1's K dim to 896.

    Call once (e.g. at model load); the result is what chessnet_forward wants.
    """
    w1_p = jnp.zeros((IN_PAD, H1), jnp.bfloat16).at[:IN_DIM, :].set(
        w1.astype(jnp.bfloat16))
    return (w1_p, b1, w2.astype(jnp.bfloat16), b2,
            w3.astype(jnp.bfloat16), b3)


def chessnet_forward(x, params):
    """x: (B, IN_DIM) f32; params from prepare_params(). Returns (B, OUT_DIM) f32."""
    w1_p, b1, w2_b, b2, w3_b, b3 = params
    B = x.shape[0]
    Bp = max(16, ((B + 15) // 16) * 16)   # bf16 sublane-packed batch

    # Per-call input prep is tiny (Bp x 896 bf16 ~= 28 KiB).
    x_p = jnp.zeros((Bp, IN_PAD), jnp.bfloat16).at[:B, :IN_DIM].set(
        x.astype(jnp.bfloat16))

    def const(shape):
        return pl.BlockSpec(shape, lambda j: (0,) * len(shape))

    weight_bytes = 2 * (IN_PAD * H1 + H1 * H2 + H2 * OUT_DIM)
    bias_bytes = 4 * (H1 + H2 + OUT_DIM)
    io_bytes = 2 * Bp * IN_PAD + 4 * Bp * OUT_DIM
    cost = pl.CostEstimate(
        flops=2 * Bp * (IN_PAD * H1 + H1 * H2 + H2 * OUT_DIM),
        transcendentals=0,
        bytes_accessed=weight_bytes + bias_bytes + io_bytes,
    )

    out = pl.pallas_call(
        chessnet_kernel,
        out_shape=jax.ShapeDtypeStruct((Bp, OUT_DIM), jnp.float32),
        grid_spec=pltpu.PrefetchScalarGridSpec(
            num_scalar_prefetch=0,
            grid=(N_TILES,),
            in_specs=[
                const((Bp, IN_PAD)),                           # x
                const((IN_PAD, H1)),                           # w1
                const((1, H1)),                                # b1
                const((H1, H2)),                               # w2
                const((1, H2)),                                # b2
                pl.BlockSpec((H2, TILE_N), lambda j: (0, j)),  # w3 tile
                pl.BlockSpec((1, TILE_N), lambda j: (0, j)),   # b3 tile
            ],
            out_specs=pl.BlockSpec((Bp, TILE_N), lambda j: (0, j)),
            scratch_shapes=[pltpu.VMEM((Bp, H2), jnp.bfloat16)],  # h2 cache
        ),
        compiler_params=pltpu.CompilerParams(
            # Single sequential axis: fc1/fc2 run once and h2 is reused, and a
            # megacore split would only re-fetch x/w1/w2 on the second core.
            dimension_semantics=("arbitrary",),
            vmem_limit_bytes=48 << 20,   # ample; working set ~11 MiB
        ),
        cost_estimate=cost,
    )(x_p, w1_p, b1, w2_b, b2, w3_b, b3)
    return out[:B]


def init_params(key):
    # Deterministic PyTorch-style uniform(-1/sqrt(fan_in), 1/sqrt(fan_in)) init.
    ks = jax.random.split(key, 6)

    def linear(kw, kb, fan_in, fan_out):
        bound = 1.0 / jnp.sqrt(fan_in)
        w = jax.random.uniform(kw, (fan_in, fan_out), jnp.float32, -bound, bound)
        b = jax.random.uniform(kb, (1, fan_out), jnp.float32, -bound, bound)
        return w, b

    w1, b1 = linear(ks[0], ks[1], IN_DIM, H1)
    w2, b2 = linear(ks[2], ks[3], H1, H2)
    w3, b3 = linear(ks[4], ks[5], H2, OUT_DIM)
    return w1, b1, w2, b2, w3, b3


if __name__ == "__main__":
    key = jax.random.PRNGKey(0)
    k_x, k_p = jax.random.split(key)

    B = 8  # small batch; wrapper supports any B (pads to a multiple of 16)
    x = jax.random.normal(k_x, (B, IN_DIM), jnp.float32)
    w1, b1, w2, b2, w3, b3 = init_params(k_p)

    # One-time weight prep (bf16 cast + pad), then the hot forward path.
    params = jax.tree_util.tree_map(jax.block_until_ready,
                                    prepare_params(w1, b1, w2, b2, w3, b3))
    out = chessnet_forward(x, params)
    out = jax.block_until_ready(out)
    assert out.shape == (B, OUT_DIM)

    # Pure-JAX reference with identical bf16 casts + f32 accumulation.
    xb = x.astype(jnp.bfloat16)
    h1 = jnp.maximum(
        jnp.dot(xb, w1.astype(jnp.bfloat16),
                preferred_element_type=jnp.float32) + b1, 0.0)
    h2 = jnp.maximum(
        jnp.dot(h1.astype(jnp.bfloat16), w2.astype(jnp.bfloat16),
                preferred_element_type=jnp.float32) + b2, 0.0)
    ref = jnp.dot(h2.astype(jnp.bfloat16), w3.astype(jnp.bfloat16),
                  preferred_element_type=jnp.float32) + b3

    assert jnp.allclose(out, ref, atol=2e-2, rtol=2e-2)

    print("KERNEL_OK")
</pallas_src>

<mosaic_0001>
module attributes {stable_mosaic.version = 11 : i64} {
  func.func @chessnet_kernel(%arg0: i32, %arg1: memref<16x896xbf16, #tpu.memory_space<vmem>>, %arg2: memref<896x1024xbf16, #tpu.memory_space<vmem>>, %arg3: memref<1x1024xf32, #tpu.memory_space<vmem>>, %arg4: memref<1024x512xbf16, #tpu.memory_space<vmem>>, %arg5: memref<1x512xf32, #tpu.memory_space<vmem>>, %arg6: memref<512x2048xbf16, #tpu.memory_space<vmem>>, %arg7: memref<1x2048xf32, #tpu.memory_space<vmem>>, %arg8: memref<16x2048xf32, #tpu.memory_space<vmem>>, %arg9: memref<16x512xbf16, #tpu.memory_space<vmem>>) attributes {dimension_semantics = [#tpu.dimension_semantics<arbitrary>], iteration_bounds = array<i64: 2>, scalar_prefetch = 0 : i64, scratch_operands = 1 : i64, tpu.core_type = #tpu.core_type<tc>, window_params = [{pipeline_mode = #tpu.pipeline_mode<synchronous>, transform_indices = @transform_0, window_bounds = array<i64: 16, 896>}, {pipeline_mode = #tpu.pipeline_mode<synchronous>, transform_indices = @transform_1, window_bounds = array<i64: 896, 1024>}, {pipeline_mode = #tpu.pipeline_mode<synchronous>, transform_indices = @transform_2, window_bounds = array<i64: 1, 1024>}, {pipeline_mode = #tpu.pipeline_mode<synchronous>, transform_indices = @transform_3, window_bounds = array<i64: 1024, 512>}, {pipeline_mode = #tpu.pipeline_mode<synchronous>, transform_indices = @transform_4, window_bounds = array<i64: 1, 512>}, {transform_indices = @transform_5, window_bounds = array<i64: 512, 2048>}, {transform_indices = @transform_6, window_bounds = array<i64: 1, 2048>}, {transform_indices = @transform_7, window_bounds = array<i64: 16, 2048>}]} {
    %c0_i32 = arith.constant 0 : i32
    %0 = arith.cmpi eq, %arg0, %c0_i32 : i32
    %1 = arith.extui %0 : i1 to i32
    %c0_i32_0 = arith.constant 0 : i32
    %2 = arith.cmpi ne, %1, %c0_i32_0 : i32
    scf.if %2 {
      %c0_8 = arith.constant 0 : index
      %c0_9 = arith.constant 0 : index
      %10 = vector.load %arg1[%c0_8, %c0_9] : memref<16x896xbf16, #tpu.memory_space<vmem>>, vector<16x896xbf16>
      %c0_10 = arith.constant 0 : index
      %c0_11 = arith.constant 0 : index
      %11 = vector.load %arg2[%c0_10, %c0_11] : memref<896x1024xbf16, #tpu.memory_space<vmem>>, vector<896x1024xbf16>
      %cst_12 = arith.constant dense<0.000000e+00> : vector<16x1024xf32>
      %12 = tpu.matmul %10, %11, %cst_12 {dimension_numbers = #tpu.dot_dimension_numbers<[1], [0], [0], [1], [0, 0, 1, 1], [], []>} : vector<16x896xbf16>, vector<896x1024xbf16>, vector<16x1024xf32> -> vector<16x1024xf32>
      %c0_13 = arith.constant 0 : index
      %c0_14 = arith.constant 0 : index
      %13 = vector.load %arg3[%c0_13, %c0_14] : memref<1x1024xf32, #tpu.memory_space<vmem>>, vector<1x1024xf32>
      %14 = vector.broadcast %13 : vector<1x1024xf32> to vector<16x1024xf32>
      %15 = arith.addf %12, %14 : vector<16x1024xf32>
      %cst_15 = arith.constant 0.000000e+00 : f32
      %16 = vector.broadcast %cst_15 : f32 to vector<16x1024xf32>
      %17 = arith.maximumf %15, %16 : vector<16x1024xf32>
      %18 = arith.truncf %17 : vector<16x1024xf32> to vector<16x1024xbf16>
      %c0_16 = arith.constant 0 : index
      %c0_17 = arith.constant 0 : index
      %19 = vector.load %arg4[%c0_16, %c0_17] : memref<1024x512xbf16, #tpu.memory_space<vmem>>, vector<1024x512xbf16>
      %cst_18 = arith.constant dense<0.000000e+00> : vector<16x512xf32>
      %20 = tpu.matmul %18, %19, %cst_18 {dimension_numbers = #tpu.dot_dimension_numbers<[1], [0], [0], [1], [0, 0, 1, 1], [], []>} : vector<16x1024xbf16>, vector<1024x512xbf16>, vector<16x512xf32> -> vector<16x512xf32>
      %c0_19 = arith.constant 0 : index
      %c0_20 = arith.constant 0 : index
      %21 = vector.load %arg5[%c0_19, %c0_20] : memref<1x512xf32, #tpu.memory_space<vmem>>, vector<1x512xf32>
      %22 = vector.broadcast %21 : vector<1x512xf32> to vector<16x512xf32>
      %23 = arith.addf %20, %22 : vector<16x512xf32>
      %cst_21 = arith.constant 0.000000e+00 : f32
      %24 = vector.broadcast %cst_21 : f32 to vector<16x512xf32>
      %25 = arith.maximumf %23, %24 : vector<16x512xf32>
      %26 = arith.truncf %25 : vector<16x512xf32> to vector<16x512xbf16>
      %c0_22 = arith.constant 0 : index
      %c0_23 = arith.constant 0 : index
      %27 = vector.load %arg9[%c0_22, %c0_23] : memref<16x512xbf16, #tpu.memory_space<vmem>>, vector<16x512xbf16>
      tpu.vector_store %arg9[%c0_22, %c0_23], %26 {strides = array<i32>} : memref<16x512xbf16, #tpu.memory_space<vmem>>, vector<16x512xbf16>,
    } else {
    }
    %c0 = arith.constant 0 : index
    %c0_1 = arith.constant 0 : index
    %3 = vector.load %arg9[%c0, %c0_1] : memref<16x512xbf16, #tpu.memory_space<vmem>>, vector<16x512xbf16>
    %c0_2 = arith.constant 0 : index
    %c0_3 = arith.constant 0 : index
    %4 = vector.load %arg6[%c0_2, %c0_3] : memref<512x2048xbf16, #tpu.memory_space<vmem>>, vector<512x2048xbf16>
    %cst = arith.constant dense<0.000000e+00> : vector<16x2048xf32>
    %5 = tpu.matmul %3, %4, %cst {dimension_numbers = #tpu.dot_dimension_numbers<[1], [0], [0], [1], [0, 0, 1, 1], [], []>} : vector<16x512xbf16>, vector<512x2048xbf16>, vector<16x2048xf32> -> vector<16x2048xf32>
    %c0_4 = arith.constant 0 : index
    %c0_5 = arith.constant 0 : index
    %6 = vector.load %arg7[%c0_4, %c0_5] : memref<1x2048xf32, #tpu.memory_space<vmem>>, vector<1x2048xf32>
    %7 = vector.broadcast %6 : vector<1x2048xf32> to vector<16x2048xf32>
    %8 = arith.addf %5, %7 : vector<16x2048xf32>
    %c0_6 = arith.constant 0 : index
    %c0_7 = arith.constant 0 : index
    %9 = vector.load %arg8[%c0_6, %c0_7] : memref<16x2048xf32, #tpu.memory_space<vmem>>, vector<16x2048xf32>
    tpu.vector_store %arg8[%c0_6, %c0_7], %8 {strides = array<i32>} : memref<16x2048xf32, #tpu.memory_space<vmem>>, vector<16x2048xf32>,
    return
  }
  func.func @transform_0(%arg0: i32) -> (i32, i32) {
    %c0_i32 = arith.constant 0 : i32
    %c0_i32_0 = arith.constant 0 : i32
    %c0_i32_1 = arith.constant 0 : i32
    return %c0_i32, %c0_i32_0 : i32, i32
  }
  func.func @transform_1(%arg0: i32) -> (i32, i32) {
    %c0_i32 = arith.constant 0 : i32
    %c0_i32_0 = arith.constant 0 : i32
    %c0_i32_1 = arith.constant 0 : i32
    return %c0_i32, %c0_i32_0 : i32, i32
  }
  func.func @transform_2(%arg0: i32) -> (i32, i32) {
    %c0_i32 = arith.constant 0 : i32
    %c0_i32_0 = arith.constant 0 : i32
    %c0_i32_1 = arith.constant 0 : i32
    return %c0_i32, %c0_i32_0 : i32, i32
  }
  func.func @transform_3(%arg0: i32) -> (i32, i32) {
    %c0_i32 = arith.constant 0 : i32
    %c0_i32_0 = arith.constant 0 : i32
    %c0_i32_1 = arith.constant 0 : i32
    return %c0_i32, %c0_i32_0 : i32, i32
  }
  func.func @transform_4(%arg0: i32) -> (i32, i32) {
    %c0_i32 = arith.constant 0 : i32
    %c0_i32_0 = arith.constant 0 : i32
    %c0_i32_1 = arith.constant 0 : i32
    return %c0_i32, %c0_i32_0 : i32, i32
  }
  func.func @transform_5(%arg0: i32) -> (i32, i32) {
    %c0_i32 = arith.constant 0 : i32
    %c0_i32_0 = arith.constant 0 : i32
    return %c0_i32, %arg0 : i32, i32
  }
  func.func @transform_6(%arg0: i32) -> (i32, i32) {
    %c0_i32 = arith.constant 0 : i32
    %c0_i32_0 = arith.constant 0 : i32
    return %c0_i32, %arg0 : i32, i32
  }
  func.func @transform_7(%arg0: i32) -> (i32, i32) {
    %c0_i32 = arith.constant 0 : i32
    %c0_i32_0 = arith.constant 0 : i32
    return %c0_i32, %arg0 : i32, i32
  }
}

</mosaic_0001>

<bundles_post_ra>
// kernel: tpu_custom_call.1
= control target key start
LH: loop header
LB: loop body
LE: loop exit
PB: predicated region body
PF: predicated region fallthrough
CT: control target
= control target key end

     0   :  { %s18595_s0 = inlined_call_operand.hbm [shape: bf16[16,896], index: 0, kind: input, shape index: {}]   ;;  %s18596_s1 = inlined_call_operand.hbm [shape: bf16[896,1024], index: 1, kind: input, shape index: {}]   ;;  %s18597_s2 = inlined_call_operand.hbm [shape: f32[1,1024], index: 2, kind: input, shape index: {}]   ;;  %s18598_s3 = inlined_call_operand.hbm [shape: bf16[1024,512], index: 3, kind: input, shape index: {}]   ;;  %s18599_s4 = inlined_call_operand.hbm [shape: f32[1,512], index: 4, kind: input, shape index: {}]   ;;  %s18600_s5 = inlined_call_operand.hbm [shape: bf16[512,4096], index: 5, kind: input, shape index: {}]   ;;  %s18601_s6 = inlined_call_operand.hbm [shape: f32[1,4096], index: 6, kind: input, shape index: {}]   ;;  %s18602_s7 = inlined_call_operand.hbm [shape: f32[16,4096], index: 7, kind: output, shape index: {}]  }
   0x1   :  { %18610 = sst [smem:[#allocation41_spill]] %s18595_s0 }
   0x2   :  { %18611 = sst [smem:[#allocation42_spill]] %s18596_s1 }
   0x3   :  { %18612 = sst [smem:[#allocation43_spill]] %s18598_s3 }
   0x4   :  { %18613 = sst [smem:[#allocation44_spill]] %s18600_s5 }
   0x5   :  { %12 = vsyncpa [#allocation4], 0 }
   0x6   :  { %13 = vsyncpa [#allocation7], 0 }
   0x7   :  { %14 = vsyncpa [#allocation10], 0 }
   0x8   :  { %15 = vsyncpa [#allocation13], 0 }
   0x9   :  { %17 = vsyncpa [#allocation13 + $0x1], 0 }
   0xa   :  { %18 = vsyncpa [#allocation5], 0 }
   0xb   :  { %20 = vsyncpa [#allocation5 + $0x1], 0  ;;  %s16837_s24 = smov 0   ;;  %s16839_s25 = smov 0  }
   0xc   :  { %s16841_s26 = smov 0   ;;  %s16843_s27 = smov 0  }
   0xd LB: > { %s16858_s28 = sadd.s32 4294967295, %s16778_s27   ;;  %s10208_s29 = sadd.s32 4294967294, %s16778_s27   ;;  %s16778_s27 = sphi %s16843_s27, %s18675_s27   ;;  %s16774_s26 = sphi %s16841_s26, %s18679_s26   ;;  %s16770_s25 = sphi %s16839_s25, %s18678_s25   ;;  %s16766_s24 = sphi %s16837_s24, %s18677_s24  }
   0xe   : > { %p151_p0 = scmp.ne.s32.totalorder %s16770_s25, %s16766_s24  ;;  %p18606_p1 = scmp.eq.s32.totalorder %s16858_s28, 0 }
   0xf   : > { %p201_p2 = scmp.eq.s32.totalorder %s16858_s28, 1  ;;  %p207_p3 = scmp.eq.s32.totalorder %s10208_s29, 1 }
  0x10   : > { %p16867_p4 = por %p18606_p1, %p151_p0  ;;  %p10209_p5 = scmp.ge.s32.totalorder %s16778_s27, 1 }
  0x11   : > { %p16872_p6 = por %p207_p3, %p151_p0  ;;  %p214_p7 = scmp.lt.s32.totalorder %s16778_s27, 3 }
  0x12   : > { %s18616_s1 = sld [smem:[#allocation42_spill]]  ;;  %s16780_s13 = smov [#allocation6]  }
  0x13   : > { %p16881_p9 = pnand %p10209_p5, %p214_p7  ;;  %s241_s14 = sshll.u32 %s16780_s13, 4  ;;  %s242_s14 = int_to_ptr.vmem [resolvable:$true] %s241_s14 }
  0x14   : > { %s18619_s3 = sld [smem:[#allocation43_spill]]  ;;  %s16781_s19 = smov 512  }
  0x15   : > { %p16399_p10 = pneg %p16881_p9  ;;  %s16782_s20 = smov 32  }
  0x16   : > { %s16783_s21 = smov [#allocation9]   ;;  %s16784_s23 = smov 256  }
  0x17   : > { %p16889_p11 = pnand %p16399_p10, %p18606_p1  ;;  %s267_s22 = sshll.u32 %s16783_s21, 4  ;;  %s268_s22 = int_to_ptr.vmem [resolvable:$true] %s267_s22 }
  0x18   : > { %s239_s11 = sshll.u32 %s18616_s1, 4  ;;  %s16785_s29 = smov 16   ;;  %s240_s11 = int_to_ptr.hbm [resolvable:$true] %s239_s11 }
  0x19   : > { %16405 = dma.hbm_to_vmem [thread:$0]  (!%p16889_p11), %s240_s11, 57344, %s242_s14, [#allocation7], %s16781_s19, %s16781_s19, %s16782_s20  }
  0x1a   : > { %s265_s18 = sshll.u32 %s18619_s3, 4  ;;  %s16902_s9 = sadd.s32 1, %s16778_s27   ;;  %s266_s18 = int_to_ptr.hbm [resolvable:$true] %s265_s18 }
  0x1b   : > { %16411 = dma.hbm_to_vmem [thread:$0]  (!%p16889_p11), %s266_s18, 32768, %s268_s22, [#allocation10], %s16784_s23, %s16784_s23, %s16785_s29  }
  0x1c   : > { %18620 = sst [smem:[#allocation21_spill]] %s16902_s9  ;;  %s135_s10 = ssub.s32 %s16778_s27, %s16902_s9 }
  0x1d   : > { %p136_p13 = scmp.eq.s32.totalorder %s135_s10, 0  ;;  %s138_s13 = sadd.s32 1, %s16774_s26 }
  0x1e   : > { %p145_p0 = scmp.ne.s32.totalorder %s16774_s26, %s16770_s25  ;;  %p146_p3 = scmp.eq.s32.totalorder %s16778_s27, 0 }
  0x1f   : > { %s16911_s11 = scalar_select %p136_p13, %s16774_s26, %s138_s13  }
  0x20   : > { %p16913_p5 = por %p146_p3, %p145_p0  ;;  %p16919_p7 = por %p201_p2, %p145_p0 }
  0x21   : > { %18621 = sst [smem:[#allocation22_spill]] %s16911_s11  ;;  %p16431_p10 = scmp.lt.s32.totalorder %s16778_s27, 2 }
  0x22   : > { %s293_s17 = sand.u32 1, %s16778_s27   ;;  %s18603_s18 = sand.u32 1, %s16774_s26  }
  0x23   : > { %s10216_s19 = sshll.u32 %s18603_s18, 12  ;;  %s15144_s20 = sshll.u32 %s16778_s27, 6 }
  0x24   : > { %s18624_s5 = sld [smem:[#allocation44_spill]]  ;;  %s297_s10 = scalar_lea.vmem [#allocation12], %s10216_s19 }
  0x25   : > { %s305_s13 = sshll.u32 %s297_s10, 4  ;;  %p16934_p2 = pnand %p16431_p10, %p16913_p5  ;;  %s306_s13 = int_to_ptr.vmem [resolvable:$true] %s305_s13 }
  0x26   : > { %s18626_s0 = sld [smem:[#allocation41_spill]]  ;;  %s16941_s9 = scalar_lea.sflag [#allocation13], %s293_s17 }
  0x27   : > { %p16554_p0 = pneg %p16934_p2 }
  0x2a   : > { %s302_s23 = scalar_lea.hbm %s18624_s5, %s15144_s20  ;;  %s16557_s22 = scalar_lea.hbm %s18624_s5, 8192 }
  0x2b   : > { %s303_s29 = sshll.u32 %s302_s23, 4  ;;  %s304_s29 = int_to_ptr.hbm [resolvable:$true] %s303_s29 }
  0x2c   : > { %s225_s18 = sshll.u32 %s18626_s0, 4  ;;  %s16550_s21 = sshra.s32 %s304_s29, 4  ;;  %s16551_s21 = int_to_ptr.hbm [resolvable:$true] %s16550_s21  ;;  %s226_s18 = int_to_ptr.hbm [resolvable:$true] %s225_s18 }
  0x2d   : > { %s16552_s20 = scalar_lea.hbm %s16551_s21, 4096  ;;  %p16558_p10 = scmp.lt.s32.totalorder %s16551_s21, %s18624_s5 }
  0x2e   : > { %p16553_p13 = scmp.ne.s32.totalorder %s16551_s21, %s16552_s20  ;;  %p16559_p12 = scmp.lt.s32.totalorder %s16557_s22, %s16552_s20 }
  0x30   : > { %p16555_p3 = pnand %p16554_p0, %p16553_p13  ;;  %p16560_p8 = por %p16559_p12, %p16558_p10 }
  0x32   : > { %p16556_p5 = pneg %p16555_p3 }
  0x34   : > { %p16561_p1 = pnand %p16560_p8, %p16556_p5 }
  0x36   : > { %16564 = shalt.err (!%p16561_p1)
}
  0x37   : > { %s16786_s17 = smov 2048   ;;  %s16787_s23 = smov 1024  }
  0x38   : > { %s16788_s10 = smov 64   ;;  %s16789_s14 = smov [#allocation3]  }
  0x39   : > { %16418 = dma.hbm_to_vmem [thread:$0]  (!%p16934_p2), %s304_s29, 65536, %s306_s13, %s16941_s9, %s16786_s17, %s16787_s23, %s16788_s10  }
  0x3a   : > { %s227_s19 = sshll.u32 %s16789_s14, 4  ;;  %s16790_s21 = smov 448   ;;  %s228_s19 = int_to_ptr.vmem [resolvable:$true] %s227_s19 }
  0x3b   : > { %s16791_s20 = smov 28   ;;  %s254_s11 = sshll.u32 %s18597_s2, 4  ;;  %s255_s11 = int_to_ptr.hbm [resolvable:$true] %s254_s11 }
  0x3c   : > { %16402 = dma.hbm_to_vmem [thread:$0]  (!%p16889_p11), %s226_s18, 896, %s228_s19, [#allocation4], %s16790_s21, %s16790_s21, %s16791_s20  }
  0x3d   : > { %s16792_s0 = smov [#allocation8]   ;;  %s280_s17 = sshll.u32 %s18599_s4, 4  ;;  %s281_s17 = int_to_ptr.hbm [resolvable:$true] %s280_s17 }
  0x3e   : > { %s256_s5 = sshll.u32 %s16792_s0, 4  ;;  %s16793_s23 = smov [#allocation11]   ;;  %s257_s5 = int_to_ptr.vmem [resolvable:$true] %s256_s5 }
  0x3f   : > { %16408 = dma.hbm_to_vmem [thread:$0]  (!%p16889_p11), %s255_s11, 128, %s257_s5, [#allocation7]  }
  0x40   : > { %s282_s10 = sshll.u32 %s16793_s23, 4  ;;  %s18627_s14 = sand.u32 1, %s16774_s26   ;;  %s283_s10 = int_to_ptr.vmem [resolvable:$true] %s282_s10 }
  0x41   : > { %s10219_s18 = sshll.u32 %s18627_s14, 4  ;;  %s10220_s19 = sshll.u32 %s16778_s27, 4 }
  0x42   : > { %16414 = dma.hbm_to_vmem [thread:$0]  (!%p16889_p11), %s281_s17, 64, %s283_s10, [#allocation10]  }
  0x43   : > { %s319_s21 = scalar_lea.vmem [#allocation14], %s10219_s18  ;;  %s323_s3 = scalar_lea.hbm %s18601_s6, %s10220_s19 }
  0x44   : > { %s327_s20 = sshll.u32 %s319_s21, 4  ;;  %s325_s29 = sshll.u32 %s323_s3, 4  ;;  %s328_s20 = int_to_ptr.vmem [resolvable:$true] %s327_s20  ;;  %s326_s29 = int_to_ptr.hbm [resolvable:$true] %s325_s29 }
  0x45   : > { %s16670_s5 = sshra.s32 %s326_s29, 4  ;;  %s16677_s17 = scalar_lea.hbm %s18601_s6, 32  ;;  %s16671_s5 = int_to_ptr.hbm [resolvable:$true] %s16670_s5 }
  0x46   : > { %s16672_s11 = scalar_lea.hbm %s16671_s5, 16  ;;  %p16678_p11 = scmp.lt.s32.totalorder %s16671_s5, %s18601_s6 }
  0x47   : > { %p16673_p1 = scmp.ne.s32.totalorder %s16671_s5, %s16672_s11  ;;  %p16679_p13 = scmp.lt.s32.totalorder %s16677_s17, %s16672_s11 }
  0x49   : > { %p16675_p8 = pnand %p16673_p1, %p16554_p0  ;;  %p16680_p3 = por %p16679_p13, %p16678_p11 }
  0x4b   : > { %p16676_p12 = pneg %p16675_p8 }
  0x4d   : > { %p16681_p5 = pnand %p16680_p3, %p16676_p12 }
  0x4f   : > { %16684 = shalt.err (!%p16681_p5)
}
  0x50   : > { %16421 = dma.hbm_to_vmem [thread:$0]  (!%p16934_p2), %s326_s29, 256, %s328_s20, %s16941_s9  }
  0x51   : > { %336 = sbr.rel (%p16881_p9) target bundleno = 1867 (0x74b), region = 48  ;;  %p18628_p0 = scmp.eq.s32.totalorder (!%p16881_p9), %s16858_s28, 0 }
  0x56   : > { %16745 = dma.done.wait (%p18628_p0), [#allocation4], 896   ;;  %p18629_p10 = pmov %p18628_p0 }
  0x57   : > { %p18630_p1 = pmov %p18628_p0 }
  0x58   : > { %16747 = vsyncadd (%p18629_p10), [#allocation4], 4294966400 }
  0x59   : > { %16749 = dma.done.wait (%p18630_p1), [#allocation7], 57472   ;;  %p18631_p8 = pmov %p18628_p0 }
  0x5a   : > { %p18632_p12 = pmov %p18628_p0 }
  0x5b   : > { %16751 = vsyncadd (%p18631_p8), [#allocation7], 4294909824 }
  0x5c   : > { %16753 = dma.done.wait (%p18632_p12), [#allocation10], 32832   ;;  %p18633_p2 = pmov %p18628_p0 }
  0x5d   : > { %s363_s1 = sand.u32 1, %s16858_s28   ;;  %s17003_s12 = sand.u32 1, %s16770_s25  }
  0x5e   : > { %16755 = vsyncadd (%p18633_p2), [#allocation10], 4294934464  ;;  %s10227_s9 = sshll.u32 %s17003_s12, 12  ;;  %s364_s14 = scalar_lea.sflag [#allocation13], %s363_s1 }
  0x5f   : > { %s17006_s18 = scalar_lea.vmem [#allocation12], %s10227_s9 }
  0x60   : > { %16757 = dma.done.wait (%p16867_p4), %s364_s14, 65792  }
  0x61   : > { %16759 = vsyncadd (%p16867_p4), %s364_s14, 4294901504  ;;  %s10228_s19 = sshll.u32 %s17003_s12, 4  ;;  %s10229_s21 = sshll.u32 %s17003_s12, 8 }
  0x62   : > { %s17014_s20 = scalar_lea.vmem [#allocation14], %s10228_s19  ;;  %s17016_s0 = scalar_lea.vmem [#allocation15], %s10229_s21 }
  0x63   : > { %p18634_p9 = scmp.ne.s32.totalorder %s16858_s28, 0 }
  0x65   : > { %420 = sbr.rel (%p18634_p9) target bundleno = 1159 (0x487), region = 80 }
  0x6a   : > { %v10485_v0 = vld [vmem:[#allocation6 + $0x1c0] sm:$0xf] }
  0x6b   : > { %v15212_v1 = vld [vmem:[#allocation6 + $0x1dc] sm:$0xf0] }
  0x6c   : > { %v10741_v2 = vld [vmem:[#allocation6 + $0x3c0] sm:$0xf]  ;;  %v10486_v3 = vor.u32 %v15212_v1, %v10485_v0 }
  0x6d   : > { %v15276_v4 = vld [vmem:[#allocation6 + $0x3dc] sm:$0xf0] }
  0x6e   : > { %v10997_v5 = vld [vmem:[#allocation6 + $0x5c0] sm:$0xf]  ;;  %v10742_v7 = vor.u32 %v15276_v4, %v10741_v2  ;;  %3171 = vmatpush.bf16.msra.mxu0 %v10486_v3 }
  0x6f   : > { %v15340_v6 = vld [vmem:[#allocation6 + $0x5dc] sm:$0xf0] }
  0x70   : > { %v10998_v8 = vor.u32 %v15340_v6, %v10997_v5  ;;  %v11253_v9 = vld [vmem:[#allocation6 + $0x7c0] sm:$0xf]  ;;  %3185 = vmatpush.bf16.msra.mxu1 %v10742_v7 }
  0x71   : > { %v15404_v10 = vld [vmem:[#allocation6 + $0x7dc] sm:$0xf0] }
  0x72   : > { %v10453_v11 = vld [vmem:[#allocation6 + $0x180] sm:$0xf]  ;;  %v11254_v12 = vor.u32 %v15404_v10, %v11253_v9  ;;  %3199 = vmatpush.bf16.msra.mxu2 %v10998_v8 }
  0x73   : > { %v15204_v13 = vld [vmem:[#allocation6 + $0x19c] sm:$0xf0] }
  0x74   : > { %v10709_v14 = vld [vmem:[#allocation6 + $0x380] sm:$0xf]  ;;  %v10454_v16 = vor.u32 %v15204_v13, %v10453_v11  ;;  %3213 = vmatpush.bf16.msra.mxu3 %v11254_v12 }
  0x75   : > { %v15268_v15 = vld [vmem:[#allocation6 + $0x39c] sm:$0xf0] }
  0x76   : > { %v10710_v17 = vor.u32 %v15268_v15, %v10709_v14  ;;  %v10965_v18 = vld [vmem:[#allocation6 + $0x580] sm:$0xf]  ;;  %3172 = vmatpush.bf16.msra.mxu0 %v10454_v16 }
  0x77   : > { %v15332_v19 = vld [vmem:[#allocation6 + $0x59c] sm:$0xf0] }
  0x78   : > { %v11221_v20 = vld [vmem:[#allocation6 + $0x780] sm:$0xf]  ;;  %v10966_v21 = vor.u32 %v15332_v19, %v10965_v18  ;;  %3186 = vmatpush.bf16.msra.mxu1 %v10710_v17 }
  0x79   : > { %v15396_v22 = vld [vmem:[#allocation6 + $0x79c] sm:$0xf0] }
  0x7a   : > { %v10421_v23 = vld [vmem:[#allocation6 + $0x140] sm:$0xf]  ;;  %v11222_v25 = vor.u32 %v15396_v22, %v11221_v20  ;;  %3200 = vmatpush.bf16.msra.mxu2 %v10966_v21 }
  0x7b   : > { %v15196_v24 = vld [vmem:[#allocation6 + $0x15c] sm:$0xf0] }
  0x7c   : > { %v10677_v26 = vld [vmem:[#allocation6 + $0x340] sm:$0xf]  ;;  %v10422_v29 = vor.u32 %v15196_v24, %v10421_v23  ;;  %3214 = vmatpush.bf16.msra.mxu3 %v11222_v25 }
  0x7d   : > { %v15260_v27 = vld [vmem:[#allocation6 + $0x35c] sm:$0xf0] }
  0x7e   : > { %v10933_v28 = vld [vmem:[#allocation6 + $0x540] sm:$0xf]  ;;  %v10678_v33 = vor.u32 %v15260_v27, %v10677_v26  ;;  %3173 = vmatpush.bf16.msra.mxu0 %v10422_v29 }
  0x7f   : > { %v15324_v30 = vld [vmem:[#allocation6 + $0x55c] sm:$0xf0] }
  0x80   : > { %v11189_v31 = vld [vmem:[#allocation6 + $0x740] sm:$0xf]  ;;  %v10934_v34 = vor.u32 %v15324_v30, %v10933_v28  ;;  %3187 = vmatpush.bf16.msra.mxu1 %v10678_v33 }
  0x81   : > { %v15388_v32 = vld [vmem:[#allocation6 + $0x75c] sm:$0xf0] }
  0x82   : > { %v10389_v35 = vld [vmem:[#allocation6 + $0x100] sm:$0xf]  ;;  %v11190_v38 = vor.u32 %v15388_v32, %v11189_v31  ;;  %3201 = vmatpush.bf16.msra.mxu2 %v10934_v34 }
  0x83   : > { %v15188_v36 = vld [vmem:[#allocation6 + $0x11c] sm:$0xf0] }
  0x84   : > { %v10645_v37 = vld [vmem:[#allocation6 + $0x300] sm:$0xf]  ;;  %v10390_v44 = vor.u32 %v15188_v36, %v10389_v35  ;;  %3215 = vmatpush.bf16.msra.mxu3 %v11190_v38  ;;  %v10487_v38 = vld [vmem:[#allocation6 + $0x1e0] sm:$0xf0] }
  0x85   : > { %v15252_v39 = vld [vmem:[#allocation6 + $0x31c] sm:$0xf0] }
  0x86   : > { %v10901_v40 = vld [vmem:[#allocation6 + $0x500] sm:$0xf]  ;;  %v10646_v45 = vor.u32 %v15252_v39, %v10645_v37  ;;  %3174 = vmatpush.bf16.msra.mxu0 %v10390_v44  ;;  %v15208_v37 = vld [vmem:[#allocation6 + $0x1c4] sm:$0xf] }
  0x87   : > { %v15316_v41 = vld [vmem:[#allocation6 + $0x51c] sm:$0xf0] }
  0x88   : > { %v11157_v42 = vld [vmem:[#allocation6 + $0x700] sm:$0xf]  ;;  %v10902_v46 = vor.u32 %v15316_v41, %v10901_v40  ;;  %3188 = vmatpush.bf16.msra.mxu1 %v10646_v45 }
  0x89   : > { %v15380_v43 = vld [vmem:[#allocation6 + $0x71c] sm:$0xf0] }
  0x8a   : > { %v10357_v47 = vld [vmem:[#allocation6 + $0xc0] sm:$0xf]  ;;  %v11158_v50 = vor.u32 %v15380_v43, %v11157_v42  ;;  %3202 = vmatpush.bf16.msra.mxu2 %v10902_v46 }
  0x8b   : > { %v15180_v48 = vld [vmem:[#allocation6 + $0xdc] sm:$0xf0] }
  0x8c   : > { %v10613_v49 = vld [vmem:[#allocation6 + $0x2c0] sm:$0xf]  ;;  %v10358_v56 = vor.u32 %v15180_v48, %v10357_v47  ;;  %3216 = vmatpush.bf16.msra.mxu3 %v11158_v50  ;;  %v10490_v48 = vor.u32 %v15208_v37, %v10487_v38  ;;  %v15200_v50 = vld [vmem:[#allocation6 + $0x184] sm:$0xf] }
  0x8d   : > { %v15244_v51 = vld [vmem:[#allocation6 + $0x2dc] sm:$0xf0] }
  0x8e   : > { %v10869_v52 = vld [vmem:[#allocation6 + $0x4c0] sm:$0xf]  ;;  %v10614_v57 = vor.u32 %v15244_v51, %v10613_v49  ;;  %3175 = vmatpush.bf16.msra.mxu0 %v10358_v56  ;;  %v10455_v51 = vld [vmem:[#allocation6 + $0x1a0] sm:$0xf0] }
  0x8f   : > { %v15308_v53 = vld [vmem:[#allocation6 + $0x4dc] sm:$0xf0] }
  0x90   : > { %v11125_v54 = vld [vmem:[#allocation6 + $0x6c0] sm:$0xf]  ;;  %v10870_v58 = vor.u32 %v15308_v53, %v10869_v52  ;;  %3189 = vmatpush.bf16.msra.mxu1 %v10614_v57  ;;  %v10233_v52 = vld [vmem:[#allocation3] sm:$0xf]  ;;  %v15148_v53 = vld [vmem:[#allocation3 + $0x18] sm:$0xf0] }
  0x91   : > { %v15372_v55 = vld [vmem:[#allocation6 + $0x6dc] sm:$0xf0]  ;;  %v17020_v57 = vor.u32 %v15148_v53, %v10233_v52 }
  0x92   : > { %v10325_v59 = vld [vmem:[#allocation6 + $0x80] sm:$0xf]  ;;  %v11126_v62 = vor.u32 %v15372_v55, %v11125_v54  ;;  %3203 = vmatpush.bf16.msra.mxu2 %v10870_v58  ;;  %v10241_v54 = vld [vmem:[#allocation3 + $0x8] sm:$0xf]  ;;  %v15149_v58 = vld [vmem:[#allocation3 + $0x20] sm:$0xf0] }
  0x93   : > { %v15172_v60 = vld [vmem:[#allocation6 + $0x9c] sm:$0xf0] }
  0x94   : > { %v10581_v61 = vld [vmem:[#allocation6 + $0x280] sm:$0xf]  ;;  %v10326_v4 = vor.u32 %v15172_v60, %v10325_v59  ;;  %3217 = vmatpush.bf16.msra.mxu3 %v11126_v62 }
  0x95   : > { %v15236_v63 = vld [vmem:[#allocation6 + $0x29c] sm:$0xf0] }
  0x96   : > { %v10837_v0 = vld [vmem:[#allocation6 + $0x480] sm:$0xf]  ;;  %v10582_v5 = vor.u32 %v15236_v63, %v10581_v61  ;;  %3176 = vmatpush.bf16.msra.mxu0 %v10326_v4  ;;  %v15192_v4 = vld [vmem:[#allocation6 + $0x144] sm:$0xf] }
  0x97   : > { %v15300_v1 = vld [vmem:[#allocation6 + $0x49c] sm:$0xf0] }
  0x98   : > { %v11093_v2 = vld [vmem:[#allocation6 + $0x680] sm:$0xf]  ;;  %v10838_v6 = vor.u32 %v15300_v1, %v10837_v0  ;;  %3190 = vmatpush.bf16.msra.mxu1 %v10582_v5  ;;  %v17022_v0 = vor.u32 %v15149_v58, %v10241_v54  ;;  %v10458_v1 = vor.u32 %v15200_v50, %v10455_v51  ;;  %v10423_v5 = vld [vmem:[#allocation6 + $0x160] sm:$0xf0] }
  0x99   : > { %v15364_v3 = vld [vmem:[#allocation6 + $0x69c] sm:$0xf0] }
  0x9a   : > { %v10293_v7 = vld [vmem:[#allocation6 + $0x40] sm:$0xf]  ;;  %v11094_v10 = vor.u32 %v15364_v3, %v11093_v2  ;;  %3204 = vmatpush.bf16.msra.mxu2 %v10838_v6  ;;  %v15145_v6 = vld [vmem:[#allocation3 + $0x4] sm:$0xf] }
  0x9b   : > { %v15164_v8 = vld [vmem:[#allocation6 + $0x5c] sm:$0xf0] }
  0x9c   : > { %v10549_v9 = vld [vmem:[#allocation6 + $0x240] sm:$0xf]  ;;  %v10294_v16 = vor.u32 %v15164_v8, %v10293_v7  ;;  %3218 = vmatpush.bf16.msra.mxu3 %v11094_v10  ;;  %v10235_v7 = vld [vmem:[#allocation3 + $0x1c] sm:$0xf0] }
  0x9d   : > { %v15228_v11 = vld [vmem:[#allocation6 + $0x25c] sm:$0xf0] }
  0x9e   : > { %v10805_v12 = vld [vmem:[#allocation6 + $0x440] sm:$0xf]  ;;  %v10550_v19 = vor.u32 %v15228_v11, %v10549_v9  ;;  %3177 = vmatpush.bf16.msra.mxu0 %v10294_v16  ;;  %v17026_v11 = vor.u32 %v15145_v6, %v10235_v7  ;;  %v15152_v7 = vld [vmem:[#allocation6 + $0x4] sm:$0xf] }
  0x9f   : > { %v15292_v13 = vld [vmem:[#allocation6 + $0x45c] sm:$0xf0] }
  0xa0   : > { %v11061_v14 = vld [vmem:[#allocation6 + $0x640] sm:$0xf]  ;;  %v10806_v20 = vor.u32 %v15292_v13, %v10805_v12  ;;  %3191 = vmatpush.bf16.msra.mxu1 %v10550_v19  ;;  %v15146_v19 = vld [vmem:[#allocation3 + $0xc] sm:$0xf] }
  0xa1   : > { %v15356_v15 = vld [vmem:[#allocation6 + $0x65c] sm:$0xf0] }
  0xa2   : > { %v10261_v17 = vld [vmem:[#allocation6] sm:$0xf]  ;;  %v11062_v24 = vor.u32 %v15356_v15, %v11061_v14  ;;  %3205 = vmatpush.bf16.msra.mxu2 %v10806_v20  ;;  %v10243_v20 = vld [vmem:[#allocation3 + $0x24] sm:$0xf0] }
  0xa3   : > { %v15156_v18 = vld [vmem:[#allocation6 + $0x1c] sm:$0xf0] }
  0xa4   : > { %v10517_v21 = vld [vmem:[#allocation6 + $0x200] sm:$0xf]  ;;  %v10262_v31 = vor.u32 %v15156_v18, %v10261_v17  ;;  %3219 = vmatpush.bf16.msra.mxu3 %v11062_v24  ;;  %v10426_v17 = vor.u32 %v15192_v4, %v10423_v5 }
  0xa5   : > { %v15220_v22 = vld [vmem:[#allocation6 + $0x21c] sm:$0xf0] }
  0xa6   : > { %v10773_v23 = vld [vmem:[#allocation6 + $0x400] sm:$0xf]  ;;  %v10518_v35 = vor.u32 %v15220_v22, %v10517_v21  ;;  %3178 = vmatpush.bf16.msra.mxu0 %v10262_v31  ;;  %v15184_v21 = vld [vmem:[#allocation6 + $0x104] sm:$0xf] }
  0xa7   : > { %v15284_v25 = vld [vmem:[#allocation6 + $0x41c] sm:$0xf0]  ;;  %v10391_v22 = vld [vmem:[#allocation6 + $0x120] sm:$0xf0] }
  0xa8   : > { %v11029_v26 = vld [vmem:[#allocation6 + $0x600] sm:$0xf]  ;;  %v10774_v36 = vor.u32 %v15284_v25, %v10773_v23  ;;  %3192 = vmatpush.bf16.msra.mxu1 %v10518_v35  ;;  %v17029_v23 = vor.u32 %v15146_v19, %v10243_v20  ;;  %v10359_v35 = vld [vmem:[#allocation6 + $0xe0] sm:$0xf0] }
  0xa9   : > { %v15348_v27 = vld [vmem:[#allocation6 + $0x61c] sm:$0xf0]  ;;  %3179 = vmatmul.bf16.vlgmr.msra.gmra.mxu0 %v17020_v57  ;;  %v11511_v19 = vld [vmem:[#allocation6 + $0x9e0] sm:$0xf0] }
  0xaa   : > { %v11509_v28 = vld [vmem:[#allocation6 + $0x9c0] sm:$0xf]  ;;  %v11030_v39 = vor.u32 %v15348_v27, %v11029_v26  ;;  %3206 = vmatpush.bf16.msra.mxu2 %v10774_v36 }
  0xab   : > { %v15468_v29 = vld [vmem:[#allocation6 + $0x9dc] sm:$0xf0]  ;;  %3193 = vmatmul.bf16.vlgmr.msra.gmra.mxu1 %v17026_v11 }
  0xac   : > { %v11765_v30 = vld [vmem:[#allocation6 + $0xbc0] sm:$0xf]  ;;  %v11510_v40 = vor.u32 %v15468_v29, %v11509_v28  ;;  %3220 = vmatpush.bf16.msra.mxu3 %v11030_v39 }
  0xad   : > { %v15532_v32 = vld [vmem:[#allocation6 + $0xbdc] sm:$0xf0]  ;;  %3207 = vmatmul.bf16.vlgmr.msra.gmra.mxu2 %v17022_v0 }
  0xae   : > { %v12021_v33 = vld [vmem:[#allocation6 + $0xdc0] sm:$0xf]  ;;  %v11766_v43 = vor.u32 %v15532_v32, %v11765_v30  ;;  %3227 = vmatpush.bf16.msrb.mxu0 %v11510_v40  ;;  %v10394_v30 = vor.u32 %v15184_v21, %v10391_v22  ;;  %v10249_v22 = vld [vmem:[#allocation3 + $0x10] sm:$0xf] }
  0xaf   : > { %v15596_v34 = vld [vmem:[#allocation6 + $0xddc] sm:$0xf0]  ;;  %3221 = vmatmul.bf16.vlgmr.msra.gmra.mxu3 %v17029_v23 }
  0xb0   : > { %v11477_v41 = vld [vmem:[#allocation6 + $0x980] sm:$0xf]  ;;  %v12022_v44 = vor.u32 %v15596_v34, %v12021_v33  ;;  %3241 = vmatpush.bf16.msrb.mxu1 %v11766_v43  ;;  %3269 = vmatpush.bf16.msrb.mxu3 %v10490_v48  ;;  %v15176_v34 = vld [vmem:[#allocation6 + $0xc4] sm:$0xf] }
  0xb1   : > { %v15460_v42 = vld [vmem:[#allocation6 + $0x99c] sm:$0xf0] }
  0xb2   : > { %v11733_v45 = vld [vmem:[#allocation6 + $0xb80] sm:$0xf]  ;;  %v11478_v55 = vor.u32 %v15460_v42, %v11477_v41  ;;  %3255 = vmatpush.bf16.msrb.mxu2 %v12022_v44  ;;  %v10362_v42 = vor.u32 %v15176_v34, %v10359_v35  ;;  %v10711_v34 = vld [vmem:[#allocation6 + $0x3a0] sm:$0xf0] }
  0xb3   : > { %v15524_v46 = vld [vmem:[#allocation6 + $0xb9c] sm:$0xf0]  ;;  %v15328_v35 = vld [vmem:[#allocation6 + $0x584] sm:$0xf] }
  0xb4   : > { %v11989_v47 = vld [vmem:[#allocation6 + $0xd80] sm:$0xf]  ;;  %v11734_v59 = vor.u32 %v15524_v46, %v11733_v45  ;;  %3228 = vmatpush.bf16.msrb.mxu0 %v11478_v55  ;;  %3270 = vmatpush.bf16.msrb.mxu3 %v10458_v1  ;;  %v15168_v46 = vld [vmem:[#allocation6 + $0x84] sm:$0xf] }
  0xb5   : > { %v15588_v49 = vld [vmem:[#allocation6 + $0xd9c] sm:$0xf0] }
  0xb6   : > { %v11445_v56 = vld [vmem:[#allocation6 + $0x940] sm:$0xf]  ;;  %v11990_v60 = vor.u32 %v15588_v49, %v11989_v47  ;;  %3242 = vmatpush.bf16.msrb.mxu1 %v11734_v59  ;;  %v10327_v47 = vld [vmem:[#allocation6 + $0xa0] sm:$0xf0] }
  0xb7   : > { %v15452_v61 = vld [vmem:[#allocation6 + $0x95c] sm:$0xf0]  ;;  %v10330_v54 = vor.u32 %v15168_v46, %v10327_v47  ;;  %v15160_v59 = vld [vmem:[#allocation6 + $0x44] sm:$0xf] }
  0xb8   : > { %v11701_v62 = vld [vmem:[#allocation6 + $0xb40] sm:$0xf]  ;;  %v11446_v8 = vor.u32 %v15452_v61, %v11445_v56  ;;  %3256 = vmatpush.bf16.msrb.mxu2 %v11990_v60  ;;  %3271 = vmatpush.bf16.msrb.mxu3 %v10426_v17  ;;  %v10295_v60 = vld [vmem:[#allocation6 + $0x60] sm:$0xf0] }
  0xb9   : > { %v15516_v63 = vld [vmem:[#allocation6 + $0xb5c] sm:$0xf0]  ;;  %v11255_v17 = vld [vmem:[#allocation6 + $0x7e0] sm:$0xf0] }
  0xba   : > { %v11957_v2 = vld [vmem:[#allocation6 + $0xd40] sm:$0xf]  ;;  %v11702_v12 = vor.u32 %v15516_v63, %v11701_v62  ;;  %3229 = vmatpush.bf16.msrb.mxu0 %v11446_v8  ;;  %v10298_v8 = vor.u32 %v15160_v59, %v10295_v60 }
  0xbb   : > { %v15580_v3 = vld [vmem:[#allocation6 + $0xd5c] sm:$0xf0] }
  0xbc   : > { %v11413_v9 = vld [vmem:[#allocation6 + $0x900] sm:$0xf]  ;;  %v11958_v13 = vor.u32 %v15580_v3, %v11957_v2  ;;  %3243 = vmatpush.bf16.msrb.mxu1 %v11702_v12  ;;  %3272 = vmatpush.bf16.msrb.mxu3 %v10394_v30  ;;  %v10743_v12 = vld [vmem:[#allocation6 + $0x3e0] sm:$0xf0]  ;;  %v10251_v30 = vld [vmem:[#allocation3 + $0x2c] sm:$0xf0] }
  0xbd   : > { %v15444_v10 = vld [vmem:[#allocation6 + $0x91c] sm:$0xf0] }
  0xbe   : > { %v11669_v14 = vld [vmem:[#allocation6 + $0xb00] sm:$0xf]  ;;  %v11414_v24 = vor.u32 %v15444_v10, %v11413_v9  ;;  %3257 = vmatpush.bf16.msrb.mxu2 %v11958_v13  ;;  %v10263_v9 = vld [vmem:[#allocation6 + $0x20] sm:$0xf0] }
  0xbf   : > { %v15508_v15 = vld [vmem:[#allocation6 + $0xb1c] sm:$0xf0]  ;;  %v15272_v10 = vld [vmem:[#allocation6 + $0x3c4] sm:$0xf] }
  0xc0   : > { %v11925_v16 = vld [vmem:[#allocation6 + $0xd00] sm:$0xf]  ;;  %v11670_v25 = vor.u32 %v15508_v15, %v11669_v14  ;;  %3230 = vmatpush.bf16.msrb.mxu0 %v11414_v24  ;;  %3273 = vmatpush.bf16.msrb.mxu3 %v10362_v42  ;;  %v15336_v13 = vld [vmem:[#allocation6 + $0x5c4] sm:$0xf]  ;;  %v15150_v24 = vld [vmem:[#allocation3 + $0x28] sm:$0xf0] }
  0xc1   : > { %v15572_v18 = vld [vmem:[#allocation6 + $0xd1c] sm:$0xf0]  ;;  %v10999_v14 = vld [vmem:[#allocation6 + $0x5e0] sm:$0xf0] }
  0xc2   : > { %v11926_v26 = vor.u32 %v15572_v18, %v11925_v16  ;;  %v11381_v27 = vld [vmem:[#allocation6 + $0x8c0] sm:$0xf]  ;;  %3244 = vmatpush.bf16.msrb.mxu1 %v11670_v25  ;;  %v15400_v15 = vld [vmem:[#allocation6 + $0x7c4] sm:$0xf] }
  0xc3   : > { %v15436_v28 = vld [vmem:[#allocation6 + $0x8dc] sm:$0xf0]  ;;  %v15464_v18 = vld [vmem:[#allocation6 + $0x9c4] sm:$0xf] }
  0xc4   : > { %v11637_v29 = vld [vmem:[#allocation6 + $0xac0] sm:$0xf]  ;;  %v11382_v36 = vor.u32 %v15436_v28, %v11381_v27  ;;  %3258 = vmatpush.bf16.msrb.mxu2 %v11926_v26  ;;  %3274 = vmatpush.bf16.msrb.mxu3 %v10330_v54  ;;  %v10266_v26 = vor.u32 %v15152_v7, %v10263_v9  ;;  %v10746_v27 = vor.u32 %v15272_v10, %v10743_v12  ;;  %v15151_v28 = vld [vmem:[#allocation3 + $0x30] sm:$0xf0]  ;;  %v11191_v54 = vld [vmem:[#allocation6 + $0x760] sm:$0xf0] }
  0xc5   : > { %v15500_v31 = vld [vmem:[#allocation6 + $0xadc] sm:$0xf0]  ;;  %v15240_v10 = vld [vmem:[#allocation6 + $0x2c4] sm:$0xf] }
  0xc6   : > { %v11893_v32 = vld [vmem:[#allocation6 + $0xcc0] sm:$0xf]  ;;  %v11638_v37 = vor.u32 %v15500_v31, %v11637_v29  ;;  %3231 = vmatpush.bf16.msrb.mxu0 %v11382_v36  ;;  %v15147_v29 = vld [vmem:[#allocation3 + $0x14] sm:$0xf]  ;;  %v11002_v31 = vor.u32 %v15336_v13, %v10999_v14  ;;  %v11514_v36 = vor.u32 %v15464_v18, %v11511_v19  ;;  %v10615_v12 = vld [vmem:[#allocation6 + $0x2e0] sm:$0xf0] }
  0xc7   : > { %v15564_v33 = vld [vmem:[#allocation6 + $0xcdc] sm:$0xf0]  ;;  %v17036_v42 = vor.u32 %v15147_v29, %v10251_v30  ;;  %v15304_v13 = vld [vmem:[#allocation6 + $0x4c4] sm:$0xf] }
  0xc8   : > { %v11894_v38 = vor.u32 %v15564_v33, %v11893_v32  ;;  %v11349_v39 = vld [vmem:[#allocation6 + $0x880] sm:$0xf]  ;;  %3245 = vmatpush.bf16.msrb.mxu1 %v11638_v37  ;;  %3275 = vmatpush.bf16.msrb.mxu3 %v10298_v8  ;;  %v11258_v32 = vor.u32 %v15400_v15, %v11255_v17  ;;  %v15264_v33 = vld [vmem:[#allocation6 + $0x384] sm:$0xf]  ;;  %v17032_v37 = vor.u32 %v15150_v24, %v10249_v22 }
  0xc9   : > { %v15428_v40 = vld [vmem:[#allocation6 + $0x89c] sm:$0xf0]  ;;  %v10871_v15 = vld [vmem:[#allocation6 + $0x4e0] sm:$0xf0] }
  0xca   : > { %v11605_v41 = vld [vmem:[#allocation6 + $0xa80] sm:$0xf]  ;;  %v11350_v48 = vor.u32 %v15428_v40, %v11349_v39  ;;  %3259 = vmatpush.bf16.msrb.mxu2 %v11894_v38  ;;  %v10967_v38 = vld [vmem:[#allocation6 + $0x5a0] sm:$0xf0] }
  0xcb   : > { %v15492_v43 = vld [vmem:[#allocation6 + $0xa9c] sm:$0xf0]  ;;  %v15392_v39 = vld [vmem:[#allocation6 + $0x784] sm:$0xf]  ;;  %v10970_v46 = vor.u32 %v15328_v35, %v10967_v38 }
  0xcc   : > { %v11861_v44 = vld [vmem:[#allocation6 + $0xc80] sm:$0xf]  ;;  %v11606_v49 = vor.u32 %v15492_v43, %v11605_v41  ;;  %3232 = vmatpush.bf16.msrb.mxu0 %v11350_v48  ;;  %v11223_v40 = vld [vmem:[#allocation6 + $0x7a0] sm:$0xf0]  ;;  %3276 = vmatpush.bf16.msrb.mxu3 %v10266_v26 }
  0xcd   : > { %v15556_v45 = vld [vmem:[#allocation6 + $0xc9c] sm:$0xf0]  ;;  %v15456_v43 = vld [vmem:[#allocation6 + $0x984] sm:$0xf]  ;;  %v11226_v47 = vor.u32 %v15392_v39, %v11223_v40 }
  0xce   : > { %v11862_v50 = vor.u32 %v15556_v45, %v11861_v44  ;;  %v11317_v51 = vld [vmem:[#allocation6 + $0x840] sm:$0xf]  ;;  %3246 = vmatpush.bf16.msrb.mxu1 %v11606_v49  ;;  %v11479_v44 = vld [vmem:[#allocation6 + $0x9a0] sm:$0xf0]  ;;  %v10714_v45 = vor.u32 %v15264_v33, %v10711_v34 }
  0xcf   : > { %v15420_v52 = vld [vmem:[#allocation6 + $0x85c] sm:$0xf0]  ;;  %v15256_v48 = vld [vmem:[#allocation6 + $0x344] sm:$0xf]  ;;  %3277 = vmatmul.bf16.vlgmr.msrb.gmra.mxu3 %v17020_v57 }
  0xd0   : > { %v11573_v53 = vld [vmem:[#allocation6 + $0xa40] sm:$0xf]  ;;  %v11318_v62 = vor.u32 %v15420_v52, %v11317_v51  ;;  %3260 = vmatpush.bf16.msrb.mxu2 %v11862_v50  ;;  %v10679_v49 = vld [vmem:[#allocation6 + $0x360] sm:$0xf0]  ;;  %3325 = vmatpush.bf16.msra.mxu3 %v11514_v36  ;;  %v11482_v51 = vor.u32 %v15456_v43, %v11479_v44 }
  0xd1   : > { %v15484_v55 = vld [vmem:[#allocation6 + $0xa5c] sm:$0xf0]  ;;  %v15320_v50 = vld [vmem:[#allocation6 + $0x544] sm:$0xf] }
  0xd2   : > { %v11829_v56 = vld [vmem:[#allocation6 + $0xc40] sm:$0xf]  ;;  %v11574_v3 = vor.u32 %v15484_v55, %v11573_v53  ;;  %3233 = vmatpush.bf16.msrb.mxu0 %v11318_v62  ;;  %v10935_v52 = vld [vmem:[#allocation6 + $0x560] sm:$0xf0] }
  0xd3   : > { %v15548_v58 = vld [vmem:[#allocation6 + $0xc5c] sm:$0xf0]  ;;  %v15384_v53 = vld [vmem:[#allocation6 + $0x744] sm:$0xf]  ;;  %v10938_v59 = vor.u32 %v15320_v50, %v10935_v52 }
  0xd4   : > { %v11285_v61 = vld [vmem:[#allocation6 + $0x800] sm:$0xf]  ;;  %v11830_v4 = vor.u32 %v15548_v58, %v11829_v56  ;;  %3247 = vmatpush.bf16.msrb.mxu1 %v11574_v3  ;;  %v15448_v55 = vld [vmem:[#allocation6 + $0x944] sm:$0xf]  ;;  %v10682_v58 = vor.u32 %v15256_v48, %v10679_v49  ;;  %v11194_v60 = vor.u32 %v15384_v53, %v11191_v54  ;;  %3326 = vmatpush.bf16.msra.mxu3 %v11482_v51 }
  0xd5   : > { %v15412_v63 = vld [vmem:[#allocation6 + $0x81c] sm:$0xf0]  ;;  %v11447_v56 = vld [vmem:[#allocation6 + $0x960] sm:$0xf0] }
  0xd6   : > { %v11541_v1 = vld [vmem:[#allocation6 + $0xa00] sm:$0xf]  ;;  %v11286_v16 = vor.u32 %v15412_v63, %v11285_v61  ;;  %3261 = vmatpush.bf16.msrb.mxu2 %v11830_v4  ;;  %v15248_v61 = vld [vmem:[#allocation6 + $0x304] sm:$0xf] }
  0xd7   : > { %v15476_v2 = vld [vmem:[#allocation6 + $0xa1c] sm:$0xf0]  ;;  %v10647_v62 = vld [vmem:[#allocation6 + $0x320] sm:$0xf0] }
  0xd8   : > { %v11797_v5 = vld [vmem:[#allocation6 + $0xc00] sm:$0xf]  ;;  %v11542_v20 = vor.u32 %v15476_v2, %v11541_v1  ;;  %3234 = vmatpush.bf16.msrb.mxu0 %v11286_v16  ;;  %v15312_v63 = vld [vmem:[#allocation6 + $0x504] sm:$0xf]  ;;  %v11450_v1 = vor.u32 %v15448_v55, %v11447_v56  ;;  %v10650_v7 = vor.u32 %v15248_v61, %v10647_v62 }
  0xd9   : > { %v15540_v6 = vld [vmem:[#allocation6 + $0xc1c] sm:$0xf0]  ;;  %v10903_v2 = vld [vmem:[#allocation6 + $0x520] sm:$0xf0] }
  0xda   : > { %v11798_v21 = vor.u32 %v15540_v6, %v11797_v5  ;;  %v10257_v25 = vld [vmem:[#allocation3 + $0x18] sm:$0xf]  ;;  %3248 = vmatpush.bf16.msrb.mxu1 %v11542_v20  ;;  %v15376_v3 = vld [vmem:[#allocation6 + $0x704] sm:$0xf]  ;;  %v10906_v8 = vor.u32 %v15312_v63, %v10903_v2  ;;  %3327 = vmatpush.bf16.msra.mxu3 %v11450_v1  ;;  %v10618_v20 = vor.u32 %v15240_v10, %v10615_v12 }
  0xdb   : > { %v17034_v41 = vor.u32 %v15151_v28, %v10257_v25  ;;  %3235 = vmatmul.bf16.vlgmr.msrb.gmra.mxu0 %v17032_v37  ;;  %v11159_v4 = vld [vmem:[#allocation6 + $0x720] sm:$0xf0] }
  0xdc   : > { %3262 = vmatpush.bf16.msrb.mxu2 %v11798_v21  ;;  %3283 = vmatpush.bf16.msra.mxu0 %v10746_v27  ;;  %v15440_v5 = vld [vmem:[#allocation6 + $0x904] sm:$0xf]  ;;  %v11162_v9 = vor.u32 %v15376_v3, %v11159_v4  ;;  %v10874_v21 = vor.u32 %v15304_v13, %v10871_v15  ;;  %v10493_v3 = vld [vmem:[#allocation6 + $0x1c8] sm:$0xf] }
  0xdd   : > { %3249 = vmatmul.bf16.vlgmr.msrb.gmra.mxu1 %v17036_v42  ;;  %v11415_v6 = vld [vmem:[#allocation6 + $0x920] sm:$0xf0]  ;;  %v15213_v4 = vld [vmem:[#allocation6 + $0x1e4] sm:$0xf0] }
  0xde   : > { %3297 = vmatpush.bf16.msra.mxu1 %v11002_v31  ;;  %v11418_v14 = vor.u32 %v15440_v5, %v11415_v6  ;;  %v15368_v16 = vld [vmem:[#allocation6 + $0x6c4] sm:$0xf]  ;;  %v10494_v13 = vor.u32 %v15213_v4, %v10493_v3 }
  0xdf   : > { %3263 = vmatmul.bf16.vlgmr.msrb.gmra.mxu2 %v17034_v41  ;;  %v11127_v17 = vld [vmem:[#allocation6 + $0x6e0] sm:$0xf0] }
  0xe0   : > { %3311 = vmatpush.bf16.msra.mxu2 %v11258_v32  ;;  %3284 = vmatpush.bf16.msra.mxu0 %v10714_v45  ;;  %v15432_v18 = vld [vmem:[#allocation6 + $0x8c4] sm:$0xf]  ;;  %v11130_v22 = vor.u32 %v15368_v16, %v11127_v17 }
  0xe1   : > { %v11383_v19 = vld [vmem:[#allocation6 + $0x8e0] sm:$0xf0]  ;;  %3328 = vmatpush.bf16.msra.mxu3 %v11418_v14 }
  0xe2   : > { %3298 = vmatpush.bf16.msra.mxu1 %v10970_v46  ;;  %v15232_v24 = vld [vmem:[#allocation6 + $0x284] sm:$0xf]  ;;  %v11386_v27 = vor.u32 %v15432_v18, %v11383_v19  ;;  %v10461_v19 = vld [vmem:[#allocation6 + $0x188] sm:$0xf] }
  0xe3   : > { %v10583_v25 = vld [vmem:[#allocation6 + $0x2a0] sm:$0xf0] }
  0xe4   : > { %3312 = vmatpush.bf16.msra.mxu2 %v11226_v47  ;;  %3285 = vmatpush.bf16.msra.mxu0 %v10682_v58  ;;  %v15296_v26 = vld [vmem:[#allocation6 + $0x484] sm:$0xf]  ;;  %v10586_v33 = vor.u32 %v15232_v24, %v10583_v25 }
  0xe5   : > { %v10839_v28 = vld [vmem:[#allocation6 + $0x4a0] sm:$0xf0]  ;;  %3329 = vmatpush.bf16.msra.mxu3 %v11386_v27 }
  0xe6   : > { %3299 = vmatpush.bf16.msra.mxu1 %v10938_v59  ;;  %v15360_v29 = vld [vmem:[#allocation6 + $0x684] sm:$0xf]  ;;  %v10842_v34 = vor.u32 %v15296_v26, %v10839_v28 }
  0xe7   : > { %v11095_v30 = vld [vmem:[#allocation6 + $0x6a0] sm:$0xf0] }
  0xe8   : > { %3313 = vmatpush.bf16.msra.mxu2 %v11194_v60  ;;  %3286 = vmatpush.bf16.msra.mxu0 %v10650_v7  ;;  %v15424_v31 = vld [vmem:[#allocation6 + $0x884] sm:$0xf]  ;;  %v11098_v35 = vor.u32 %v15360_v29, %v11095_v30  ;;  %v10749_v7 = vld [vmem:[#allocation6 + $0x3c8] sm:$0xf] }
  0xe9   : > { %v11351_v32 = vld [vmem:[#allocation6 + $0x8a0] sm:$0xf0] }
  0xea   : > { %3300 = vmatpush.bf16.msra.mxu1 %v10906_v8  ;;  %v15224_v36 = vld [vmem:[#allocation6 + $0x244] sm:$0xf]  ;;  %v11354_v40 = vor.u32 %v15424_v31, %v11351_v32  ;;  %v15277_v8 = vld [vmem:[#allocation6 + $0x3e4] sm:$0xf0] }
  0xeb   : > { %v10551_v38 = vld [vmem:[#allocation6 + $0x260] sm:$0xf0]  ;;  %v10750_v17 = vor.u32 %v15277_v8, %v10749_v7  ;;  %v10429_v32 = vld [vmem:[#allocation6 + $0x148] sm:$0xf] }
  0xec   : > { %3314 = vmatpush.bf16.msra.mxu2 %v11162_v9  ;;  %3287 = vmatpush.bf16.msra.mxu0 %v10618_v20  ;;  %v15288_v39 = vld [vmem:[#allocation6 + $0x444] sm:$0xf]  ;;  %v10554_v48 = vor.u32 %v15224_v36, %v10551_v38  ;;  %v15205_v20 = vld [vmem:[#allocation6 + $0x1a4] sm:$0xf0] }
  0xed   : > { %v10807_v43 = vld [vmem:[#allocation6 + $0x460] sm:$0xf0]  ;;  %3330 = vmatpush.bf16.msra.mxu3 %v11354_v40  ;;  %v10462_v26 = vor.u32 %v15205_v20, %v10461_v19 }
  0xee   : > { %3301 = vmatpush.bf16.msra.mxu1 %v10874_v21  ;;  %v15352_v44 = vld [vmem:[#allocation6 + $0x644] sm:$0xf]  ;;  %v10810_v51 = vor.u32 %v15288_v39, %v10807_v43  ;;  %v10717_v21 = vld [vmem:[#allocation6 + $0x388] sm:$0xf] }
  0xef   : > { %v11063_v45 = vld [vmem:[#allocation6 + $0x660] sm:$0xf0] }
  0xf0   : > { %3315 = vmatpush.bf16.msra.mxu2 %v11130_v22  ;;  %v15416_v46 = vld [vmem:[#allocation6 + $0x844] sm:$0xf]  ;;  %3288 = vmatpush.bf16.msra.mxu0 %v10586_v33  ;;  %v11066_v52 = vor.u32 %v15352_v44, %v11063_v45  ;;  %v15269_v22 = vld [vmem:[#allocation6 + $0x3a4] sm:$0xf0] }
  0xf1   : > { %v11319_v47 = vld [vmem:[#allocation6 + $0x860] sm:$0xf0]  ;;  %v10718_v30 = vor.u32 %v15269_v22, %v10717_v21  ;;  %v15197_v33 = vld [vmem:[#allocation6 + $0x164] sm:$0xf0] }
  0xf2   : > { %v15216_v49 = vld [vmem:[#allocation6 + $0x204] sm:$0xf]  ;;  %3302 = vmatpush.bf16.msra.mxu1 %v10842_v34  ;;  %v11322_v56 = vor.u32 %v15416_v46, %v11319_v47  ;;  %v10685_v34 = vld [vmem:[#allocation6 + $0x348] sm:$0xf]  ;;  %v10430_v39 = vor.u32 %v15197_v33, %v10429_v32 }
  0xf3   : > { %v10519_v50 = vld [vmem:[#allocation6 + $0x220] sm:$0xf0]  ;;  %v10397_v47 = vld [vmem:[#allocation6 + $0x108] sm:$0xf] }
  0xf4   : > { %3316 = vmatpush.bf16.msra.mxu2 %v11098_v35  ;;  %v15280_v53 = vld [vmem:[#allocation6 + $0x404] sm:$0xf]  ;;  %3289 = vmatpush.bf16.msra.mxu0 %v10554_v48  ;;  %v10522_v1 = vor.u32 %v15216_v49, %v10519_v50  ;;  %v15261_v35 = vld [vmem:[#allocation6 + $0x364] sm:$0xf0] }
  0xf5   : > { %v10775_v54 = vld [vmem:[#allocation6 + $0x420] sm:$0xf0]  ;;  %3331 = vmatpush.bf16.msra.mxu3 %v11322_v56  ;;  %v10686_v45 = vor.u32 %v15261_v35, %v10685_v34  ;;  %v15189_v48 = vld [vmem:[#allocation6 + $0x124] sm:$0xf0] }
  0xf6   : > { %v15344_v55 = vld [vmem:[#allocation6 + $0x604] sm:$0xf]  ;;  %3303 = vmatpush.bf16.msra.mxu1 %v10810_v51  ;;  %v10778_v5 = vor.u32 %v15280_v53, %v10775_v54  ;;  %v10653_v49 = vld [vmem:[#allocation6 + $0x308] sm:$0xf]  ;;  %v10398_v53 = vor.u32 %v15189_v48, %v10397_v47 }
  0xf7   : > { %v11031_v58 = vld [vmem:[#allocation6 + $0x620] sm:$0xf0]  ;;  %v15253_v50 = vld [vmem:[#allocation6 + $0x324] sm:$0xf0] }
  0xf8   : > { %v15408_v59 = vld [vmem:[#allocation6 + $0x804] sm:$0xf]  ;;  %3317 = vmatpush.bf16.msra.mxu2 %v11066_v52  ;;  %v11034_v6 = vor.u32 %v15344_v55, %v11031_v58  ;;  %3290 = vmatpush.bf16.msra.mxu0 %v10522_v1  ;;  %v10654_v58 = vor.u32 %v15253_v50, %v10653_v49  ;;  %v10301_v22 = vld [vmem:[#allocation6 + $0x48] sm:$0xf] }
  0xf9   : > { %v11287_v60 = vld [vmem:[#allocation6 + $0x820] sm:$0xf0]  ;;  %v10269_v34 = vld [vmem:[#allocation6 + $0x8] sm:$0xf] }
  0xfa   : > { %v15528_v61 = vld [vmem:[#allocation6 + $0xbc4] sm:$0xf]  ;;  %v11290_v9 = vor.u32 %v15408_v59, %v11287_v60  ;;  %3304 = vmatpush.bf16.msra.mxu1 %v10778_v5  ;;  %v10365_v60 = vld [vmem:[#allocation6 + $0xc8] sm:$0xf] }
  0xfb   : > { %v11767_v62 = vld [vmem:[#allocation6 + $0xbe0] sm:$0xf0]  ;;  %3291 = vmatmul.bf16.vlgmr.msra.gmra.mxu0 %v17026_v11  ;;  %v11517_v47 = vld [vmem:[#allocation6 + $0x9c8] sm:$0xf] }
  0xfc   : > { %v15592_v63 = vld [vmem:[#allocation6 + $0xdc4] sm:$0xf]  ;;  %v11770_v10 = vor.u32 %v15528_v61, %v11767_v62  ;;  %3318 = vmatpush.bf16.msra.mxu2 %v11034_v6  ;;  %3332 = vmatpush.bf16.msra.mxu3 %v11290_v9  ;;  %v15181_v61 = vld [vmem:[#allocation6 + $0xe4] sm:$0xf0] }
  0xfd   : > { %v12023_v2 = vld [vmem:[#allocation6 + $0xde0] sm:$0xf0]  ;;  %3305 = vmatmul.bf16.vlgmr.msra.gmra.mxu1 %v17022_v0  ;;  %v10621_v62 = vld [vmem:[#allocation6 + $0x2c8] sm:$0xf]  ;;  %v10366_v3 = vor.u32 %v15181_v61, %v10365_v60 }
  0xfe   : > { %v12026_v12 = vor.u32 %v15592_v63, %v12023_v2  ;;  %v15520_v14 = vld [vmem:[#allocation6 + $0xb84] sm:$0xf]  ;;  %3339 = vmatpush.bf16.msrb.mxu0 %v11770_v10  ;;  %v15245_v63 = vld [vmem:[#allocation6 + $0x2e4] sm:$0xf0] }
  0xff   : > { %v11735_v15 = vld [vmem:[#allocation6 + $0xba0] sm:$0xf0]  ;;  %3319 = vmatmul.bf16.vlgmr.msra.gmra.mxu2 %v17029_v23  ;;  %3333 = vmatmul.bf16.vlgmr.msra.gmra.mxu3 %v17032_v37  ;;  %v10622_v7 = vor.u32 %v15245_v63, %v10621_v62  ;;  %v10333_v9 = vld [vmem:[#allocation6 + $0x88] sm:$0xf] }
 0x100   : > { %v15584_v16 = vld [vmem:[#allocation6 + $0xd84] sm:$0xf]  ;;  %v11738_v24 = vor.u32 %v15520_v14, %v11735_v15  ;;  %3353 = vmatpush.bf16.msrb.mxu1 %v12026_v12  ;;  %3367 = vmatpush.bf16.msrb.mxu2 %v10494_v13  ;;  %v15173_v10 = vld [vmem:[#allocation6 + $0xa4] sm:$0xf0] }
 0x101   : > { %v11991_v18 = vld [vmem:[#allocation6 + $0xda0] sm:$0xf0]  ;;  %3381 = vmatpush.bf16.msrb.mxu3 %v10750_v17  ;;  %v10589_v12 = vld [vmem:[#allocation6 + $0x288] sm:$0xf] }
 0x102   : > { %v11994_v25 = vor.u32 %v15584_v16, %v11991_v18  ;;  %v15512_v27 = vld [vmem:[#allocation6 + $0xb44] sm:$0xf]  ;;  %3340 = vmatpush.bf16.msrb.mxu0 %v11738_v24  ;;  %v15237_v13 = vld [vmem:[#allocation6 + $0x2a4] sm:$0xf0]  ;;  %v10334_v16 = vor.u32 %v15173_v10, %v10333_v9 }
 0x103   : > { %v11703_v28 = vld [vmem:[#allocation6 + $0xb60] sm:$0xf0]  ;;  %v10590_v20 = vor.u32 %v15237_v13, %v10589_v12  ;;  %v15165_v24 = vld [vmem:[#allocation6 + $0x64] sm:$0xf0] }
 0x104   : > { %v15576_v29 = vld [vmem:[#allocation6 + $0xd44] sm:$0xf]  ;;  %v11706_v36 = vor.u32 %v15512_v27, %v11703_v28  ;;  %3354 = vmatpush.bf16.msrb.mxu1 %v11994_v25  ;;  %3368 = vmatpush.bf16.msrb.mxu2 %v10462_v26  ;;  %v10557_v25 = vld [vmem:[#allocation6 + $0x248] sm:$0xf] }
 0x105   : > { %v11959_v31 = vld [vmem:[#allocation6 + $0xd60] sm:$0xf0]  ;;  %3382 = vmatpush.bf16.msrb.mxu3 %v10718_v30  ;;  %v15229_v26 = vld [vmem:[#allocation6 + $0x264] sm:$0xf0] }
 0x106   : > { %v11962_v38 = vor.u32 %v15576_v29, %v11959_v31  ;;  %v15504_v40 = vld [vmem:[#allocation6 + $0xb04] sm:$0xf]  ;;  %3341 = vmatpush.bf16.msrb.mxu0 %v11706_v36  ;;  %v10302_v31 = vor.u32 %v15165_v24, %v10301_v22  ;;  %v10558_v35 = vor.u32 %v15229_v26, %v10557_v25  ;;  %v15157_v36 = vld [vmem:[#allocation6 + $0x24] sm:$0xf0] }
 0x107   : > { %v11671_v43 = vld [vmem:[#allocation6 + $0xb20] sm:$0xf0]  ;;  %v15469_v48 = vld [vmem:[#allocation6 + $0x9e4] sm:$0xf0]  ;;  %v10270_v50 = vor.u32 %v15157_v36, %v10269_v34 }
 0x108   : > { %v15568_v44 = vld [vmem:[#allocation6 + $0xd04] sm:$0xf]  ;;  %v11674_v51 = vor.u32 %v15504_v40, %v11671_v43  ;;  %3355 = vmatpush.bf16.msrb.mxu1 %v11962_v38  ;;  %3369 = vmatpush.bf16.msrb.mxu2 %v10430_v39  ;;  %v10525_v38 = vld [vmem:[#allocation6 + $0x208] sm:$0xf] }
 0x109   : > { %v11927_v46 = vld [vmem:[#allocation6 + $0xd20] sm:$0xf0]  ;;  %3383 = vmatpush.bf16.msrb.mxu3 %v10686_v45  ;;  %v15221_v39 = vld [vmem:[#allocation6 + $0x224] sm:$0xf0] }
 0x10a   : > { %v11930_v52 = vor.u32 %v15568_v44, %v11927_v46  ;;  %v15496_v54 = vld [vmem:[#allocation6 + $0xac4] sm:$0xf]  ;;  %3342 = vmatpush.bf16.msrb.mxu0 %v11674_v51  ;;  %v11005_v40 = vld [vmem:[#allocation6 + $0x5c8] sm:$0xf] }
 0x10b   : > { %v11639_v55 = vld [vmem:[#allocation6 + $0xae0] sm:$0xf0]  ;;  %v15341_v43 = vld [vmem:[#allocation6 + $0x5e4] sm:$0xf0] }
 0x10c   : > { %v15560_v56 = vld [vmem:[#allocation6 + $0xcc4] sm:$0xf]  ;;  %v11642_v1 = vor.u32 %v15496_v54, %v11639_v55  ;;  %3356 = vmatpush.bf16.msrb.mxu1 %v11930_v52  ;;  %3370 = vmatpush.bf16.msrb.mxu2 %v10398_v53  ;;  %v11261_v44 = vld [vmem:[#allocation6 + $0x7c8] sm:$0xf]  ;;  %v10526_v53 = vor.u32 %v15221_v39, %v10525_v38  ;;  %v11006_v54 = vor.u32 %v15341_v43, %v11005_v40 }
 0x10d   : > { %v11895_v59 = vld [vmem:[#allocation6 + $0xce0] sm:$0xf0]  ;;  %3384 = vmatpush.bf16.msrb.mxu3 %v10654_v58  ;;  %v15405_v46 = vld [vmem:[#allocation6 + $0x7e4] sm:$0xf0] }
 0x10e   : > { %v11898_v2 = vor.u32 %v15560_v56, %v11895_v59  ;;  %v15488_v4 = vld [vmem:[#allocation6 + $0xa84] sm:$0xf]  ;;  %3343 = vmatpush.bf16.msrb.mxu0 %v11642_v1  ;;  %v11773_v51 = vld [vmem:[#allocation6 + $0xbc8] sm:$0xf]  ;;  %v11262_v55 = vor.u32 %v15405_v46, %v11261_v44  ;;  %v11518_v56 = vor.u32 %v15469_v48, %v11517_v47 }
 0x10f   : > { %v11607_v5 = vld [vmem:[#allocation6 + $0xaa0] sm:$0xf0]  ;;  %v15533_v52 = vld [vmem:[#allocation6 + $0xbe4] sm:$0xf0] }
 0x110   : > { %v15552_v6 = vld [vmem:[#allocation6 + $0xc84] sm:$0xf]  ;;  %v11610_v14 = vor.u32 %v15488_v4, %v11607_v5  ;;  %3357 = vmatpush.bf16.msrb.mxu1 %v11898_v2  ;;  %3371 = vmatpush.bf16.msrb.mxu2 %v10366_v3  ;;  %v10973_v58 = vld [vmem:[#allocation6 + $0x588] sm:$0xf]  ;;  %v11774_v61 = vor.u32 %v15533_v52, %v11773_v51 }
 0x111   : > { %v11863_v8 = vld [vmem:[#allocation6 + $0xca0] sm:$0xf0]  ;;  %3385 = vmatpush.bf16.msrb.mxu3 %v10622_v7  ;;  %v15333_v59 = vld [vmem:[#allocation6 + $0x5a4] sm:$0xf0] }
 0x112   : > { %v11866_v15 = vor.u32 %v15552_v6, %v11863_v8  ;;  %v15480_v17 = vld [vmem:[#allocation6 + $0xa44] sm:$0xf]  ;;  %3344 = vmatpush.bf16.msrb.mxu0 %v11610_v14  ;;  %v11229_v60 = vld [vmem:[#allocation6 + $0x788] sm:$0xf]  ;;  %v10974_v4 = vor.u32 %v15333_v59, %v10973_v58 }
 0x113   : > { %v11575_v18 = vld [vmem:[#allocation6 + $0xa60] sm:$0xf0]  ;;  %v15397_v62 = vld [vmem:[#allocation6 + $0x7a4] sm:$0xf0] }
 0x114   : > { %v15544_v19 = vld [vmem:[#allocation6 + $0xc44] sm:$0xf]  ;;  %v11578_v27 = vor.u32 %v15480_v17, %v11575_v18  ;;  %3358 = vmatpush.bf16.msrb.mxu1 %v11866_v15  ;;  %3372 = vmatpush.bf16.msrb.mxu2 %v10334_v16  ;;  %v11485_v63 = vld [vmem:[#allocation6 + $0x988] sm:$0xf]  ;;  %v11230_v5 = vor.u32 %v15397_v62, %v11229_v60 }
 0x115   : > { %v11831_v21 = vld [vmem:[#allocation6 + $0xc60] sm:$0xf0]  ;;  %3386 = vmatpush.bf16.msrb.mxu3 %v10590_v20  ;;  %v15461_v1 = vld [vmem:[#allocation6 + $0x9a4] sm:$0xf0] }
 0x116   : > { %v15472_v28 = vld [vmem:[#allocation6 + $0xa04] sm:$0xf]  ;;  %v11834_v30 = vor.u32 %v15544_v19, %v11831_v21  ;;  %3345 = vmatpush.bf16.msrb.mxu0 %v11578_v27  ;;  %v11741_v2 = vld [vmem:[#allocation6 + $0xb88] sm:$0xf]  ;;  %v11486_v6 = vor.u32 %v15461_v1, %v11485_v63 }
 0x117   : > { %v11543_v29 = vld [vmem:[#allocation6 + $0xa20] sm:$0xf0]  ;;  %v15525_v3 = vld [vmem:[#allocation6 + $0xba4] sm:$0xf0] }
 0x118   : > { %v15536_v32 = vld [vmem:[#allocation6 + $0xc04] sm:$0xf]  ;;  %v11546_v45 = vor.u32 %v15472_v28, %v11543_v29  ;;  %3359 = vmatpush.bf16.msrb.mxu1 %v11834_v30  ;;  %3373 = vmatpush.bf16.msrb.mxu2 %v10302_v31  ;;  %v10941_v7 = vld [vmem:[#allocation6 + $0x548] sm:$0xf]  ;;  %v11742_v10 = vor.u32 %v15525_v3, %v11741_v2 }
 0x119   : > { %v11799_v33 = vld [vmem:[#allocation6 + $0xc20] sm:$0xf0]  ;;  %3387 = vmatpush.bf16.msrb.mxu3 %v10558_v35  ;;  %v15325_v8 = vld [vmem:[#allocation6 + $0x564] sm:$0xf0] }
 0x11a   : > { %v11802_v49 = vor.u32 %v15536_v32, %v11799_v33  ;;  %3346 = vmatpush.bf16.msrb.mxu0 %v11546_v45  ;;  %v11197_v9 = vld [vmem:[#allocation6 + $0x748] sm:$0xf]  ;;  %v10942_v17 = vor.u32 %v15325_v8, %v10941_v7 }
 0x11b   : > { %v15389_v12 = vld [vmem:[#allocation6 + $0x764] sm:$0xf0] }
 0x11c   : > { %3360 = vmatpush.bf16.msrb.mxu1 %v11802_v49  ;;  %3374 = vmatpush.bf16.msrb.mxu2 %v10270_v50  ;;  %v11453_v13 = vld [vmem:[#allocation6 + $0x948] sm:$0xf]  ;;  %v11198_v18 = vor.u32 %v15389_v12, %v11197_v9 }
 0x11d   : > { %3388 = vmatpush.bf16.msrb.mxu3 %v10526_v53  ;;  %3347 = vmatmul.bf16.vlgmr.msrb.gmra.mxu0 %v17036_v42  ;;  %v15453_v14 = vld [vmem:[#allocation6 + $0x964] sm:$0xf0] }
 0x11e   : > { %3395 = vmatpush.bf16.msra.mxu0 %v11006_v54  ;;  %v11709_v15 = vld [vmem:[#allocation6 + $0xb48] sm:$0xf]  ;;  %v11454_v19 = vor.u32 %v15453_v14, %v11453_v13 }
 0x11f   : > { %3361 = vmatmul.bf16.vlgmr.msrb.gmra.mxu1 %v17034_v41  ;;  %v15517_v16 = vld [vmem:[#allocation6 + $0xb64] sm:$0xf0]  ;;  %3375 = vmatmul.bf16.vlgmr.msrb.gmra.mxu2 %v17020_v57 }
 0x120   : > { %3409 = vmatpush.bf16.msra.mxu1 %v11262_v55  ;;  %3423 = vmatpush.bf16.msra.mxu2 %v11518_v56  ;;  %v10909_v20 = vld [vmem:[#allocation6 + $0x508] sm:$0xf]  ;;  %v11710_v24 = vor.u32 %v15517_v16, %v11709_v15 }
 0x121   : > { %3437 = vmatpush.bf16.msra.mxu3 %v11774_v61  ;;  %v15317_v21 = vld [vmem:[#allocation6 + $0x524] sm:$0xf0] }
 0x122   : > { %3396 = vmatpush.bf16.msra.mxu0 %v10974_v4  ;;  %3389 = vmatmul.bf16.vlgmr.msrb.gmra.mxu3 %v17026_v11  ;;  %v11165_v22 = vld [vmem:[#allocation6 + $0x708] sm:$0xf]  ;;  %v10910_v30 = vor.u32 %v15317_v21, %v10909_v20 }
 0x123   : > { %v15381_v25 = vld [vmem:[#allocation6 + $0x724] sm:$0xf0] }
 0x124   : > { %3410 = vmatpush.bf16.msra.mxu1 %v11230_v5  ;;  %3424 = vmatpush.bf16.msra.mxu2 %v11486_v6  ;;  %v11421_v26 = vld [vmem:[#allocation6 + $0x908] sm:$0xf]  ;;  %v11166_v31 = vor.u32 %v15381_v25, %v11165_v22  ;;  %v15209_v22 = vld [vmem:[#allocation6 + $0x1cc] sm:$0xf] }
 0x125   : > { %3438 = vmatpush.bf16.msra.mxu3 %v11742_v10  ;;  %v15445_v27 = vld [vmem:[#allocation6 + $0x924] sm:$0xf0]  ;;  %v10495_v25 = vld [vmem:[#allocation6 + $0x1e8] sm:$0xf0] }
 0x126   : > { %v11677_v28 = vld [vmem:[#allocation6 + $0xb08] sm:$0xf]  ;;  %3397 = vmatpush.bf16.msra.mxu0 %v10942_v17  ;;  %v11422_v32 = vor.u32 %v15445_v27, %v11421_v26  ;;  %v15273_v26 = vld [vmem:[#allocation6 + $0x3cc] sm:$0xf] }
 0x127   : > { %v15509_v29 = vld [vmem:[#allocation6 + $0xb24] sm:$0xf0]  ;;  %v10751_v27 = vld [vmem:[#allocation6 + $0x3e8] sm:$0xf0] }
 0x128   : > { %3411 = vmatpush.bf16.msra.mxu1 %v11198_v18  ;;  %3425 = vmatpush.bf16.msra.mxu2 %v11454_v19  ;;  %v10877_v33 = vld [vmem:[#allocation6 + $0x4c8] sm:$0xf]  ;;  %v11678_v36 = vor.u32 %v15509_v29, %v11677_v28 }
 0x129   : > { %v15309_v34 = vld [vmem:[#allocation6 + $0x4e4] sm:$0xf0]  ;;  %3439 = vmatpush.bf16.msra.mxu3 %v11710_v24 }
 0x12a   : > { %v11133_v35 = vld [vmem:[#allocation6 + $0x6c8] sm:$0xf]  ;;  %3398 = vmatpush.bf16.msra.mxu0 %v10910_v30  ;;  %v10878_v45 = vor.u32 %v15309_v34, %v10877_v33  ;;  %v15337_v30 = vld [vmem:[#allocation6 + $0x5cc] sm:$0xf]  ;;  %v10498_v34 = vor.u32 %v15209_v22, %v10495_v25 }
 0x12b   : > { %v15373_v38 = vld [vmem:[#allocation6 + $0x6e4] sm:$0xf0]  ;;  %v10367_v22 = vld [vmem:[#allocation6 + $0xe8] sm:$0xf0] }
 0x12c   : > { %v11389_v39 = vld [vmem:[#allocation6 + $0x8c8] sm:$0xf]  ;;  %3412 = vmatpush.bf16.msra.mxu1 %v11166_v31  ;;  %3426 = vmatpush.bf16.msra.mxu2 %v11422_v32  ;;  %v11134_v46 = vor.u32 %v15373_v38, %v11133_v35  ;;  %v11007_v31 = vld [vmem:[#allocation6 + $0x5e8] sm:$0xf0]  ;;  %v10754_v35 = vor.u32 %v15273_v26, %v10751_v27 }
 0x12d   : > { %v15437_v40 = vld [vmem:[#allocation6 + $0x8e4] sm:$0xf0]  ;;  %3440 = vmatpush.bf16.msra.mxu3 %v11678_v36  ;;  %v10623_v25 = vld [vmem:[#allocation6 + $0x2e8] sm:$0xf0] }
 0x12e   : > { %v11645_v43 = vld [vmem:[#allocation6 + $0xac8] sm:$0xf]  ;;  %v11390_v47 = vor.u32 %v15437_v40, %v11389_v39  ;;  %3399 = vmatpush.bf16.msra.mxu0 %v10878_v45  ;;  %v15201_v39 = vld [vmem:[#allocation6 + $0x18c] sm:$0xf]  ;;  %v11010_v40 = vor.u32 %v15337_v30, %v11007_v31 }
 0x12f   : > { %v15501_v44 = vld [vmem:[#allocation6 + $0xae4] sm:$0xf0]  ;;  %v10719_v45 = vld [vmem:[#allocation6 + $0x3a8] sm:$0xf0] }
 0x130   : > { %v10845_v48 = vld [vmem:[#allocation6 + $0x488] sm:$0xf]  ;;  %v11646_v51 = vor.u32 %v15501_v44, %v11645_v43  ;;  %3413 = vmatpush.bf16.msra.mxu1 %v11134_v46  ;;  %3427 = vmatpush.bf16.msra.mxu2 %v11390_v47  ;;  %v10463_v43 = vld [vmem:[#allocation6 + $0x1a8] sm:$0xf0] }
 0x131   : > { %v15301_v49 = vld [vmem:[#allocation6 + $0x4a4] sm:$0xf0]  ;;  %v15265_v44 = vld [vmem:[#allocation6 + $0x38c] sm:$0xf] }
 0x132   : > { %v11101_v50 = vld [vmem:[#allocation6 + $0x688] sm:$0xf]  ;;  %v10846_v58 = vor.u32 %v15301_v49, %v10845_v48  ;;  %3441 = vmatpush.bf16.msra.mxu3 %v11646_v51  ;;  %v15329_v46 = vld [vmem:[#allocation6 + $0x58c] sm:$0xf]  ;;  %v10722_v51 = vor.u32 %v15265_v44, %v10719_v45 }
 0x133   : > { %v15365_v52 = vld [vmem:[#allocation6 + $0x6a4] sm:$0xf0]  ;;  %v10975_v47 = vld [vmem:[#allocation6 + $0x5a8] sm:$0xf0] }
 0x134   : > { %v11357_v53 = vld [vmem:[#allocation6 + $0x888] sm:$0xf]  ;;  %v11102_v59 = vor.u32 %v15365_v52, %v11101_v50  ;;  %3400 = vmatpush.bf16.msra.mxu0 %v10846_v58  ;;  %v10466_v50 = vor.u32 %v15201_v39, %v10463_v43  ;;  %v15257_v58 = vld [vmem:[#allocation6 + $0x34c] sm:$0xf]  ;;  %v3208_v43 = vpop.f32.mrf.mxu2 }
 0x135   : > { %v15429_v54 = vld [vmem:[#allocation6 + $0x8a4] sm:$0xf0]  ;;  %v15305_v26 = vld [vmem:[#allocation6 + $0x4cc] sm:$0xf] }
 0x136   : > { %v11613_v55 = vld [vmem:[#allocation6 + $0xa88] sm:$0xf]  ;;  %v11358_v60 = vor.u32 %v15429_v54, %v11357_v53  ;;  %3414 = vmatpush.bf16.msra.mxu1 %v11102_v59  ;;  %v15193_v53 = vld [vmem:[#allocation6 + $0x14c] sm:$0xf]  ;;  %v17050_v54 = vld [vmem:[#allocation8] sm:$0xff] }
 0x137   : > { %v15493_v56 = vld [vmem:[#allocation6 + $0xaa4] sm:$0xf0]  ;;  %v10687_v59 = vld [vmem:[#allocation6 + $0x368] sm:$0xf0] }
 0x138   : > { %v10813_v61 = vld [vmem:[#allocation6 + $0x448] sm:$0xf]  ;;  %v11614_v1 = vor.u32 %v15493_v56, %v11613_v55  ;;  %3428 = vmatpush.bf16.msra.mxu2 %v11358_v60  ;;  %v10978_v55 = vor.u32 %v15329_v46, %v10975_v47  ;;  %v10431_v56 = vld [vmem:[#allocation6 + $0x168] sm:$0xf0] }
 0x139   : > { %v15293_v62 = vld [vmem:[#allocation6 + $0x464] sm:$0xf0]  ;;  %v15321_v60 = vld [vmem:[#allocation6 + $0x54c] sm:$0xf] }
 0x13a   : > { %v11069_v63 = vld [vmem:[#allocation6 + $0x648] sm:$0xf]  ;;  %v10814_v7 = vor.u32 %v15293_v62, %v10813_v61  ;;  %3442 = vmatpush.bf16.msra.mxu3 %v11614_v1  ;;  %v10943_v61 = vld [vmem:[#allocation6 + $0x568] sm:$0xf0]  ;;  %v10434_v1 = vor.u32 %v15193_v53, %v10431_v56 }
 0x13b   : > { %v15357_v2 = vld [vmem:[#allocation6 + $0x664] sm:$0xf0]  ;;  %v10879_v27 = vld [vmem:[#allocation6 + $0x4e8] sm:$0xf0] }
 0x13c   : > { %v11325_v3 = vld [vmem:[#allocation6 + $0x848] sm:$0xf]  ;;  %v11070_v10 = vor.u32 %v15357_v2, %v11069_v63  ;;  %3401 = vmatpush.bf16.msra.mxu0 %v10814_v7  ;;  %v18609_v63 = vperm.slane %v17050_v54, 0  ;;  %v10690_v2 = vor.u32 %v15257_v58, %v10687_v59  ;;  %v10399_v7 = vld [vmem:[#allocation6 + $0x128] sm:$0xf0] }
 0x13d   : > { %v15421_v4 = vld [vmem:[#allocation6 + $0x864] sm:$0xf0]  ;;  %v15233_v39 = vld [vmem:[#allocation6 + $0x28c] sm:$0xf] }
 0x13e   : > { %v11581_v5 = vld [vmem:[#allocation6 + $0xa48] sm:$0xf]  ;;  %v11326_v12 = vor.u32 %v15421_v4, %v11325_v3  ;;  %3415 = vmatpush.bf16.msra.mxu1 %v11070_v10  ;;  %v15313_v10 = vld [vmem:[#allocation6 + $0x50c] sm:$0xf] }
 0x13f   : > { %v15485_v6 = vld [vmem:[#allocation6 + $0xa64] sm:$0xf0]  ;;  %v15297_v44 = vld [vmem:[#allocation6 + $0x48c] sm:$0xf] }
 0x140   : > { %v10781_v8 = vld [vmem:[#allocation6 + $0x408] sm:$0xf]  ;;  %v11582_v16 = vor.u32 %v15485_v6, %v11581_v5  ;;  %3429 = vmatpush.bf16.msra.mxu2 %v11326_v12  ;;  %v15185_v5 = vld [vmem:[#allocation6 + $0x10c] sm:$0xf]  ;;  %v10946_v6 = vor.u32 %v15321_v60, %v10943_v61 }
 0x141   : > { %v15285_v9 = vld [vmem:[#allocation6 + $0x424] sm:$0xf0]  ;;  %v10911_v12 = vld [vmem:[#allocation6 + $0x528] sm:$0xf0] }
 0x142   : > { %v11037_v13 = vld [vmem:[#allocation6 + $0x608] sm:$0xf]  ;;  %v10782_v24 = vor.u32 %v15285_v9, %v10781_v8  ;;  %3443 = vmatpush.bf16.msra.mxu3 %v11582_v16  ;;  %v15249_v8 = vld [vmem:[#allocation6 + $0x30c] sm:$0xf]  ;;  %v10402_v16 = vor.u32 %v15185_v5, %v10399_v7 }
 0x143   : > { %v15349_v14 = vld [vmem:[#allocation6 + $0x624] sm:$0xf0]  ;;  %v10655_v9 = vld [vmem:[#allocation6 + $0x328] sm:$0xf0] }
 0x144   : > { %v11293_v15 = vld [vmem:[#allocation6 + $0x808] sm:$0xf]  ;;  %v11038_v28 = vor.u32 %v15349_v14, %v11037_v13  ;;  %3402 = vmatpush.bf16.msra.mxu0 %v10782_v24  ;;  %v3180_v13 = vpop.f32.mrf.mxu0  ;;  %v15241_v24 = vld [vmem:[#allocation6 + $0x2cc] sm:$0xf] }
 0x145   : > { %v15413_v17 = vld [vmem:[#allocation6 + $0x824] sm:$0xf0]  ;;  %v10847_v45 = vld [vmem:[#allocation6 + $0x4a8] sm:$0xf0] }
 0x146   : > { %v11549_v18 = vld [vmem:[#allocation6 + $0xa08] sm:$0xf]  ;;  %v11294_v29 = vor.u32 %v15413_v17, %v11293_v15  ;;  %3416 = vmatpush.bf16.msra.mxu1 %v11038_v28  ;;  %v3181_v15 = vadd.f32 %v3180_v13, %v18609_v63  ;;  %v10658_v17 = vor.u32 %v15249_v8, %v10655_v9  ;;  %v3194_v28 = vpop.f32.mrf.mxu1  ;;  %v10850_v53 = vor.u32 %v15297_v44, %v10847_v45  ;;  %v15225_v56 = vld [vmem:[#allocation6 + $0x24c] sm:$0xf] }
 0x147   : > { %v15477_v19 = vld [vmem:[#allocation6 + $0xa24] sm:$0xf0]  ;;  %3403 = vmatmul.bf16.vlgmr.msra.gmra.mxu0 %v17022_v0  ;;  %v10559_v58 = vld [vmem:[#allocation6 + $0x268] sm:$0xf0] }
 0x148   : > { %v12029_v20 = vld [vmem:[#allocation6 + $0xdc8] sm:$0xf]  ;;  %v11550_v32 = vor.u32 %v15477_v19, %v11549_v18  ;;  %3430 = vmatpush.bf16.msra.mxu2 %v11294_v29  ;;  %v3195_v30 = vadd.f32 %v3194_v28, %v3181_v15  ;;  %v15289_v59 = vld [vmem:[#allocation6 + $0x44c] sm:$0xf] }
 0x149   : > { %v15597_v21 = vld [vmem:[#allocation6 + $0xde4] sm:$0xf0]  ;;  %3417 = vmatmul.bf16.vlgmr.msra.gmra.mxu1 %v17029_v23  ;;  %v10815_v60 = vld [vmem:[#allocation6 + $0x468] sm:$0xf0] }
 0x14a   : > { %v12030_v33 = vor.u32 %v15597_v21, %v12029_v20  ;;  %v11997_v36 = vld [vmem:[#allocation6 + $0xd88] sm:$0xf]  ;;  %3444 = vmatpush.bf16.msra.mxu3 %v11550_v32  ;;  %3465 = vmatpush.bf16.msrb.mxu1 %v10498_v34  ;;  %v15177_v20 = vld [vmem:[#allocation6 + $0xcc] sm:$0xf]  ;;  %v10914_v21 = vor.u32 %v15313_v10, %v10911_v12  ;;  %v10626_v32 = vor.u32 %v15241_v24, %v10623_v25  ;;  %v3222_v12 = vpop.f32.mrf.mxu3 }
 0x14b   : > { %v15589_v38 = vld [vmem:[#allocation6 + $0xda4] sm:$0xf0]  ;;  %3431 = vmatmul.bf16.vlgmr.msra.gmra.mxu2 %v17032_v37  ;;  %v10370_v31 = vor.u32 %v15177_v20, %v10367_v22  ;;  %v3209_v46 = vadd.f32 %v3208_v43, %v3195_v30  ;;  %v10271_v5 = vld [vmem:[#allocation6 + $0x28] sm:$0xf0]  ;;  %v10818_v7 = vor.u32 %v15289_v59, %v10815_v60  ;;  %v17068_v59 = vpop.f32.mrf.mxu2 }
 0x14c   : > { %3451 = vmatpush.bf16.msrb.mxu0 %v12030_v33  ;;  %v11998_v48 = vor.u32 %v15589_v38, %v11997_v36  ;;  %v11965_v49 = vld [vmem:[#allocation6 + $0xd48] sm:$0xf]  ;;  %3479 = vmatpush.bf16.msrb.mxu2 %v10754_v35  ;;  %v15169_v35 = vld [vmem:[#allocation6 + $0x8c] sm:$0xf]  ;;  %v10882_v36 = vor.u32 %v15305_v26, %v10879_v27  ;;  %v17061_v30 = vpop.f32.mrf.mxu0 }
 0x14d   : > { %v15581_v52 = vld [vmem:[#allocation6 + $0xd64] sm:$0xf0]  ;;  %3445 = vmatmul.bf16.vlgmr.msra.gmra.mxu3 %v17036_v42  ;;  %v10335_v38 = vld [vmem:[#allocation6 + $0xa8] sm:$0xf0] }
 0x14e   : > { %3493 = vmatpush.bf16.msrb.mxu3 %v11010_v40  ;;  %v11966_v62 = vor.u32 %v15581_v52, %v11965_v49  ;;  %3466 = vmatpush.bf16.msrb.mxu1 %v10466_v50  ;;  %v11933_v3 = vld [vmem:[#allocation6 + $0xd08] sm:$0xf]  ;;  %v10591_v40 = vld [vmem:[#allocation6 + $0x2a8] sm:$0xf0]  ;;  %v17063_v43 = vpop.f32.mrf.mxu1 }
 0x14f   : > { %v15573_v4 = vld [vmem:[#allocation6 + $0xd24] sm:$0xf0]  ;;  %v10594_v49 = vor.u32 %v15233_v39, %v10591_v40  ;;  %v15161_v52 = vld [vmem:[#allocation6 + $0x4c] sm:$0xf] }
 0x150   : > { %3452 = vmatpush.bf16.msrb.mxu0 %v11998_v48  ;;  %3480 = vmatpush.bf16.msrb.mxu2 %v10722_v51  ;;  %v11934_v14 = vor.u32 %v15573_v4, %v11933_v3  ;;  %v11901_v18 = vld [vmem:[#allocation6 + $0xcc8] sm:$0xf]  ;;  %v10338_v48 = vor.u32 %v15169_v35, %v10335_v38  ;;  %v10562_v3 = vor.u32 %v15225_v56, %v10559_v58  ;;  %v15153_v4 = vld [vmem:[#allocation6 + $0xc] sm:$0xf] }
 0x151   : > { %v15565_v19 = vld [vmem:[#allocation6 + $0xce4] sm:$0xf0]  ;;  %v10527_v8 = vld [vmem:[#allocation6 + $0x228] sm:$0xf0] }
 0x152   : > { %3494 = vmatpush.bf16.msrb.mxu3 %v10978_v55  ;;  %3467 = vmatpush.bf16.msrb.mxu1 %v10434_v1  ;;  %v11902_v29 = vor.u32 %v15565_v19, %v11901_v18  ;;  %v11869_v33 = vld [vmem:[#allocation6 + $0xc88] sm:$0xf]  ;;  %v10303_v55 = vld [vmem:[#allocation6 + $0x68] sm:$0xf0] }
 0x153   : > { %v15557_v34 = vld [vmem:[#allocation6 + $0xca4] sm:$0xf0]  ;;  %v15281_v9 = vld [vmem:[#allocation6 + $0x40c] sm:$0xf] }
 0x154   : > { %3453 = vmatpush.bf16.msrb.mxu0 %v11966_v62  ;;  %3481 = vmatpush.bf16.msrb.mxu2 %v10690_v2  ;;  %v11870_v47 = vor.u32 %v15557_v34, %v11869_v33  ;;  %v11837_v50 = vld [vmem:[#allocation6 + $0xc48] sm:$0xf]  ;;  %v10306_v2 = vor.u32 %v15161_v52, %v10303_v55  ;;  %v10783_v10 = vld [vmem:[#allocation6 + $0x428] sm:$0xf0] }
 0x155   : > { %v15549_v51 = vld [vmem:[#allocation6 + $0xc64] sm:$0xf0]  ;;  %v15401_v13 = vld [vmem:[#allocation6 + $0x7cc] sm:$0xf]  ;;  %v10786_v26 = vor.u32 %v15281_v9, %v10783_v10 }
 0x156   : > { %3495 = vmatpush.bf16.msrb.mxu3 %v10946_v6  ;;  %3468 = vmatpush.bf16.msrb.mxu1 %v10402_v16  ;;  %v11838_v61 = vor.u32 %v15549_v51, %v11837_v50  ;;  %v11805_v62 = vld [vmem:[#allocation6 + $0xc08] sm:$0xf]  ;;  %v15217_v6 = vld [vmem:[#allocation6 + $0x20c] sm:$0xf]  ;;  %v17059_v16 = vadd.f32 %v3222_v12, %v3209_v46 }
 0x157   : > { %v15541_v1 = vld [vmem:[#allocation6 + $0xc24] sm:$0xf0]  ;;  %v15465_v15 = vld [vmem:[#allocation6 + $0x9cc] sm:$0xf]  ;;  %v10530_v22 = vor.u32 %v15217_v6, %v10527_v8 }
 0x158   : > { %3454 = vmatpush.bf16.msrb.mxu0 %v11934_v14  ;;  %3482 = vmatpush.bf16.msrb.mxu2 %v10658_v17  ;;  %v11263_v14 = vld [vmem:[#allocation6 + $0x7e8] sm:$0xf0]  ;;  %v11806_v17 = vor.u32 %v15541_v1, %v11805_v62 }
 0x159   : > { %v11519_v18 = vld [vmem:[#allocation6 + $0x9e8] sm:$0xf0]  ;;  %v11266_v27 = vor.u32 %v15401_v13, %v11263_v14 }
 0x15a   : > { %3496 = vmatpush.bf16.msrb.mxu3 %v10914_v21  ;;  %3469 = vmatpush.bf16.msrb.mxu1 %v10370_v31  ;;  %v15529_v19 = vld [vmem:[#allocation6 + $0xbcc] sm:$0xf]  ;;  %v10274_v21 = vor.u32 %v15153_v4, %v10271_v5  ;;  %v11522_v28 = vor.u32 %v15465_v15, %v11519_v18  ;;  %v3250_v15 = vpop.f32.mrf.mxu1 }
 0x15b   : > { %v11775_v20 = vld [vmem:[#allocation6 + $0xbe8] sm:$0xf0] }
 0x15c   : > { %3455 = vmatpush.bf16.msrb.mxu0 %v11902_v29  ;;  %3483 = vmatpush.bf16.msrb.mxu2 %v10626_v32  ;;  %v15593_v24 = vld [vmem:[#allocation6 + $0xdcc] sm:$0xf]  ;;  %v11778_v29 = vor.u32 %v15529_v19, %v11775_v20 }
 0x15d   : > { %v12031_v25 = vld [vmem:[#allocation6 + $0xde8] sm:$0xf0] }
 0x15e   : > { %3497 = vmatpush.bf16.msrb.mxu3 %v10882_v36  ;;  %3470 = vmatpush.bf16.msrb.mxu1 %v10338_v48  ;;  %v15393_v31 = vld [vmem:[#allocation6 + $0x78c] sm:$0xf]  ;;  %v12034_v34 = vor.u32 %v15593_v24, %v12031_v25 }
 0x15f   : > { %v11231_v32 = vld [vmem:[#allocation6 + $0x7a8] sm:$0xf0] }
 0x160   : > { %3456 = vmatpush.bf16.msrb.mxu0 %v11870_v47  ;;  %3484 = vmatpush.bf16.msrb.mxu2 %v10594_v49  ;;  %v15457_v33 = vld [vmem:[#allocation6 + $0x98c] sm:$0xf]  ;;  %v11234_v44 = vor.u32 %v15393_v31, %v11231_v32 }
 0x161   : > { %v11487_v35 = vld [vmem:[#allocation6 + $0x9a8] sm:$0xf0] }
 0x162   : > { %3498 = vmatpush.bf16.msrb.mxu3 %v10850_v53  ;;  %3471 = vmatpush.bf16.msrb.mxu1 %v10306_v2  ;;  %v15521_v36 = vld [vmem:[#allocation6 + $0xb8c] sm:$0xf]  ;;  %v11490_v45 = vor.u32 %v15457_v33, %v11487_v35  ;;  %v3264_v35 = vpop.f32.mrf.mxu2 }
 0x163   : > { %v11743_v38 = vld [vmem:[#allocation6 + $0xba8] sm:$0xf0] }
 0x164   : > { %3457 = vmatpush.bf16.msrb.mxu0 %v11838_v61  ;;  %3485 = vmatpush.bf16.msrb.mxu2 %v10562_v3  ;;  %v15585_v39 = vld [vmem:[#allocation6 + $0xd8c] sm:$0xf]  ;;  %v11746_v46 = vor.u32 %v15521_v36, %v11743_v38 }
 0x165   : > { %v11999_v40 = vld [vmem:[#allocation6 + $0xda8] sm:$0xf0] }
 0x166   : > { %3499 = vmatpush.bf16.msrb.mxu3 %v10818_v7  ;;  %3472 = vmatpush.bf16.msrb.mxu1 %v10274_v21  ;;  %v15385_v47 = vld [vmem:[#allocation6 + $0x74c] sm:$0xf]  ;;  %v12002_v50 = vor.u32 %v15585_v39, %v11999_v40  ;;  %v3236_v7 = vpop.f32.mrf.mxu0 }
 0x167   : > { %v11199_v48 = vld [vmem:[#allocation6 + $0x768] sm:$0xf0]  ;;  %v3237_v10 = vadd.f32 %v3236_v7, %v17059_v16 }
 0x168   : > { %3458 = vmatpush.bf16.msrb.mxu0 %v11806_v17  ;;  %3486 = vmatpush.bf16.msrb.mxu2 %v10530_v22  ;;  %v15449_v49 = vld [vmem:[#allocation6 + $0x94c] sm:$0xf]  ;;  %v11202_v58 = vor.u32 %v15385_v47, %v11199_v48 }
 0x169   : > { %v11455_v51 = vld [vmem:[#allocation6 + $0x968] sm:$0xf0]  ;;  %3473 = vmatmul.bf16.vlgmr.msrb.gmra.mxu1 %v17020_v57  ;;  %v3251_v21 = vadd.f32 %v3250_v15, %v3237_v10  ;;  %v10757_v15 = vld [vmem:[#allocation6 + $0x3d0] sm:$0xf] }
 0x16a   : > { %3500 = vmatpush.bf16.msrb.mxu3 %v10786_v26  ;;  %3521 = vmatpush.bf16.msra.mxu1 %v11522_v28  ;;  %v15513_v52 = vld [vmem:[#allocation6 + $0xb4c] sm:$0xf]  ;;  %v11458_v60 = vor.u32 %v15449_v49, %v11455_v51 }
 0x16b   : > { %3459 = vmatmul.bf16.vlgmr.msrb.gmra.mxu0 %v17034_v41  ;;  %v11711_v53 = vld [vmem:[#allocation6 + $0xb68] sm:$0xf0]  ;;  %3487 = vmatmul.bf16.vlgmr.msrb.gmra.mxu2 %v17026_v11  ;;  %v17072_v40 = vadd.f32 %v3264_v35, %v3251_v21  ;;  %v15270_v35 = vld [vmem:[#allocation6 + $0x3ac] sm:$0xf0] }
 0x16c   : > { %3507 = vmatpush.bf16.msra.mxu0 %v11266_v27  ;;  %3535 = vmatpush.bf16.msra.mxu2 %v11778_v29  ;;  %v15577_v55 = vld [vmem:[#allocation6 + $0xd4c] sm:$0xf]  ;;  %v11714_v61 = vor.u32 %v15513_v52, %v11711_v53  ;;  %v17074_v52 = vpop.f32.mrf.mxu3 }
 0x16d   : > { %v11967_v56 = vld [vmem:[#allocation6 + $0xd68] sm:$0xf0]  ;;  %3501 = vmatmul.bf16.vlgmr.msrb.gmra.mxu3 %v17022_v0  ;;  %18635 = vst [vmem:[#allocation23_spill] sm:$0xff] %v17072_v40 }
 0x16e   : > { %3549 = vmatpush.bf16.msra.mxu3 %v12034_v34  ;;  %3522 = vmatpush.bf16.msra.mxu1 %v11490_v45  ;;  %v15377_v62 = vld [vmem:[#allocation6 + $0x70c] sm:$0xf]  ;;  %v11970_v3 = vor.u32 %v15577_v55, %v11967_v56 }
 0x16f   : > { %v11167_v1 = vld [vmem:[#allocation6 + $0x728] sm:$0xf0] }
 0x170   : > { %3508 = vmatpush.bf16.msra.mxu0 %v11234_v44  ;;  %3536 = vmatpush.bf16.msra.mxu2 %v11746_v46  ;;  %v15441_v2 = vld [vmem:[#allocation6 + $0x90c] sm:$0xf]  ;;  %v11170_v12 = vor.u32 %v15377_v62, %v11167_v1 }
 0x171   : > { %v11423_v4 = vld [vmem:[#allocation6 + $0x928] sm:$0xf0] }
 0x172   : > { %3550 = vmatpush.bf16.msra.mxu3 %v12002_v50  ;;  %v15505_v5 = vld [vmem:[#allocation6 + $0xb0c] sm:$0xf]  ;;  %3523 = vmatpush.bf16.msra.mxu1 %v11458_v60  ;;  %v11426_v13 = vor.u32 %v15441_v2, %v11423_v4 }
 0x173   : > { %v11679_v6 = vld [vmem:[#allocation6 + $0xb28] sm:$0xf0] }
 0x174   : > { %v15569_v8 = vld [vmem:[#allocation6 + $0xd0c] sm:$0xf]  ;;  %3509 = vmatpush.bf16.msra.mxu0 %v11202_v58  ;;  %3537 = vmatpush.bf16.msra.mxu2 %v11714_v61  ;;  %v11682_v14 = vor.u32 %v15505_v5, %v11679_v6 }
 0x175   : > { %v11935_v9 = vld [vmem:[#allocation6 + $0xd28] sm:$0xf0] }
 0x176   : > { %v15369_v17 = vld [vmem:[#allocation6 + $0x6cc] sm:$0xf]  ;;  %3551 = vmatpush.bf16.msra.mxu3 %v11970_v3  ;;  %v11938_v20 = vor.u32 %v15569_v8, %v11935_v9  ;;  %3524 = vmatpush.bf16.msra.mxu1 %v11426_v13  ;;  %v10501_v13 = vld [vmem:[#allocation6 + $0x1d0] sm:$0xf] }
 0x177   : > { %v11135_v18 = vld [vmem:[#allocation6 + $0x6e8] sm:$0xf0] }
 0x178   : > { %v15433_v19 = vld [vmem:[#allocation6 + $0x8cc] sm:$0xf]  ;;  %3510 = vmatpush.bf16.msra.mxu0 %v11170_v12  ;;  %v11138_v28 = vor.u32 %v15369_v17, %v11135_v18  ;;  %3538 = vmatpush.bf16.msra.mxu2 %v11682_v14  ;;  %v15214_v14 = vld [vmem:[#allocation6 + $0x1ec] sm:$0xf0] }
 0x179   : > { %v11391_v22 = vld [vmem:[#allocation6 + $0x8e8] sm:$0xf0]  ;;  %v15278_v18 = vld [vmem:[#allocation6 + $0x3ec] sm:$0xf0] }
 0x17a   : > { %v15497_v24 = vld [vmem:[#allocation6 + $0xacc] sm:$0xf]  ;;  %v11394_v16 = vor.u32 %v15433_v19, %v11391_v22  ;;  %3552 = vmatpush.bf16.msra.mxu3 %v11938_v20  ;;  %v11013_v19 = vld [vmem:[#allocation6 + $0x5d0] sm:$0xf] }
 0x17b   : > { %v11647_v25 = vld [vmem:[#allocation6 + $0xae8] sm:$0xf0]  ;;  %v15342_v20 = vld [vmem:[#allocation6 + $0x5ec] sm:$0xf0] }
 0x17c   : > { %v15561_v26 = vld [vmem:[#allocation6 + $0xccc] sm:$0xf]  ;;  %v11650_v29 = vor.u32 %v15497_v24, %v11647_v25  ;;  %3511 = vmatpush.bf16.msra.mxu0 %v11138_v28  ;;  %3525 = vmatpush.bf16.msra.mxu1 %v11394_v16  ;;  %v11269_v24 = vld [vmem:[#allocation6 + $0x7d0] sm:$0xf]  ;;  %v3278_v28 = vpop.f32.mrf.mxu3  ;;  %v10758_v16 = vor.u32 %v15278_v18, %v10757_v15 }
 0x17d   : > { %v11903_v27 = vld [vmem:[#allocation6 + $0xce8] sm:$0xf0]  ;;  %v15406_v25 = vld [vmem:[#allocation6 + $0x7ec] sm:$0xf0] }
 0x17e   : > { %v15361_v31 = vld [vmem:[#allocation6 + $0x68c] sm:$0xf]  ;;  %v11906_v34 = vor.u32 %v15561_v26, %v11903_v27  ;;  %3539 = vmatpush.bf16.msra.mxu2 %v11650_v29  ;;  %v10502_v27 = vor.u32 %v15214_v14, %v10501_v13  ;;  %v11014_v29 = vor.u32 %v15342_v20, %v11013_v19  ;;  %v15254_v13 = vld [vmem:[#allocation6 + $0x32c] sm:$0xf0] }
 0x17f   : > { %v11103_v32 = vld [vmem:[#allocation6 + $0x6a8] sm:$0xf0]  ;;  %v10917_v14 = vld [vmem:[#allocation6 + $0x510] sm:$0xf] }
 0x180   : > { %v15425_v33 = vld [vmem:[#allocation6 + $0x88c] sm:$0xf]  ;;  %v11106_v46 = vor.u32 %v15361_v31, %v11103_v32  ;;  %3553 = vmatpush.bf16.msra.mxu3 %v11906_v34  ;;  %v10469_v31 = vld [vmem:[#allocation6 + $0x190] sm:$0xf]  ;;  %v11270_v34 = vor.u32 %v15406_v25, %v11269_v24 }
 0x181   : > { %v11359_v36 = vld [vmem:[#allocation6 + $0x8a8] sm:$0xf0]  ;;  %v15206_v32 = vld [vmem:[#allocation6 + $0x1ac] sm:$0xf0] }
 0x182   : > { %v15489_v38 = vld [vmem:[#allocation6 + $0xa8c] sm:$0xf]  ;;  %v11362_v47 = vor.u32 %v15425_v33, %v11359_v36  ;;  %3512 = vmatpush.bf16.msra.mxu0 %v11106_v46  ;;  %v10725_v33 = vld [vmem:[#allocation6 + $0x390] sm:$0xf]  ;;  %v18608_v46 = vperm.slane %v17050_v54, 1 }
 0x183   : > { %v11615_v39 = vld [vmem:[#allocation6 + $0xaa8] sm:$0xf0]  ;;  %v10981_v36 = vld [vmem:[#allocation6 + $0x590] sm:$0xf] }
 0x184   : > { %v15553_v44 = vld [vmem:[#allocation6 + $0xc8c] sm:$0xf]  ;;  %v11618_v48 = vor.u32 %v15489_v38, %v11615_v39  ;;  %3526 = vmatpush.bf16.msra.mxu1 %v11362_v47  ;;  %v15334_v38 = vld [vmem:[#allocation6 + $0x5ac] sm:$0xf0]  ;;  %v17076_v39 = vpop.f32.mrf.mxu0  ;;  %v10470_v47 = vor.u32 %v15206_v32, %v10469_v31 }
 0x185   : > { %v11871_v45 = vld [vmem:[#allocation6 + $0xca8] sm:$0xf0]  ;;  %v15318_v15 = vld [vmem:[#allocation6 + $0x52c] sm:$0xf0] }
 0x186   : > { %v15353_v49 = vld [vmem:[#allocation6 + $0x64c] sm:$0xf]  ;;  %v11874_v53 = vor.u32 %v15553_v44, %v11871_v45  ;;  %3540 = vmatpush.bf16.msra.mxu2 %v11618_v48  ;;  %v11237_v44 = vld [vmem:[#allocation6 + $0x790] sm:$0xf]  ;;  %v17079_v48 = vpop.f32.mrf.mxu1  ;;  %v10918_v24 = vor.u32 %v15318_v15, %v10917_v14 }
 0x187   : > { %v11071_v50 = vld [vmem:[#allocation6 + $0x668] sm:$0xf0]  ;;  %v15398_v45 = vld [vmem:[#allocation6 + $0x7ac] sm:$0xf0] }
 0x188   : > { %v15417_v51 = vld [vmem:[#allocation6 + $0x84c] sm:$0xf]  ;;  %v11074_v62 = vor.u32 %v15353_v49, %v11071_v50  ;;  %3554 = vmatpush.bf16.msra.mxu3 %v11874_v53  ;;  %v10726_v49 = vor.u32 %v15270_v35, %v10725_v33  ;;  %v10982_v50 = vor.u32 %v15334_v38, %v10981_v36  ;;  %v15198_v53 = vld [vmem:[#allocation6 + $0x16c] sm:$0xf0] }
 0x189   : > { %v11327_v55 = vld [vmem:[#allocation6 + $0x868] sm:$0xf0]  ;;  %v11173_v18 = vld [vmem:[#allocation6 + $0x710] sm:$0xf] }
 0x18a   : > { %v15481_v56 = vld [vmem:[#allocation6 + $0xa4c] sm:$0xf]  ;;  %v11330_v3 = vor.u32 %v15417_v51, %v11327_v55  ;;  %3513 = vmatpush.bf16.msra.mxu0 %v11074_v62  ;;  %v10437_v51 = vld [vmem:[#allocation6 + $0x150] sm:$0xf] }
 0x18b   : > { %v11583_v58 = vld [vmem:[#allocation6 + $0xa68] sm:$0xf0]  ;;  %v10693_v55 = vld [vmem:[#allocation6 + $0x350] sm:$0xf] }
 0x18c   : > { %v15545_v60 = vld [vmem:[#allocation6 + $0xc4c] sm:$0xf]  ;;  %v11586_v4 = vor.u32 %v15481_v56, %v11583_v58  ;;  %3527 = vmatpush.bf16.msra.mxu1 %v11330_v3  ;;  %v11238_v56 = vor.u32 %v15398_v45, %v11237_v44  ;;  %v15262_v58 = vld [vmem:[#allocation6 + $0x36c] sm:$0xf0]  ;;  %v10438_v3 = vor.u32 %v15198_v53, %v10437_v51 }
 0x18d   : > { %v11839_v61 = vld [vmem:[#allocation6 + $0xc68] sm:$0xf0]  ;;  %v11205_v62 = vld [vmem:[#allocation6 + $0x750] sm:$0xf] }
 0x18e   : > { %v15345_v1 = vld [vmem:[#allocation6 + $0x60c] sm:$0xf]  ;;  %v11842_v8 = vor.u32 %v15545_v60, %v11839_v61  ;;  %3541 = vmatpush.bf16.msra.mxu2 %v11586_v4  ;;  %v10949_v60 = vld [vmem:[#allocation6 + $0x550] sm:$0xf]  ;;  %v10694_v4 = vor.u32 %v15262_v58, %v10693_v55  ;;  %v3306_v25 = vpop.f32.mrf.mxu1 }
 0x18f   : > { %v11039_v2 = vld [vmem:[#allocation6 + $0x628] sm:$0xf0]  ;;  %v15326_v61 = vld [vmem:[#allocation6 + $0x56c] sm:$0xf0] }
 0x190   : > { %v15409_v5 = vld [vmem:[#allocation6 + $0x80c] sm:$0xf]  ;;  %v11042_v17 = vor.u32 %v15345_v1, %v11039_v2  ;;  %3555 = vmatpush.bf16.msra.mxu3 %v11842_v8  ;;  %v15390_v1 = vld [vmem:[#allocation6 + $0x76c] sm:$0xf0]  ;;  %v3279_v2 = vadd.f32 %v3278_v28, %v18608_v46  ;;  %v10831_v46 = vld [vmem:[#allocation6 + $0x478] sm:$0xf0] }
 0x191   : > { %v11295_v6 = vld [vmem:[#allocation6 + $0x828] sm:$0xf0]  ;;  %v10661_v8 = vld [vmem:[#allocation6 + $0x310] sm:$0xf] }
 0x192   : > { %v15473_v7 = vld [vmem:[#allocation6 + $0xa0c] sm:$0xf]  ;;  %v11298_v21 = vor.u32 %v15409_v5, %v11295_v6  ;;  %3514 = vmatpush.bf16.msra.mxu0 %v11042_v17  ;;  %v10950_v5 = vor.u32 %v15326_v61, %v10949_v60  ;;  %v10405_v6 = vld [vmem:[#allocation6 + $0x110] sm:$0xf]  ;;  %v3292_v17 = vpop.f32.mrf.mxu0 }
 0x193   : > { %v11551_v9 = vld [vmem:[#allocation6 + $0xa28] sm:$0xf0]  ;;  %v15382_v19 = vld [vmem:[#allocation6 + $0x72c] sm:$0xf0]  ;;  %v3293_v20 = vadd.f32 %v3292_v17, %v3279_v2 }
 0x194   : > { %v15537_v10 = vld [vmem:[#allocation6 + $0xc0c] sm:$0xf]  ;;  %v11554_v22 = vor.u32 %v15473_v7, %v11551_v9  ;;  %3528 = vmatpush.bf16.msra.mxu1 %v11298_v21  ;;  %v15190_v7 = vld [vmem:[#allocation6 + $0x12c] sm:$0xf0]  ;;  %v17087_v9 = vpop.f32.mrf.mxu2 }
 0x195   : > { %v11807_v12 = vld [vmem:[#allocation6 + $0xc28] sm:$0xf0]  ;;  %3515 = vmatmul.bf16.vlgmr.msra.gmra.mxu0 %v17029_v23  ;;  %18636 = vst [vmem:[#allocation24_spill] sm:$0xff] %v17087_v9  ;;  %v10406_v21 = vor.u32 %v15190_v7, %v10405_v6  ;;  %v10629_v28 = vld [vmem:[#allocation6 + $0x2d0] sm:$0xf] }
 0x196   : > { %v11810_v26 = vor.u32 %v15537_v10, %v11807_v12  ;;  %3542 = vmatpush.bf16.msra.mxu2 %v11554_v22  ;;  %3563 = vmatpush.bf16.msrb.mxu0 %v10502_v27  ;;  %v11206_v10 = vor.u32 %v15390_v1, %v11205_v62  ;;  %v17089_v12 = vpop.f32.mrf.mxu3  ;;  %v10662_v22 = vor.u32 %v15254_v13, %v10661_v8  ;;  %v15182_v27 = vld [vmem:[#allocation6 + $0xec] sm:$0xf0]  ;;  %v11503_v9 = vld [vmem:[#allocation6 + $0x9b8] sm:$0xf0] }
 0x197   : > { %3529 = vmatmul.bf16.vlgmr.msra.gmra.mxu1 %v17032_v37  ;;  %v15246_v31 = vld [vmem:[#allocation6 + $0x2ec] sm:$0xf0] }
 0x198   : > { %3556 = vmatpush.bf16.msra.mxu3 %v11810_v26  ;;  %3577 = vmatpush.bf16.msrb.mxu1 %v10758_v16  ;;  %v10373_v26 = vld [vmem:[#allocation6 + $0xd0] sm:$0xf]  ;;  %v11174_v16 = vor.u32 %v15382_v19, %v11173_v18  ;;  %v10630_v38 = vor.u32 %v15246_v31, %v10629_v28 }
 0x199   : > { %3543 = vmatmul.bf16.vlgmr.msra.gmra.mxu2 %v17036_v42  ;;  %v10885_v32 = vld [vmem:[#allocation6 + $0x4d0] sm:$0xf]  ;;  %v10374_v36 = vor.u32 %v15182_v27, %v10373_v26 }
 0x19a   : > { %3591 = vmatpush.bf16.msrb.mxu2 %v11014_v29  ;;  %3564 = vmatpush.bf16.msrb.mxu0 %v10470_v47  ;;  %v3307_v29 = vadd.f32 %v3306_v25, %v3293_v20  ;;  %v15310_v33 = vld [vmem:[#allocation6 + $0x4ec] sm:$0xf0] }
 0x19b   : > { %3557 = vmatmul.bf16.vlgmr.msra.gmra.mxu3 %v17034_v41  ;;  %v15374_v35 = vld [vmem:[#allocation6 + $0x6ec] sm:$0xf0]  ;;  %v10886_v44 = vor.u32 %v15310_v33, %v10885_v32 }
 0x19c   : > { %3605 = vmatpush.bf16.msrb.mxu3 %v11270_v34  ;;  %3578 = vmatpush.bf16.msrb.mxu1 %v10726_v49  ;;  %v11141_v34 = vld [vmem:[#allocation6 + $0x6d0] sm:$0xf]  ;;  %v3320_v51 = vpop.f32.mrf.mxu2 }
 0x19d   : > { %v10341_v45 = vld [vmem:[#allocation6 + $0x90] sm:$0xf]  ;;  %v3321_v58 = vadd.f32 %v3320_v51, %v3307_v29 }
 0x19e   : > { %3592 = vmatpush.bf16.msrb.mxu2 %v10982_v50  ;;  %3565 = vmatpush.bf16.msrb.mxu0 %v10438_v3  ;;  %v15174_v47 = vld [vmem:[#allocation6 + $0xac] sm:$0xf0]  ;;  %v11142_v50 = vor.u32 %v15374_v35, %v11141_v34  ;;  %v3334_v62 = vpop.f32.mrf.mxu3 }
 0x19f   : > { %v10597_v49 = vld [vmem:[#allocation6 + $0x290] sm:$0xf]  ;;  %v10342_v1 = vor.u32 %v15174_v47, %v10341_v45  ;;  %v17091_v2 = vadd.f32 %v3334_v62, %v3321_v58  ;;  %v15210_v47 = vld [vmem:[#allocation6 + $0x1d4] sm:$0xf] }
 0x1a0   : > { %3606 = vmatpush.bf16.msrb.mxu3 %v11238_v56  ;;  %3579 = vmatpush.bf16.msrb.mxu1 %v10694_v4  ;;  %v15238_v53 = vld [vmem:[#allocation6 + $0x2ac] sm:$0xf0] }
 0x1a1   : > { %v10853_v55 = vld [vmem:[#allocation6 + $0x490] sm:$0xf]  ;;  %v10598_v3 = vor.u32 %v15238_v53, %v10597_v49  ;;  %v10503_v49 = vld [vmem:[#allocation6 + $0x1f0] sm:$0xf0] }
 0x1a2   : > { %3593 = vmatpush.bf16.msrb.mxu2 %v10950_v5  ;;  %3566 = vmatpush.bf16.msrb.mxu0 %v10406_v21  ;;  %v15302_v56 = vld [vmem:[#allocation6 + $0x4ac] sm:$0xf0] }
 0x1a3   : > { %v11109_v60 = vld [vmem:[#allocation6 + $0x690] sm:$0xf]  ;;  %v10854_v4 = vor.u32 %v15302_v56, %v10853_v55 }
 0x1a4   : > { %3607 = vmatpush.bf16.msrb.mxu3 %v11206_v10  ;;  %3580 = vmatpush.bf16.msrb.mxu1 %v10662_v22  ;;  %v15366_v61 = vld [vmem:[#allocation6 + $0x6ac] sm:$0xf0] }
 0x1a5   : > { %v10309_v5 = vld [vmem:[#allocation6 + $0x50] sm:$0xf]  ;;  %v11110_v8 = vor.u32 %v15366_v61, %v11109_v60  ;;  %v10506_v61 = vor.u32 %v15210_v47, %v10503_v49 }
 0x1a6   : > { %3594 = vmatpush.bf16.msrb.mxu2 %v10918_v24  ;;  %3567 = vmatpush.bf16.msrb.mxu0 %v10374_v36  ;;  %v15166_v6 = vld [vmem:[#allocation6 + $0x6c] sm:$0xf0] }
 0x1a7   : > { %v10565_v7 = vld [vmem:[#allocation6 + $0x250] sm:$0xf]  ;;  %v10310_v18 = vor.u32 %v15166_v6, %v10309_v5  ;;  %v15202_v5 = vld [vmem:[#allocation6 + $0x194] sm:$0xf] }
 0x1a8   : > { %3608 = vmatpush.bf16.msrb.mxu3 %v11174_v16  ;;  %3581 = vmatpush.bf16.msrb.mxu1 %v10630_v38  ;;  %v15230_v10 = vld [vmem:[#allocation6 + $0x26c] sm:$0xf0]  ;;  %v10471_v6 = vld [vmem:[#allocation6 + $0x1b0] sm:$0xf0] }
 0x1a9   : > { %v10821_v13 = vld [vmem:[#allocation6 + $0x450] sm:$0xf]  ;;  %v10566_v21 = vor.u32 %v15230_v10, %v10565_v7  ;;  %v17095_v7 = vpop.f32.mrf.mxu1 }
 0x1aa   : > { %3595 = vmatpush.bf16.msrb.mxu2 %v10886_v44  ;;  %v15294_v14 = vld [vmem:[#allocation6 + $0x46c] sm:$0xf0]  ;;  %3568 = vmatpush.bf16.msrb.mxu0 %v10342_v1 }
 0x1ab   : > { %v11077_v15 = vld [vmem:[#allocation6 + $0x650] sm:$0xf]  ;;  %v10822_v22 = vor.u32 %v15294_v14, %v10821_v13 }
 0x1ac   : > { %3609 = vmatpush.bf16.msrb.mxu3 %v11142_v50  ;;  %v15358_v17 = vld [vmem:[#allocation6 + $0x66c] sm:$0xf0]  ;;  %3582 = vmatpush.bf16.msrb.mxu1 %v10598_v3 }
 0x1ad   : > { %v10277_v19 = vld [vmem:[#allocation6 + $0x10] sm:$0xf]  ;;  %v11078_v27 = vor.u32 %v15358_v17, %v11077_v15 }
 0x1ae   : > { %v15158_v20 = vld [vmem:[#allocation6 + $0x2c] sm:$0xf0]  ;;  %3596 = vmatpush.bf16.msrb.mxu2 %v10854_v4  ;;  %3569 = vmatpush.bf16.msrb.mxu0 %v10310_v18  ;;  %v17093_v4 = vpop.f32.mrf.mxu0  ;;  %v10474_v18 = vor.u32 %v15202_v5, %v10471_v6  ;;  %v15178_v5 = vld [vmem:[#allocation6 + $0xd4] sm:$0xf] }
 0x1af   : > { %v10533_v24 = vld [vmem:[#allocation6 + $0x210] sm:$0xf]  ;;  %v10278_v34 = vor.u32 %v15158_v20, %v10277_v19  ;;  %v10375_v6 = vld [vmem:[#allocation6 + $0xf0] sm:$0xf0] }
 0x1b0   : > { %v15222_v25 = vld [vmem:[#allocation6 + $0x22c] sm:$0xf0]  ;;  %3610 = vmatpush.bf16.msrb.mxu3 %v11110_v8  ;;  %3583 = vmatpush.bf16.msrb.mxu1 %v10566_v21 }
 0x1b1   : > { %v10789_v26 = vld [vmem:[#allocation6 + $0x410] sm:$0xf]  ;;  %v10534_v44 = vor.u32 %v15222_v25, %v10533_v24  ;;  %v10439_v24 = vld [vmem:[#allocation6 + $0x170] sm:$0xf0] }
 0x1b2   : > { %v15286_v28 = vld [vmem:[#allocation6 + $0x42c] sm:$0xf0]  ;;  %3597 = vmatpush.bf16.msrb.mxu2 %v10822_v22  ;;  %3570 = vmatpush.bf16.msrb.mxu0 %v10278_v34  ;;  %v15194_v22 = vld [vmem:[#allocation6 + $0x154] sm:$0xf] }
 0x1b3   : > { %v11045_v16 = vld [vmem:[#allocation6 + $0x610] sm:$0xf]  ;;  %v10790_v45 = vor.u32 %v15286_v28, %v10789_v26 }
 0x1b4   : > { %v15350_v29 = vld [vmem:[#allocation6 + $0x62c] sm:$0xf0]  ;;  %3611 = vmatpush.bf16.msrb.mxu3 %v11078_v27  ;;  %3584 = vmatpush.bf16.msrb.mxu1 %v10534_v44  ;;  %v10407_v44 = vld [vmem:[#allocation6 + $0x130] sm:$0xf0] }
 0x1b5   : > { %v11525_v31 = vld [vmem:[#allocation6 + $0x9d0] sm:$0xf]  ;;  %v11046_v50 = vor.u32 %v15350_v29, %v11045_v16  ;;  %3571 = vmatmul.bf16.vlgmr.msrb.gmra.mxu0 %v17020_v57 }
 0x1b6   : > { %v15470_v32 = vld [vmem:[#allocation6 + $0x9ec] sm:$0xf0]  ;;  %3598 = vmatpush.bf16.msrb.mxu2 %v10790_v45  ;;  %v17103_v45 = vpop.f32.mrf.mxu3 }
 0x1b7   : > { %v11781_v33 = vld [vmem:[#allocation6 + $0xbd0] sm:$0xf]  ;;  %v11526_v51 = vor.u32 %v15470_v32, %v11525_v31  ;;  %3585 = vmatmul.bf16.vlgmr.msrb.gmra.mxu1 %v17026_v11  ;;  %v17101_v31 = vpop.f32.mrf.mxu2  ;;  %v10442_v32 = vor.u32 %v15194_v22, %v10439_v24  ;;  %v15170_v24 = vld [vmem:[#allocation6 + $0x94] sm:$0xf] }
 0x1b8   : > { %v15534_v35 = vld [vmem:[#allocation6 + $0xbec] sm:$0xf0]  ;;  %3612 = vmatpush.bf16.msrb.mxu3 %v11046_v50  ;;  %v3362_v50 = vpop.f32.mrf.mxu1 }
 0x1b9   : > { %v12037_v36 = vld [vmem:[#allocation6 + $0xdd0] sm:$0xf]  ;;  %v11782_v53 = vor.u32 %v15534_v35, %v11781_v33  ;;  %3619 = vmatpush.bf16.msra.mxu0 %v11526_v51  ;;  %3599 = vmatmul.bf16.vlgmr.msrb.gmra.mxu2 %v17022_v0 }
 0x1ba   : > { %v15598_v38 = vld [vmem:[#allocation6 + $0xdec] sm:$0xf0] }
 0x1bb   : > { %v12038_v55 = vor.u32 %v15598_v38, %v12037_v36  ;;  %v11493_v56 = vld [vmem:[#allocation6 + $0x990] sm:$0xf]  ;;  %3633 = vmatpush.bf16.msra.mxu1 %v11782_v53  ;;  %3613 = vmatmul.bf16.vlgmr.msrb.gmra.mxu3 %v17029_v23  ;;  %v3348_v36 = vpop.f32.mrf.mxu0  ;;  %v15186_v38 = vld [vmem:[#allocation6 + $0x114] sm:$0xf] }
 0x1bc   : > { %v15462_v58 = vld [vmem:[#allocation6 + $0x9ac] sm:$0xf0]  ;;  %3661 = vmatpush.bf16.msra.mxu3 %v10506_v61  ;;  %v3349_v47 = vadd.f32 %v3348_v36, %v17091_v2  ;;  %v18607_v2 = vperm.slane %v17050_v54, 2 }
 0x1bd   : > { %v11749_v60 = vld [vmem:[#allocation6 + $0xb90] sm:$0xf]  ;;  %v11494_v8 = vor.u32 %v15462_v58, %v11493_v56  ;;  %3647 = vmatpush.bf16.msra.mxu2 %v12038_v55 }
 0x1be   : > { %v15526_v62 = vld [vmem:[#allocation6 + $0xbac] sm:$0xf0]  ;;  %v17106_v61 = vadd.f32 %v3362_v50, %v3349_v47  ;;  %v10311_v50 = vld [vmem:[#allocation6 + $0x70] sm:$0xf0] }
 0x1bf   : > { %v12005_v1 = vld [vmem:[#allocation6 + $0xd90] sm:$0xf]  ;;  %v11750_v10 = vor.u32 %v15526_v62, %v11749_v60  ;;  %3620 = vmatpush.bf16.msra.mxu0 %v11494_v8  ;;  %v10410_v60 = vor.u32 %v15186_v38, %v10407_v44  ;;  %v3376_v22 = vpop.f32.mrf.mxu2 }
 0x1c0   : > { %v15590_v3 = vld [vmem:[#allocation6 + $0xdac] sm:$0xf0]  ;;  %3662 = vmatpush.bf16.msra.mxu3 %v10474_v18  ;;  %18637 = vst [vmem:[#allocation25_spill] sm:$0xff] %v17106_v61  ;;  %v10378_v18 = vor.u32 %v15178_v5, %v10375_v6  ;;  %v15154_v6 = vld [vmem:[#allocation6 + $0x14] sm:$0xf] }
 0x1c1   : > { %v12006_v13 = vor.u32 %v15590_v3, %v12005_v1  ;;  %v11461_v14 = vld [vmem:[#allocation6 + $0x950] sm:$0xf]  ;;  %3634 = vmatpush.bf16.msra.mxu1 %v11750_v10 }
 0x1c2   : > { %v15454_v15 = vld [vmem:[#allocation6 + $0x96c] sm:$0xf0] }
 0x1c3   : > { %v11717_v17 = vld [vmem:[#allocation6 + $0xb50] sm:$0xf]  ;;  %v11462_v25 = vor.u32 %v15454_v15, %v11461_v14  ;;  %3648 = vmatpush.bf16.msra.mxu2 %v12006_v13 }
 0x1c4   : > { %v15518_v19 = vld [vmem:[#allocation6 + $0xb6c] sm:$0xf0]  ;;  %3663 = vmatpush.bf16.msra.mxu3 %v10442_v32 }
 0x1c5   : > { %v11973_v20 = vld [vmem:[#allocation6 + $0xd50] sm:$0xf]  ;;  %v11718_v26 = vor.u32 %v15518_v19, %v11717_v17  ;;  %3621 = vmatpush.bf16.msra.mxu0 %v11462_v25  ;;  %v10343_v25 = vld [vmem:[#allocation6 + $0xb0] sm:$0xf0] }
 0x1c6   : > { %v15582_v21 = vld [vmem:[#allocation6 + $0xd6c] sm:$0xf0]  ;;  %v10346_v36 = vor.u32 %v15170_v24, %v10343_v25  ;;  %v11527_v24 = vld [vmem:[#allocation6 + $0x9f0] sm:$0xf0] }
 0x1c7   : > { %v11974_v27 = vor.u32 %v15582_v21, %v11973_v20  ;;  %v11429_v28 = vld [vmem:[#allocation6 + $0x910] sm:$0xf]  ;;  %3635 = vmatpush.bf16.msra.mxu1 %v11718_v26  ;;  %v3377_v26 = vadd.f32 %v3376_v22, %v18607_v2  ;;  %v15466_v22 = vld [vmem:[#allocation6 + $0x9d4] sm:$0xf]  ;;  %v15291_v2 = vld [vmem:[#allocation6 + $0x45c] sm:$0xf] }
 0x1c8   : > { %v15446_v16 = vld [vmem:[#allocation6 + $0x92c] sm:$0xf0]  ;;  %3664 = vmatpush.bf16.msra.mxu3 %v10410_v60 }
 0x1c9   : > { %v11685_v29 = vld [vmem:[#allocation6 + $0xb10] sm:$0xf]  ;;  %v11430_v49 = vor.u32 %v15446_v16, %v11429_v28  ;;  %3649 = vmatpush.bf16.msra.mxu2 %v11974_v27  ;;  %v3390_v28 = vpop.f32.mrf.mxu3 }
 0x1ca   : > { %v15510_v33 = vld [vmem:[#allocation6 + $0xb2c] sm:$0xf0] }
 0x1cb   : > { %v11941_v34 = vld [vmem:[#allocation6 + $0xd10] sm:$0xf]  ;;  %v11686_v51 = vor.u32 %v15510_v33, %v11685_v29  ;;  %3622 = vmatpush.bf16.msra.mxu0 %v11430_v49  ;;  %v15162_v49 = vld [vmem:[#allocation6 + $0x54] sm:$0xf] }
 0x1cc   : > { %v15574_v35 = vld [vmem:[#allocation6 + $0xd2c] sm:$0xf0]  ;;  %3665 = vmatpush.bf16.msra.mxu3 %v10378_v18  ;;  %v15402_v18 = vld [vmem:[#allocation6 + $0x7d4] sm:$0xf] }
 0x1cd   : > { %v11942_v53 = vor.u32 %v15574_v35, %v11941_v34  ;;  %v11397_v55 = vld [vmem:[#allocation6 + $0x8d0] sm:$0xf]  ;;  %3636 = vmatpush.bf16.msra.mxu1 %v11686_v51  ;;  %v17111_v35 = vadd.f32 %v3390_v28, %v3377_v26 }
 0x1ce   : > { %v15438_v56 = vld [vmem:[#allocation6 + $0x8ec] sm:$0xf0] }
 0x1cf   : > { %v11653_v58 = vld [vmem:[#allocation6 + $0xad0] sm:$0xf]  ;;  %v11398_v8 = vor.u32 %v15438_v56, %v11397_v55  ;;  %3650 = vmatpush.bf16.msra.mxu2 %v11942_v53 }
 0x1d0   : > { %v15502_v62 = vld [vmem:[#allocation6 + $0xaec] sm:$0xf0]  ;;  %3666 = vmatpush.bf16.msra.mxu3 %v10346_v36  ;;  %v15394_v36 = vld [vmem:[#allocation6 + $0x794] sm:$0xf] }
 0x1d1   : > { %v11909_v1 = vld [vmem:[#allocation6 + $0xcd0] sm:$0xf]  ;;  %v11654_v10 = vor.u32 %v15502_v62, %v11653_v58  ;;  %3623 = vmatpush.bf16.msra.mxu0 %v11398_v8  ;;  %v10279_v8 = vld [vmem:[#allocation6 + $0x30] sm:$0xf0] }
 0x1d2   : > { %v15566_v3 = vld [vmem:[#allocation6 + $0xcec] sm:$0xf0]  ;;  %v10282_v25 = vor.u32 %v15154_v6, %v10279_v8  ;;  %v15450_v6 = vld [vmem:[#allocation6 + $0x954] sm:$0xf] }
 0x1d3   : > { %v11910_v13 = vor.u32 %v15566_v3, %v11909_v1  ;;  %v11365_v14 = vld [vmem:[#allocation6 + $0x890] sm:$0xf]  ;;  %3637 = vmatpush.bf16.msra.mxu1 %v11654_v10  ;;  %v10314_v3 = vor.u32 %v15162_v49, %v10311_v50  ;;  %v15274_v10 = vld [vmem:[#allocation6 + $0x3d4] sm:$0xf] }
 0x1d4   : > { %v15430_v15 = vld [vmem:[#allocation6 + $0x8ac] sm:$0xf0]  ;;  %v11495_v49 = vld [vmem:[#allocation6 + $0x9b0] sm:$0xf0] }
 0x1d5   : > { %v11621_v17 = vld [vmem:[#allocation6 + $0xa90] sm:$0xf]  ;;  %v11366_v27 = vor.u32 %v15430_v15, %v11365_v14  ;;  %3651 = vmatpush.bf16.msra.mxu2 %v11910_v13  ;;  %v10759_v13 = vld [vmem:[#allocation6 + $0x3f0] sm:$0xf0]  ;;  %3667 = vmatpush.bf16.msra.mxu3 %v10314_v3 }
 0x1d6   : > { %v15494_v19 = vld [vmem:[#allocation6 + $0xaac] sm:$0xf0]  ;;  %v15338_v14 = vld [vmem:[#allocation6 + $0x5d4] sm:$0xf]  ;;  %v10762_v26 = vor.u32 %v15274_v10, %v10759_v13 }
 0x1d7   : > { %v11877_v20 = vld [vmem:[#allocation6 + $0xc90] sm:$0xf]  ;;  %v11622_v16 = vor.u32 %v15494_v19, %v11621_v17  ;;  %3624 = vmatpush.bf16.msra.mxu0 %v11366_v27  ;;  %v11015_v17 = vld [vmem:[#allocation6 + $0x5f0] sm:$0xf0] }
 0x1d8   : > { %v15558_v21 = vld [vmem:[#allocation6 + $0xcac] sm:$0xf0]  ;;  %v11271_v19 = vld [vmem:[#allocation6 + $0x7f0] sm:$0xf0]  ;;  %v11018_v27 = vor.u32 %v15338_v14, %v11015_v17 }
 0x1d9   : > { %v11878_v29 = vor.u32 %v15558_v21, %v11877_v20  ;;  %v11333_v32 = vld [vmem:[#allocation6 + $0x850] sm:$0xf]  ;;  %3638 = vmatpush.bf16.msra.mxu1 %v11622_v16  ;;  %v11274_v28 = vor.u32 %v15402_v18, %v11271_v19  ;;  %v15266_v16 = vld [vmem:[#allocation6 + $0x394] sm:$0xf]  ;;  %3668 = vmatpush.bf16.msra.mxu3 %v10282_v25 }
 0x1da   : > { %v15422_v33 = vld [vmem:[#allocation6 + $0x86c] sm:$0xf0]  ;;  %v15386_v3 = vld [vmem:[#allocation6 + $0x754] sm:$0xf] }
 0x1db   : > { %v11589_v34 = vld [vmem:[#allocation6 + $0xa50] sm:$0xf]  ;;  %v11334_v51 = vor.u32 %v15422_v33, %v11333_v32  ;;  %3652 = vmatpush.bf16.msra.mxu2 %v11878_v29  ;;  %v10727_v29 = vld [vmem:[#allocation6 + $0x3b0] sm:$0xf0]  ;;  %v11530_v33 = vor.u32 %v15466_v22, %v11527_v24 }
 0x1dc   : > { %v15486_v38 = vld [vmem:[#allocation6 + $0xa6c] sm:$0xf0]  ;;  %v15330_v32 = vld [vmem:[#allocation6 + $0x594] sm:$0xf]  ;;  %v10730_v50 = vor.u32 %v15266_v16, %v10727_v29  ;;  %3669 = vmatmul.bf16.vlgmr.msra.gmra.mxu3 %v17020_v57 }
 0x1dd   : > { %v11845_v44 = vld [vmem:[#allocation6 + $0xc50] sm:$0xf]  ;;  %v11590_v56 = vor.u32 %v15486_v38, %v11589_v34  ;;  %3625 = vmatpush.bf16.msra.mxu0 %v11334_v51  ;;  %v10983_v34 = vld [vmem:[#allocation6 + $0x5b0] sm:$0xf0]  ;;  %v17115_v51 = vpop.f32.mrf.mxu1  ;;  %3717 = vmatpush.bf16.msrb.mxu3 %v11530_v33 }
 0x1de   : > { %v15550_v47 = vld [vmem:[#allocation6 + $0xc6c] sm:$0xf0]  ;;  %v11239_v38 = vld [vmem:[#allocation6 + $0x7b0] sm:$0xf0]  ;;  %18638 = vst [vmem:[#allocation26_spill] sm:$0xff] %v17115_v51 }
 0x1df   : > { %v11301_v53 = vld [vmem:[#allocation6 + $0x810] sm:$0xf]  ;;  %v11846_v58 = vor.u32 %v15550_v47, %v11845_v44  ;;  %3639 = vmatpush.bf16.msra.mxu1 %v11590_v56  ;;  %v17113_v44 = vpop.f32.mrf.mxu0  ;;  %v15458_v47 = vld [vmem:[#allocation6 + $0x994] sm:$0xf] }
 0x1e0   : > { %v15414_v55 = vld [vmem:[#allocation6 + $0x82c] sm:$0xf0]  ;;  %v15258_v56 = vld [vmem:[#allocation6 + $0x354] sm:$0xf] }
 0x1e1   : > { %v11557_v60 = vld [vmem:[#allocation6 + $0xa10] sm:$0xf]  ;;  %v11302_v15 = vor.u32 %v15414_v55, %v11301_v53  ;;  %3653 = vmatpush.bf16.msra.mxu2 %v11846_v58  ;;  %v10986_v53 = vor.u32 %v15330_v32, %v10983_v34  ;;  %v11242_v55 = vor.u32 %v15394_v36, %v11239_v38  ;;  %v10695_v58 = vld [vmem:[#allocation6 + $0x370] sm:$0xf0] }
 0x1e2   : > { %v15478_v62 = vld [vmem:[#allocation6 + $0xa2c] sm:$0xf0]  ;;  %v11463_v8 = vld [vmem:[#allocation6 + $0x970] sm:$0xf0]  ;;  %v10698_v10 = vor.u32 %v15258_v56, %v10695_v58 }
 0x1e3   : > { %v11813_v1 = vld [vmem:[#allocation6 + $0xc10] sm:$0xf]  ;;  %v11558_v20 = vor.u32 %v15478_v62, %v11557_v60  ;;  %3626 = vmatpush.bf16.msra.mxu0 %v11302_v15  ;;  %v15322_v60 = vld [vmem:[#allocation6 + $0x554] sm:$0xf]  ;;  %v11498_v62 = vor.u32 %v15458_v47, %v11495_v49  ;;  %v11466_v19 = vor.u32 %v15450_v6, %v11463_v8 }
 0x1e4   : > { %v15542_v5 = vld [vmem:[#allocation6 + $0xc2c] sm:$0xf0]  ;;  %v15250_v15 = vld [vmem:[#allocation6 + $0x314] sm:$0xf] }
 0x1e5   : > { %v11814_v21 = vor.u32 %v15542_v5, %v11813_v1  ;;  %3640 = vmatpush.bf16.msra.mxu1 %v11558_v20  ;;  %v10951_v1 = vld [vmem:[#allocation6 + $0x570] sm:$0xf0]  ;;  %3718 = vmatpush.bf16.msrb.mxu3 %v11498_v62  ;;  %v3418_v32 = vpop.f32.mrf.mxu1 }
 0x1e6   : > { %3627 = vmatmul.bf16.vlgmr.msra.gmra.mxu0 %v17032_v37  ;;  %v11207_v5 = vld [vmem:[#allocation6 + $0x770] sm:$0xf0]  ;;  %v10954_v13 = vor.u32 %v15322_v60, %v10951_v1 }
 0x1e7   : > { %3654 = vmatpush.bf16.msra.mxu2 %v11814_v21  ;;  %3675 = vmatpush.bf16.msrb.mxu0 %v10762_v26  ;;  %v11210_v14 = vor.u32 %v15386_v3, %v11207_v5  ;;  %v10663_v17 = vld [vmem:[#allocation6 + $0x330] sm:$0xf0]  ;;  %v3404_v24 = vpop.f32.mrf.mxu0 }
 0x1e8   : > { %3641 = vmatmul.bf16.vlgmr.msra.gmra.mxu1 %v17036_v42  ;;  %v15314_v18 = vld [vmem:[#allocation6 + $0x514] sm:$0xf] }
 0x1e9   : > { %3689 = vmatpush.bf16.msrb.mxu1 %v11018_v27  ;;  %v10919_v20 = vld [vmem:[#allocation6 + $0x530] sm:$0xf0]  ;;  %v3405_v27 = vadd.f32 %v3404_v24, %v17111_v35  ;;  %3719 = vmatpush.bf16.msrb.mxu3 %v11466_v19 }
 0x1ea   : > { %3655 = vmatmul.bf16.vlgmr.msra.gmra.mxu2 %v17034_v41  ;;  %v15378_v21 = vld [vmem:[#allocation6 + $0x714] sm:$0xf]  ;;  %v10922_v16 = vor.u32 %v15314_v18, %v10919_v20 }
 0x1eb   : > { %3703 = vmatpush.bf16.msrb.mxu2 %v11274_v28  ;;  %3676 = vmatpush.bf16.msrb.mxu0 %v10730_v50  ;;  %v11175_v22 = vld [vmem:[#allocation6 + $0x730] sm:$0xf0]  ;;  %v10666_v28 = vor.u32 %v15250_v15, %v10663_v17  ;;  %v17122_v47 = vadd.f32 %v3418_v32, %v3405_v27 }
 0x1ec   : > { %v15442_v25 = vld [vmem:[#allocation6 + $0x914] sm:$0xf]  ;;  %v11178_v29 = vor.u32 %v15378_v21, %v11175_v22 }
 0x1ed   : > { %3690 = vmatpush.bf16.msrb.mxu1 %v10986_v53  ;;  %v11431_v26 = vld [vmem:[#allocation6 + $0x930] sm:$0xf0] }
 0x1ee   : > { %v15242_v33 = vld [vmem:[#allocation6 + $0x2d4] sm:$0xf]  ;;  %v11434_v38 = vor.u32 %v15442_v25, %v11431_v26 }
 0x1ef   : > { %3704 = vmatpush.bf16.msrb.mxu2 %v11242_v55  ;;  %3677 = vmatpush.bf16.msrb.mxu0 %v10698_v10  ;;  %v10631_v34 = vld [vmem:[#allocation6 + $0x2f0] sm:$0xf0] }
 0x1f0   : > { %v15306_v36 = vld [vmem:[#allocation6 + $0x4d4] sm:$0xf]  ;;  %v10634_v35 = vor.u32 %v15242_v33, %v10631_v34  ;;  %3720 = vmatpush.bf16.msrb.mxu3 %v11434_v38 }
 0x1f1   : > { %3691 = vmatpush.bf16.msrb.mxu1 %v10954_v13  ;;  %v10887_v49 = vld [vmem:[#allocation6 + $0x4f0] sm:$0xf0] }
 0x1f2   : > { %v15370_v50 = vld [vmem:[#allocation6 + $0x6d4] sm:$0xf]  ;;  %v10890_v58 = vor.u32 %v15306_v36, %v10887_v49 }
 0x1f3   : > { %3705 = vmatpush.bf16.msrb.mxu2 %v11210_v14  ;;  %v11143_v53 = vld [vmem:[#allocation6 + $0x6f0] sm:$0xf0]  ;;  %3678 = vmatpush.bf16.msrb.mxu0 %v10666_v28 }
 0x1f4   : > { %v15434_v55 = vld [vmem:[#allocation6 + $0x8d4] sm:$0xf]  ;;  %v11146_v60 = vor.u32 %v15370_v50, %v11143_v53 }
 0x1f5   : > { %v11399_v56 = vld [vmem:[#allocation6 + $0x8f0] sm:$0xf0]  ;;  %3692 = vmatpush.bf16.msrb.mxu1 %v10922_v16 }
 0x1f6   : > { %v15234_v62 = vld [vmem:[#allocation6 + $0x294] sm:$0xf]  ;;  %v11402_v5 = vor.u32 %v15434_v55, %v11399_v56 }
 0x1f7   : > { %3706 = vmatpush.bf16.msrb.mxu2 %v11178_v29  ;;  %v10599_v1 = vld [vmem:[#allocation6 + $0x2b0] sm:$0xf0]  ;;  %3679 = vmatpush.bf16.msrb.mxu0 %v10634_v35 }
 0x1f8   : > { %v15298_v3 = vld [vmem:[#allocation6 + $0x494] sm:$0xf]  ;;  %v10602_v15 = vor.u32 %v15234_v62, %v10599_v1  ;;  %3721 = vmatpush.bf16.msrb.mxu3 %v11402_v5  ;;  %v15215_v5 = vld [vmem:[#allocation6 + $0x1f4] sm:$0xf0] }
 0x1f9   : > { %v10855_v6 = vld [vmem:[#allocation6 + $0x4b0] sm:$0xf0]  ;;  %3693 = vmatpush.bf16.msrb.mxu1 %v10890_v58 }
 0x1fa   : > { %v15362_v8 = vld [vmem:[#allocation6 + $0x694] sm:$0xf]  ;;  %v10858_v17 = vor.u32 %v15298_v3, %v10855_v6  ;;  %v10509_v3 = vld [vmem:[#allocation6 + $0x1d8] sm:$0xf] }
 0x1fb   : > { %v11111_v10 = vld [vmem:[#allocation6 + $0x6b0] sm:$0xf0]  ;;  %3707 = vmatpush.bf16.msrb.mxu2 %v11146_v60  ;;  %3680 = vmatpush.bf16.msrb.mxu0 %v10602_v15 }
 0x1fc   : > { %v15426_v13 = vld [vmem:[#allocation6 + $0x894] sm:$0xf]  ;;  %v11114_v18 = vor.u32 %v15362_v8, %v11111_v10  ;;  %v10765_v10 = vld [vmem:[#allocation6 + $0x3d8] sm:$0xf] }
 0x1fd   : > { %v11367_v14 = vld [vmem:[#allocation6 + $0x8b0] sm:$0xf0]  ;;  %3694 = vmatpush.bf16.msrb.mxu1 %v10858_v17 }
 0x1fe   : > { %v15226_v19 = vld [vmem:[#allocation6 + $0x254] sm:$0xf]  ;;  %v11370_v22 = vor.u32 %v15426_v13, %v11367_v14  ;;  %v15279_v13 = vld [vmem:[#allocation6 + $0x3f4] sm:$0xf0] }
 0x1ff   : > { %v10567_v20 = vld [vmem:[#allocation6 + $0x270] sm:$0xf0]  ;;  %3708 = vmatpush.bf16.msrb.mxu2 %v11114_v18  ;;  %v10510_v18 = vor.u32 %v15215_v5, %v10509_v3 }
 0x200   : > { %v15290_v21 = vld [vmem:[#allocation6 + $0x454] sm:$0xf]  ;;  %v10570_v16 = vor.u32 %v15226_v19, %v10567_v20  ;;  %3722 = vmatpush.bf16.msrb.mxu3 %v11370_v22  ;;  %v10766_v22 = vor.u32 %v15279_v13, %v10765_v10  ;;  %v15191_v10 = vld [vmem:[#allocation6 + $0x134] sm:$0xf0] }
 0x201   : > { %v10823_v24 = vld [vmem:[#allocation6 + $0x470] sm:$0xf0]  ;;  %v10669_v13 = vld [vmem:[#allocation6 + $0x318] sm:$0xf] }
 0x202   : > { %v15354_v25 = vld [vmem:[#allocation6 + $0x654] sm:$0xf]  ;;  %v10826_v33 = vor.u32 %v15290_v21, %v10823_v24  ;;  %3681 = vmatpush.bf16.msrb.mxu0 %v10570_v16 }
 0x203   : > { %v11079_v26 = vld [vmem:[#allocation6 + $0x670] sm:$0xf0] }
 0x204   : > { %v15418_v27 = vld [vmem:[#allocation6 + $0x854] sm:$0xf]  ;;  %v11082_v34 = vor.u32 %v15354_v25, %v11079_v26  ;;  %3695 = vmatpush.bf16.msrb.mxu1 %v10826_v33  ;;  %v10477_v25 = vld [vmem:[#allocation6 + $0x198] sm:$0xf] }
 0x205   : > { %v11335_v28 = vld [vmem:[#allocation6 + $0x870] sm:$0xf0]  ;;  %v15207_v26 = vld [vmem:[#allocation6 + $0x1b4] sm:$0xf0] }
 0x206   : > { %v15218_v29 = vld [vmem:[#allocation6 + $0x214] sm:$0xf]  ;;  %v11338_v50 = vor.u32 %v15418_v27, %v11335_v28  ;;  %3709 = vmatpush.bf16.msrb.mxu2 %v11082_v34  ;;  %v10733_v27 = vld [vmem:[#allocation6 + $0x398] sm:$0xf] }
 0x207   : > { %v10535_v32 = vld [vmem:[#allocation6 + $0x230] sm:$0xf0]  ;;  %v15271_v28 = vld [vmem:[#allocation6 + $0x3b4] sm:$0xf0] }
 0x208   : > { %v15282_v36 = vld [vmem:[#allocation6 + $0x414] sm:$0xf]  ;;  %v10538_v62 = vor.u32 %v15218_v29, %v10535_v32  ;;  %3723 = vmatpush.bf16.msrb.mxu3 %v11338_v50  ;;  %v10478_v32 = vor.u32 %v15207_v26, %v10477_v25  ;;  %v10445_v50 = vld [vmem:[#allocation6 + $0x158] sm:$0xf] }
 0x209   : > { %v10791_v38 = vld [vmem:[#allocation6 + $0x430] sm:$0xf0]  ;;  %v10381_v25 = vld [vmem:[#allocation6 + $0xd8] sm:$0xf] }
 0x20a   : > { %v15346_v49 = vld [vmem:[#allocation6 + $0x614] sm:$0xf]  ;;  %v10794_v6 = vor.u32 %v15282_v36, %v10791_v38  ;;  %3682 = vmatpush.bf16.msrb.mxu0 %v10538_v62  ;;  %v10734_v38 = vor.u32 %v15271_v28, %v10733_v27  ;;  %v15183_v26 = vld [vmem:[#allocation6 + $0xf4] sm:$0xf0] }
 0x20b   : > { %v11047_v53 = vld [vmem:[#allocation6 + $0x630] sm:$0xf0]  ;;  %v10637_v27 = vld [vmem:[#allocation6 + $0x2d8] sm:$0xf] }
 0x20c   : > { %v15410_v55 = vld [vmem:[#allocation6 + $0x814] sm:$0xf]  ;;  %v11050_v8 = vor.u32 %v15346_v49, %v11047_v53  ;;  %3696 = vmatpush.bf16.msrb.mxu1 %v10794_v6  ;;  %v15199_v53 = vld [vmem:[#allocation6 + $0x174] sm:$0xf0] }
 0x20d   : > { %v11303_v56 = vld [vmem:[#allocation6 + $0x830] sm:$0xf0]  ;;  %3683 = vmatmul.bf16.vlgmr.msrb.gmra.mxu0 %v17026_v11  ;;  %v15247_v28 = vld [vmem:[#allocation6 + $0x2f4] sm:$0xf0] }
 0x20e   : > { %v15530_v35 = vld [vmem:[#allocation6 + $0xbd4] sm:$0xf]  ;;  %v11306_v14 = vor.u32 %v15410_v55, %v11303_v56  ;;  %3710 = vmatpush.bf16.msrb.mxu2 %v11050_v8  ;;  %v10701_v55 = vld [vmem:[#allocation6 + $0x358] sm:$0xf] }
 0x20f   : > { %v11783_v58 = vld [vmem:[#allocation6 + $0xbf0] sm:$0xf0]  ;;  %3697 = vmatmul.bf16.vlgmr.msrb.gmra.mxu1 %v17022_v0  ;;  %v15263_v56 = vld [vmem:[#allocation6 + $0x374] sm:$0xf0] }
 0x210   : > { %v15594_v60 = vld [vmem:[#allocation6 + $0xdd4] sm:$0xf]  ;;  %v11786_v15 = vor.u32 %v15530_v35, %v11783_v58  ;;  %3724 = vmatpush.bf16.msrb.mxu3 %v11306_v14  ;;  %v10702_v5 = vor.u32 %v15263_v56, %v10701_v55  ;;  %v10413_v8 = vld [vmem:[#allocation6 + $0x118] sm:$0xf] }
 0x211   : > { %v12039_v1 = vld [vmem:[#allocation6 + $0xdf0] sm:$0xf0]  ;;  %3711 = vmatmul.bf16.vlgmr.msrb.gmra.mxu2 %v17029_v23  ;;  %v15255_v14 = vld [vmem:[#allocation6 + $0x334] sm:$0xf0] }
 0x212   : > { %v12042_v17 = vor.u32 %v15594_v60, %v12039_v1  ;;  %v15522_v19 = vld [vmem:[#allocation6 + $0xb94] sm:$0xf]  ;;  %3731 = vmatpush.bf16.msra.mxu0 %v11786_v15  ;;  %3759 = vmatpush.bf16.msra.mxu2 %v10510_v18  ;;  %v10446_v60 = vor.u32 %v15199_v53, %v10445_v50  ;;  %v10414_v18 = vor.u32 %v15191_v10, %v10413_v8  ;;  %v10349_v50 = vld [vmem:[#allocation6 + $0x98] sm:$0xf] }
 0x213   : > { %v11751_v20 = vld [vmem:[#allocation6 + $0xbb0] sm:$0xf0]  ;;  %3725 = vmatmul.bf16.vlgmr.msrb.gmra.mxu3 %v17032_v37  ;;  %v15175_v53 = vld [vmem:[#allocation6 + $0xb4] sm:$0xf0] }
 0x214   : > { %v15586_v21 = vld [vmem:[#allocation6 + $0xd94] sm:$0xf]  ;;  %v11754_v16 = vor.u32 %v15522_v19, %v11751_v20  ;;  %3745 = vmatpush.bf16.msra.mxu1 %v12042_v17  ;;  %3773 = vmatpush.bf16.msra.mxu3 %v10766_v22  ;;  %v10670_v22 = vor.u32 %v15255_v14, %v10669_v13  ;;  %v10605_v55 = vld [vmem:[#allocation6 + $0x298] sm:$0xf] }
 0x215   : > { %v12007_v24 = vld [vmem:[#allocation6 + $0xdb0] sm:$0xf0]  ;;  %v15239_v56 = vld [vmem:[#allocation6 + $0x2b4] sm:$0xf0] }
 0x216   : > { %v12010_v29 = vor.u32 %v15586_v21, %v12007_v24  ;;  %v15514_v33 = vld [vmem:[#allocation6 + $0xb54] sm:$0xf]  ;;  %3732 = vmatpush.bf16.msra.mxu0 %v11754_v16  ;;  %3760 = vmatpush.bf16.msra.mxu2 %v10478_v32  ;;  %v10382_v32 = vor.u32 %v15183_v26, %v10381_v25  ;;  %v10317_v8 = vld [vmem:[#allocation6 + $0x58] sm:$0xf] }
 0x217   : > { %v11719_v34 = vld [vmem:[#allocation6 + $0xb70] sm:$0xf0]  ;;  %v15167_v10 = vld [vmem:[#allocation6 + $0x74] sm:$0xf0] }
 0x218   : > { %v15578_v36 = vld [vmem:[#allocation6 + $0xd54] sm:$0xf]  ;;  %v11722_v35 = vor.u32 %v15514_v33, %v11719_v34  ;;  %3746 = vmatpush.bf16.msra.mxu1 %v12010_v29  ;;  %3774 = vmatpush.bf16.msra.mxu3 %v10734_v38  ;;  %v10638_v38 = vor.u32 %v15247_v28, %v10637_v27  ;;  %v10573_v13 = vld [vmem:[#allocation6 + $0x258] sm:$0xf] }
 0x219   : > { %v11975_v49 = vld [vmem:[#allocation6 + $0xd70] sm:$0xf0]  ;;  %v15231_v14 = vld [vmem:[#allocation6 + $0x274] sm:$0xf0] }
 0x21a   : > { %v11978_v58 = vor.u32 %v15578_v36, %v11975_v49  ;;  %v15506_v62 = vld [vmem:[#allocation6 + $0xb14] sm:$0xf]  ;;  %3733 = vmatpush.bf16.msra.mxu0 %v11722_v35  ;;  %3761 = vmatpush.bf16.msra.mxu2 %v10446_v60  ;;  %v10350_v60 = vor.u32 %v15175_v53, %v10349_v50  ;;  %v10574_v25 = vor.u32 %v15231_v14, %v10573_v13  ;;  %v15159_v26 = vld [vmem:[#allocation6 + $0x34] sm:$0xf0] }
 0x21b   : > { %v11687_v1 = vld [vmem:[#allocation6 + $0xb30] sm:$0xf0]  ;;  %v10541_v27 = vld [vmem:[#allocation6 + $0x218] sm:$0xf] }
 0x21c   : > { %v15570_v3 = vld [vmem:[#allocation6 + $0xd14] sm:$0xf]  ;;  %v11690_v15 = vor.u32 %v15506_v62, %v11687_v1  ;;  %3747 = vmatpush.bf16.msra.mxu1 %v11978_v58  ;;  %3775 = vmatpush.bf16.msra.mxu3 %v10702_v5  ;;  %v10606_v5 = vor.u32 %v15239_v56, %v10605_v55  ;;  %v15223_v28 = vld [vmem:[#allocation6 + $0x234] sm:$0xf0] }
 0x21d   : > { %v11943_v6 = vld [vmem:[#allocation6 + $0xd30] sm:$0xf0]  ;;  %v11789_v53 = vld [vmem:[#allocation6 + $0xbd8] sm:$0xf]  ;;  %v10542_v56 = vor.u32 %v15223_v28, %v10541_v27 }
 0x21e   : > { %v11946_v17 = vor.u32 %v15570_v3, %v11943_v6  ;;  %v15498_v19 = vld [vmem:[#allocation6 + $0xad4] sm:$0xf]  ;;  %3734 = vmatpush.bf16.msra.mxu0 %v11690_v15  ;;  %3762 = vmatpush.bf16.msra.mxu2 %v10414_v18  ;;  %v15535_v55 = vld [vmem:[#allocation6 + $0xbf4] sm:$0xf0] }
 0x21f   : > { %v11655_v20 = vld [vmem:[#allocation6 + $0xaf0] sm:$0xf0]  ;;  %v11757_v13 = vld [vmem:[#allocation6 + $0xb98] sm:$0xf] }
 0x220   : > { %v15562_v21 = vld [vmem:[#allocation6 + $0xcd4] sm:$0xf]  ;;  %v11658_v16 = vor.u32 %v15498_v19, %v11655_v20  ;;  %3748 = vmatpush.bf16.msra.mxu1 %v11946_v17  ;;  %3776 = vmatpush.bf16.msra.mxu3 %v10670_v22  ;;  %v10318_v20 = vor.u32 %v15167_v10, %v10317_v8  ;;  %v11501_v8 = vld [vmem:[#allocation6 + $0x998] sm:$0xf] }
 0x221   : > { %v11911_v24 = vld [vmem:[#allocation6 + $0xcf0] sm:$0xf0]  ;;  %v15463_v10 = vld [vmem:[#allocation6 + $0x9b4] sm:$0xf0] }
 0x222   : > { %v11914_v29 = vor.u32 %v15562_v21, %v11911_v24  ;;  %v15490_v33 = vld [vmem:[#allocation6 + $0xa94] sm:$0xf]  ;;  %3735 = vmatpush.bf16.msra.mxu0 %v11658_v16  ;;  %3763 = vmatpush.bf16.msra.mxu2 %v10382_v32  ;;  %v10285_v24 = vld [vmem:[#allocation6 + $0x18] sm:$0xf] }
 0x223   : > { %v11623_v34 = vld [vmem:[#allocation6 + $0xab0] sm:$0xf0]  ;;  %v11021_v16 = vld [vmem:[#allocation6 + $0x5d8] sm:$0xf]  ;;  %v10286_v50 = vor.u32 %v15159_v26, %v10285_v24 }
 0x224   : > { %v15554_v36 = vld [vmem:[#allocation6 + $0xc94] sm:$0xf]  ;;  %v11626_v35 = vor.u32 %v15490_v33, %v11623_v34  ;;  %3749 = vmatpush.bf16.msra.mxu1 %v11914_v29  ;;  %3777 = vmatpush.bf16.msra.mxu3 %v10638_v38  ;;  %v15343_v29 = vld [vmem:[#allocation6 + $0x5f4] sm:$0xf0] }
 0x225   : > { %v11879_v49 = vld [vmem:[#allocation6 + $0xcb0] sm:$0xf0]  ;;  %v11277_v32 = vld [vmem:[#allocation6 + $0x7d8] sm:$0xf] }
 0x226   : > { %v11882_v58 = vor.u32 %v15554_v36, %v11879_v49  ;;  %v15482_v62 = vld [vmem:[#allocation6 + $0xa54] sm:$0xf]  ;;  %3736 = vmatpush.bf16.msra.mxu0 %v11626_v35  ;;  %3764 = vmatpush.bf16.msra.mxu2 %v10350_v60  ;;  %v15407_v34 = vld [vmem:[#allocation6 + $0x7f4] sm:$0xf0]  ;;  %v11022_v35 = vor.u32 %v15343_v29, %v11021_v16 }
 0x227   : > { %v11591_v1 = vld [vmem:[#allocation6 + $0xa70] sm:$0xf0]  ;;  %v11533_v36 = vld [vmem:[#allocation6 + $0x9d8] sm:$0xf] }
 0x228   : > { %v15546_v3 = vld [vmem:[#allocation6 + $0xc54] sm:$0xf]  ;;  %v11594_v15 = vor.u32 %v15482_v62, %v11591_v1  ;;  %3750 = vmatpush.bf16.msra.mxu1 %v11882_v58  ;;  %3778 = vmatpush.bf16.msra.mxu3 %v10606_v5  ;;  %v15471_v38 = vld [vmem:[#allocation6 + $0x9f4] sm:$0xf0]  ;;  %v11278_v58 = vor.u32 %v15407_v34, %v11277_v32  ;;  %v11790_v5 = vor.u32 %v15535_v55, %v11789_v53 }
 0x229   : > { %v11847_v6 = vld [vmem:[#allocation6 + $0xc70] sm:$0xf0]  ;;  %v11534_v60 = vor.u32 %v15471_v38, %v11533_v36  ;;  %v10989_v62 = vld [vmem:[#allocation6 + $0x598] sm:$0xf] }
 0x22a   : > { %v15474_v17 = vld [vmem:[#allocation6 + $0xa14] sm:$0xf]  ;;  %v11850_v19 = vor.u32 %v15546_v3, %v11847_v6  ;;  %3737 = vmatpush.bf16.msra.mxu0 %v11594_v15  ;;  %3765 = vmatpush.bf16.msra.mxu2 %v10318_v20  ;;  %v15335_v1 = vld [vmem:[#allocation6 + $0x5b4] sm:$0xf0] }
 0x22b   : > { %v11559_v18 = vld [vmem:[#allocation6 + $0xa30] sm:$0xf0]  ;;  %v11245_v3 = vld [vmem:[#allocation6 + $0x798] sm:$0xf]  ;;  %v10990_v15 = vor.u32 %v15335_v1, %v10989_v62 }
 0x22c   : > { %v15538_v21 = vld [vmem:[#allocation6 + $0xc14] sm:$0xf]  ;;  %v11562_v33 = vor.u32 %v15474_v17, %v11559_v18  ;;  %3751 = vmatpush.bf16.msra.mxu1 %v11850_v19  ;;  %3779 = vmatpush.bf16.msra.mxu3 %v10574_v25  ;;  %v15399_v6 = vld [vmem:[#allocation6 + $0x7b4] sm:$0xf0]  ;;  %v11502_v18 = vor.u32 %v15463_v10, %v11501_v8 }
 0x22d   : > { %v11815_v22 = vld [vmem:[#allocation6 + $0xc30] sm:$0xf0]  ;;  %v15527_v14 = vld [vmem:[#allocation6 + $0xbb4] sm:$0xf0]  ;;  %v11246_v17 = vor.u32 %v15399_v6, %v11245_v3 }
 0x22e   : > { %v11818_v49 = vor.u32 %v15538_v21, %v11815_v22  ;;  %3738 = vmatpush.bf16.msra.mxu0 %v11562_v33  ;;  %3766 = vmatpush.bf16.msra.mxu2 %v10286_v50  ;;  %v10957_v19 = vld [vmem:[#allocation6 + $0x558] sm:$0xf]  ;;  %v11758_v22 = vor.u32 %v15527_v14, %v11757_v13 }
 0x22f   : > { %v15327_v20 = vld [vmem:[#allocation6 + $0x574] sm:$0xf0] }
 0x230   : > { %3752 = vmatpush.bf16.msra.mxu1 %v11818_v49  ;;  %3780 = vmatpush.bf16.msra.mxu3 %v10542_v56  ;;  %v11213_v21 = vld [vmem:[#allocation6 + $0x758] sm:$0xf]  ;;  %v10958_v16 = vor.u32 %v15327_v20, %v10957_v19 }
 0x231   : > { %3739 = vmatmul.bf16.vlgmr.msra.gmra.mxu0 %v17036_v42  ;;  %v15391_v24 = vld [vmem:[#allocation6 + $0x774] sm:$0xf0]  ;;  %3767 = vmatmul.bf16.vlgmr.msra.gmra.mxu2 %v17020_v57 }
 0x232   : > { %3787 = vmatpush.bf16.msrb.mxu0 %v11022_v35  ;;  %3815 = vmatpush.bf16.msrb.mxu2 %v11534_v60  ;;  %v11469_v25 = vld [vmem:[#allocation6 + $0x958] sm:$0xf]  ;;  %v11214_v29 = vor.u32 %v15391_v24, %v11213_v21 }
 0x233   : > { %v15455_v26 = vld [vmem:[#allocation6 + $0x974] sm:$0xf0]  ;;  %3753 = vmatmul.bf16.vlgmr.msra.gmra.mxu1 %v17034_v41  ;;  %3781 = vmatmul.bf16.vlgmr.msra.gmra.mxu3 %v17026_v11 }
 0x234   : > { %3801 = vmatpush.bf16.msrb.mxu1 %v11278_v58  ;;  %3829 = vmatpush.bf16.msrb.mxu3 %v11790_v5  ;;  %v11725_v27 = vld [vmem:[#allocation6 + $0xb58] sm:$0xf]  ;;  %v11470_v32 = vor.u32 %v15455_v26, %v11469_v25 }
 0x235   : > { %v15519_v28 = vld [vmem:[#allocation6 + $0xb74] sm:$0xf0] }
 0x236   : > { %3788 = vmatpush.bf16.msrb.mxu0 %v10990_v15  ;;  %3816 = vmatpush.bf16.msrb.mxu2 %v11502_v18  ;;  %v10925_v33 = vld [vmem:[#allocation6 + $0x518] sm:$0xf]  ;;  %v11726_v38 = vor.u32 %v15519_v28, %v11725_v27 }
 0x237   : > { %v15319_v34 = vld [vmem:[#allocation6 + $0x534] sm:$0xf0] }
 0x238   : > { %3802 = vmatpush.bf16.msrb.mxu1 %v11246_v17  ;;  %v11181_v36 = vld [vmem:[#allocation6 + $0x718] sm:$0xf]  ;;  %3830 = vmatpush.bf16.msrb.mxu3 %v11758_v22  ;;  %v10926_v35 = vor.u32 %v15319_v34, %v10925_v33  ;;  %v17132_v22 = vpop.f32.mrf.mxu2 }
 0x239   : > { %v15383_v49 = vld [vmem:[#allocation6 + $0x734] sm:$0xf0] }
 0x23a   : > { %v11437_v50 = vld [vmem:[#allocation6 + $0x918] sm:$0xf]  ;;  %3789 = vmatpush.bf16.msrb.mxu0 %v10958_v16  ;;  %3817 = vmatpush.bf16.msrb.mxu2 %v11470_v32  ;;  %v11182_v58 = vor.u32 %v15383_v49, %v11181_v36 }
 0x23b   : > { %v15447_v53 = vld [vmem:[#allocation6 + $0x934] sm:$0xf0] }
 0x23c   : > { %v11693_v55 = vld [vmem:[#allocation6 + $0xb18] sm:$0xf]  ;;  %3803 = vmatpush.bf16.msrb.mxu1 %v11214_v29  ;;  %v11438_v60 = vor.u32 %v15447_v53, %v11437_v50  ;;  %3831 = vmatpush.bf16.msrb.mxu3 %v11726_v38 }
 0x23d   : > { %v15511_v56 = vld [vmem:[#allocation6 + $0xb34] sm:$0xf0] }
 0x23e   : > { %v10893_v62 = vld [vmem:[#allocation6 + $0x4d8] sm:$0xf]  ;;  %v11694_v5 = vor.u32 %v15511_v56, %v11693_v55  ;;  %3790 = vmatpush.bf16.msrb.mxu0 %v10926_v35  ;;  %3818 = vmatpush.bf16.msrb.mxu2 %v11438_v60  ;;  %v17134_v56 = vpop.f32.mrf.mxu3 }
 0x23f   : > { %v15311_v1 = vld [vmem:[#allocation6 + $0x4f4] sm:$0xf0] }
 0x240   : > { %v11149_v3 = vld [vmem:[#allocation6 + $0x6d8] sm:$0xf]  ;;  %v10894_v15 = vor.u32 %v15311_v1, %v10893_v62  ;;  %3804 = vmatpush.bf16.msrb.mxu1 %v11182_v58  ;;  %3832 = vmatpush.bf16.msrb.mxu3 %v11694_v5 }
 0x241   : > { %v15375_v6 = vld [vmem:[#allocation6 + $0x6f4] sm:$0xf0] }
 0x242   : > { %v11405_v8 = vld [vmem:[#allocation6 + $0x8d8] sm:$0xf]  ;;  %v11150_v17 = vor.u32 %v15375_v6, %v11149_v3  ;;  %3791 = vmatpush.bf16.msrb.mxu0 %v10894_v15 }
 0x243   : > { %v15439_v10 = vld [vmem:[#allocation6 + $0x8f4] sm:$0xf0] }
 0x244   : > { %v11661_v13 = vld [vmem:[#allocation6 + $0xad8] sm:$0xf]  ;;  %v11406_v18 = vor.u32 %v15439_v10, %v11405_v8  ;;  %3805 = vmatpush.bf16.msrb.mxu1 %v11150_v17 }
 0x245   : > { %v15503_v14 = vld [vmem:[#allocation6 + $0xaf4] sm:$0xf0] }
 0x246   : > { %v10861_v19 = vld [vmem:[#allocation6 + $0x498] sm:$0xf]  ;;  %v11662_v24 = vor.u32 %v15503_v14, %v11661_v13  ;;  %3819 = vmatpush.bf16.msrb.mxu2 %v11406_v18 }
 0x247   : > { %v15303_v20 = vld [vmem:[#allocation6 + $0x4b4] sm:$0xf0] }
 0x248   : > { %v11117_v21 = vld [vmem:[#allocation6 + $0x698] sm:$0xf]  ;;  %v10862_v29 = vor.u32 %v15303_v20, %v10861_v19  ;;  %3833 = vmatpush.bf16.msrb.mxu3 %v11662_v24  ;;  %v15211_v20 = vld [vmem:[#allocation6 + $0x1dc] sm:$0xf] }
 0x249   : > { %v15367_v25 = vld [vmem:[#allocation6 + $0x6b4] sm:$0xf0] }
 0x24a   : > { %v11373_v26 = vld [vmem:[#allocation6 + $0x898] sm:$0xf]  ;;  %v11118_v32 = vor.u32 %v15367_v25, %v11117_v21  ;;  %3792 = vmatpush.bf16.msrb.mxu0 %v10862_v29  ;;  %v17136_v21 = vpop.f32.mrf.mxu2  ;;  %v10511_v25 = vld [vmem:[#allocation6 + $0x1f8] sm:$0xf0] }
 0x24b   : > { %v15431_v27 = vld [vmem:[#allocation6 + $0x8b4] sm:$0xf0]  ;;  %18639 = vst [vmem:[#allocation27_spill] sm:$0xff] %v17136_v21  ;;  %v15339_v29 = vld [vmem:[#allocation6 + $0x5dc] sm:$0xf] }
 0x24c   : > { %v11629_v28 = vld [vmem:[#allocation6 + $0xa98] sm:$0xf]  ;;  %v11374_v33 = vor.u32 %v15431_v27, %v11373_v26  ;;  %3806 = vmatpush.bf16.msrb.mxu1 %v11118_v32  ;;  %v15275_v26 = vld [vmem:[#allocation6 + $0x3dc] sm:$0xf] }
 0x24d   : > { %v15495_v16 = vld [vmem:[#allocation6 + $0xab4] sm:$0xf0]  ;;  %v10767_v27 = vld [vmem:[#allocation6 + $0x3f8] sm:$0xf0] }
 0x24e   : > { %v10829_v34 = vld [vmem:[#allocation6 + $0x458] sm:$0xf]  ;;  %v11630_v49 = vor.u32 %v15495_v16, %v11629_v28  ;;  %3820 = vmatpush.bf16.msrb.mxu2 %v11374_v33  ;;  %v11023_v32 = vld [vmem:[#allocation6 + $0x5f8] sm:$0xf0] }
 0x24f   : > { %v15295_v36 = vld [vmem:[#allocation6 + $0x474] sm:$0xf0]  ;;  %v15523_v21 = vld [vmem:[#allocation6 + $0xb9c] sm:$0xf] }
 0x250   : > { %v11085_v38 = vld [vmem:[#allocation6 + $0x658] sm:$0xf]  ;;  %v10830_v60 = vor.u32 %v15295_v36, %v10829_v34  ;;  %3834 = vmatpush.bf16.msrb.mxu3 %v11630_v49  ;;  %v17138_v36 = vpop.f32.mrf.mxu0  ;;  %v10514_v49 = vor.u32 %v15211_v20, %v10511_v25  ;;  %v15259_v20 = vld [vmem:[#allocation6 + $0x35c] sm:$0xf] }
 0x251   : > { %v15359_v50 = vld [vmem:[#allocation6 + $0x674] sm:$0xf0]  ;;  %v15323_v25 = vld [vmem:[#allocation6 + $0x55c] sm:$0xf] }
 0x252   : > { %v11341_v53 = vld [vmem:[#allocation6 + $0x858] sm:$0xf]  ;;  %v11086_v3 = vor.u32 %v15359_v50, %v11085_v38  ;;  %3793 = vmatpush.bf16.msrb.mxu0 %v10830_v60  ;;  %v17140_v38 = vpop.f32.mrf.mxu1  ;;  %v10770_v50 = vor.u32 %v15275_v26, %v10767_v27  ;;  %v10479_v60 = vld [vmem:[#allocation6 + $0x1b8] sm:$0xf0]  ;;  %v17147_v27 = vpop.f32.mrf.mxu2 }
 0x253   : > { %v15423_v55 = vld [vmem:[#allocation6 + $0x874] sm:$0xf0]  ;;  %v10959_v26 = vld [vmem:[#allocation6 + $0x578] sm:$0xf0] }
 0x254   : > { %v11597_v35 = vld [vmem:[#allocation6 + $0xa58] sm:$0xf]  ;;  %v11342_v5 = vor.u32 %v15423_v55, %v11341_v53  ;;  %3807 = vmatpush.bf16.msrb.mxu1 %v11086_v3  ;;  %v17142_v3 = vpop.f32.mrf.mxu3 }
 0x255   : > { %v15487_v58 = vld [vmem:[#allocation6 + $0xa74] sm:$0xf0]  ;;  %18640 = vst [vmem:[#allocation28_spill] sm:$0xff] %v17142_v3 }
 0x256   : > { %v10797_v62 = vld [vmem:[#allocation6 + $0x418] sm:$0xf]  ;;  %v11598_v13 = vor.u32 %v15487_v58, %v11597_v35  ;;  %3821 = vmatpush.bf16.msrb.mxu2 %v11342_v5  ;;  %v15203_v35 = vld [vmem:[#allocation6 + $0x19c] sm:$0xf]  ;;  %v11026_v58 = vor.u32 %v15339_v29, %v11023_v32 }
 0x257   : > { %v15287_v1 = vld [vmem:[#allocation6 + $0x434] sm:$0xf0]  ;;  %v15331_v5 = vld [vmem:[#allocation6 + $0x59c] sm:$0xf] }
 0x258   : > { %v11053_v6 = vld [vmem:[#allocation6 + $0x618] sm:$0xf]  ;;  %v10798_v24 = vor.u32 %v15287_v1, %v10797_v62  ;;  %3835 = vmatpush.bf16.msrb.mxu3 %v11598_v13  ;;  %v15267_v62 = vld [vmem:[#allocation6 + $0x39c] sm:$0xf] }
 0x259   : > { %v15351_v8 = vld [vmem:[#allocation6 + $0x634] sm:$0xf0]  ;;  %v10735_v1 = vld [vmem:[#allocation6 + $0x3b8] sm:$0xf0] }
 0x25a   : > { %v11309_v10 = vld [vmem:[#allocation6 + $0x818] sm:$0xf]  ;;  %v11054_v28 = vor.u32 %v15351_v8, %v11053_v6  ;;  %3794 = vmatpush.bf16.msrb.mxu0 %v10798_v24  ;;  %v10991_v6 = vld [vmem:[#allocation6 + $0x5b8] sm:$0xf0]  ;;  %v10738_v13 = vor.u32 %v15267_v62, %v10735_v1  ;;  %v17152_v29 = vpop.f32.mrf.mxu1 }
 0x25b   : > { %v15415_v14 = vld [vmem:[#allocation6 + $0x834] sm:$0xf0]  ;;  %v10703_v24 = vld [vmem:[#allocation6 + $0x378] sm:$0xf0] }
 0x25c   : > { %v11565_v15 = vld [vmem:[#allocation6 + $0xa18] sm:$0xf]  ;;  %v11310_v16 = vor.u32 %v15415_v14, %v11309_v10  ;;  %3808 = vmatpush.bf16.msrb.mxu1 %v11054_v28  ;;  %v10482_v10 = vor.u32 %v15203_v35, %v10479_v60  ;;  %v15251_v35 = vld [vmem:[#allocation6 + $0x31c] sm:$0xf] }
 0x25d   : > { %v15479_v17 = vld [vmem:[#allocation6 + $0xa34] sm:$0xf0]  ;;  %3795 = vmatmul.bf16.vlgmr.msrb.gmra.mxu0 %v17022_v0  ;;  %v15315_v60 = vld [vmem:[#allocation6 + $0x51c] sm:$0xf] }
 0x25e   : > { %v12045_v18 = vld [vmem:[#allocation6 + $0xdd8] sm:$0xf]  ;;  %v11566_v33 = vor.u32 %v15479_v17, %v11565_v15  ;;  %3822 = vmatpush.bf16.msrb.mxu2 %v11310_v16  ;;  %v15195_v17 = vld [vmem:[#allocation6 + $0x15c] sm:$0xf]  ;;  %v17150_v16 = vpop.f32.mrf.mxu0 }
 0x25f   : > { %v15599_v19 = vld [vmem:[#allocation6 + $0xdf4] sm:$0xf0]  ;;  %3809 = vmatmul.bf16.vlgmr.msrb.gmra.mxu1 %v17029_v23  ;;  %18641 = vst [vmem:[#allocation29_spill] sm:$0xff] %v17150_v16  ;;  %v10927_v62 = vld [vmem:[#allocation6 + $0x538] sm:$0xf0] }
 0x260   : > { %v12046_v34 = vor.u32 %v15599_v19, %v12045_v18  ;;  %v12013_v53 = vld [vmem:[#allocation6 + $0xd98] sm:$0xf]  ;;  %3836 = vmatpush.bf16.msrb.mxu3 %v11566_v33  ;;  %3857 = vmatpush.bf16.msra.mxu1 %v10514_v49  ;;  %v10994_v18 = vor.u32 %v15331_v5, %v10991_v6  ;;  %v10447_v19 = vld [vmem:[#allocation6 + $0x178] sm:$0xf0]  ;;  %v10706_v33 = vor.u32 %v15259_v20, %v10703_v24  ;;  %v17154_v5 = vpop.f32.mrf.mxu3 }
 0x261   : > { %v15591_v55 = vld [vmem:[#allocation6 + $0xdb4] sm:$0xf0]  ;;  %3823 = vmatmul.bf16.vlgmr.msrb.gmra.mxu2 %v17032_v37  ;;  %v10450_v32 = vor.u32 %v15195_v17, %v10447_v19  ;;  %18642 = vst [vmem:[#allocation30_spill] sm:$0xff] %v17154_v5  ;;  %v10383_v17 = vld [vmem:[#allocation6 + $0xf8] sm:$0xf0] }
 0x262   : > { %3843 = vmatpush.bf16.msra.mxu0 %v12046_v34  ;;  %v12014_v8 = vor.u32 %v15591_v55, %v12013_v53  ;;  %3871 = vmatpush.bf16.msra.mxu2 %v10770_v50  ;;  %v11981_v14 = vld [vmem:[#allocation6 + $0xd58] sm:$0xf]  ;;  %v15187_v50 = vld [vmem:[#allocation6 + $0x11c] sm:$0xf]  ;;  %v10962_v53 = vor.u32 %v15323_v25, %v10959_v26  ;;  %v17156_v26 = vpop.f32.mrf.mxu2 }
 0x263   : > { %v15583_v15 = vld [vmem:[#allocation6 + $0xd74] sm:$0xf0]  ;;  %3837 = vmatmul.bf16.vlgmr.msrb.gmra.mxu3 %v17036_v42  ;;  %v10415_v55 = vld [vmem:[#allocation6 + $0x138] sm:$0xf0] }
 0x264   : > { %3885 = vmatpush.bf16.msra.mxu3 %v11026_v58  ;;  %v11982_v28 = vor.u32 %v15583_v15, %v11981_v14  ;;  %3858 = vmatpush.bf16.msra.mxu1 %v10482_v10  ;;  %v11949_v34 = vld [vmem:[#allocation6 + $0xd18] sm:$0xf]  ;;  %v10671_v58 = vld [vmem:[#allocation6 + $0x338] sm:$0xf0]  ;;  %v10418_v6 = vor.u32 %v15187_v50, %v10415_v55  ;;  %v10930_v15 = vor.u32 %v15315_v60, %v10927_v62  ;;  %v17160_v60 = vpop.f32.mrf.mxu1 }
 0x265   : > { %v15575_v49 = vld [vmem:[#allocation6 + $0xd34] sm:$0xf0]  ;;  %v15179_v14 = vld [vmem:[#allocation6 + $0xdc] sm:$0xf] }
 0x266   : > { %3844 = vmatpush.bf16.msra.mxu0 %v12014_v8  ;;  %3872 = vmatpush.bf16.msra.mxu2 %v10738_v13  ;;  %v11950_v1 = vor.u32 %v15575_v49, %v11949_v34  ;;  %v10674_v8 = vor.u32 %v15251_v35, %v10671_v58  ;;  %v11917_v10 = vld [vmem:[#allocation6 + $0xcd8] sm:$0xf]  ;;  %v10639_v19 = vld [vmem:[#allocation6 + $0x2f8] sm:$0xf0]  ;;  %v17158_v58 = vpop.f32.mrf.mxu0 }
 0x267   : > { %v15567_v13 = vld [vmem:[#allocation6 + $0xcf4] sm:$0xf0]  ;;  %v15307_v20 = vld [vmem:[#allocation6 + $0x4dc] sm:$0xf]  ;;  %18643 = vst [vmem:[#allocation31_spill] sm:$0xff] %v17158_v58 }
 0x268   : > { %3886 = vmatpush.bf16.msra.mxu3 %v10994_v18  ;;  %3859 = vmatpush.bf16.msra.mxu1 %v10450_v32  ;;  %v15243_v18 = vld [vmem:[#allocation6 + $0x2dc] sm:$0xf]  ;;  %v11918_v25 = vor.u32 %v15567_v13, %v11917_v10  ;;  %v15559_v34 = vld [vmem:[#allocation6 + $0xcb4] sm:$0xf0] }
 0x269   : > { %v10895_v24 = vld [vmem:[#allocation6 + $0x4f8] sm:$0xf0]  ;;  %v10642_v32 = vor.u32 %v15243_v18, %v10639_v19 }
 0x26a   : > { %3845 = vmatpush.bf16.msra.mxu0 %v11982_v28  ;;  %3873 = vmatpush.bf16.msra.mxu2 %v10706_v33  ;;  %v10386_v28 = vor.u32 %v15179_v14, %v10383_v17  ;;  %v11885_v33 = vld [vmem:[#allocation6 + $0xc98] sm:$0xf]  ;;  %v15171_v49 = vld [vmem:[#allocation6 + $0x9c] sm:$0xf]  ;;  %v10898_v50 = vor.u32 %v15307_v20, %v10895_v24 }
 0x26b   : > { %v15235_v55 = vld [vmem:[#allocation6 + $0x29c] sm:$0xf]  ;;  %v11886_v10 = vor.u32 %v15559_v34, %v11885_v33  ;;  %v11853_v14 = vld [vmem:[#allocation6 + $0xc58] sm:$0xf] }
 0x26c   : > { %3887 = vmatpush.bf16.msra.mxu3 %v10962_v53  ;;  %3860 = vmatpush.bf16.msra.mxu1 %v10418_v6  ;;  %v10351_v53 = vld [vmem:[#allocation6 + $0xb8] sm:$0xf0]  ;;  %v17162_v6 = vpop.f32.mrf.mxu3  ;;  %v15543_v33 = vld [vmem:[#allocation6 + $0xc34] sm:$0xf0] }
 0x26d   : > { %v10607_v35 = vld [vmem:[#allocation6 + $0x2b8] sm:$0xf0] }
 0x26e   : > { %3846 = vmatpush.bf16.msra.mxu0 %v11950_v1  ;;  %3874 = vmatpush.bf16.msra.mxu2 %v10674_v8  ;;  %v15299_v62 = vld [vmem:[#allocation6 + $0x49c] sm:$0xf]  ;;  %v10354_v8 = vor.u32 %v15171_v49, %v10351_v53  ;;  %v10610_v13 = vor.u32 %v15235_v55, %v10607_v35  ;;  %v10834_v55 = vor.u32 %v15291_v2, %v10831_v46  ;;  %v17166_v61 = vpop.f32.mrf.mxu0 }
 0x26f   : > { %v10863_v1 = vld [vmem:[#allocation6 + $0x4b8] sm:$0xf0] }
 0x270   : > { %3888 = vmatpush.bf16.msra.mxu3 %v10930_v15  ;;  %3861 = vmatpush.bf16.msra.mxu1 %v10386_v28  ;;  %v15551_v15 = vld [vmem:[#allocation6 + $0xc74] sm:$0xf0]  ;;  %v15163_v17 = vld [vmem:[#allocation6 + $0x5c] sm:$0xf]  ;;  %v10866_v18 = vor.u32 %v15299_v62, %v10863_v1  ;;  %v17164_v1 = vpop.f32.mrf.mxu2 }
 0x271   : > { %v10319_v19 = vld [vmem:[#allocation6 + $0x78] sm:$0xf0]  ;;  %v11854_v63 = vor.u32 %v15551_v15, %v11853_v14 }
 0x272   : > { %3847 = vmatpush.bf16.msra.mxu0 %v11918_v25  ;;  %3875 = vmatpush.bf16.msra.mxu2 %v10642_v32  ;;  %v15227_v20 = vld [vmem:[#allocation6 + $0x25c] sm:$0xf]  ;;  %v11821_v25 = vld [vmem:[#allocation6 + $0xc18] sm:$0xf]  ;;  %v10322_v28 = vor.u32 %v15163_v17, %v10319_v19 }
 0x273   : > { %v10575_v24 = vld [vmem:[#allocation6 + $0x278] sm:$0xf0] }
 0x274   : > { %3889 = vmatpush.bf16.msra.mxu3 %v10898_v50  ;;  %3862 = vmatpush.bf16.msra.mxu1 %v10354_v8  ;;  %v10578_v32 = vor.u32 %v15227_v20, %v10575_v24  ;;  %v15155_v34 = vld [vmem:[#allocation6 + $0x1c] sm:$0xf]  ;;  %v11822_v8 = vor.u32 %v15543_v33, %v11821_v25  ;;  %v17168_v20 = vpop.f32.mrf.mxu1  ;;  %v17170_v58 = vpop.f32.mrf.mxu3 }
 0x275   : > { %v10287_v49 = vld [vmem:[#allocation6 + $0x38] sm:$0xf0] }
 0x276   : > { %3848 = vmatpush.bf16.msra.mxu0 %v11886_v10  ;;  %3876 = vmatpush.bf16.msra.mxu2 %v10610_v13  ;;  %v15219_v53 = vld [vmem:[#allocation6 + $0x21c] sm:$0xf]  ;;  %v10290_v46 = vor.u32 %v15155_v34, %v10287_v49 }
 0x277   : > { %v10543_v50 = vld [vmem:[#allocation6 + $0x238] sm:$0xf0] }
 0x278   : > { %3890 = vmatpush.bf16.msra.mxu3 %v10866_v18  ;;  %v15283_v35 = vld [vmem:[#allocation6 + $0x41c] sm:$0xf]  ;;  %3863 = vmatpush.bf16.msra.mxu1 %v10322_v28  ;;  %v10546_v2 = vor.u32 %v15219_v53, %v10543_v50 }
 0x279   : > { %v10799_v62 = vld [vmem:[#allocation6 + $0x438] sm:$0xf0] }
 0x27a   : > { %v15403_v10 = vld [vmem:[#allocation6 + $0x7dc] sm:$0xf]  ;;  %3849 = vmatpush.bf16.msra.mxu0 %v11854_v63  ;;  %3877 = vmatpush.bf16.msra.mxu2 %v10578_v32  ;;  %v10802_v16 = vor.u32 %v15283_v35, %v10799_v62 }
 0x27b   : > { %v11279_v14 = vld [vmem:[#allocation6 + $0x7f8] sm:$0xf0] }
 0x27c   : > { %v15467_v15 = vld [vmem:[#allocation6 + $0x9dc] sm:$0xf]  ;;  %3891 = vmatpush.bf16.msra.mxu3 %v10834_v55  ;;  %v11282_v40 = vor.u32 %v15403_v10, %v11279_v14  ;;  %3864 = vmatpush.bf16.msra.mxu1 %v10290_v46 }
 0x27d   : > { %v11535_v13 = vld [vmem:[#allocation6 + $0x9f8] sm:$0xf0] }
 0x27e   : > { %v15531_v17 = vld [vmem:[#allocation6 + $0xbdc] sm:$0xf]  ;;  %v11538_v3 = vor.u32 %v15467_v15, %v11535_v13  ;;  %3850 = vmatpush.bf16.msra.mxu0 %v11822_v8  ;;  %3878 = vmatpush.bf16.msra.mxu2 %v10546_v2  ;;  %v17173_v13 = vpop.f32.mrf.mxu2 }
 0x27f   : > { %v11791_v19 = vld [vmem:[#allocation6 + $0xbf8] sm:$0xf0]  ;;  %18644 = vst [vmem:[#allocation32_spill] sm:$0xff] %v17173_v13  ;;  %3865 = vmatmul.bf16.vlgmr.msra.gmra.mxu1 %v17020_v57 }
 0x280   : > { %v15595_v18 = vld [vmem:[#allocation6 + $0xddc] sm:$0xf]  ;;  %v11794_v51 = vor.u32 %v15531_v17, %v11791_v19  ;;  %3892 = vmatpush.bf16.msra.mxu3 %v10802_v16  ;;  %3913 = vmatpush.bf16.msrb.mxu1 %v11538_v3  ;;  %v17175_v17 = vpop.f32.mrf.mxu0 }
 0x281   : > { %v12047_v24 = vld [vmem:[#allocation6 + $0xdf8] sm:$0xf0]  ;;  %3851 = vmatmul.bf16.vlgmr.msra.gmra.mxu0 %v17034_v41  ;;  %3879 = vmatmul.bf16.vlgmr.msra.gmra.mxu2 %v17026_v11 }
 0x282   : > { %v15395_v63 = vld [vmem:[#allocation6 + $0x79c] sm:$0xf]  ;;  %v12050_v5 = vor.u32 %v15595_v18, %v12047_v24  ;;  %3899 = vmatpush.bf16.msrb.mxu0 %v11282_v40  ;;  %3927 = vmatpush.bf16.msrb.mxu2 %v11794_v51 }
 0x283   : > { %v11247_v25 = vld [vmem:[#allocation6 + $0x7b8] sm:$0xf0]  ;;  %3893 = vmatmul.bf16.vlgmr.msra.gmra.mxu3 %v17022_v0 }
 0x284   : > { %v15459_v33 = vld [vmem:[#allocation6 + $0x99c] sm:$0xf]  ;;  %v11250_v49 = vor.u32 %v15395_v63, %v11247_v25  ;;  %3941 = vmatpush.bf16.msrb.mxu3 %v12050_v5  ;;  %v17182_v63 = vpop.f32.mrf.mxu3 }
 0x285   : > { %v11759_v28 = vld [vmem:[#allocation6 + $0xbb8] sm:$0xf0]  ;;  %v11506_v53 = vor.u32 %v15459_v33, %v11503_v9  ;;  %18645 = vst [vmem:[#allocation33_spill] sm:$0xff] %v17182_v63 }
 0x286   : > { %v15587_v32 = vld [vmem:[#allocation6 + $0xd9c] sm:$0xf]  ;;  %v11762_v55 = vor.u32 %v15523_v21, %v11759_v28  ;;  %3900 = vmatpush.bf16.msrb.mxu0 %v11250_v49  ;;  %v17180_v21 = vpop.f32.mrf.mxu1 }
 0x287   : > { %v12015_v34 = vld [vmem:[#allocation6 + $0xdb8] sm:$0xf0]  ;;  %3914 = vmatpush.bf16.msrb.mxu1 %v11506_v53 }
 0x288   : > { %v15387_v50 = vld [vmem:[#allocation6 + $0x75c] sm:$0xf]  ;;  %v12018_v10 = vor.u32 %v15587_v32, %v12015_v34  ;;  %3928 = vmatpush.bf16.msrb.mxu2 %v11762_v55 }
 0x289   : > { %v11215_v35 = vld [vmem:[#allocation6 + $0x778] sm:$0xf0] }
 0x28a   : > { %v15451_v62 = vld [vmem:[#allocation6 + $0x95c] sm:$0xf]  ;;  %v11218_v9 = vor.u32 %v15387_v50, %v11215_v35  ;;  %3942 = vmatpush.bf16.msrb.mxu3 %v12018_v10 }
 0x28b   : > { %v11471_v14 = vld [vmem:[#allocation6 + $0x978] sm:$0xf0] }
 0x28c   : > { %v15515_v15 = vld [vmem:[#allocation6 + $0xb5c] sm:$0xf]  ;;  %v11474_v3 = vor.u32 %v15451_v62, %v11471_v14  ;;  %3901 = vmatpush.bf16.msrb.mxu0 %v11218_v9  ;;  %v17184_v62 = vpop.f32.mrf.mxu0 }
 0x28d   : > { %v11727_v8 = vld [vmem:[#allocation6 + $0xb78] sm:$0xf0]  ;;  %18646 = vst [vmem:[#allocation34_spill] sm:$0xff] %v17184_v62  ;;  %v12293_v62 = vld [vmem:[#allocation9 + $0x1e0] sm:$0xf] }
 0x28e   : > { %v15579_v40 = vld [vmem:[#allocation6 + $0xd5c] sm:$0xf]  ;;  %v11730_v16 = vor.u32 %v15515_v15, %v11727_v8  ;;  %3915 = vmatpush.bf16.msrb.mxu1 %v11474_v3  ;;  %v17186_v8 = vpop.f32.mrf.mxu2 }
 0x28f   : > { %v11983_v51 = vld [vmem:[#allocation6 + $0xd78] sm:$0xf0] }
 0x290   : > { %v15379_v5 = vld [vmem:[#allocation6 + $0x71c] sm:$0xf]  ;;  %v11986_v2 = vor.u32 %v15579_v40, %v11983_v51  ;;  %3929 = vmatpush.bf16.msrb.mxu2 %v11730_v16  ;;  %v17188_v40 = vpop.f32.mrf.mxu1 }
 0x291   : > { %v11183_v19 = vld [vmem:[#allocation6 + $0x738] sm:$0xf0]  ;;  %18647 = vst [vmem:[#allocation35_spill] sm:$0xff] %v17188_v40 }
 0x292   : > { %v15443_v46 = vld [vmem:[#allocation6 + $0x91c] sm:$0xf]  ;;  %v11186_v57 = vor.u32 %v15379_v5, %v11183_v19  ;;  %3943 = vmatpush.bf16.msrb.mxu3 %v11986_v2 }
 0x293   : > { %v11439_v11 = vld [vmem:[#allocation6 + $0x938] sm:$0xf0] }
 0x294   : > { %v15507_v18 = vld [vmem:[#allocation6 + $0xb1c] sm:$0xf]  ;;  %v11442_v33 = vor.u32 %v15443_v46, %v11439_v11  ;;  %3902 = vmatpush.bf16.msrb.mxu0 %v11186_v57 }
 0x295   : > { %v11695_v24 = vld [vmem:[#allocation6 + $0xb38] sm:$0xf0] }
 0x296   : > { %v15571_v0 = vld [vmem:[#allocation6 + $0xd1c] sm:$0xf]  ;;  %v11698_v28 = vor.u32 %v15507_v18, %v11695_v24  ;;  %3916 = vmatpush.bf16.msrb.mxu1 %v11442_v33 }
 0x297   : > { %v11951_v25 = vld [vmem:[#allocation6 + $0xd38] sm:$0xf0] }
 0x298   : > { %v15371_v32 = vld [vmem:[#allocation6 + $0x6dc] sm:$0xf]  ;;  %v11954_v53 = vor.u32 %v15571_v0, %v11951_v25  ;;  %3930 = vmatpush.bf16.msrb.mxu2 %v11698_v28  ;;  %v17190_v25 = vpop.f32.mrf.mxu3 }
 0x299   : > { %v11151_v34 = vld [vmem:[#allocation6 + $0x6f8] sm:$0xf0]  ;;  %18648 = vst [vmem:[#allocation36_spill] sm:$0xff] %v17190_v25 }
 0x29a   : > { %v15435_v49 = vld [vmem:[#allocation6 + $0x8dc] sm:$0xf]  ;;  %v11154_v15 = vor.u32 %v15371_v32, %v11151_v34  ;;  %3944 = vmatpush.bf16.msrb.mxu3 %v11954_v53 }
 0x29b   : > { %v11407_v55 = vld [vmem:[#allocation6 + $0x8f8] sm:$0xf0] }
 0x29c   : > { %v15499_v50 = vld [vmem:[#allocation6 + $0xadc] sm:$0xf]  ;;  %v11410_v51 = vor.u32 %v15435_v49, %v11407_v55  ;;  %3903 = vmatpush.bf16.msrb.mxu0 %v11154_v15 }
 0x29d   : > { %v11663_v35 = vld [vmem:[#allocation6 + $0xaf8] sm:$0xf0] }
 0x29e   : > { %v15563_v10 = vld [vmem:[#allocation6 + $0xcdc] sm:$0xf]  ;;  %v11666_v9 = vor.u32 %v15499_v50, %v11663_v35  ;;  %3917 = vmatpush.bf16.msrb.mxu1 %v11410_v51  ;;  %v17194_v51 = vpop.f32.mrf.mxu0 }
 0x29f   : > { %v11919_v14 = vld [vmem:[#allocation6 + $0xcf8] sm:$0xf0]  ;;  %18650 = vst [vmem:[#allocation38_spill] sm:$0xff] %v17194_v51  ;;  %v15662_v51 = vld [vmem:[#allocation9 + $0x1ec] sm:$0xf0] }
 0x2a0   : > { %v15363_v3 = vld [vmem:[#allocation6 + $0x69c] sm:$0xf]  ;;  %v11922_v19 = vor.u32 %v15563_v10, %v11919_v14  ;;  %3931 = vmatpush.bf16.msrb.mxu2 %v11666_v9  ;;  %v12294_v63 = vor.u32 %v15662_v51, %v12293_v62 }
 0x2a1   : > { %v11119_v16 = vld [vmem:[#allocation6 + $0x6b8] sm:$0xf0] }
 0x2a2   : > { %v15427_v5 = vld [vmem:[#allocation6 + $0x89c] sm:$0xf]  ;;  %v11122_v0 = vor.u32 %v15363_v3, %v11119_v16  ;;  %3945 = vmatpush.bf16.msrb.mxu3 %v11922_v19  ;;  %v17192_v16 = vpop.f32.mrf.mxu2 }
 0x2a3   : > { %v11375_v46 = vld [vmem:[#allocation6 + $0x8b8] sm:$0xf0]  ;;  %18649 = vst [vmem:[#allocation37_spill] sm:$0xff] %v17192_v16 }
 0x2a4   : > { %v15491_v2 = vld [vmem:[#allocation6 + $0xa9c] sm:$0xf]  ;;  %v11378_v57 = vor.u32 %v15427_v5, %v11375_v46  ;;  %3904 = vmatpush.bf16.msrb.mxu0 %v11122_v0  ;;  %v17196_v0 = vpop.f32.mrf.mxu1 }
 0x2a5   : > { %v11631_v11 = vld [vmem:[#allocation6 + $0xab8] sm:$0xf0]  ;;  %18651 = vst [vmem:[#allocation39_spill] sm:$0xff] %v17196_v0  ;;  %v17203_v0 = vld [vmem:[#allocation8] sm:$0xff] }
 0x2a6   : > { %v15555_v18 = vld [vmem:[#allocation6 + $0xc9c] sm:$0xf]  ;;  %v11634_v33 = vor.u32 %v15491_v2, %v11631_v11  ;;  %3918 = vmatpush.bf16.msrb.mxu1 %v11378_v57  ;;  %v12421_v57 = vld [vmem:[#allocation9 + $0x2e0] sm:$0xf] }
 0x2a7   : > { %v11887_v24 = vld [vmem:[#allocation6 + $0xcb8] sm:$0xf0] }
 0x2a8   : > { %v15355_v28 = vld [vmem:[#allocation6 + $0x65c] sm:$0xf]  ;;  %v11890_v49 = vor.u32 %v15555_v18, %v11887_v24  ;;  %3932 = vmatpush.bf16.msrb.mxu2 %v11634_v33  ;;  %v15694_v33 = vld [vmem:[#allocation9 + $0x2ec] sm:$0xf0] }
 0x2a9   : > { %v11087_v32 = vld [vmem:[#allocation6 + $0x678] sm:$0xf0]  ;;  %v12422_v25 = vor.u32 %v15694_v33, %v12421_v57  ;;  %v15622_v57 = vld [vmem:[#allocation9 + $0xac] sm:$0xf0]  ;;  %v12261_v33 = vld [vmem:[#allocation9 + $0x1a0] sm:$0xf] }
 0x2aa   : > { %v15419_v34 = vld [vmem:[#allocation6 + $0x85c] sm:$0xf]  ;;  %v11090_v14 = vor.u32 %v15355_v28, %v11087_v32  ;;  %3946 = vmatpush.bf16.msrb.mxu3 %v11890_v49  ;;  %v12165_v28 = vld [vmem:[#allocation9 + $0xe0] sm:$0xf]  ;;  %v15630_v32 = vld [vmem:[#allocation9 + $0xec] sm:$0xf0]  ;;  %v17209_v51 = vpop.f32.mrf.mxu2 }
 0x2ab   : > { %v11343_v53 = vld [vmem:[#allocation6 + $0x878] sm:$0xf0] }
 0x2ac   : > { %v15483_v55 = vld [vmem:[#allocation6 + $0xa5c] sm:$0xf]  ;;  %v11346_v9 = vor.u32 %v15419_v34, %v11343_v53  ;;  %3905 = vmatpush.bf16.msrb.mxu0 %v11090_v14  ;;  %v17198_v34 = vpop.f32.mrf.mxu3  ;;  %v882_v14 = vperm.slane %v17203_v0, 3 }
 0x2ad   : > { %v11599_v50 = vld [vmem:[#allocation6 + $0xa78] sm:$0xf0]  ;;  %18652 = vst [vmem:[#allocation40_spill] sm:$0xff] %v17198_v34  ;;  %v12149_v34 = vld [vmem:[#allocation9 + $0xc0] sm:$0xf] }
 0x2ae   : > { %v15547_v35 = vld [vmem:[#allocation6 + $0xc5c] sm:$0xf]  ;;  %v11602_v5 = vor.u32 %v15483_v55, %v11599_v50  ;;  %3919 = vmatpush.bf16.msrb.mxu1 %v11346_v9  ;;  %v12549_v55 = vld [vmem:[#allocation9 + $0x3e0] sm:$0xf]  ;;  %v15726_v50 = vld [vmem:[#allocation9 + $0x3ec] sm:$0xf0] }
 0x2af   : > { %v11855_v10 = vld [vmem:[#allocation6 + $0xc78] sm:$0xf0]  ;;  %v15626_v9 = vld [vmem:[#allocation9 + $0xcc] sm:$0xf0] }
 0x2b0   : > { %v15347_v15 = vld [vmem:[#allocation6 + $0x61c] sm:$0xf]  ;;  %v11858_v11 = vor.u32 %v15547_v35, %v11855_v10  ;;  %3933 = vmatpush.bf16.msrb.mxu2 %v11602_v5  ;;  %v18653_v35 = vperm.slane %v17050_v54, 0  ;;  %v12277_v5 = vld [vmem:[#allocation9 + $0x1c0] sm:$0xf]  ;;  %v12150_v62 = vor.u32 %v15626_v9, %v12149_v34 }
 0x2b1   : > { %v11055_v3 = vld [vmem:[#allocation6 + $0x638] sm:$0xf0]  ;;  %v12245_v9 = vld [vmem:[#allocation9 + $0x180] sm:$0xf] }
 0x2b2   : > { %v15411_v46 = vld [vmem:[#allocation6 + $0x81c] sm:$0xf]  ;;  %v11058_v16 = vor.u32 %v15347_v15, %v11055_v3  ;;  %v3183_v10 = vadd.f32 %v17061_v30, %v18653_v35  ;;  %3947 = vmatpush.bf16.msrb.mxu3 %v11858_v11  ;;  %v12166_v3 = vor.u32 %v15630_v32, %v12165_v28  ;;  %v12533_v30 = vld [vmem:[#allocation9 + $0x3c0] sm:$0xf]  ;;  %v15722_v35 = vld [vmem:[#allocation9 + $0x3cc] sm:$0xf0]  ;;  %v3475_v11 = vadd.f32 %v17152_v29, %v882_v14 }
 0x2b3   : > { %v11311_v19 = vld [vmem:[#allocation6 + $0x838] sm:$0xf0]  ;;  %v12133_v32 = vld [vmem:[#allocation9 + $0xa0] sm:$0xf] }
 0x2b4   : > { %v15475_v2 = vld [vmem:[#allocation6 + $0xa1c] sm:$0xf]  ;;  %v11314_v53 = vor.u32 %v15411_v46, %v11311_v19  ;;  %3906 = vmatpush.bf16.msrb.mxu0 %v11058_v16  ;;  %v12550_v46 = vor.u32 %v15726_v50, %v12549_v55  ;;  %v15658_v19 = vld [vmem:[#allocation9 + $0x1cc] sm:$0xf0]  ;;  %v3197_v13 = vadd.f32 %v17063_v43, %v3183_v10  ;;  %v17211_v16 = vpop.f32.mrf.mxu0  ;;  %v18654_v43 = vperm.slane %v17050_v54, 1  ;;  %v17220_v55 = vpop.f32.mrf.mxu1 }
 0x2b5   : > { %v11567_v18 = vld [vmem:[#allocation6 + $0xa38] sm:$0xf0]  ;;  %v12517_v50 = vld [vmem:[#allocation9 + $0x3a0] sm:$0xf]  ;;  %v15718_v10 = vld [vmem:[#allocation9 + $0x3ac] sm:$0xf0] }
 0x2b6   : > { %v15539_v24 = vld [vmem:[#allocation6 + $0xc1c] sm:$0xf]  ;;  %v11570_v49 = vor.u32 %v15475_v2, %v11567_v18  ;;  %v12405_v2 = vld [vmem:[#allocation9 + $0x2c0] sm:$0xf]  ;;  %v15690_v18 = vld [vmem:[#allocation9 + $0x2cc] sm:$0xf0]  ;;  %3920 = vmatpush.bf16.msrb.mxu1 %v11314_v53  ;;  %v3281_v29 = vadd.f32 %v17089_v12, %v18654_v43  ;;  %v3489_v12 = vadd.f32 %v17156_v26, %v3475_v11  ;;  %v17237_v43 = vpop.f32.mrf.mxu2 }
 0x2b7   : > { %v11823_v40 = vld [vmem:[#allocation6 + $0xc38] sm:$0xf0]  ;;  %v12406_v28 = vor.u32 %v15690_v18, %v12405_v2  ;;  %v18655_v53 = vperm.slane %v17050_v54, 2  ;;  %3907 = vmatmul.bf16.vlgmr.msrb.gmra.mxu0 %v17029_v23  ;;  %v12134_v54 = vor.u32 %v15622_v57, %v12133_v32  ;;  %v12501_v2 = vld [vmem:[#allocation9 + $0x380] sm:$0xf] }
 0x2b8   : > { %v11826_v15 = vor.u32 %v15539_v24, %v11823_v40  ;;  %3934 = vmatpush.bf16.msrb.mxu2 %v11570_v49  ;;  %5525 = vmatpush.bf16.msra.mxu0 %v12166_v3  ;;  %v3477_v40 = vadd.f32 %v17160_v60, %v882_v14  ;;  %v12278_v24 = vor.u32 %v15658_v19, %v12277_v5  ;;  %v15654_v49 = vld [vmem:[#allocation9 + $0x1ac] sm:$0xf0]  ;;  %v12117_v3 = vld [vmem:[#allocation9 + $0x80] sm:$0xf] }
 0x2b9   : > { %v3379_v34 = vadd.f32 %v17132_v22, %v18655_v53  ;;  %v12534_v60 = vor.u32 %v15722_v35, %v12533_v30  ;;  %3921 = vmatmul.bf16.vlgmr.msrb.gmra.mxu1 %v17032_v37  ;;  %v17227_v22 = vpop.f32.mrf.mxu3  ;;  %v12262_v14 = vor.u32 %v15654_v49, %v12261_v33  ;;  %v15618_v37 = vld [vmem:[#allocation9 + $0x8c] sm:$0xf0]  ;;  %v3295_v5 = vadd.f32 %v17093_v4, %v3281_v29  ;;  %v12373_v19 = vld [vmem:[#allocation9 + $0x280] sm:$0xf] }
 0x2ba   : > { %3948 = vmatpush.bf16.msrb.mxu3 %v11826_v15  ;;  %5539 = vmatpush.bf16.msra.mxu1 %v12294_v63  ;;  %v12389_v63 = vld [vmem:[#allocation9 + $0x2a0] sm:$0xf]  ;;  %v3491_v23 = vadd.f32 %v17164_v1, %v3477_v40  ;;  %v15682_v1 = vld [vmem:[#allocation9 + $0x28c] sm:$0xf0]  ;;  %v3503_v30 = vadd.f32 %v17162_v6, %v3489_v12  ;;  %v12118_v35 = vor.u32 %v15618_v37, %v12117_v3 }
 0x2bb   : > { %3935 = vmatmul.bf16.vlgmr.msrb.gmra.mxu2 %v17036_v42  ;;  %v3211_v42 = vadd.f32 %v17068_v59, %v3197_v13  ;;  %v3393_v26 = vadd.f32 %v17134_v56, %v3379_v34  ;;  %v15714_v18 = vld [vmem:[#allocation9 + $0x38c] sm:$0xf0]  ;;  %v12374_v13 = vor.u32 %v15682_v1, %v12373_v19  ;;  %v12101_v4 = vld [vmem:[#allocation9 + $0x60] sm:$0xf] }
 0x2bc   : > { %5553 = vmatpush.bf16.msra.mxu2 %v12422_v25  ;;  %v15686_v25 = vld [vmem:[#allocation9 + $0x2ac] sm:$0xf0]  ;;  %5526 = vmatpush.bf16.msra.mxu0 %v12150_v62  ;;  %v3505_v11 = vadd.f32 %v17170_v58, %v3491_v23  ;;  %v12229_v56 = vld [vmem:[#allocation9 + $0x160] sm:$0xf]  ;;  %v12502_v32 = vor.u32 %v15714_v18, %v12501_v2  ;;  %v17239_v58 = vpop.f32.mrf.mxu0 }
 0x2bd   : > { %3949 = vmatmul.bf16.vlgmr.msrb.gmra.mxu3 %v17034_v41  ;;  %v12390_v15 = vor.u32 %v15686_v25, %v12389_v63  ;;  %v12518_v41 = vor.u32 %v15718_v10, %v12517_v50  ;;  %v15614_v62 = vld [vmem:[#allocation9 + $0x6c] sm:$0xf0]  ;;  %v3225_v40 = vadd.f32 %v17074_v52, %v3211_v42  ;;  %v12357_v57 = vld [vmem:[#allocation9 + $0x260] sm:$0xf] }
 0x2be   : > { %5567 = vmatpush.bf16.msra.mxu3 %v12550_v46  ;;  %5540 = vmatpush.bf16.msra.mxu1 %v12278_v24  ;;  %v15650_v46 = vld [vmem:[#allocation9 + $0x18c] sm:$0xf0]  ;;  %v3309_v24 = vadd.f32 %v17095_v7, %v3295_v5  ;;  %v12485_v29 = vld [vmem:[#allocation9 + $0x360] sm:$0xf]  ;;  %v12102_v52 = vor.u32 %v15614_v62, %v12101_v4  ;;  %v3519_v7 = vadd.f32 %v17175_v17, %v3505_v11 }
 0x2bf   : > { %v12246_v59 = vor.u32 %v15650_v46, %v12245_v9  ;;  %v15646_v6 = vld [vmem:[#allocation9 + $0x16c] sm:$0xf0]  ;;  %v12085_v50 = vld [vmem:[#allocation9 + $0x40] sm:$0xf] }
 0x2c0   : > { %5554 = vmatpush.bf16.msra.mxu2 %v12406_v28  ;;  %5527 = vmatpush.bf16.msra.mxu0 %v12134_v54  ;;  %v3407_v28 = vadd.f32 %v17138_v36, %v3393_v26  ;;  %v15678_v33 = vld [vmem:[#allocation9 + $0x26c] sm:$0xf0]  ;;  %v3323_v34 = vadd.f32 %v17101_v31, %v3309_v24  ;;  %v17244_v36 = vpop.f32.mrf.mxu1  ;;  %v12230_v63 = vor.u32 %v15646_v6, %v12229_v56  ;;  %v12213_v12 = vld [vmem:[#allocation9 + $0x140] sm:$0xf] }
 0x2c1   : > { %v15710_v53 = vld [vmem:[#allocation9 + $0x36c] sm:$0xf0]  ;;  %v17246_v49 = vpop.f32.mrf.mxu3  ;;  %v12358_v25 = vor.u32 %v15678_v33, %v12357_v57  ;;  %v3239_v54 = vadd.f32 %v17076_v39, %v3225_v40  ;;  %v3533_v26 = vadd.f32 %v17180_v21, %v3519_v7  ;;  %v12197_v19 = vld [vmem:[#allocation9 + $0x120] sm:$0xf]  ;;  %v18662_v7 = vld [vmem:[#allocation31_spill] sm:$0xff] }
 0x2c2   : > { %5568 = vmatpush.bf16.msra.mxu3 %v12534_v60  ;;  %5541 = vmatpush.bf16.msra.mxu1 %v12262_v14  ;;  %v3517_v60 = vadd.f32 %v17166_v61, %v3503_v30  ;;  %v15610_v10 = vld [vmem:[#allocation9 + $0x4c] sm:$0xf0]  ;;  %v3421_v31 = vadd.f32 %v17140_v38, %v3407_v28  ;;  %v12486_v61 = vor.u32 %v15710_v53, %v12485_v29  ;;  %v12341_v14 = vld [vmem:[#allocation9 + $0x240] sm:$0xf]  ;;  %v17264_v28 = vpop.f32.mrf.mxu2 }
 0x2c3   : > { %v15642_v23 = vld [vmem:[#allocation9 + $0x14c] sm:$0xf0]  ;;  %v3337_v37 = vadd.f32 %v17103_v45, %v3323_v34  ;;  %v12086_v5 = vor.u32 %v15610_v10, %v12085_v50  ;;  %v3253_v1 = vadd.f32 %v17079_v48, %v3239_v54  ;;  %v18656_v45 = vld [vmem:[#allocation27_spill] sm:$0xff]  ;;  %v12325_v30 = vld [vmem:[#allocation9 + $0x220] sm:$0xf]  ;;  %v3547_v21 = vadd.f32 %v17186_v8, %v3533_v26 }
 0x2c4   : > { %5555 = vmatpush.bf16.msra.mxu2 %v12390_v15  ;;  %5528 = vmatpush.bf16.msra.mxu0 %v12118_v35  ;;  %v15674_v17 = vld [vmem:[#allocation9 + $0x24c] sm:$0xf0]  ;;  %v12469_v15 = vld [vmem:[#allocation9 + $0x340] sm:$0xf]  ;;  %v3435_v9 = vadd.f32 %v17147_v27, %v3421_v31  ;;  %v3531_v42 = vadd.f32 %v17168_v20, %v3517_v60  ;;  %v12214_v39 = vor.u32 %v15642_v23, %v12213_v12  ;;  %v17259_v11 = vpop.f32.mrf.mxu0 }
 0x2c5   : > { %v15706_v3 = vld [vmem:[#allocation9 + $0x34c] sm:$0xf0]  ;;  %v12342_v38 = vor.u32 %v15674_v17, %v12341_v14  ;;  %v3351_v2 = vadd.f32 %v17113_v44, %v3337_v37  ;;  %v3433_v27 = vadd.f32 %v18656_v45, %v17122_v47  ;;  %v18658_v56 = vld [vmem:[#allocation30_spill] sm:$0xff] }
 0x2c6   : > { %5569 = vmatpush.bf16.msra.mxu3 %v12518_v41  ;;  %5542 = vmatpush.bf16.msra.mxu1 %v12246_v59  ;;  %v12069_v41 = vld [vmem:[#allocation9 + $0x20] sm:$0xf]  ;;  %v15606_v46 = vld [vmem:[#allocation9 + $0x2c] sm:$0xf0]  ;;  %v12470_v20 = vor.u32 %v15706_v3, %v12469_v15  ;;  %v3449_v48 = vadd.f32 %v18658_v56, %v3435_v9  ;;  %v18664_v15 = vld [vmem:[#allocation23_spill] sm:$0xff] }
 0x2c7   : > { %v15638_v18 = vld [vmem:[#allocation9 + $0x12c] sm:$0xf0]  ;;  %v12453_v59 = vld [vmem:[#allocation9 + $0x320] sm:$0xf]  ;;  %v12070_v44 = vor.u32 %v15606_v46, %v12069_v41  ;;  %v3955_v3 = vmax.f32 %v18664_v15, 0.0  ;;  %v18665_v9 = vld [vmem:[#allocation29_spill] sm:$0xff] }
 0x2c8   : > { %5556 = vmatpush.bf16.msra.mxu2 %v12374_v13  ;;  %5529 = vmatpush.bf16.msra.mxu0 %v12102_v52  ;;  %v15670_v35 = vld [vmem:[#allocation9 + $0x22c] sm:$0xf0]  ;;  %v12053_v40 = vld [vmem:[#allocation9] sm:$0xf]  ;;  %v12198_v8 = vor.u32 %v15638_v18, %v12197_v19  ;;  %v883_v46 = vperm.slane %v17203_v0, 4 }
 0x2c9   : > { %v15702_v13 = vld [vmem:[#allocation9 + $0x32c] sm:$0xf0]  ;;  %v12326_v6 = vor.u32 %v15670_v35, %v12325_v30  ;;  %v12181_v33 = vld [vmem:[#allocation9 + $0x100] sm:$0xf]  ;;  %v18667_v35 = vld [vmem:[#allocation25_spill] sm:$0xff] }
 0x2ca   : > { %5570 = vmatpush.bf16.msra.mxu3 %v12502_v32  ;;  %5543 = vmatpush.bf16.msra.mxu1 %v12230_v63  ;;  %v18657_v4 = vld [vmem:[#allocation24_spill] sm:$0xff]  ;;  %v17266_v32 = vpop.f32.mrf.mxu1  ;;  %v18660_v53 = vld [vmem:[#allocation26_spill] sm:$0xff]  ;;  %v3463_v63 = vadd.f32 %v18662_v7, %v3449_v48 }
 0x2cb   : > { %v3267_v62 = vadd.f32 %v18657_v4, %v3253_v1  ;;  %v18659_v24 = vld [vmem:[#allocation32_spill] sm:$0xff]  ;;  %v3365_v34 = vadd.f32 %v18660_v53, %v3351_v2  ;;  %v12309_v50 = vld [vmem:[#allocation9 + $0x200] sm:$0xf] }
 0x2cc   : > { %5557 = vmatpush.bf16.msra.mxu2 %v12358_v25  ;;  %5530 = vmatpush.bf16.msra.mxu0 %v12086_v5  ;;  %v3545_v47 = vadd.f32 %v18659_v24, %v3531_v42  ;;  %v15602_v57 = vld [vmem:[#allocation9 + $0xc] sm:$0xf0]  ;;  %v12454_v25 = vor.u32 %v15702_v13, %v12453_v59  ;;  %v12437_v12 = vld [vmem:[#allocation9 + $0x300] sm:$0xf]  ;;  %v3965_v45 = vmax.f32 %v3463_v63, 0.0  ;;  %v3686_v53 = vpop.f32.mrf.mxu0 }
 0x2cd   : > { %v15634_v29 = vld [vmem:[#allocation9 + $0x10c] sm:$0xf0]  ;;  %v12677_v14 = vld [vmem:[#allocation9 + $0x4e0] sm:$0xf]  ;;  %v3963_v37 = vmax.f32 %v3267_v62, 0.0  ;;  %v12054_v5 = vor.u32 %v15602_v57, %v12053_v40  ;;  %v3964_v2 = vmax.f32 %v3365_v34, 0.0 }
 0x2ce   : > { %5571 = vmatpush.bf16.msra.mxu3 %v12486_v61  ;;  %5544 = vmatpush.bf16.msra.mxu1 %v12214_v39  ;;  %v18661_v60 = vld [vmem:[#allocation28_spill] sm:$0xff]  ;;  %v3672_v61 = vpop.f32.mrf.mxu3  ;;  %v12805_v26 = vld [vmem:[#allocation9 + $0x5e0] sm:$0xf]  ;;  %v12182_v19 = vor.u32 %v15634_v29, %v12181_v33  ;;  %v17282_v29 = vpop.f32.mrf.mxu2 }
 0x2cf   : > { %v3447_v52 = vadd.f32 %v18661_v60, %v3433_v27  ;;  %v15666_v10 = vld [vmem:[#allocation9 + $0x20c] sm:$0xf0]  ;;  %v12933_v18 = vld [vmem:[#allocation9 + $0x6e0] sm:$0xf]  ;;  %v17277_v56 = vpack.c.bf16 %v3963_v37, %v3955_v3  ;;  %v18670_v3 = vld [vmem:[#allocation35_spill] sm:$0xff] }
 0x2d0   : > { %5558 = vmatpush.bf16.msra.mxu2 %v12342_v38  ;;  %v18663_v54 = vld [vmem:[#allocation36_spill] sm:$0xff]  ;;  %5531 = vmatpush.bf16.msra.mxu0 %v12070_v44  ;;  %v18666_v38 = vld [vmem:[#allocation33_spill] sm:$0xff]  ;;  %v12310_v1 = vor.u32 %v15666_v10, %v12309_v50  ;;  %v12661_v4 = vld [vmem:[#allocation9 + $0x4c0] sm:$0xf]  ;;  %v884_v44 = vperm.slane %v17203_v0, 5 }
 0x2d1   : > { %v3561_v31 = vadd.f32 %v18663_v54, %v3547_v21  ;;  %v15698_v23 = vld [vmem:[#allocation9 + $0x30c] sm:$0xf0]  ;;  %v3461_v42 = vadd.f32 %v18665_v9, %v3447_v52  ;;  %v3559_v41 = vadd.f32 %v18666_v38, %v3545_v47  ;;  %v3956_v21 = vmax.f32 %v18667_v35, 0.0  ;;  %v12789_v40 = vld [vmem:[#allocation9 + $0x5c0] sm:$0xf]  ;;  %v18671_v9 = vld [vmem:[#allocation39_spill] sm:$0xff] }
 0x2d2   : > { %5572 = vmatpush.bf16.msra.mxu3 %v12470_v20  ;;  %v15758_v17 = vld [vmem:[#allocation9 + $0x4ec] sm:$0xf0]  ;;  %5545 = vmatpush.bf16.msra.mxu1 %v12198_v8  ;;  %v12438_v27 = vor.u32 %v15698_v23, %v12437_v12  ;;  %v18668_v8 = vld [vmem:[#allocation34_spill] sm:$0xff]  ;;  %v3700_v10 = vpop.f32.mrf.mxu1  ;;  %v3671_v23 = vadd.f32 %v17246_v49, %v884_v44 }
 0x2d3   : > { %v15790_v39 = vld [vmem:[#allocation9 + $0x5ec] sm:$0xf0]  ;;  %v12678_v20 = vor.u32 %v15758_v17, %v12677_v14  ;;  %v3966_v59 = vmax.f32 %v3561_v31, 0.0  ;;  %v3957_v48 = vmax.f32 %v3461_v42, 0.0  ;;  %v3958_v47 = vmax.f32 %v3559_v41, 0.0  ;;  %v18669_v57 = vld [vmem:[#allocation38_spill] sm:$0xff] }
 0x2d4   : > { %5559 = vmatpush.bf16.msra.mxu2 %v12326_v6  ;;  %v15822_v30 = vld [vmem:[#allocation9 + $0x6ec] sm:$0xf0]  ;;  %v12806_v13 = vor.u32 %v15790_v39, %v12805_v26  ;;  %5532 = vmatpush.bf16.msra.mxu0 %v12054_v5  ;;  %v3573_v6 = vadd.f32 %v18668_v8, %v883_v46  ;;  %v3575_v33 = vadd.f32 %v18669_v57, %v883_v46  ;;  %v12917_v63 = vld [vmem:[#allocation9 + $0x6c0] sm:$0xf] }
 0x2d5   : > { %v15754_v62 = vld [vmem:[#allocation9 + $0x4cc] sm:$0xf0]  ;;  %v12934_v34 = vor.u32 %v15822_v30, %v12933_v18  ;;  %v17284_v60 = vpack.c.bf16 %v3964_v2, %v3956_v21  ;;  %v17286_v52 = vpack.c.bf16 %v3965_v45, %v3957_v48  ;;  %v17288_v50 = vpack.c.bf16 %v3966_v59, %v3958_v47  ;;  %v12645_v54 = vld [vmem:[#allocation9 + $0x4a0] sm:$0xf]  ;;  %v3740_v30 = vpop.f32.mrf.mxu0 }
 0x2d6   : > { %5573 = vmatpush.bf16.msra.mxu3 %v12454_v25  ;;  %v15786_v24 = vld [vmem:[#allocation9 + $0x5cc] sm:$0xf0]  ;;  %5546 = vmatpush.bf16.msra.mxu1 %v12182_v19  ;;  %v12662_v7 = vor.u32 %v15754_v62, %v12661_v4  ;;  %v3673_v14 = vadd.f32 %v3672_v61, %v884_v44  ;;  %v12773_v17 = vld [vmem:[#allocation9 + $0x5a0] sm:$0xf]  ;;  %v3587_v37 = vadd.f32 %v18670_v3, %v3573_v6  ;;  %v17296_v5 = vpop.f32.mrf.mxu3  ;;  %v3714_v4 = vpop.f32.mrf.mxu2 }
 0x2d7   : > { %v15818_v25 = vld [vmem:[#allocation9 + $0x6cc] sm:$0xf0]  ;;  %5533 = vmatmul.bf16.vlgmr.msra.gmra.mxu0 %v17277_v56  ;;  %v12790_v12 = vor.u32 %v15786_v24, %v12789_v40  ;;  %v3589_v42 = vadd.f32 %v18671_v9, %v3575_v33  ;;  %v12901_v49 = vld [vmem:[#allocation9 + $0x6a0] sm:$0xf]  ;;  %v3685_v19 = vadd.f32 %v17259_v11, %v3671_v23 }
 0x2d8   : > { %5560 = vmatpush.bf16.msra.mxu2 %v12310_v1  ;;  %5581 = vmatpush.bf16.msrb.mxu0 %v12678_v20  ;;  %v15750_v31 = vld [vmem:[#allocation9 + $0x4ac] sm:$0xf0]  ;;  %v12918_v26 = vor.u32 %v15818_v25, %v12917_v63  ;;  %v12629_v41 = vld [vmem:[#allocation9 + $0x480] sm:$0xf]  ;;  %v3687_v1 = vadd.f32 %v3686_v53, %v3673_v14 }
 0x2d9   : > { %5547 = vmatmul.bf16.vlgmr.msra.gmra.mxu1 %v17284_v60  ;;  %v15782_v15 = vld [vmem:[#allocation9 + $0x5ac] sm:$0xf0]  ;;  %v12646_v39 = vor.u32 %v15750_v31, %v12645_v54  ;;  %v12757_v2 = vld [vmem:[#allocation9 + $0x580] sm:$0xf]  ;;  %v3603_v18 = vadd.f32 %v17209_v51, %v3589_v42  ;;  %v3699_v40 = vadd.f32 %v17266_v32, %v3685_v19 }
 0x2da   : > { %5574 = vmatpush.bf16.msra.mxu3 %v12438_v27  ;;  %5595 = vmatpush.bf16.msrb.mxu1 %v12806_v13  ;;  %v15814_v61 = vld [vmem:[#allocation9 + $0x6ac] sm:$0xf0]  ;;  %v12774_v38 = vor.u32 %v15782_v15, %v12773_v17  ;;  %v18672_v27 = vld [vmem:[#allocation37_spill] sm:$0xff]  ;;  %v12885_v59 = vld [vmem:[#allocation9 + $0x680] sm:$0xf]  ;;  %v17302_v48 = vpop.f32.mrf.mxu1  ;;  %v3701_v24 = vadd.f32 %v3700_v10, %v3687_v1 }
 0x2db   : > { %5561 = vmatmul.bf16.vlgmr.msra.gmra.mxu2 %v17286_v52  ;;  %v15746_v46 = vld [vmem:[#allocation9 + $0x48c] sm:$0xf0]  ;;  %v3601_v20 = vadd.f32 %v18672_v27, %v3587_v37  ;;  %v12902_v35 = vor.u32 %v15814_v61, %v12901_v49  ;;  %v12613_v11 = vld [vmem:[#allocation9 + $0x460] sm:$0xf]  ;;  %v3617_v57 = vadd.f32 %v17227_v22, %v3603_v18  ;;  %v3713_v32 = vadd.f32 %v17282_v29, %v3699_v40 }
 0x2dc   : > { %5609 = vmatpush.bf16.msrb.mxu2 %v12934_v34  ;;  %5582 = vmatpush.bf16.msrb.mxu0 %v12662_v7  ;;  %v15778_v45 = vld [vmem:[#allocation9 + $0x58c] sm:$0xf0]  ;;  %v12630_v21 = vor.u32 %v15746_v46, %v12629_v41  ;;  %v12741_v47 = vld [vmem:[#allocation9 + $0x560] sm:$0xf]  ;;  %v3715_v53 = vadd.f32 %v3714_v4, %v3701_v24  ;;  %v12167_v4 = vld [vmem:[#allocation9 + $0xf0] sm:$0xf0] }
 0x2dd   : > { %5575 = vmatmul.bf16.vlgmr.msra.gmra.mxu3 %v17288_v50  ;;  %v15810_v13 = vld [vmem:[#allocation9 + $0x68c] sm:$0xf0]  ;;  %v12758_v62 = vor.u32 %v15778_v45, %v12757_v2  ;;  %v12869_v7 = vld [vmem:[#allocation9 + $0x660] sm:$0xf]  ;;  %v3631_v22 = vadd.f32 %v17239_v58, %v3617_v57  ;;  %v3742_v17 = vpop.f32.mrf.mxu0  ;;  %v3727_v29 = vadd.f32 %v17296_v5, %v3713_v32  ;;  %v12423_v57 = vld [vmem:[#allocation9 + $0x2f0] sm:$0xf0] }
 0x2de   : > { %5596 = vmatpush.bf16.msrb.mxu1 %v12790_v12  ;;  %v15742_v44 = vld [vmem:[#allocation9 + $0x46c] sm:$0xf0]  ;;  %v12886_v33 = vor.u32 %v15810_v13, %v12885_v59  ;;  %v3728_v25 = vpop.f32.mrf.mxu3  ;;  %v12597_v54 = vld [vmem:[#allocation9 + $0x440] sm:$0xf] }
 0x2df   : > { %v15774_v8 = vld [vmem:[#allocation9 + $0x56c] sm:$0xf0]  ;;  %v12614_v34 = vor.u32 %v15742_v44, %v12613_v11  ;;  %v12725_v10 = vld [vmem:[#allocation9 + $0x540] sm:$0xf]  ;;  %v3729_v3 = vadd.f32 %v3728_v25, %v3715_v53  ;;  %v3645_v58 = vadd.f32 %v17244_v36, %v3631_v22  ;;  %v3741_v1 = vadd.f32 %v3740_v30, %v3727_v29  ;;  %v12295_v11 = vld [vmem:[#allocation9 + $0x1f0] sm:$0xf0] }
 0x2e0   : > { %5610 = vmatpush.bf16.msrb.mxu2 %v12918_v26  ;;  %5583 = vmatpush.bf16.msrb.mxu0 %v12646_v39  ;;  %v18673_v51 = vld [vmem:[#allocation40_spill] sm:$0xff]  ;;  %v12742_v12 = vor.u32 %v15774_v8, %v12741_v47  ;;  %v12853_v9 = vld [vmem:[#allocation9 + $0x640] sm:$0xf]  ;;  %v12279_v25 = vld [vmem:[#allocation9 + $0x1d0] sm:$0xf0] }
 0x2e1   : > { %v3615_v6 = vadd.f32 %v18673_v51, %v3601_v20  ;;  %v15806_v63 = vld [vmem:[#allocation9 + $0x66c] sm:$0xf0]  ;;  %v12581_v39 = vld [vmem:[#allocation9 + $0x420] sm:$0xf]  ;;  %v3743_v61 = vadd.f32 %v3742_v17, %v3729_v3  ;;  %v3659_v20 = vadd.f32 %v17264_v28, %v3645_v58  ;;  %v3755_v44 = vadd.f32 %v17302_v48, %v3741_v1  ;;  %v15620_v3 = vld [vmem:[#allocation9 + $0xa4] sm:$0xf] }
 0x2e2   : > { %5597 = vmatpush.bf16.msrb.mxu1 %v12774_v38  ;;  %v15738_v31 = vld [vmem:[#allocation9 + $0x44c] sm:$0xf0]  ;;  %v12870_v15 = vor.u32 %v15806_v63, %v12869_v7  ;;  %v12709_v38 = vld [vmem:[#allocation9 + $0x520] sm:$0xf]  ;;  %v3756_v46 = vpop.f32.mrf.mxu1  ;;  %v15656_v63 = vld [vmem:[#allocation9 + $0x1c4] sm:$0xf] }
 0x2e3   : > { %v15770_v23 = vld [vmem:[#allocation9 + $0x54c] sm:$0xf0]  ;;  %v3629_v14 = vadd.f32 %v17211_v16, %v3615_v6  ;;  %v12598_v37 = vor.u32 %v15738_v31, %v12597_v54  ;;  %v12837_v45 = vld [vmem:[#allocation9 + $0x620] sm:$0xf]  ;;  %v3757_v59 = vadd.f32 %v3756_v46, %v3743_v61  ;;  %v3967_v47 = vmax.f32 %v3659_v20, 0.0  ;;  %v17322_v20 = vpop.f32.mrf.mxu2 }
 0x2e4   : > { %5611 = vmatpush.bf16.msrb.mxu2 %v12902_v35  ;;  %5584 = vmatpush.bf16.msrb.mxu0 %v12630_v21  ;;  %v15802_v42 = vld [vmem:[#allocation9 + $0x64c] sm:$0xf0]  ;;  %v12726_v26 = vor.u32 %v15770_v23, %v12725_v10  ;;  %v12565_v5 = vld [vmem:[#allocation9 + $0x400] sm:$0xf]  ;;  %v15692_v6 = vld [vmem:[#allocation9 + $0x2e4] sm:$0xf] }
 0x2e5   : > { %v15734_v49 = vld [vmem:[#allocation9 + $0x42c] sm:$0xf0]  ;;  %v3643_v16 = vadd.f32 %v17220_v55, %v3629_v14  ;;  %v12854_v19 = vor.u32 %v15802_v42, %v12853_v9  ;;  %v12693_v21 = vld [vmem:[#allocation9 + $0x500] sm:$0xf]  ;;  %v15628_v55 = vld [vmem:[#allocation9 + $0xe4] sm:$0xf]  ;;  %v12426_v54 = vor.u32 %v15692_v6, %v12423_v57 }
 0x2e6   : > { %5598 = vmatpush.bf16.msrb.mxu1 %v12758_v62  ;;  %v15766_v41 = vld [vmem:[#allocation9 + $0x52c] sm:$0xf0]  ;;  %v12582_v2 = vor.u32 %v15734_v49, %v12581_v39  ;;  %v15660_v62 = vld [vmem:[#allocation9 + $0x1e4] sm:$0xf]  ;;  %v12821_v28 = vld [vmem:[#allocation9 + $0x600] sm:$0xf]  ;;  %v12170_v51 = vor.u32 %v15628_v55, %v12167_v4 }
 0x2e7   : > { %v15798_v27 = vld [vmem:[#allocation9 + $0x62c] sm:$0xf0]  ;;  %v12710_v18 = vor.u32 %v15766_v41, %v12709_v38  ;;  %v3657_v36 = vadd.f32 %v17237_v43, %v3643_v16  ;;  %v12298_v53 = vor.u32 %v15660_v62, %v12295_v11  ;;  %v12151_v43 = vld [vmem:[#allocation9 + $0xd0] sm:$0xf0]  ;;  %v3960_v48 = vmax.f32 %v3755_v44, 0.0  ;;  %v17324_v44 = vpop.f32.mrf.mxu3 }
 0x2e8   : > { %5612 = vmatpush.bf16.msrb.mxu2 %v12886_v33  ;;  %5585 = vmatpush.bf16.msrb.mxu0 %v12614_v34  ;;  %v15730_v35 = vld [vmem:[#allocation9 + $0x40c] sm:$0xf0]  ;;  %v12838_v30 = vor.u32 %v15798_v27, %v12837_v45  ;;  %v3968_v33 = vmax.f32 %v3757_v59, 0.0  ;;  %v15624_v34 = vld [vmem:[#allocation9 + $0xc4] sm:$0xf] }
 0x2e9   : > { %v15762_v13 = vld [vmem:[#allocation9 + $0x50c] sm:$0xf0]  ;;  %v12566_v40 = vor.u32 %v15730_v35, %v12565_v5  ;;  %v3959_v7 = vmax.f32 %v3657_v36, 0.0  ;;  %v15688_v31 = vld [vmem:[#allocation9 + $0x2c4] sm:$0xf]  ;;  %v12154_v10 = vor.u32 %v15624_v34, %v12151_v43 }
 0x2ea   : > { %5599 = vmatpush.bf16.msrb.mxu1 %v12742_v12  ;;  %v15794_v24 = vld [vmem:[#allocation9 + $0x60c] sm:$0xf0]  ;;  %v12694_v8 = vor.u32 %v15762_v13, %v12693_v21  ;;  %v12407_v23 = vld [vmem:[#allocation9 + $0x2d0] sm:$0xf0]  ;;  %v13061_v14 = vld [vmem:[#allocation9 + $0x7e0] sm:$0xf]  ;;  %v17318_v17 = vpack.c.bf16 %v3968_v33, %v3960_v48 }
 0x2eb   : > { %v12822_v12 = vor.u32 %v15794_v24, %v12821_v28  ;;  %v17316_v32 = vpack.c.bf16 %v3967_v47, %v3959_v7  ;;  %v15854_v22 = vld [vmem:[#allocation9 + $0x7ec] sm:$0xf0]  ;;  %v15652_v42 = vld [vmem:[#allocation9 + $0x1a4] sm:$0xf]  ;;  %v12410_v39 = vor.u32 %v15688_v31, %v12407_v23  ;;  %v12391_v61 = vld [vmem:[#allocation9 + $0x2b0] sm:$0xf0]  ;;  %v3770_v23 = vpop.f32.mrf.mxu2 }
 0x2ec   : > { %5613 = vmatpush.bf16.msrb.mxu2 %v12870_v15  ;;  %5586 = vmatpush.bf16.msrb.mxu0 %v12598_v37  ;;  %v12282_v15 = vor.u32 %v15656_v63, %v12279_v25  ;;  %v12135_v37 = vld [vmem:[#allocation9 + $0xb0] sm:$0xf0]  ;;  %v13062_v9 = vor.u32 %v15854_v22, %v13061_v14  ;;  %v15684_v49 = vld [vmem:[#allocation9 + $0x2a4] sm:$0xf]  ;;  %v13045_v38 = vld [vmem:[#allocation9 + $0x7c0] sm:$0xf] }
 0x2ed   : > { %v12138_v29 = vor.u32 %v15620_v3, %v12135_v37  ;;  %v15850_v41 = vld [vmem:[#allocation9 + $0x7cc] sm:$0xf0]  ;;  %v15616_v58 = vld [vmem:[#allocation9 + $0x84] sm:$0xf]  ;;  %v12119_v46 = vld [vmem:[#allocation9 + $0x90] sm:$0xf0]  ;;  %v12394_v45 = vor.u32 %v15684_v49, %v12391_v61 }
 0x2ee   : > { %5600 = vmatpush.bf16.msrb.mxu1 %v12726_v26  ;;  %v12263_v26 = vld [vmem:[#allocation9 + $0x1b0] sm:$0xf0]  ;;  %5623 = vmatpush.bf16.msrb.mxu3 %v13062_v9  ;;  %v15648_v1 = vld [vmem:[#allocation9 + $0x184] sm:$0xf]  ;;  %v13029_v35 = vld [vmem:[#allocation9 + $0x7a0] sm:$0xf]  ;;  %v3796_v9 = vpop.f32.mrf.mxu0 }
 0x2ef   : > { %v12266_v16 = vor.u32 %v15652_v42, %v12263_v26  ;;  %v15680_v27 = vld [vmem:[#allocation9 + $0x284] sm:$0xf]  ;;  %v12375_v5 = vld [vmem:[#allocation9 + $0x290] sm:$0xf0]  ;;  %v15846_v21 = vld [vmem:[#allocation9 + $0x7ac] sm:$0xf0] }
 0x2f0   : > { %5614 = vmatpush.bf16.msrb.mxu2 %v12854_v19  ;;  %5587 = vmatpush.bf16.msrb.mxu0 %v12582_v2  ;;  %v13046_v19 = vor.u32 %v15850_v41, %v13045_v38  ;;  %v12247_v2 = vld [vmem:[#allocation9 + $0x190] sm:$0xf0]  ;;  %v15612_v13 = vld [vmem:[#allocation9 + $0x64] sm:$0xf]  ;;  %v13030_v4 = vor.u32 %v15846_v21, %v13029_v35  ;;  %v12378_v11 = vor.u32 %v15680_v27, %v12375_v5  ;;  %v13013_v24 = vld [vmem:[#allocation9 + $0x780] sm:$0xf] }
 0x2f1   : > { %v12250_v59 = vor.u32 %v15648_v1, %v12247_v2  ;;  %v12103_v55 = vld [vmem:[#allocation9 + $0x70] sm:$0xf0]  ;;  %v15644_v36 = vld [vmem:[#allocation9 + $0x164] sm:$0xf]  ;;  %v15842_v47 = vld [vmem:[#allocation9 + $0x78c] sm:$0xf0] }
 0x2f2   : > { %5601 = vmatpush.bf16.msrb.mxu1 %v12710_v18  ;;  %v12122_v18 = vor.u32 %v15616_v58, %v12119_v46  ;;  %5624 = vmatpush.bf16.msrb.mxu3 %v13046_v19  ;;  %v12231_v62 = vld [vmem:[#allocation9 + $0x170] sm:$0xf0]  ;;  %v13014_v57 = vor.u32 %v15842_v47, %v13013_v24  ;;  %v15640_v33 = vld [vmem:[#allocation9 + $0x144] sm:$0xf]  ;;  %v12997_v25 = vld [vmem:[#allocation9 + $0x760] sm:$0xf] }
 0x2f3   : > { %v12359_v28 = vld [vmem:[#allocation9 + $0x270] sm:$0xf0]  ;;  %v15672_v43 = vld [vmem:[#allocation9 + $0x244] sm:$0xf]  ;;  %v12981_v49 = vld [vmem:[#allocation9 + $0x740] sm:$0xf] }
 0x2f4   : > { %5615 = vmatpush.bf16.msrb.mxu2 %v12838_v30  ;;  %5588 = vmatpush.bf16.msrb.mxu0 %v12566_v40  ;;  %v15676_v30 = vld [vmem:[#allocation9 + $0x264] sm:$0xf]  ;;  %v12106_v40 = vor.u32 %v15612_v13, %v12103_v55  ;;  %v12087_v6 = vld [vmem:[#allocation9 + $0x50] sm:$0xf0]  ;;  %v15834_v41 = vld [vmem:[#allocation9 + $0x74c] sm:$0xf0] }
 0x2f5   : > { %v12362_v34 = vor.u32 %v15676_v30, %v12359_v28  ;;  %v12343_v63 = vld [vmem:[#allocation9 + $0x250] sm:$0xf0]  ;;  %v15636_v14 = vld [vmem:[#allocation9 + $0x124] sm:$0xf]  ;;  %v12965_v21 = vld [vmem:[#allocation9 + $0x720] sm:$0xf] }
 0x2f6   : > { %5602 = vmatpush.bf16.msrb.mxu1 %v12694_v8  ;;  %5625 = vmatpush.bf16.msrb.mxu3 %v13030_v4  ;;  %v12234_v8 = vor.u32 %v15644_v36, %v12231_v62  ;;  %v12071_v31 = vld [vmem:[#allocation9 + $0x30] sm:$0xf0]  ;;  %v15600_v3 = vld [vmem:[#allocation9 + $0x4] sm:$0xf]  ;;  %v12346_v37 = vor.u32 %v15672_v43, %v12343_v63  ;;  %v3810_v36 = vpop.f32.mrf.mxu1 }
 0x2f7   : > { %5589 = vmatmul.bf16.vlgmr.msrb.gmra.mxu0 %v17316_v32  ;;  %v12199_v22 = vld [vmem:[#allocation9 + $0x130] sm:$0xf0]  ;;  %v15668_v26 = vld [vmem:[#allocation9 + $0x224] sm:$0xf] }
 0x2f8   : > { %5637 = vmatpush.bf16.msra.mxu0 %v12170_v51  ;;  %5616 = vmatpush.bf16.msrb.mxu2 %v12822_v12  ;;  %v15608_v51 = vld [vmem:[#allocation9 + $0x44] sm:$0xf]  ;;  %v15838_v12 = vld [vmem:[#allocation9 + $0x76c] sm:$0xf0]  ;;  %v12055_v61 = vld [vmem:[#allocation9 + $0x10] sm:$0xf0] }
 0x2f9   : > { %5603 = vmatmul.bf16.vlgmr.msrb.gmra.mxu1 %v17318_v17  ;;  %v12090_v7 = vor.u32 %v15608_v51, %v12087_v6  ;;  %v15632_v38 = vld [vmem:[#allocation9 + $0x104] sm:$0xf]  ;;  %v12183_v58 = vld [vmem:[#allocation9 + $0x110] sm:$0xf0]  ;;  %v12058_v5 = vor.u32 %v15600_v3, %v12055_v61  ;;  %v12949_v51 = vld [vmem:[#allocation9 + $0x700] sm:$0xf] }
 0x2fa   : > { %5651 = vmatpush.bf16.msra.mxu1 %v12298_v53  ;;  %v12215_v53 = vld [vmem:[#allocation9 + $0x150] sm:$0xf0]  ;;  %5626 = vmatpush.bf16.msrb.mxu3 %v13014_v57  ;;  %v15756_v46 = vld [vmem:[#allocation9 + $0x4e4] sm:$0xf]  ;;  %v12186_v13 = vor.u32 %v15632_v38, %v12183_v58  ;;  %v15826_v6 = vld [vmem:[#allocation9 + $0x70c] sm:$0xf0] }
 0x2fb   : > { %v12218_v48 = vor.u32 %v15640_v33, %v12215_v53  ;;  %v12679_v19 = vld [vmem:[#allocation9 + $0x4f0] sm:$0xf0]  ;;  %v15788_v2 = vld [vmem:[#allocation9 + $0x5e4] sm:$0xf]  ;;  %v12950_v53 = vor.u32 %v15826_v6, %v12949_v51 }
 0x2fc   : > { %5665 = vmatpush.bf16.msra.mxu2 %v12426_v54  ;;  %5638 = vmatpush.bf16.msra.mxu0 %v12154_v10  ;;  %v15604_v54 = vld [vmem:[#allocation9 + $0x24] sm:$0xf]  ;;  %v12998_v10 = vor.u32 %v15838_v12, %v12997_v25  ;;  %v12311_v35 = vld [vmem:[#allocation9 + $0x210] sm:$0xf0]  ;;  %v12682_v55 = vor.u32 %v15756_v46, %v12679_v19 }
 0x2fd   : > { %v12074_v42 = vor.u32 %v15604_v54, %v12071_v31  ;;  %v12663_v30 = vld [vmem:[#allocation9 + $0x4d0] sm:$0xf0]  ;;  %v15784_v28 = vld [vmem:[#allocation9 + $0x5c4] sm:$0xf] }
 0x2fe   : > { %5652 = vmatpush.bf16.msra.mxu1 %v12282_v15  ;;  %v885_v15 = vperm.slane %v17203_v0, 6  ;;  %5627 = vmatpush.bf16.msrb.mxu3 %v12998_v10  ;;  %v12982_v0 = vor.u32 %v15834_v41, %v12981_v49  ;;  %v12791_v24 = vld [vmem:[#allocation9 + $0x5d0] sm:$0xf0]  ;;  %v15748_v33 = vld [vmem:[#allocation9 + $0x4a4] sm:$0xf] }
 0x2ff   : > { %v12794_v43 = vor.u32 %v15784_v28, %v12791_v24  ;;  %v12551_v63 = vld [vmem:[#allocation9 + $0x3f0] sm:$0xf0]  ;;  %v15744_v3 = vld [vmem:[#allocation9 + $0x484] sm:$0xf] }
 0x300   : > { %5666 = vmatpush.bf16.msra.mxu2 %v12410_v39  ;;  %5639 = vmatpush.bf16.msra.mxu0 %v12138_v29  ;;  %v12327_v39 = vld [vmem:[#allocation9 + $0x230] sm:$0xf0]  ;;  %v12202_v29 = vor.u32 %v15636_v14, %v12199_v22  ;;  %v3769_v1 = vadd.f32 %v17322_v20, %v885_v15  ;;  %v15720_v14 = vld [vmem:[#allocation9 + $0x3c4] sm:$0xf] }
 0x301   : > { %v12330_v27 = vor.u32 %v15668_v26, %v12327_v39  ;;  %v12775_v54 = vld [vmem:[#allocation9 + $0x5b0] sm:$0xf0]  ;;  %v15776_v39 = vld [vmem:[#allocation9 + $0x584] sm:$0xf] }
 0x302   : > { %5653 = vmatpush.bf16.msra.mxu1 %v12266_v16  ;;  %v3784_v16 = vpop.f32.mrf.mxu3  ;;  %5628 = vmatpush.bf16.msrb.mxu3 %v12982_v0  ;;  %v3783_v20 = vadd.f32 %v17324_v44, %v3769_v1  ;;  %v15724_v44 = vld [vmem:[#allocation9 + $0x3e4] sm:$0xf]  ;;  %v12535_v22 = vld [vmem:[#allocation9 + $0x3d0] sm:$0xf0] }
 0x303   : > { %v12554_v31 = vor.u32 %v15724_v44, %v12551_v63  ;;  %v12759_v49 = vld [vmem:[#allocation9 + $0x590] sm:$0xf0]  ;;  %v15716_v38 = vld [vmem:[#allocation9 + $0x3a4] sm:$0xf] }
 0x304   : > { %5667 = vmatpush.bf16.msra.mxu2 %v12394_v45  ;;  %5640 = vmatpush.bf16.msra.mxu0 %v12122_v18  ;;  %v12807_v45 = vld [vmem:[#allocation9 + $0x5f0] sm:$0xf0]  ;;  %v15664_v18 = vld [vmem:[#allocation9 + $0x204] sm:$0xf]  ;;  %v3797_v12 = vadd.f32 %v3796_v9, %v3783_v20  ;;  %v12538_v9 = vor.u32 %v15720_v14, %v12535_v22  ;;  %v12762_v46 = vor.u32 %v15776_v39, %v12759_v49  ;;  %v15663_v49 = vld [vmem:[#allocation9 + $0x1f4] sm:$0xf0] }
 0x305   : > { %v12810_v62 = vor.u32 %v15788_v2, %v12807_v45  ;;  %v12314_v47 = vor.u32 %v15664_v18, %v12311_v35  ;;  %v12519_v41 = vld [vmem:[#allocation9 + $0x3b0] sm:$0xf0]  ;;  %v15740_v19 = vld [vmem:[#allocation9 + $0x464] sm:$0xf] }
 0x306   : > { %5654 = vmatpush.bf16.msra.mxu1 %v12250_v59  ;;  %v15830_v59 = vld [vmem:[#allocation9 + $0x72c] sm:$0xf0]  ;;  %v12615_v0 = vld [vmem:[#allocation9 + $0x470] sm:$0xf0]  ;;  %v12522_v1 = vor.u32 %v15716_v38, %v12519_v41  ;;  %v15820_v44 = vld [vmem:[#allocation9 + $0x6e4] sm:$0xf] }
 0x307   : > { %v12966_v4 = vor.u32 %v15830_v59, %v12965_v21  ;;  %v12743_v18 = vld [vmem:[#allocation9 + $0x570] sm:$0xf0]  ;;  %v12618_v35 = vor.u32 %v15740_v19, %v12615_v0  ;;  %v15712_v21 = vld [vmem:[#allocation9 + $0x384] sm:$0xf] }
 0x308   : > { %5668 = vmatpush.bf16.msra.mxu2 %v12378_v11  ;;  %5641 = vmatpush.bf16.msra.mxu0 %v12106_v40  ;;  %v15752_v11 = vld [vmem:[#allocation9 + $0x4c4] sm:$0xf]  ;;  %v3771_v40 = vadd.f32 %v3770_v23, %v885_v15  ;;  %v12503_v59 = vld [vmem:[#allocation9 + $0x390] sm:$0xf0] }
 0x309   : > { %5629 = vmatpush.bf16.msrb.mxu3 %v12966_v4  ;;  %v12666_v57 = vor.u32 %v15752_v11, %v12663_v30  ;;  %v15736_v4 = vld [vmem:[#allocation9 + $0x444] sm:$0xf]  ;;  %v12727_v20 = vld [vmem:[#allocation9 + $0x550] sm:$0xf0] }
 0x30a   : > { %5655 = vmatpush.bf16.msra.mxu1 %v12234_v8  ;;  %v3824_v8 = vpop.f32.mrf.mxu2  ;;  %v3785_v25 = vadd.f32 %v3784_v16, %v3771_v40  ;;  %v3838_v10 = vpop.f32.mrf.mxu3  ;;  %v15768_v30 = vld [vmem:[#allocation9 + $0x544] sm:$0xf]  ;;  %v12935_v63 = vld [vmem:[#allocation9 + $0x6f0] sm:$0xf0] }
 0x30b   : > { %v12730_v6 = vor.u32 %v15768_v30, %v12727_v20  ;;  %v12938_v14 = vor.u32 %v15820_v44, %v12935_v63  ;;  %v15760_v22 = vld [vmem:[#allocation9 + $0x504] sm:$0xf]  ;;  %v12253_v44 = vld [vmem:[#allocation9 + $0x188] sm:$0xf] }
 0x30c   : > { %5669 = vmatpush.bf16.msra.mxu2 %v12362_v34  ;;  %5642 = vmatpush.bf16.msra.mxu0 %v12090_v7  ;;  %v3798_v34 = vpop.f32.mrf.mxu0  ;;  %v12647_v7 = vld [vmem:[#allocation9 + $0x4b0] sm:$0xf0] }
 0x30d   : > { %5630 = vmatpush.bf16.msrb.mxu3 %v12950_v53  ;;  %v12650_v23 = vor.u32 %v15748_v33, %v12647_v7  ;;  %v3799_v26 = vadd.f32 %v3798_v34, %v3785_v25  ;;  %v12583_v33 = vld [vmem:[#allocation9 + $0x430] sm:$0xf0]  ;;  %v15764_v53 = vld [vmem:[#allocation9 + $0x524] sm:$0xf] }
 0x30e   : > { %5656 = vmatpush.bf16.msra.mxu1 %v12218_v48  ;;  %v15780_v48 = vld [vmem:[#allocation9 + $0x5a4] sm:$0xf]  ;;  %v12711_v7 = vld [vmem:[#allocation9 + $0x530] sm:$0xf0] }
 0x30f   : > { %v12778_v15 = vor.u32 %v15780_v48, %v12775_v54  ;;  %v15728_v25 = vld [vmem:[#allocation9 + $0x404] sm:$0xf] }
 0x310   : > { %5670 = vmatpush.bf16.msra.mxu2 %v12346_v37  ;;  %5643 = vmatpush.bf16.msra.mxu0 %v12074_v42  ;;  %v12631_v37 = vld [vmem:[#allocation9 + $0x490] sm:$0xf0]  ;;  %v3811_v42 = vadd.f32 %v3810_v36, %v3797_v12 }
 0x311   : > { %5679 = vmatpush.bf16.msra.mxu3 %v12554_v31  ;;  %v12634_v61 = vor.u32 %v15744_v3, %v12631_v37  ;;  %v12599_v36 = vld [vmem:[#allocation9 + $0x450] sm:$0xf0] }
 0x312   : > { %5657 = vmatpush.bf16.msra.mxu1 %v12202_v29  ;;  %v3812_v29 = vpop.f32.mrf.mxu1  ;;  %v3826_v16 = vpop.f32.mrf.mxu2  ;;  %v3825_v2 = vadd.f32 %v3824_v8, %v3811_v42  ;;  %v12602_v24 = vor.u32 %v15736_v4, %v12599_v36  ;;  %v12487_v8 = vld [vmem:[#allocation9 + $0x370] sm:$0xf0]  ;;  %v15631_v42 = vld [vmem:[#allocation9 + $0xf4] sm:$0xf0] }
 0x313   : > { %v3813_v45 = vadd.f32 %v3812_v29, %v3799_v26  ;;  %v12567_v31 = vld [vmem:[#allocation9 + $0x410] sm:$0xf0]  ;;  %v12301_v26 = vld [vmem:[#allocation9 + $0x1e8] sm:$0xf]  ;;  %v15816_v29 = vld [vmem:[#allocation9 + $0x6c4] sm:$0xf] }
 0x314   : > { %5671 = vmatpush.bf16.msra.mxu2 %v12330_v27  ;;  %5644 = vmatpush.bf16.msra.mxu0 %v12058_v5  ;;  %v3852_v58 = vpop.f32.mrf.mxu0  ;;  %v15772_v27 = vld [vmem:[#allocation9 + $0x564] sm:$0xf]  ;;  %v3839_v11 = vadd.f32 %v3838_v10, %v3825_v2  ;;  %v12471_v3 = vld [vmem:[#allocation9 + $0x350] sm:$0xf0]  ;;  %v12570_v41 = vor.u32 %v15728_v25, %v12567_v31  ;;  %v12302_v0 = vor.u32 %v15663_v49, %v12301_v26  ;;  %v12157_v2 = vld [vmem:[#allocation9 + $0xc8] sm:$0xf] }
 0x315   : > { %5680 = vmatpush.bf16.msra.mxu3 %v12538_v9  ;;  %v3827_v5 = vadd.f32 %v3826_v16, %v3813_v45  ;;  %v15704_v10 = vld [vmem:[#allocation9 + $0x344] sm:$0xf]  ;;  %v12173_v9 = vld [vmem:[#allocation9 + $0xe8] sm:$0xf]  ;;  %v15627_v45 = vld [vmem:[#allocation9 + $0xd4] sm:$0xf0] }
 0x316   : > { %5658 = vmatpush.bf16.msra.mxu1 %v12186_v13  ;;  %v3840_v13 = vpop.f32.mrf.mxu3  ;;  %v3853_v28 = vadd.f32 %v3852_v58, %v3839_v11  ;;  %v12474_v39 = vor.u32 %v15704_v10, %v12471_v3  ;;  %v15700_v16 = vld [vmem:[#allocation9 + $0x324] sm:$0xf]  ;;  %v12455_v58 = vld [vmem:[#allocation9 + $0x330] sm:$0xf0]  ;;  %v12174_v19 = vor.u32 %v15631_v42, %v12173_v9  ;;  %v16488_v4 = vld [vmem:[#allocation8] sm:$0xff]  ;;  %v12158_v11 = vor.u32 %v15627_v45, %v12157_v2 }
 0x317   : > { %5645 = vmatmul.bf16.vlgmr.msra.gmra.mxu0 %v17277_v56  ;;  %v3841_v40 = vadd.f32 %v3840_v13, %v3827_v5  ;;  %v15812_v5 = vld [vmem:[#allocation9 + $0x6a4] sm:$0xf]  ;;  %v886_v36 = vperm.slane %v16488_v4, 7  ;;  %v15651_v25 = vld [vmem:[#allocation9 + $0x194] sm:$0xf0] }
 0x318   : > { %5693 = vmatpush.bf16.msrb.mxu0 %v12682_v55  ;;  %5672 = vmatpush.bf16.msra.mxu2 %v12314_v47  ;;  %v12746_v55 = vor.u32 %v15772_v27, %v12743_v18  ;;  %v15708_v47 = vld [vmem:[#allocation9 + $0x364] sm:$0xf]  ;;  %v3961_v12 = vmax.f32 %v3853_v28, 0.0  ;;  %v12285_v27 = vld [vmem:[#allocation9 + $0x1c8] sm:$0xf]  ;;  %v12254_v10 = vor.u32 %v15651_v25, %v12253_v44 }
 0x319   : > { %5659 = vmatmul.bf16.vlgmr.msra.gmra.mxu1 %v17284_v60  ;;  %5681 = vmatpush.bf16.msra.mxu3 %v12522_v1  ;;  %v12490_v34 = vor.u32 %v15708_v47, %v12487_v8  ;;  %v15659_v18 = vld [vmem:[#allocation9 + $0x1d4] sm:$0xf0]  ;;  %v15696_v13 = vld [vmem:[#allocation9 + $0x304] sm:$0xf]  ;;  %v12205_v4 = vld [vmem:[#allocation9 + $0x128] sm:$0xf] }
 0x31a   : > { %5707 = vmatpush.bf16.msrb.mxu1 %v12810_v62  ;;  %v12506_v62 = vor.u32 %v15712_v21, %v12503_v59  ;;  %v3866_v38 = vpop.f32.mrf.mxu1  ;;  %v12458_v21 = vor.u32 %v15700_v16, %v12455_v58  ;;  %v3880_v59 = vpop.f32.mrf.mxu2  ;;  %v12286_v30 = vor.u32 %v15659_v18, %v12285_v27  ;;  %v15623_v28 = vld [vmem:[#allocation9 + $0xb4] sm:$0xf0]  ;;  %v15808_v8 = vld [vmem:[#allocation9 + $0x684] sm:$0xf]  ;;  %v12093_v58 = vld [vmem:[#allocation9 + $0x48] sm:$0xf] }
 0x31b   : > { %v15655_v47 = vld [vmem:[#allocation9 + $0x1b4] sm:$0xf0]  ;;  %v3867_v63 = vadd.f32 %v3866_v38, %v886_v36  ;;  %v15800_v49 = vld [vmem:[#allocation9 + $0x644] sm:$0xf]  ;;  %v12839_v27 = vld [vmem:[#allocation9 + $0x630] sm:$0xf0] }
 0x31c   : > { %5694 = vmatpush.bf16.msrb.mxu0 %v12666_v57  ;;  %v3854_v51 = vpop.f32.mrf.mxu0  ;;  %v15732_v57 = vld [vmem:[#allocation9 + $0x424] sm:$0xf]  ;;  %v15643_v2 = vld [vmem:[#allocation9 + $0x154] sm:$0xf0] }
 0x31d   : > { %5682 = vmatpush.bf16.msra.mxu3 %v12506_v62  ;;  %v12586_v54 = vor.u32 %v15732_v57, %v12583_v33  ;;  %v3881_v3 = vadd.f32 %v3880_v59, %v3867_v63  ;;  %v15796_v45 = vld [vmem:[#allocation9 + $0x624] sm:$0xf]  ;;  %v12685_v63 = vld [vmem:[#allocation9 + $0x4e8] sm:$0xf]  ;;  %v15759_v25 = vld [vmem:[#allocation9 + $0x4f4] sm:$0xf0] }
 0x31e   : > { %5708 = vmatpush.bf16.msrb.mxu1 %v12794_v43  ;;  %v3855_v43 = vadd.f32 %v3854_v51, %v3841_v40  ;;  %v3894_v62 = vpop.f32.mrf.mxu3  ;;  %v12141_v40 = vld [vmem:[#allocation9 + $0xa8] sm:$0xf]  ;;  %v12887_v51 = vld [vmem:[#allocation9 + $0x690] sm:$0xf0]  ;;  %v12842_v59 = vor.u32 %v15796_v45, %v12839_v27 }
 0x31f   : > { %v12142_v57 = vor.u32 %v15623_v28, %v12141_v40  ;;  %v12823_v40 = vld [vmem:[#allocation9 + $0x610] sm:$0xf0]  ;;  %v12429_v28 = vld [vmem:[#allocation9 + $0x2e8] sm:$0xf] }
 0x320   : > { %5695 = vmatpush.bf16.msrb.mxu0 %v12650_v23  ;;  %v3969_v48 = vmax.f32 %v3855_v43, 0.0  ;;  %v12714_v23 = vor.u32 %v15764_v53, %v12711_v7  ;;  %v12125_v43 = vld [vmem:[#allocation9 + $0x88] sm:$0xf]  ;;  %v15619_v7 = vld [vmem:[#allocation9 + $0x94] sm:$0xf0] }
 0x321   : > { %5683 = vmatpush.bf16.msra.mxu3 %v12490_v34  ;;  %v12890_v34 = vor.u32 %v15808_v8, %v12887_v51 }
 0x322   : > { %5709 = vmatpush.bf16.msrb.mxu1 %v12778_v15  ;;  %v12695_v15 = vld [vmem:[#allocation9 + $0x510] sm:$0xf0]  ;;  %v17331_v37 = vpack.c.bf16 %v3969_v48, %v3961_v12  ;;  %v3868_v33 = vpop.f32.mrf.mxu1  ;;  %v15804_v12 = vld [vmem:[#allocation9 + $0x664] sm:$0xf]  ;;  %v3882_v31 = vpop.f32.mrf.mxu2 }
 0x323   : > { %v12871_v48 = vld [vmem:[#allocation9 + $0x670] sm:$0xf0]  ;;  %v3869_v9 = vadd.f32 %v3868_v33, %v886_v36 }
 0x324   : > { %5696 = vmatpush.bf16.msrb.mxu0 %v12634_v61  ;;  %v12919_v61 = vld [vmem:[#allocation9 + $0x6d0] sm:$0xf0]  ;;  %5617 = vmatmul.bf16.vlgmr.msrb.gmra.mxu2 %v17331_v37 }
 0x325   : > { %5721 = vmatpush.bf16.msrb.mxu2 %v12938_v14  ;;  %v12922_v1 = vor.u32 %v15816_v29, %v12919_v61  ;;  %5684 = vmatpush.bf16.msra.mxu3 %v12474_v39  ;;  %v12109_v14 = vld [vmem:[#allocation9 + $0x68] sm:$0xf]  ;;  %v15647_v39 = vld [vmem:[#allocation9 + $0x174] sm:$0xf0]  ;;  %v12855_v29 = vld [vmem:[#allocation9 + $0x650] sm:$0xf0] }
 0x326   : > { %5710 = vmatpush.bf16.msrb.mxu1 %v12762_v46  ;;  %v12698_v46 = vor.u32 %v15760_v22, %v12695_v15  ;;  %v15615_v22 = vld [vmem:[#allocation9 + $0x74] sm:$0xf0]  ;;  %v12237_v15 = vld [vmem:[#allocation9 + $0x168] sm:$0xf]  ;;  %v3896_v42 = vpop.f32.mrf.mxu3  ;;  %v12858_v16 = vor.u32 %v15800_v49, %v12855_v29 }
 0x327   : > { %v12110_v61 = vor.u32 %v15615_v22, %v12109_v14  ;;  %v12669_v49 = vld [vmem:[#allocation9 + $0x4c8] sm:$0xf]  ;;  %v15755_v29 = vld [vmem:[#allocation9 + $0x4d4] sm:$0xf0] }
 0x328   : > { %5697 = vmatpush.bf16.msrb.mxu0 %v12618_v35  ;;  %v12903_v35 = vld [vmem:[#allocation9 + $0x6b0] sm:$0xf0] }
 0x329   : > { %5722 = vmatpush.bf16.msrb.mxu2 %v12922_v1  ;;  %v12906_v20 = vor.u32 %v15812_v5, %v12903_v35  ;;  %5685 = vmatpush.bf16.msra.mxu3 %v12458_v21  ;;  %v3883_v1 = vadd.f32 %v3882_v31, %v3869_v9  ;;  %v12413_v31 = vld [vmem:[#allocation9 + $0x2c8] sm:$0xf] }
 0x32a   : > { %5711 = vmatpush.bf16.msrb.mxu1 %v12746_v55  ;;  %v12439_v55 = vld [vmem:[#allocation9 + $0x310] sm:$0xf0] }
 0x32b   : > { %v3897_v36 = vadd.f32 %v3896_v42, %v3883_v1  ;;  %v12670_v1 = vor.u32 %v15755_v29, %v12669_v49  ;;  %v15836_v49 = vld [vmem:[#allocation9 + $0x764] sm:$0xf]  ;;  %v12999_v29 = vld [vmem:[#allocation9 + $0x770] sm:$0xf0] }
 0x32c   : > { %5698 = vmatpush.bf16.msrb.mxu0 %v12602_v24  ;;  %v12269_v24 = vld [vmem:[#allocation9 + $0x1a8] sm:$0xf] }
 0x32d   : > { %5723 = vmatpush.bf16.msrb.mxu2 %v12906_v20  ;;  %v12270_v53 = vor.u32 %v15655_v47, %v12269_v24  ;;  %v15639_v20 = vld [vmem:[#allocation9 + $0x134] sm:$0xf0] }
 0x32e   : > { %5712 = vmatpush.bf16.msrb.mxu1 %v12730_v6  ;;  %v12442_v6 = vor.u32 %v15696_v13, %v12439_v55  ;;  %v12077_v13 = vld [vmem:[#allocation9 + $0x28] sm:$0xf]  ;;  %v15607_v55 = vld [vmem:[#allocation9 + $0x34] sm:$0xf0] }
 0x32f   : > { %v15695_v24 = vld [vmem:[#allocation9 + $0x2f4] sm:$0xf0]  ;;  %v12078_v51 = vor.u32 %v15607_v55, %v12077_v13  ;;  %v15848_v55 = vld [vmem:[#allocation9 + $0x7c4] sm:$0xf] }
 0x330   : > { %5699 = vmatpush.bf16.msrb.mxu0 %v12586_v54  ;;  %5686 = vmatpush.bf16.msra.mxu3 %v12442_v6  ;;  %v12126_v54 = vor.u32 %v15619_v7, %v12125_v43  ;;  %v12061_v6 = vld [vmem:[#allocation9 + $0x8] sm:$0xf]  ;;  %v15635_v43 = vld [vmem:[#allocation9 + $0x114] sm:$0xf0]  ;;  %v12430_v44 = vor.u32 %v15695_v24, %v12429_v28 }
 0x331   : > { %5724 = vmatpush.bf16.msrb.mxu2 %v12890_v34  ;;  %v12189_v34 = vld [vmem:[#allocation9 + $0x108] sm:$0xf]  ;;  %v15783_v13 = vld [vmem:[#allocation9 + $0x5b4] sm:$0xf0] }
 0x332   : > { %5713 = vmatpush.bf16.msrb.mxu1 %v12714_v23  ;;  %v12874_v23 = vor.u32 %v15804_v12, %v12871_v48  ;;  %v12813_v12 = vld [vmem:[#allocation9 + $0x5e8] sm:$0xf]  ;;  %v15747_v28 = vld [vmem:[#allocation9 + $0x494] sm:$0xf0] }
 0x334   : > { %5700 = vmatpush.bf16.msrb.mxu0 %v12570_v41  ;;  %v3908_v26 = vpop.f32.mrf.mxu0  ;;  %5673 = vmatmul.bf16.vlgmr.msra.gmra.mxu2 %v17286_v52  ;;  %v12238_v41 = vor.u32 %v15647_v39, %v12237_v15  ;;  %v12190_v15 = vor.u32 %v15635_v43, %v12189_v34 }
 0x335   : > { %5725 = vmatpush.bf16.msrb.mxu2 %v12874_v23 }
 0x336   : > { %5714 = vmatpush.bf16.msrb.mxu1 %v12698_v46  ;;  %v3922_v38 = vpop.f32.mrf.mxu1  ;;  %v15611_v46 = vld [vmem:[#allocation9 + $0x54] sm:$0xf0] }
 0x337   : > { %5701 = vmatmul.bf16.vlgmr.msrb.gmra.mxu0 %v17316_v32  ;;  %v12094_v5 = vor.u32 %v15611_v46, %v12093_v58  ;;  %v13063_v46 = vld [vmem:[#allocation9 + $0x7f0] sm:$0xf0] }
 0x338   : > { %5749 = vmatpush.bf16.msra.mxu0 %v12174_v19  ;;  %v12221_v19 = vld [vmem:[#allocation9 + $0x148] sm:$0xf] }
 0x339   : > { %5715 = vmatmul.bf16.vlgmr.msrb.gmra.mxu1 %v17318_v17  ;;  %5726 = vmatpush.bf16.msrb.mxu2 %v12858_v16  ;;  %v12222_v21 = vor.u32 %v15643_v2, %v12221_v19  ;;  %v15852_v16 = vld [vmem:[#allocation9 + $0x7e4] sm:$0xf]  ;;  %v12397_v19 = vld [vmem:[#allocation9 + $0x2a8] sm:$0xf] }
 0x33a   : > { %5763 = vmatpush.bf16.msra.mxu1 %v12302_v0  ;;  %v3895_v0 = vadd.f32 %v3894_v62, %v3881_v3  ;;  %v15792_v62 = vld [vmem:[#allocation9 + $0x604] sm:$0xf]  ;;  %v12686_v3 = vor.u32 %v15759_v25, %v12685_v63 }
 0x33b   : > { %v12826_v33 = vor.u32 %v15792_v62, %v12823_v40  ;;  %v12637_v40 = vld [vmem:[#allocation9 + $0x488] sm:$0xf] }
 0x33c   : > { %5750 = vmatpush.bf16.msra.mxu0 %v12158_v11  ;;  %v3909_v18 = vadd.f32 %v3908_v26, %v3895_v0  ;;  %v15687_v0 = vld [vmem:[#allocation9 + $0x2b4] sm:$0xf0]  ;;  %v12638_v34 = vor.u32 %v15747_v28, %v12637_v40  ;;  %v15828_v40 = vld [vmem:[#allocation9 + $0x724] sm:$0xf]  ;;  %v12967_v28 = vld [vmem:[#allocation9 + $0x730] sm:$0xf0] }
 0x33d   : > { %5727 = vmatpush.bf16.msrb.mxu2 %v12842_v59  ;;  %v12781_v59 = vld [vmem:[#allocation9 + $0x5a8] sm:$0xf] }
 0x33e   : > { %5764 = vmatpush.bf16.msra.mxu1 %v12286_v30  ;;  %v3936_v35 = vpop.f32.mrf.mxu2  ;;  %v3910_v30 = vpop.f32.mrf.mxu0  ;;  %v3923_v47 = vadd.f32 %v3922_v38, %v3909_v18  ;;  %v12797_v38 = vld [vmem:[#allocation9 + $0x5c8] sm:$0xf]  ;;  %v12782_v62 = vor.u32 %v15783_v13, %v12781_v59  ;;  %v15823_v59 = vld [vmem:[#allocation9 + $0x6f4] sm:$0xf0] }
 0x33f   : > { %v3911_v8 = vadd.f32 %v3910_v30, %v3897_v36  ;;  %v3924_v48 = vpop.f32.mrf.mxu1  ;;  %v12653_v18 = vld [vmem:[#allocation9 + $0x4a8] sm:$0xf]  ;;  %v13047_v36 = vld [vmem:[#allocation9 + $0x7d0] sm:$0xf0]  ;;  %v15683_v30 = vld [vmem:[#allocation9 + $0x294] sm:$0xf0] }
 0x340   : > { %5751 = vmatpush.bf16.msra.mxu0 %v12142_v57  ;;  %v3950_v11 = vpop.f32.mrf.mxu3  ;;  %v12206_v57 = vor.u32 %v15639_v20, %v12205_v4  ;;  %v3937_v7 = vadd.f32 %v3936_v35, %v3923_v47  ;;  %v13066_v35 = vor.u32 %v15852_v16, %v13063_v46  ;;  %v13050_v24 = vor.u32 %v15848_v55, %v13047_v36  ;;  %v15735_v46 = vld [vmem:[#allocation9 + $0x434] sm:$0xf0]  ;;  %v12573_v55 = vld [vmem:[#allocation9 + $0x408] sm:$0xf] }
 0x341   : > { %v3925_v23 = vadd.f32 %v3924_v48, %v3911_v8  ;;  %5728 = vmatpush.bf16.msrb.mxu2 %v12826_v33  ;;  %v12765_v8 = vld [vmem:[#allocation9 + $0x588] sm:$0xf]  ;;  %v15775_v48 = vld [vmem:[#allocation9 + $0x574] sm:$0xf0] }
 0x342   : > { %5765 = vmatpush.bf16.msra.mxu1 %v12270_v53  ;;  %v15603_v53 = vld [vmem:[#allocation9 + $0x14] sm:$0xf0]  ;;  %v3951_v9 = vadd.f32 %v3950_v11, %v3937_v7  ;;  %v12381_v11 = vld [vmem:[#allocation9 + $0x288] sm:$0xf] }
 0x343   : > { %v12062_v14 = vor.u32 %v15603_v53, %v12061_v6  ;;  %v12382_v47 = vor.u32 %v15683_v30, %v12381_v11  ;;  %v15844_v6 = vld [vmem:[#allocation9 + $0x7a4] sm:$0xf]  ;;  %v12365_v33 = vld [vmem:[#allocation9 + $0x268] sm:$0xf]  ;;  %v15679_v53 = vld [vmem:[#allocation9 + $0x274] sm:$0xf0] }
 0x344   : > { %5752 = vmatpush.bf16.msra.mxu0 %v12126_v54  ;;  %v15791_v54 = vld [vmem:[#allocation9 + $0x5f4] sm:$0xf0]  ;;  %5729 = vmatmul.bf16.vlgmr.msrb.gmra.mxu2 %v17331_v37  ;;  %v3962_v2 = vmax.f32 %v3951_v9, 0.0  ;;  %v12621_v7 = vld [vmem:[#allocation9 + $0x468] sm:$0xf]  ;;  %v12366_v25 = vor.u32 %v15679_v53, %v12365_v33 }
 0x345   : > { %5777 = vmatpush.bf16.msra.mxu2 %v12430_v44  ;;  %v12814_v26 = vor.u32 %v15791_v54, %v12813_v12  ;;  %v15743_v44 = vld [vmem:[#allocation9 + $0x474] sm:$0xf0]  ;;  %v12749_v12 = vld [vmem:[#allocation9 + $0x568] sm:$0xf]  ;;  %v15840_v54 = vld [vmem:[#allocation9 + $0x784] sm:$0xf] }
 0x346   : > { %5766 = vmatpush.bf16.msra.mxu1 %v12254_v10  ;;  %v15691_v10 = vld [vmem:[#allocation9 + $0x2d4] sm:$0xf0]  ;;  %v3938_v22 = vpop.f32.mrf.mxu2  ;;  %v12701_v11 = vld [vmem:[#allocation9 + $0x508] sm:$0xf] }
 0x347   : > { %v3939_v42 = vadd.f32 %v3938_v22, %v3925_v23  ;;  %v12414_v39 = vor.u32 %v15691_v10, %v12413_v31  ;;  %v13015_v31 = vld [vmem:[#allocation9 + $0x790] sm:$0xf0]  ;;  %v12349_v10 = vld [vmem:[#allocation9 + $0x248] sm:$0xf]  ;;  %v15675_v23 = vld [vmem:[#allocation9 + $0x254] sm:$0xf0]  ;;  %v12750_v22 = vor.u32 %v15775_v48, %v12749_v12 }
 0x348   : > { %5753 = vmatpush.bf16.msra.mxu0 %v12110_v61  ;;  %v3952_v61 = vpop.f32.mrf.mxu3  ;;  %v13018_v9 = vor.u32 %v15840_v54, %v13015_v31  ;;  %v15731_v36 = vld [vmem:[#allocation9 + $0x414] sm:$0xf0]  ;;  %v12925_v33 = vld [vmem:[#allocation9 + $0x6c8] sm:$0xf]  ;;  %v15625_v48 = vld [vmem:[#allocation9 + $0xcc] sm:$0xf] }
 0x349   : > { %v3953_v58 = vadd.f32 %v3952_v61, %v3939_v42  ;;  %5778 = vmatpush.bf16.msra.mxu2 %v12414_v39  ;;  %v12350_v42 = vor.u32 %v15675_v23, %v12349_v10  ;;  %v15771_v39 = vld [vmem:[#allocation9 + $0x554] sm:$0xf0]  ;;  %v12333_v61 = vld [vmem:[#allocation9 + $0x228] sm:$0xf]  ;;  %v12159_v54 = vld [vmem:[#allocation9 + $0xd8] sm:$0xf0] }
 0x34a   : > { %5767 = vmatpush.bf16.msra.mxu1 %v12238_v41  ;;  %v15787_v41 = vld [vmem:[#allocation9 + $0x5d4] sm:$0xf0]  ;;  %v15657_v31 = vld [vmem:[#allocation9 + $0x1cc] sm:$0xf]  ;;  %v12287_v10 = vld [vmem:[#allocation9 + $0x1d8] sm:$0xf0] }
 0x34b   : > { %v3970_v45 = vmax.f32 %v3953_v58, 0.0  ;;  %v12798_v27 = vor.u32 %v15787_v41, %v12797_v38  ;;  %v15671_v38 = vld [vmem:[#allocation9 + $0x234] sm:$0xf0]  ;;  %v12589_v58 = vld [vmem:[#allocation9 + $0x428] sm:$0xf] }
 0x34c   : > { %5754 = vmatpush.bf16.msra.mxu0 %v12094_v5  ;;  %v15751_v5 = vld [vmem:[#allocation9 + $0x4b4] sm:$0xf0]  ;;  %v12557_v23 = vld [vmem:[#allocation9 + $0x3e8] sm:$0xf] }
 0x34d   : > { %v17339_v4 = vpack.c.bf16 %v3970_v45, %v3962_v2  ;;  %v12654_v20 = vor.u32 %v15751_v5, %v12653_v18  ;;  %v15767_v2 = vld [vmem:[#allocation9 + $0x534] sm:$0xf0]  ;;  %v15832_v45 = vld [vmem:[#allocation9 + $0x744] sm:$0xf]  ;;  %v12317_v18 = vld [vmem:[#allocation9 + $0x208] sm:$0xf] }
 0x34e   : > { %5768 = vmatpush.bf16.msra.mxu1 %v12222_v21  ;;  %v12398_v21 = vor.u32 %v15687_v0, %v12397_v19  ;;  %v13002_v19 = vor.u32 %v15836_v49, %v12999_v29  ;;  %v12334_v0 = vor.u32 %v15671_v38, %v12333_v61  ;;  %v15667_v5 = vld [vmem:[#allocation9 + $0x214] sm:$0xf0]  ;;  %v12143_v49 = vld [vmem:[#allocation9 + $0xb8] sm:$0xf0]  ;;  %v15653_v29 = vld [vmem:[#allocation9 + $0x1ac] sm:$0xf] }
 0x34f   : > { %5631 = vmatmul.bf16.vlgmr.msrb.gmra.mxu3 %v17339_v4  ;;  %v15819_v53 = vld [vmem:[#allocation9 + $0x6d4] sm:$0xf0]  ;;  %v12271_v38 = vld [vmem:[#allocation9 + $0x1b8] sm:$0xf0] }
 0x350   : > { %5755 = vmatpush.bf16.msra.mxu0 %v12078_v51  ;;  %5735 = vmatpush.bf16.msrb.mxu3 %v13066_v35  ;;  %v15779_v51 = vld [vmem:[#allocation9 + $0x594] sm:$0xf0]  ;;  %v12590_v35 = vor.u32 %v15735_v46, %v12589_v58  ;;  %v12926_v12 = vor.u32 %v15819_v53, %v12925_v33  ;;  %v12893_v58 = vld [vmem:[#allocation9 + $0x688] sm:$0xf]  ;;  %v15609_v53 = vld [vmem:[#allocation9 + $0x4c] sm:$0xf] }
 0x351   : > { %5779 = vmatpush.bf16.msra.mxu2 %v12398_v21  ;;  %v12766_v43 = vor.u32 %v15779_v51, %v12765_v8  ;;  %v12941_v21 = vld [vmem:[#allocation9 + $0x6e8] sm:$0xf]  ;;  %v12175_v8 = vld [vmem:[#allocation9 + $0xf8] sm:$0xf0]  ;;  %v15661_v51 = vld [vmem:[#allocation9 + $0x1ec] sm:$0xf] }
 0x352   : > { %5769 = vmatpush.bf16.msra.mxu1 %v12206_v57  ;;  %v13031_v57 = vld [vmem:[#allocation9 + $0x7b0] sm:$0xf0]  ;;  %v15811_v46 = vld [vmem:[#allocation9 + $0x694] sm:$0xf0] }
 0x353   : > { %v13034_v63 = vor.u32 %v15844_v6, %v13031_v57  ;;  %v12574_v6 = vor.u32 %v15731_v36, %v12573_v55  ;;  %v12303_v57 = vld [vmem:[#allocation9 + $0x1f8] sm:$0xf0] }
 0x354   : > { %5756 = vmatpush.bf16.msra.mxu0 %v12062_v14  ;;  %5736 = vmatpush.bf16.msrb.mxu3 %v13050_v24  ;;  %v12622_v14 = vor.u32 %v15743_v44, %v12621_v7  ;;  %v12942_v24 = vor.u32 %v15823_v59, %v12941_v21  ;;  %v15824_v44 = vld [vmem:[#allocation9 + $0x704] sm:$0xf]  ;;  %v15719_v21 = vld [vmem:[#allocation9 + $0x3b4] sm:$0xf0]  ;;  %v12877_v59 = vld [vmem:[#allocation9 + $0x668] sm:$0xf] }
 0x355   : > { %5780 = vmatpush.bf16.msra.mxu2 %v12382_v47  ;;  %v15629_v47 = vld [vmem:[#allocation9 + $0xec] sm:$0xf] }
 0x356   : > { %5770 = vmatpush.bf16.msra.mxu1 %v12190_v15  ;;  %v12605_v15 = vld [vmem:[#allocation9 + $0x448] sm:$0xf]  ;;  %v12178_v7 = vor.u32 %v15629_v47, %v12175_v8  ;;  %v15715_v47 = vld [vmem:[#allocation9 + $0x394] sm:$0xf0] }
 0x357   : > { %5757 = vmatmul.bf16.vlgmr.msra.gmra.mxu0 %v17277_v56  ;;  %v12861_v8 = vld [vmem:[#allocation9 + $0x648] sm:$0xf] }
 0x358   : > { %5805 = vmatpush.bf16.msrb.mxu0 %v12686_v3  ;;  %v15739_v3 = vld [vmem:[#allocation9 + $0x454] sm:$0xf0]  ;;  %5737 = vmatpush.bf16.msrb.mxu3 %v13034_v63  ;;  %v12951_v63 = vld [vmem:[#allocation9 + $0x710] sm:$0xf0] }
 0x359   : > { %5771 = vmatmul.bf16.vlgmr.msra.gmra.mxu1 %v17284_v60  ;;  %5781 = vmatpush.bf16.msra.mxu2 %v12366_v25  ;;  %v12606_v41 = vor.u32 %v15739_v3, %v12605_v15  ;;  %v12306_v25 = vor.u32 %v15661_v51, %v12303_v57  ;;  %v15815_v15 = vld [vmem:[#allocation9 + $0x6b4] sm:$0xf0]  ;;  %v12954_v3 = vor.u32 %v15824_v44, %v12951_v63  ;;  %v12223_v44 = vld [vmem:[#allocation9 + $0x158] sm:$0xf0]  ;;  %v12493_v63 = vld [vmem:[#allocation9 + $0x368] sm:$0xf] }
 0x35a   : > { %5819 = vmatpush.bf16.msrb.mxu1 %v12814_v26  ;;  %v12733_v26 = vld [vmem:[#allocation9 + $0x548] sm:$0xf]  ;;  %v15803_v51 = vld [vmem:[#allocation9 + $0x654] sm:$0xf0] }
 0x35b   : > { %v12734_v16 = vor.u32 %v15771_v39, %v12733_v26  ;;  %v15621_v39 = vld [vmem:[#allocation9 + $0xac] sm:$0xf] }
 0x35c   : > { %5806 = vmatpush.bf16.msrb.mxu0 %v12670_v1  ;;  %5738 = vmatpush.bf16.msrb.mxu3 %v13018_v9  ;;  %v12717_v1 = vld [vmem:[#allocation9 + $0x528] sm:$0xf]  ;;  %v12162_v9 = vor.u32 %v15625_v48, %v12159_v54  ;;  %v15799_v48 = vld [vmem:[#allocation9 + $0x634] sm:$0xf0] }
 0x35d   : > { %5782 = vmatpush.bf16.msra.mxu2 %v12350_v42  ;;  %v12718_v13 = vor.u32 %v15767_v2, %v12717_v1  ;;  %v12290_v42 = vor.u32 %v15657_v31, %v12287_v10  ;;  %v15617_v2 = vld [vmem:[#allocation9 + $0x8c] sm:$0xf] }
 0x35e   : > { %5820 = vmatpush.bf16.msrb.mxu1 %v12798_v27  ;;  %v12983_v27 = vld [vmem:[#allocation9 + $0x750] sm:$0xf0] }
 0x35f   : > { %5687 = vmatmul.bf16.vlgmr.msra.gmra.mxu3 %v17288_v50  ;;  %v12986_v30 = vor.u32 %v15832_v45, %v12983_v27  ;;  %v12127_v45 = vld [vmem:[#allocation9 + $0x98] sm:$0xf0]  ;;  %v15649_v27 = vld [vmem:[#allocation9 + $0x18c] sm:$0xf] }
 0x360   : > { %5807 = vmatpush.bf16.msrb.mxu0 %v12654_v20  ;;  %5739 = vmatpush.bf16.msrb.mxu3 %v13002_v19  ;;  %v12318_v20 = vor.u32 %v15667_v5, %v12317_v18  ;;  %v12146_v19 = vor.u32 %v15621_v39, %v12143_v49  ;;  %v12894_v18 = vor.u32 %v15811_v46, %v12893_v58  ;;  %v12255_v5 = vld [vmem:[#allocation9 + $0x198] sm:$0xf0]  ;;  %v15795_v39 = vld [vmem:[#allocation9 + $0x614] sm:$0xf0]  ;;  %v15633_v46 = vld [vmem:[#allocation9 + $0x10c] sm:$0xf] }
 0x361   : > { %5783 = vmatpush.bf16.msra.mxu2 %v12334_v0  ;;  %v12274_v0 = vor.u32 %v15653_v29, %v12271_v38  ;;  %v12130_v55 = vor.u32 %v15617_v2, %v12127_v45  ;;  %v12258_v36 = vor.u32 %v15649_v27, %v12255_v5  ;;  %v15693_v29 = vld [vmem:[#allocation9 + $0x2ec] sm:$0xf]  ;;  %v12063_v58 = vld [vmem:[#allocation9 + $0x18] sm:$0xf0]  ;;  %v15703_v2 = vld [vmem:[#allocation9 + $0x334] sm:$0xf0] }
 0x362   : > { %5821 = vmatpush.bf16.msrb.mxu1 %v12782_v62  ;;  %v15763_v62 = vld [vmem:[#allocation9 + $0x514] sm:$0xf0]  ;;  %v15757_v27 = vld [vmem:[#allocation9 + $0x4ec] sm:$0xf] }
 0x363   : > { %v15789_v5 = vld [vmem:[#allocation9 + $0x5ec] sm:$0xf] }
 0x364   : > { %5808 = vmatpush.bf16.msrb.mxu0 %v12638_v34  ;;  %v12702_v34 = vor.u32 %v15763_v62, %v12701_v11  ;;  %5740 = vmatpush.bf16.msrb.mxu3 %v12986_v30  ;;  %v15613_v30 = vld [vmem:[#allocation9 + $0x6c] sm:$0xf] }
 0x365   : > { %5784 = vmatpush.bf16.msra.mxu2 %v12318_v20  ;;  %v12111_v20 = vld [vmem:[#allocation9 + $0x78] sm:$0xf0]  ;;  %v15645_v62 = vld [vmem:[#allocation9 + $0x16c] sm:$0xf] }
 0x366   : > { %5822 = vmatpush.bf16.msrb.mxu1 %v12766_v43  ;;  %v12970_v43 = vor.u32 %v15828_v40, %v12967_v28  ;;  %v12239_v28 = vld [vmem:[#allocation9 + $0x178] sm:$0xf0] }
 0x367   : > { %v12242_v57 = vor.u32 %v15645_v62, %v12239_v28  ;;  %v15753_v28 = vld [vmem:[#allocation9 + $0x4cc] sm:$0xf] }
 0x368   : > { %5809 = vmatpush.bf16.msrb.mxu0 %v12622_v14  ;;  %v15727_v14 = vld [vmem:[#allocation9 + $0x3f4] sm:$0xf0]  ;;  %5785 = vmatmul.bf16.vlgmr.msra.gmra.mxu2 %v17286_v52 }
 0x369   : > { %5833 = vmatpush.bf16.msrb.mxu2 %v12942_v24  ;;  %5741 = vmatpush.bf16.msrb.mxu3 %v12970_v43  ;;  %v12558_v26 = vor.u32 %v15727_v14, %v12557_v23  ;;  %v12509_v24 = vld [vmem:[#allocation9 + $0x388] sm:$0xf]  ;;  %v15641_v43 = vld [vmem:[#allocation9 + $0x14c] sm:$0xf]  ;;  %v12079_v14 = vld [vmem:[#allocation9 + $0x38] sm:$0xf0] }
 0x36a   : > { %5823 = vmatpush.bf16.msrb.mxu1 %v12750_v22  ;;  %v12909_v22 = vld [vmem:[#allocation9 + $0x6a8] sm:$0xf]  ;;  %v12510_v33 = vor.u32 %v15715_v47, %v12509_v24  ;;  %v12226_v31 = vor.u32 %v15641_v43, %v12223_v44  ;;  %v15605_v23 = vld [vmem:[#allocation9 + $0x2c] sm:$0xf]  ;;  %v12671_v24 = vld [vmem:[#allocation9 + $0x4d8] sm:$0xf0] }
 0x36b   : > { %v12910_v61 = vor.u32 %v15815_v15, %v12909_v22  ;;  %v15637_v22 = vld [vmem:[#allocation9 + $0x12c] sm:$0xf]  ;;  %v12082_v49 = vor.u32 %v15605_v23, %v12079_v14  ;;  %v12383_v23 = vld [vmem:[#allocation9 + $0x298] sm:$0xf0] }
 0x36c   : > { %5810 = vmatpush.bf16.msrb.mxu0 %v12606_v41  ;;  %v12541_v41 = vld [vmem:[#allocation9 + $0x3c8] sm:$0xf]  ;;  %v15785_v47 = vld [vmem:[#allocation9 + $0x5cc] sm:$0xf] }
 0x36d   : > { %5834 = vmatpush.bf16.msrb.mxu2 %v12926_v12  ;;  %5742 = vmatpush.bf16.msrb.mxu3 %v12954_v3  ;;  %v12845_v12 = vld [vmem:[#allocation9 + $0x628] sm:$0xf]  ;;  %v12207_v3 = vld [vmem:[#allocation9 + $0x138] sm:$0xf0]  ;;  %v15749_v44 = vld [vmem:[#allocation9 + $0x4ac] sm:$0xf] }
 0x36e   : > { %5824 = vmatpush.bf16.msrb.mxu1 %v12734_v16  ;;  %v15723_v16 = vld [vmem:[#allocation9 + $0x3d4] sm:$0xf0]  ;;  %v12846_v15 = vor.u32 %v15799_v48, %v12845_v12  ;;  %v12210_v38 = vor.u32 %v15637_v22, %v12207_v3  ;;  %v12783_v48 = vld [vmem:[#allocation9 + $0x5b8] sm:$0xf0]  ;;  %v15745_v3 = vld [vmem:[#allocation9 + $0x48c] sm:$0xf] }
 0x36f   : > { %v12542_v1 = vor.u32 %v15723_v16, %v12541_v41  ;;  %v15601_v16 = vld [vmem:[#allocation9 + $0xc] sm:$0xf] }
 0x370   : > { %5811 = vmatpush.bf16.msrb.mxu0 %v12590_v35  ;;  %v12525_v35 = vld [vmem:[#allocation9 + $0x3a8] sm:$0xf]  ;;  %5743 = vmatmul.bf16.vlgmr.msrb.gmra.mxu3 %v17339_v4 }
 0x371   : > { %5791 = vmatpush.bf16.msra.mxu3 %v12558_v26  ;;  %5835 = vmatpush.bf16.msrb.mxu2 %v12910_v61  ;;  %v12526_v11 = vor.u32 %v15719_v21, %v12525_v35  ;;  %v12829_v26 = vld [vmem:[#allocation9 + $0x608] sm:$0xf]  ;;  %v12431_v61 = vld [vmem:[#allocation9 + $0x2f8] sm:$0xf0]  ;;  %v12066_v35 = vor.u32 %v15601_v16, %v12063_v58  ;;  %v15741_v16 = vld [vmem:[#allocation9 + $0x46c] sm:$0xf] }
 0x372   : > { %5825 = vmatpush.bf16.msrb.mxu1 %v12718_v13  ;;  %v15807_v13 = vld [vmem:[#allocation9 + $0x674] sm:$0xf0]  ;;  %v12434_v45 = vor.u32 %v15693_v29, %v12431_v61  ;;  %v12815_v21 = vld [vmem:[#allocation9 + $0x5f8] sm:$0xf0] }
 0x373   : > { %v12878_v40 = vor.u32 %v15807_v13, %v12877_v59  ;;  %v15689_v59 = vld [vmem:[#allocation9 + $0x2cc] sm:$0xf]  ;;  %v12415_v13 = vld [vmem:[#allocation9 + $0x2d8] sm:$0xf0]  ;;  %v12818_v62 = vor.u32 %v15789_v5, %v12815_v21 }
 0x374   : > { %5812 = vmatpush.bf16.msrb.mxu0 %v12574_v6  ;;  %v12114_v6 = vor.u32 %v15613_v30, %v12111_v20  ;;  %v12445_v30 = vld [vmem:[#allocation9 + $0x308] sm:$0xf]  ;;  %v15699_v20 = vld [vmem:[#allocation9 + $0x314] sm:$0xf0]  ;;  %v12367_v29 = vld [vmem:[#allocation9 + $0x278] sm:$0xf0] }
 0x375   : > { %5792 = vmatpush.bf16.msra.mxu3 %v12542_v1  ;;  %5836 = vmatpush.bf16.msrb.mxu2 %v12894_v18  ;;  %v12461_v1 = vld [vmem:[#allocation9 + $0x328] sm:$0xf]  ;;  %v12687_v18 = vld [vmem:[#allocation9 + $0x4f8] sm:$0xf0]  ;;  %v15737_v21 = vld [vmem:[#allocation9 + $0x44c] sm:$0xf] }
 0x376   : > { %5826 = vmatpush.bf16.msrb.mxu1 %v12702_v34  ;;  %v12095_v34 = vld [vmem:[#allocation9 + $0x58] sm:$0xf0] }
 0x377   : > { %5813 = vmatmul.bf16.vlgmr.msrb.gmra.mxu0 %v17316_v32  ;;  %v12098_v54 = vor.u32 %v15609_v53, %v12095_v34  ;;  %v12446_v53 = vor.u32 %v15699_v20, %v12445_v30  ;;  %v12674_v34 = vor.u32 %v15753_v28, %v12671_v24  ;;  %v12623_v58 = vld [vmem:[#allocation9 + $0x478] sm:$0xf0]  ;;  %v15839_v30 = vld [vmem:[#allocation9 + $0x774] sm:$0xf0]  ;;  %v15669_v20 = vld [vmem:[#allocation9 + $0x22c] sm:$0xf] }
 0x378   : > { %5861 = vmatpush.bf16.msra.mxu0 %v12178_v7  ;;  %v12862_v7 = vor.u32 %v15803_v51, %v12861_v8  ;;  %v12799_v8 = vld [vmem:[#allocation9 + $0x5d8] sm:$0xf0]  ;;  %v13069_v51 = vld [vmem:[#allocation9 + $0x7e8] sm:$0xf] }
 0x379   : > { %5827 = vmatmul.bf16.vlgmr.msrb.gmra.mxu1 %v17318_v17  ;;  %5793 = vmatpush.bf16.msra.mxu3 %v12526_v11  ;;  %v12690_v11 = vor.u32 %v15757_v27, %v12687_v18  ;;  %v12802_v43 = vor.u32 %v15785_v47, %v12799_v8  ;;  %v12351_v27 = vld [vmem:[#allocation9 + $0x258] sm:$0xf0]  ;;  %v12626_v18 = vor.u32 %v15741_v16, %v12623_v58  ;;  %v15733_v47 = vld [vmem:[#allocation9 + $0x42c] sm:$0xf] }
 0x37a   : > { %5875 = vmatpush.bf16.msra.mxu1 %v12306_v25  ;;  %5837 = vmatpush.bf16.msrb.mxu2 %v12878_v40  ;;  %v15711_v25 = vld [vmem:[#allocation9 + $0x374] sm:$0xf0]  ;;  %v12418_v40 = vor.u32 %v15689_v59, %v12415_v13  ;;  %v12607_v59 = vld [vmem:[#allocation9 + $0x458] sm:$0xf0]  ;;  %v15769_v13 = vld [vmem:[#allocation9 + $0x54c] sm:$0xf] }
 0x37b   : > { %v12494_v10 = vor.u32 %v15711_v25, %v12493_v63  ;;  %v12655_v63 = vld [vmem:[#allocation9 + $0x4b8] sm:$0xf0]  ;;  %v15781_v25 = vld [vmem:[#allocation9 + $0x5ac] sm:$0xf] }
 0x37c   : > { %5862 = vmatpush.bf16.msra.mxu0 %v12162_v9  ;;  %v12477_v9 = vld [vmem:[#allocation9 + $0x348] sm:$0xf]  ;;  %v12658_v14 = vor.u32 %v15749_v44, %v12655_v63  ;;  %v12786_v22 = vor.u32 %v15781_v25, %v12783_v48  ;;  %v12591_v8 = vld [vmem:[#allocation9 + $0x438] sm:$0xf0]  ;;  %v15821_v44 = vld [vmem:[#allocation9 + $0x6ec] sm:$0xf] }
 0x37d   : > { %5794 = vmatpush.bf16.msra.mxu3 %v12510_v33  ;;  %v12399_v33 = vld [vmem:[#allocation9 + $0x2b8] sm:$0xf0]  ;;  %v15729_v48 = vld [vmem:[#allocation9 + $0x40c] sm:$0xf] }
 0x37e   : > { %5876 = vmatpush.bf16.msra.mxu1 %v12290_v42  ;;  %5838 = vmatpush.bf16.msrb.mxu2 %v12862_v7  ;;  %v15707_v42 = vld [vmem:[#allocation9 + $0x354] sm:$0xf0]  ;;  %v12943_v63 = vld [vmem:[#allocation9 + $0x6f8] sm:$0xf0] }
 0x37f   : > { %v12478_v41 = vor.u32 %v15707_v42, %v12477_v9  ;;  %v12639_v9 = vld [vmem:[#allocation9 + $0x498] sm:$0xf0]  ;;  %v15777_v42 = vld [vmem:[#allocation9 + $0x58c] sm:$0xf] }
 0x380   : > { %5863 = vmatpush.bf16.msra.mxu0 %v12146_v19  ;;  %v12830_v19 = vor.u32 %v15795_v39, %v12829_v26  ;;  %v12767_v26 = vld [vmem:[#allocation9 + $0x598] sm:$0xf0]  ;;  %v15847_v39 = vld [vmem:[#allocation9 + $0x7b4] sm:$0xf0]  ;;  %v12642_v61 = vor.u32 %v15745_v3, %v12639_v9  ;;  %v15817_v9 = vld [vmem:[#allocation9 + $0x6cc] sm:$0xf] }
 0x381   : > { %5795 = vmatpush.bf16.msra.mxu3 %v12494_v10  ;;  %v15681_v10 = vld [vmem:[#allocation9 + $0x28c] sm:$0xf] }
 0x382   : > { %5877 = vmatpush.bf16.msra.mxu1 %v12274_v0  ;;  %5839 = vmatpush.bf16.msrb.mxu2 %v12846_v15  ;;  %v12191_v0 = vld [vmem:[#allocation9 + $0x118] sm:$0xf0] }
 0x384   : > { %5864 = vmatpush.bf16.msra.mxu0 %v12130_v55  ;;  %v12194_v55 = vor.u32 %v15633_v46, %v12191_v0  ;;  %v15773_v46 = vld [vmem:[#allocation9 + $0x56c] sm:$0xf]  ;;  %v12751_v0 = vld [vmem:[#allocation9 + $0x578] sm:$0xf0] }
 0x385   : > { %5796 = vmatpush.bf16.msra.mxu3 %v12478_v41  ;;  %v12754_v5 = vor.u32 %v15773_v46, %v12751_v0  ;;  %v12543_v0 = vld [vmem:[#allocation9 + $0x3d8] sm:$0xf0] }
 0x386   : > { %5878 = vmatpush.bf16.msra.mxu1 %v12258_v36  ;;  %5840 = vmatpush.bf16.msrb.mxu2 %v12830_v19  ;;  %v12462_v36 = vor.u32 %v15703_v2, %v12461_v1  ;;  %v13021_v1 = vld [vmem:[#allocation9 + $0x788] sm:$0xf]  ;;  %v15843_v2 = vld [vmem:[#allocation9 + $0x794] sm:$0xf0] }
 0x388   : > { %5865 = vmatpush.bf16.msra.mxu0 %v12114_v6  ;;  %v15855_v6 = vld [vmem:[#allocation9 + $0x7f4] sm:$0xf0] }
 0x389   : > { %5841 = vmatmul.bf16.vlgmr.msrb.gmra.mxu2 %v17331_v37  ;;  %5797 = vmatpush.bf16.msra.mxu3 %v12462_v36  ;;  %v13070_v7 = vor.u32 %v15855_v6, %v13069_v51  ;;  %v12735_v36 = vld [vmem:[#allocation9 + $0x558] sm:$0xf0]  ;;  %v15765_v51 = vld [vmem:[#allocation9 + $0x52c] sm:$0xf] }
 0x38a   : > { %5879 = vmatpush.bf16.msra.mxu1 %v12242_v57  ;;  %5889 = vmatpush.bf16.msra.mxu2 %v12434_v45  ;;  %v15685_v57 = vld [vmem:[#allocation9 + $0x2ac] sm:$0xf]  ;;  %v12738_v28 = vor.u32 %v15769_v13, %v12735_v36  ;;  %v17356_v36 = vpop.f32.mrf.mxu0 }
 0x38b   : > { %v12402_v12 = vor.u32 %v15685_v57, %v12399_v33  ;;  %v15673_v45 = vld [vmem:[#allocation9 + $0x24c] sm:$0xf]  ;;  %v12719_v57 = vld [vmem:[#allocation9 + $0x538] sm:$0xf0]  ;;  %v12989_v33 = vld [vmem:[#allocation9 + $0x748] sm:$0xf] }
 0x38c   : > { %5866 = vmatpush.bf16.msra.mxu0 %v12098_v54  ;;  %v13053_v54 = vld [vmem:[#allocation9 + $0x7c8] sm:$0xf]  ;;  %v12722_v25 = vor.u32 %v15765_v51, %v12719_v57  ;;  %v15801_v13 = vld [vmem:[#allocation9 + $0x64c] sm:$0xf]  ;;  %v12479_v57 = vld [vmem:[#allocation9 + $0x358] sm:$0xf0] }
 0x38d   : > { %5798 = vmatpush.bf16.msra.mxu3 %v12446_v53  ;;  %v15835_v53 = vld [vmem:[#allocation9 + $0x754] sm:$0xf0] }
 0x38e   : > { %5880 = vmatpush.bf16.msra.mxu1 %v12226_v31  ;;  %5890 = vmatpush.bf16.msra.mxu2 %v12418_v40  ;;  %v15851_v31 = vld [vmem:[#allocation9 + $0x7d4] sm:$0xf0]  ;;  %v12610_v40 = vor.u32 %v15737_v21, %v12607_v59  ;;  %v15713_v59 = vld [vmem:[#allocation9 + $0x38c] sm:$0xf] }
 0x38f   : > { %v13054_v15 = vor.u32 %v15851_v31, %v13053_v54  ;;  %v12575_v54 = vld [vmem:[#allocation9 + $0x418] sm:$0xf0] }
 0x390   : > { %5867 = vmatpush.bf16.msra.mxu0 %v12082_v49  ;;  %5799 = vmatmul.bf16.vlgmr.msra.gmra.mxu3 %v17288_v50  ;;  %v15677_v49 = vld [vmem:[#allocation9 + $0x26c] sm:$0xf]  ;;  %v12578_v3 = vor.u32 %v15729_v48, %v12575_v54 }
 0x391   : > { %5847 = vmatpush.bf16.msrb.mxu3 %v13070_v7  ;;  %v12370_v19 = vor.u32 %v15677_v49, %v12367_v29  ;;  %v12594_v7 = vor.u32 %v15733_v47, %v12591_v8  ;;  %v15827_v49 = vld [vmem:[#allocation9 + $0x714] sm:$0xf0]  ;;  %v15725_v29 = vld [vmem:[#allocation9 + $0x3ec] sm:$0xf]  ;;  %v17360_v47 = vpop.f32.mrf.mxu2 }
 0x392   : > { %5881 = vmatpush.bf16.msra.mxu1 %v12210_v38  ;;  %5891 = vmatpush.bf16.msra.mxu2 %v12402_v12  ;;  %v12770_v38 = vor.u32 %v15777_v42, %v12767_v26  ;;  %v12990_v12 = vor.u32 %v15835_v53, %v12989_v33  ;;  %v12927_v42 = vld [vmem:[#allocation9 + $0x6d8] sm:$0xf0]  ;;  %v15793_v33 = vld [vmem:[#allocation9 + $0x60c] sm:$0xf] }
 0x393   : > { %v12831_v53 = vld [vmem:[#allocation9 + $0x618] sm:$0xf0]  ;;  %v15697_v54 = vld [vmem:[#allocation9 + $0x30c] sm:$0xf] }
 0x394   : > { %5868 = vmatpush.bf16.msra.mxu0 %v12066_v35  ;;  %v13022_v35 = vor.u32 %v15843_v2, %v13021_v1  ;;  %v15809_v1 = vld [vmem:[#allocation9 + $0x68c] sm:$0xf]  ;;  %v12895_v2 = vld [vmem:[#allocation9 + $0x698] sm:$0xf0] }
 0x395   : > { %5848 = vmatpush.bf16.msrb.mxu3 %v13054_v15  ;;  %v15831_v15 = vld [vmem:[#allocation9 + $0x734] sm:$0xf0] }
 0x396   : > { %5882 = vmatpush.bf16.msra.mxu1 %v12194_v55  ;;  %v12354_v55 = vor.u32 %v15673_v45, %v12351_v27  ;;  %v12898_v27 = vor.u32 %v15809_v1, %v12895_v2 }
 0x397   : > { %5869 = vmatmul.bf16.vlgmr.msra.gmra.mxu0 %v17277_v56  ;;  %v12386_v56 = vor.u32 %v15681_v10, %v12383_v23  ;;  %v15761_v10 = vld [vmem:[#allocation9 + $0x50c] sm:$0xf]  ;;  %v12703_v23 = vld [vmem:[#allocation9 + $0x518] sm:$0xf0] }
 0x398   : > { %5917 = vmatpush.bf16.msrb.mxu0 %v12690_v11  ;;  %v13005_v11 = vld [vmem:[#allocation9 + $0x768] sm:$0xf] }
 0x399   : > { %5883 = vmatmul.bf16.vlgmr.msra.gmra.mxu1 %v17284_v60  ;;  %v13037_v60 = vld [vmem:[#allocation9 + $0x7a8] sm:$0xf]  ;;  %5892 = vmatpush.bf16.msra.mxu2 %v12386_v56  ;;  %v13006_v24 = vor.u32 %v15839_v30, %v13005_v11  ;;  %v12706_v56 = vor.u32 %v15761_v10, %v12703_v23  ;;  %v17366_v48 = vpop.f32.mrf.mxu2  ;;  %v15853_v10 = vld [vmem:[#allocation9 + $0x7ec] sm:$0xf]  ;;  %v13071_v23 = vld [vmem:[#allocation9 + $0x7f8] sm:$0xf0] }
 0x39a   : > { %5931 = vmatpush.bf16.msrb.mxu1 %v12818_v62  ;;  %v13038_v41 = vor.u32 %v15847_v39, %v13037_v60  ;;  %v12335_v62 = vld [vmem:[#allocation9 + $0x238] sm:$0xf0]  ;;  %v12930_v60 = vor.u32 %v15817_v9, %v12927_v42  ;;  %v12957_v39 = vld [vmem:[#allocation9 + $0x708] sm:$0xf]  ;;  %v15849_v9 = vld [vmem:[#allocation9 + $0x7cc] sm:$0xf] }
 0x39b   : > { %v12338_v6 = vor.u32 %v15669_v20, %v12335_v62  ;;  %v12958_v16 = vor.u32 %v15827_v49, %v12957_v39  ;;  %v15709_v20 = vld [vmem:[#allocation9 + $0x36c] sm:$0xf]  ;;  %v12495_v62 = vld [vmem:[#allocation9 + $0x378] sm:$0xf0] }
 0x39c   : > { %5918 = vmatpush.bf16.msrb.mxu0 %v12674_v34  ;;  %5849 = vmatpush.bf16.msrb.mxu3 %v13038_v41  ;;  %v15665_v34 = vld [vmem:[#allocation9 + $0x20c] sm:$0xf]  ;;  %v12911_v41 = vld [vmem:[#allocation9 + $0x6b8] sm:$0xf0]  ;;  %v12498_v8 = vor.u32 %v15709_v20, %v12495_v62 }
 0x39d   : > { %5893 = vmatpush.bf16.msra.mxu2 %v12370_v19  ;;  %v15721_v19 = vld [vmem:[#allocation9 + $0x3cc] sm:$0xf]  ;;  %v13055_v42 = vld [vmem:[#allocation9 + $0x7d8] sm:$0xf0] }
 0x39e   : > { %5932 = vmatpush.bf16.msrb.mxu1 %v12802_v43  ;;  %v12319_v43 = vld [vmem:[#allocation9 + $0x218] sm:$0xf0]  ;;  %v12546_v45 = vor.u32 %v15721_v19, %v12543_v0  ;;  %v15845_v39 = vld [vmem:[#allocation9 + $0x7ac] sm:$0xf] }
 0x39f   : > { %v12322_v31 = vor.u32 %v15665_v34, %v12319_v43  ;;  %v12834_v43 = vor.u32 %v15793_v33, %v12831_v53  ;;  %v13039_v49 = vld [vmem:[#allocation9 + $0x7b8] sm:$0xf0] }
 0x3a0   : > { %5919 = vmatpush.bf16.msrb.mxu0 %v12658_v14  ;;  %5850 = vmatpush.bf16.msrb.mxu3 %v13022_v35  ;;  %v12946_v14 = vor.u32 %v15821_v44, %v12943_v63  ;;  %v12879_v35 = vld [vmem:[#allocation9 + $0x678] sm:$0xf0]  ;;  %v15701_v44 = vld [vmem:[#allocation9 + $0x32c] sm:$0xf] }
 0x3a1   : > { %5894 = vmatpush.bf16.msra.mxu2 %v12354_v55  ;;  %v12863_v55 = vld [vmem:[#allocation9 + $0x658] sm:$0xf0] }
 0x3a2   : > { %5933 = vmatpush.bf16.msrb.mxu1 %v12786_v22  ;;  %v12973_v22 = vld [vmem:[#allocation9 + $0x728] sm:$0xf]  ;;  %v12866_v30 = vor.u32 %v15801_v13, %v12863_v55  ;;  %v12463_v63 = vld [vmem:[#allocation9 + $0x338] sm:$0xf0] }
 0x3a3   : > { %v12974_v26 = vor.u32 %v15831_v15, %v12973_v22 }
 0x3a4   : > { %5920 = vmatpush.bf16.msrb.mxu0 %v12642_v61  ;;  %5851 = vmatpush.bf16.msrb.mxu3 %v13006_v24  ;;  %v12559_v61 = vld [vmem:[#allocation9 + $0x3f8] sm:$0xf0]  ;;  %v17358_v24 = vpop.f32.mrf.mxu1 }
 0x3a5   : > { %5895 = vmatpush.bf16.msra.mxu2 %v12338_v6  ;;  %v12562_v58 = vor.u32 %v15725_v29, %v12559_v61  ;;  %v15705_v6 = vld [vmem:[#allocation9 + $0x34c] sm:$0xf] }
 0x3a6   : > { %5934 = vmatpush.bf16.msrb.mxu1 %v12770_v38  ;;  %v15813_v38 = vld [vmem:[#allocation9 + $0x6ac] sm:$0xf]  ;;  %v12482_v34 = vor.u32 %v15705_v6, %v12479_v57 }
 0x3a7   : > { %v12914_v46 = vor.u32 %v15813_v38, %v12911_v41  ;;  %v15841_v61 = vld [vmem:[#allocation9 + $0x78c] sm:$0xf]  ;;  %v13023_v38 = vld [vmem:[#allocation9 + $0x798] sm:$0xf0] }
 0x3a8   : > { %5921 = vmatpush.bf16.msrb.mxu0 %v12626_v18  ;;  %5852 = vmatpush.bf16.msrb.mxu3 %v12990_v12  ;;  %v12527_v18 = vld [vmem:[#allocation9 + $0x3b8] sm:$0xf0] }
 0x3a9   : > { %5896 = vmatpush.bf16.msra.mxu2 %v12322_v31  ;;  %v12447_v31 = vld [vmem:[#allocation9 + $0x318] sm:$0xf0] }
 0x3aa   : > { %5935 = vmatpush.bf16.msrb.mxu1 %v12754_v5  ;;  %v15805_v5 = vld [vmem:[#allocation9 + $0x66c] sm:$0xf]  ;;  %v12450_v22 = vor.u32 %v15697_v54, %v12447_v31 }
 0x3ab   : > { %v12882_v21 = vor.u32 %v15805_v5, %v12879_v35  ;;  %v15829_v5 = vld [vmem:[#allocation9 + $0x72c] sm:$0xf]  ;;  %v12975_v35 = vld [vmem:[#allocation9 + $0x738] sm:$0xf0] }
 0x3ac   : > { %5922 = vmatpush.bf16.msrb.mxu0 %v12610_v40  ;;  %5897 = vmatmul.bf16.vlgmr.msra.gmra.mxu2 %v17286_v52  ;;  %v15717_v52 = vld [vmem:[#allocation9 + $0x3ac] sm:$0xf]  ;;  %v17364_v12 = vpop.f32.mrf.mxu1  ;;  %v12978_v55 = vor.u32 %v15829_v5, %v12975_v35 }
 0x3ad   : > { %5945 = vmatpush.bf16.msrb.mxu2 %v12946_v14  ;;  %5853 = vmatpush.bf16.msrb.mxu3 %v12974_v26  ;;  %v15797_v40 = vld [vmem:[#allocation9 + $0x62c] sm:$0xf]  ;;  %v17368_v14 = vpop.f32.mrf.mxu3  ;;  %v17375_v26 = vpop.f32.mrf.mxu2 }
 0x3ae   : > { %5936 = vmatpush.bf16.msrb.mxu1 %v12738_v28  ;;  %v12847_v28 = vld [vmem:[#allocation9 + $0x638] sm:$0xf0] }
 0x3af   : > { %v12850_v51 = vor.u32 %v15797_v40, %v12847_v28 }
 0x3b0   : > { %5923 = vmatpush.bf16.msrb.mxu0 %v12594_v7  ;;  %v17362_v7 = vpop.f32.mrf.mxu0 }
 0x3b1   : > { %5946 = vmatpush.bf16.msrb.mxu2 %v12930_v60  ;;  %5854 = vmatpush.bf16.msrb.mxu3 %v12958_v16  ;;  %v13058_v60 = vor.u32 %v15849_v9, %v13055_v42  ;;  %v13026_v16 = vor.u32 %v15841_v61, %v13023_v38 }
 0x3b2   : > { %5937 = vmatpush.bf16.msrb.mxu1 %v12722_v25  ;;  %v12466_v25 = vor.u32 %v15701_v44, %v12463_v63 }
 0x3b4   : > { %5924 = vmatpush.bf16.msrb.mxu0 %v12578_v3  ;;  %5855 = vmatmul.bf16.vlgmr.msrb.gmra.mxu3 %v17339_v4  ;;  %v13074_v3 = vor.u32 %v15853_v10, %v13071_v23 }
 0x3b5   : > { %5903 = vmatpush.bf16.msra.mxu3 %v12562_v58  ;;  %5947 = vmatpush.bf16.msrb.mxu2 %v12914_v46  ;;  %v17378_v29 = vpop.f32.mrf.mxu3  ;;  %v15837_v58 = vld [vmem:[#allocation9 + $0x76c] sm:$0xf]  ;;  %v13007_v46 = vld [vmem:[#allocation9 + $0x778] sm:$0xf0]  ;;  %v17382_v0 = vpop.f32.mrf.mxu2 }
 0x3b6   : > { %5938 = vmatpush.bf16.msrb.mxu1 %v12706_v56  ;;  %v17373_v56 = vpop.f32.mrf.mxu1  ;;  %v13010_v2 = vor.u32 %v15837_v58, %v13007_v46 }
 0x3b7   : > { %5925 = vmatmul.bf16.vlgmr.msrb.gmra.mxu0 %v17316_v32  ;;  %v12530_v32 = vor.u32 %v15717_v52, %v12527_v18  ;;  %v17384_v52 = vld [vmem:[#allocation11] sm:$0xf] }
 0x3b8   : > { %v17371_v15 = vpop.f32.mrf.mxu0 }
 0x3b9   : > { %5939 = vmatmul.bf16.vlgmr.msrb.gmra.mxu1 %v17318_v17  ;;  %5904 = vmatpush.bf16.msra.mxu3 %v12546_v45  ;;  %v12511_v17 = vld [vmem:[#allocation9 + $0x398] sm:$0xf0]  ;;  %v15833_v45 = vld [vmem:[#allocation9 + $0x74c] sm:$0xf] }
 0x3ba   : > { %5948 = vmatpush.bf16.msrb.mxu2 %v12898_v27  ;;  %v12514_v11 = vor.u32 %v15713_v59, %v12511_v17  ;;  %v4238_v59 = vperm.slane %v17384_v52, 1 }
 0x3bd   : > { %5905 = vmatpush.bf16.msra.mxu3 %v12530_v32  ;;  %v5674_v17 = vpop.f32.mrf.mxu2 }
 0x3be   : > { %5949 = vmatpush.bf16.msrb.mxu2 %v12882_v21  ;;  %v17380_v19 = vpop.f32.mrf.mxu1  ;;  %v4237_v21 = vperm.slane %v17384_v52, 0 }
 0x3c0   : > { %v5592_v41 = vpop.f32.mrf.mxu0  ;;  %v5535_v20 = vadd.f32 %v17356_v36, %v4237_v21 }
 0x3c1   : > { %5906 = vmatpush.bf16.msra.mxu3 %v12514_v11  ;;  %v15825_v11 = vld [vmem:[#allocation9 + $0x70c] sm:$0xf] }
 0x3c2   : > { %5950 = vmatpush.bf16.msrb.mxu2 %v12866_v30  ;;  %v12959_v30 = vld [vmem:[#allocation9 + $0x718] sm:$0xf0] }
 0x3c3   : > { %v12962_v28 = vor.u32 %v15825_v11, %v12959_v30 }
 0x3c5   : > { %5907 = vmatpush.bf16.msra.mxu3 %v12498_v8  ;;  %v5549_v8 = vadd.f32 %v17358_v24, %v5535_v20 }
 0x3c6   : > { %5951 = vmatpush.bf16.msrb.mxu2 %v12850_v51  ;;  %v5660_v32 = vpop.f32.mrf.mxu1 }
 0x3c7   : > { %v5563_v33 = vadd.f32 %v17360_v47, %v5549_v8 }
 0x3c8   : > { %v5646_v27 = vpop.f32.mrf.mxu0 }
 0x3c9   : > { %5908 = vmatpush.bf16.msra.mxu3 %v12482_v34  ;;  %v5647_v62 = vadd.f32 %v5646_v27, %v4238_v59  ;;  %v5676_v34 = vpop.f32.mrf.mxu2 }
 0x3ca   : > { %5952 = vmatpush.bf16.msrb.mxu2 %v12834_v43  ;;  %v5537_v43 = vadd.f32 %v17362_v7, %v4237_v21 }
 0x3cb   : > { %v5661_v51 = vadd.f32 %v5660_v32, %v5647_v62 }
 0x3cc   : > { %v5551_v54 = vadd.f32 %v17364_v12, %v5537_v43 }
 0x3cd   : > { %5953 = vmatmul.bf16.vlgmr.msrb.gmra.mxu2 %v17331_v37  ;;  %5909 = vmatpush.bf16.msra.mxu3 %v12466_v25  ;;  %v13042_v37 = vor.u32 %v15845_v39, %v13039_v49  ;;  %v5675_v53 = vadd.f32 %v5674_v17, %v5661_v51  ;;  %v5577_v25 = vadd.f32 %v17368_v14, %v5563_v33  ;;  %v4239_v51 = vperm.slane %v17384_v52, 2 }
 0x3ce   : > { %v5662_v6 = vpop.f32.mrf.mxu1  ;;  %v5565_v47 = vadd.f32 %v17366_v48, %v5551_v54  ;;  %v4240_v33 = vperm.slane %v17384_v52, 3 }
 0x3cf   : > { %v5591_v24 = vadd.f32 %v17371_v15, %v5577_v25 }
 0x3d0   : > { %v5648_v40 = vpop.f32.mrf.mxu0 }
 0x3d1   : > { %5910 = vmatpush.bf16.msra.mxu3 %v12450_v22  ;;  %v5649_v44 = vadd.f32 %v5648_v40, %v4238_v59  ;;  %v5605_v7 = vadd.f32 %v17373_v56, %v5591_v24 }
 0x3d2   : > { %v5632_v1 = vpop.f32.mrf.mxu3 }
 0x3d3   : > { %v5663_v31 = vadd.f32 %v5662_v6, %v5649_v44  ;;  %v5619_v14 = vadd.f32 %v17375_v26, %v5605_v7 }
 0x3d4   : > { %5911 = vmatmul.bf16.vlgmr.msra.gmra.mxu3 %v17288_v50  ;;  %v12991_v50 = vld [vmem:[#allocation9 + $0x758] sm:$0xf0] }
 0x3d5   : > { %5959 = vmatpush.bf16.msrb.mxu3 %v13074_v3  ;;  %v12994_v18 = vor.u32 %v15833_v45, %v12991_v50  ;;  %v5677_v3 = vadd.f32 %v5676_v34, %v5663_v31  ;;  %v5633_v49 = vadd.f32 %v5632_v1, %v5619_v14 }
 0x3d6   : > { %v5716_v23 = vpop.f32.mrf.mxu1 }
 0x3d7   : > { %v5973_v58 = vmax.f32 %v5633_v49, 0.0 }
 0x3d8   : > { %v5702_v36 = vpop.f32.mrf.mxu0 }
 0x3d9   : > { %5960 = vmatpush.bf16.msrb.mxu3 %v13058_v60  ;;  %v5730_v60 = vpop.f32.mrf.mxu2 }
 0x3da   : > { %v5634_v13 = vpop.f32.mrf.mxu3 }
 0x3dd   : > { %5961 = vmatpush.bf16.msrb.mxu3 %v13042_v37 }
 0x3e0   : > { %v5704_v39 = vpop.f32.mrf.mxu0 }
 0x3e1   : > { %5962 = vmatpush.bf16.msrb.mxu3 %v13026_v16  ;;  %v5718_v16 = vpop.f32.mrf.mxu1  ;;  %v5732_v50 = vpop.f32.mrf.mxu2 }
 0x3e2   : > { %v5688_v57 = vpop.f32.mrf.mxu3 }
 0x3e3   : > { %v5689_v63 = vadd.f32 %v5688_v57, %v5675_v53 }
 0x3e5   : > { %5963 = vmatpush.bf16.msrb.mxu3 %v13010_v2  ;;  %v5703_v10 = vadd.f32 %v5702_v36, %v5689_v63 }
 0x3e7   : > { %v5717_v42 = vadd.f32 %v5716_v23, %v5703_v10 }
 0x3e8   : > { %v5758_v35 = vpop.f32.mrf.mxu0 }
 0x3e9   : > { %5964 = vmatpush.bf16.msrb.mxu3 %v12994_v18  ;;  %v5731_v37 = vadd.f32 %v5730_v60, %v5717_v42  ;;  %v5772_v32 = vpop.f32.mrf.mxu1  ;;  %v5759_v53 = vadd.f32 %v5758_v35, %v4239_v51 }
 0x3ea   : > { %v5690_v22 = vpop.f32.mrf.mxu3 }
 0x3eb   : > { %v5691_v9 = vadd.f32 %v5690_v22, %v5677_v3  ;;  %v5786_v21 = vpop.f32.mrf.mxu2  ;;  %v5773_v63 = vadd.f32 %v5772_v32, %v5759_v53 }
 0x3ed   : > { %5965 = vmatpush.bf16.msrb.mxu3 %v12978_v55  ;;  %v5705_v15 = vadd.f32 %v5704_v39, %v5691_v9  ;;  %v5787_v25 = vadd.f32 %v5786_v21, %v5773_v63 }
 0x3ef   : > { %v5719_v56 = vadd.f32 %v5718_v16, %v5705_v15 }
 0x3f1   : > { %5966 = vmatpush.bf16.msrb.mxu3 %v12962_v28  ;;  %v5733_v26 = vadd.f32 %v5732_v50, %v5719_v56  ;;  %v5774_v17 = vpop.f32.mrf.mxu1 }
 0x3f3   : > { %v5744_v61 = vpop.f32.mrf.mxu3  ;;  %v5788_v11 = vpop.f32.mrf.mxu2 }
 0x3f4   : > { %5967 = vmatmul.bf16.vlgmr.msrb.gmra.mxu3 %v17339_v4  ;;  %v5579_v4 = vadd.f32 %v17378_v29, %v5565_v47  ;;  %v5745_v38 = vadd.f32 %v5744_v61, %v5731_v37 }
 0x3f6   : > { %v5593_v12 = vadd.f32 %v5592_v41, %v5579_v4  ;;  %v5974_v46 = vmax.f32 %v5745_v38, 0.0 }
 0x3f8   : > { %v5607_v48 = vadd.f32 %v17380_v19, %v5593_v12  ;;  %v5981_v45 = vpack.c.bf16 %v5974_v46, %v5973_v58  ;;  %v5760_v19 = vpop.f32.mrf.mxu0 }
 0x3f9   : > { %v5761_v31 = vadd.f32 %v5760_v19, %v4239_v51 }
 0x3fa   : > { %v5621_v2 = vadd.f32 %v17382_v0, %v5607_v48  ;;  %5985 = vst [vmem:[#allocation2] sm:$0xff] %v5981_v45  ;;  %v5828_v0 = vpop.f32.mrf.mxu1 }
 0x3fb   : > { %v5746_v27 = vpop.f32.mrf.mxu3  ;;  %v5775_v9 = vadd.f32 %v5774_v17, %v5761_v31 }
 0x3fc   : > { %v5635_v29 = vadd.f32 %v5634_v13, %v5621_v2  ;;  %v5747_v41 = vadd.f32 %v5746_v27, %v5733_v26 }
 0x3fd   : > { %v5789_v60 = vadd.f32 %v5788_v11, %v5775_v9 }
 0x3fe   : > { %v5977_v1 = vmax.f32 %v5635_v29, 0.0  ;;  %v5978_v18 = vmax.f32 %v5747_v41, 0.0 }
 0x400   : > { %v5983_v5 = vpack.c.bf16 %v5978_v18, %v5977_v1  ;;  %v5814_v55 = vpop.f32.mrf.mxu0 }
 0x402   : > { %5987 = vst [vmem:[#allocation2 + $0x10] sm:$0xff] %v5983_v5  ;;  %v5830_v40 = vpop.f32.mrf.mxu1 }
 0x408   : > { %v5816_v13 = vpop.f32.mrf.mxu0 }
 0x40c   : > { %v5842_v20 = vpop.f32.mrf.mxu2 }
 0x413   : > { %v5800_v59 = vpop.f32.mrf.mxu3 }
 0x414   : > { %v5870_v28 = vpop.f32.mrf.mxu0  ;;  %v5844_v8 = vpop.f32.mrf.mxu2  ;;  %v5801_v10 = vadd.f32 %v5800_v59, %v5787_v25 }
 0x415   : > { %v5871_v43 = vadd.f32 %v5870_v28, %v4240_v33 }
 0x416   : > { %v5884_v6 = vpop.f32.mrf.mxu1  ;;  %v5815_v42 = vadd.f32 %v5814_v55, %v5801_v10 }
 0x417   : > { %v5885_v54 = vadd.f32 %v5884_v6, %v5871_v43 }
 0x418   : > { %v5829_v49 = vadd.f32 %v5828_v0, %v5815_v42 }
 0x41a   : > { %v5843_v48 = vadd.f32 %v5842_v20, %v5829_v49 }
 0x41b   : > { %v5802_v30 = vpop.f32.mrf.mxu3 }
 0x41c   : > { %v5872_v44 = vpop.f32.mrf.mxu0  ;;  %v5803_v12 = vadd.f32 %v5802_v30, %v5789_v60 }
 0x41d   : > { %v5873_v22 = vadd.f32 %v5872_v44, %v4240_v33 }
 0x41e   : > { %v5886_v24 = vpop.f32.mrf.mxu1  ;;  %v5817_v16 = vadd.f32 %v5816_v13, %v5803_v12 }
 0x41f   : > { %v5887_v52 = vadd.f32 %v5886_v24, %v5873_v22 }
 0x420   : > { %v5831_v50 = vadd.f32 %v5830_v40, %v5817_v16 }
 0x422   : > { %v5845_v18 = vadd.f32 %v5844_v8, %v5831_v50 }
 0x42f   : > { %v5898_v34 = vpop.f32.mrf.mxu2 }
 0x430   : > { %v5899_v23 = vadd.f32 %v5898_v34, %v5885_v54 }
 0x434   : > { %v5926_v3 = vpop.f32.mrf.mxu0 }
 0x436   : > { %v5940_v14 = vpop.f32.mrf.mxu1 }
 0x437   : > { %v5856_v62 = vpop.f32.mrf.mxu3  ;;  %v5900_v7 = vpop.f32.mrf.mxu2 }
 0x438   : > { %v5901_v15 = vadd.f32 %v5900_v7, %v5887_v52  ;;  %v5857_v46 = vadd.f32 %v5856_v62, %v5843_v48 }
 0x43a   : > { %v5975_v27 = vmax.f32 %v5857_v46, 0.0 }
 0x43c   : > { %v5928_v58 = vpop.f32.mrf.mxu0 }
 0x43e   : > { %v5942_v26 = vpop.f32.mrf.mxu1 }
 0x43f   : > { %v5858_v57 = vpop.f32.mrf.mxu3 }
 0x440   : > { %v5859_v32 = vadd.f32 %v5858_v57, %v5845_v18 }
 0x442   : > { %v5979_v17 = vmax.f32 %v5859_v32, 0.0 }
 0x450   : > { %v5954_v38 = vpop.f32.mrf.mxu2 }
 0x457   : > { %v5912_v36 = vpop.f32.mrf.mxu3 }
 0x458   : > { %v5913_v47 = vadd.f32 %v5912_v36, %v5899_v23  ;;  %v5956_v35 = vpop.f32.mrf.mxu2 }
 0x45a   : > { %v5927_v4 = vadd.f32 %v5926_v3, %v5913_v47 }
 0x45c   : > { %v5941_v61 = vadd.f32 %v5940_v14, %v5927_v4 }
 0x45e   : > { %v5955_v2 = vadd.f32 %v5954_v38, %v5941_v61 }
 0x45f   : > { %v5914_v39 = vpop.f32.mrf.mxu3 }
 0x460   : > { %v5915_v37 = vadd.f32 %v5914_v39, %v5901_v15 }
 0x462   : > { %v5929_v56 = vadd.f32 %v5928_v58, %v5915_v37 }
 0x464   : > { %v5943_v1 = vadd.f32 %v5942_v26, %v5929_v56 }
 0x466   : > { %v5957_v21 = vadd.f32 %v5956_v35, %v5943_v1 }
 0x477   : > { %v5968_v45 = vpop.f32.mrf.mxu3 }
 0x478   : > { %v5969_v29 = vadd.f32 %v5968_v45, %v5955_v2 }
 0x47a   : > { %v5976_v41 = vmax.f32 %v5969_v29, 0.0 }
 0x47c   : > { %v5982_v5 = vpack.c.bf16 %v5976_v41, %v5975_v27 }
 0x47e   : > { %5986 = vst [vmem:[#allocation2 + $0x8] sm:$0xff] %v5982_v5 }
 0x47f   : > { %v5970_v19 = vpop.f32.mrf.mxu3 }
 0x480   : > { %v5971_v59 = vadd.f32 %v5970_v19, %v5957_v21 }
 0x482   : > { %v5980_v55 = vmax.f32 %v5971_v59, 0.0 }
 0x484   : > { %v5984_v11 = vpack.c.bf16 %v5980_v55, %v5979_v17 }
 0x486   : > { %5988 = vst [vmem:[#allocation2 + $0x18] sm:$0xff] %v5984_v11 }
 0x487 PF: > { %v13541_v0 = vld [vmem:[%s17006_s18 + $0x380] sm:$0xf]  ;;  %s16372_s30 = sshll.u32 %s16858_s28, 7  ;;  %s10062_s5 = sshll.u32 %s17016_s0, 4  ;;  %s10063_s5 = int_to_ptr.vmem [resolvable:$true] %s10062_s5 }
 0x488   : > { %v15980_v30 = vld [vmem:[%s17006_s18 + $0x3bc] sm:$0xf0]  ;;  %s10061_s29 = scalar_lea.hbm %s18602_s7, %s16372_s30  ;;  %s10050_s28 = scalar_lea.sflag [#allocation5], %s17003_s12 }
 0x489   : > { %v14053_v20 = vld [vmem:[%s17006_s18 + $0x780] sm:$0xf]  ;;  %v13542_v13 = vor.u32 %v15980_v30, %v13541_v0  ;;  %s10064_s11 = sshll.u32 %s10061_s29, 4  ;;  %s16720_s10 = scalar_lea.hbm %s18602_s7, 512  ;;  %s10065_s11 = int_to_ptr.hbm [resolvable:$true] %s10064_s11 }
 0x48a   : > { %v16108_v62 = vld [vmem:[%s17006_s18 + $0x7bc] sm:$0xf0]  ;;  %s16714_s15 = sshra.s32 %s10065_s11, 4  ;;  %s16715_s15 = int_to_ptr.hbm [resolvable:$true] %s16714_s15 }
 0x48b   : > { %v14565_v40 = vld [vmem:[%s17006_s18 + $0xb80] sm:$0xf]  ;;  %v14054_v8 = vor.u32 %v16108_v62, %v14053_v20  ;;  %9121 = vmatpush.bf16.msra.mxu0 %v13542_v13  ;;  %s16716_s13 = scalar_lea.hbm %s16715_s15, 256  ;;  %p16721_p3 = scmp.lt.s32.totalorder %s16715_s15, %s18602_s7 }
 0x48c   : > { %v16236_v28 = vld [vmem:[%s17006_s18 + $0xbbc] sm:$0xf0]  ;;  %p16717_p4 = scmp.ne.s32.totalorder %s16715_s15, %s16716_s13  ;;  %p16722_p5 = scmp.lt.s32.totalorder %s16720_s10, %s16716_s13 }
 0x48d   : > { %v14566_v51 = vor.u32 %v16236_v28, %v14565_v40  ;;  %v15077_v6 = vld [vmem:[%s17006_s18 + $0xf80] sm:$0xf]  ;;  %9135 = vmatpush.bf16.msra.mxu1 %v14054_v8 }
 0x48e   : > { %v16364_v57 = vld [vmem:[%s17006_s18 + $0xfbc] sm:$0xf0]  ;;  %p16718_p11 = pnand %p16717_p4, %p16919_p7  ;;  %p16723_p0 = por %p16722_p5, %p16721_p3 }
 0x48f   : > { %v13477_v33 = vld [vmem:[%s17006_s18 + $0x300] sm:$0xf]  ;;  %v15078_v53 = vor.u32 %v16364_v57, %v15077_v6  ;;  %9149 = vmatpush.bf16.msra.mxu2 %v14566_v51 }
 0x490   : > { %v15964_v34 = vld [vmem:[%s17006_s18 + $0x33c] sm:$0xf0]  ;;  %p16719_p13 = pneg %p16718_p11 }
 0x491   : > { %v13989_v43 = vld [vmem:[%s17006_s18 + $0x700] sm:$0xf]  ;;  %v13478_v63 = vor.u32 %v15964_v34, %v13477_v33  ;;  %9163 = vmatpush.bf16.msra.mxu3 %v15078_v53 }
 0x492   : > { %v16092_v44 = vld [vmem:[%s17006_s18 + $0x73c] sm:$0xf0]  ;;  %p16724_p10 = pnand %p16723_p0, %p16719_p13 }
 0x493   : > { %v13990_v36 = vor.u32 %v16092_v44, %v13989_v43  ;;  %v14501_v25 = vld [vmem:[%s17006_s18 + $0xb00] sm:$0xf]  ;;  %9122 = vmatpush.bf16.msra.mxu0 %v13478_v63 }
 0x494   : > { %v16220_v54 = vld [vmem:[%s17006_s18 + $0xb3c] sm:$0xf0] }
 0x495   : > { %v15013_v24 = vld [vmem:[%s17006_s18 + $0xf00] sm:$0xf]  ;;  %v14502_v31 = vor.u32 %v16220_v54, %v14501_v25  ;;  %9136 = vmatpush.bf16.msra.mxu1 %v13990_v36 }
 0x496   : > { %v16348_v10 = vld [vmem:[%s17006_s18 + $0xf3c] sm:$0xf0] }
 0x497   : > { %v13413_v23 = vld [vmem:[%s17006_s18 + $0x280] sm:$0xf]  ;;  %v15014_v47 = vor.u32 %v16348_v10, %v15013_v24  ;;  %9150 = vmatpush.bf16.msra.mxu2 %v14502_v31 }
 0x498   : > { %v15948_v22 = vld [vmem:[%s17006_s18 + $0x2bc] sm:$0xf0] }
 0x499   : > { %v13925_v3 = vld [vmem:[%s17006_s18 + $0x680] sm:$0xf]  ;;  %v13414_v42 = vor.u32 %v15948_v22, %v13413_v23  ;;  %9164 = vmatpush.bf16.msra.mxu3 %v15014_v47 }
 0x49a   : > { %v16076_v7 = vld [vmem:[%s17006_s18 + $0x6bc] sm:$0xf0] }
 0x49b   : > { %v14437_v9 = vld [vmem:[%s17006_s18 + $0xa80] sm:$0xf]  ;;  %v13926_v14 = vor.u32 %v16076_v7, %v13925_v3  ;;  %9123 = vmatpush.bf16.msra.mxu0 %v13414_v42  ;;  %v13543_v42 = vld [vmem:[%s17006_s18 + $0x3c0] sm:$0xf0] }
 0x49c   : > { %v16204_v60 = vld [vmem:[%s17006_s18 + $0xabc] sm:$0xf0] }
 0x49d   : > { %v14949_v52 = vld [vmem:[%s17006_s18 + $0xe80] sm:$0xf]  ;;  %v14438_v39 = vor.u32 %v16204_v60, %v14437_v9  ;;  %9137 = vmatpush.bf16.msra.mxu1 %v13926_v14  ;;  %v15972_v9 = vld [vmem:[%s17006_s18 + $0x384] sm:$0xf] }
 0x49e   : > { %v16332_v4 = vld [vmem:[%s17006_s18 + $0xebc] sm:$0xf0]  ;;  %v16100_v60 = vld [vmem:[%s17006_s18 + $0x784] sm:$0xf] }
 0x49f   : > { %v13349_v12 = vld [vmem:[%s17006_s18 + $0x200] sm:$0xf]  ;;  %v14950_v37 = vor.u32 %v16332_v4, %v14949_v52  ;;  %9151 = vmatpush.bf16.msra.mxu2 %v14438_v39  ;;  %v14055_v4 = vld [vmem:[%s17006_s18 + $0x7c0] sm:$0xf0] }
 0x4a0   : > { %v15932_v49 = vld [vmem:[%s17006_s18 + $0x23c] sm:$0xf0]  ;;  %v16228_v14 = vld [vmem:[%s17006_s18 + $0xb84] sm:$0xf] }
 0x4a1   : > { %v13861_v15 = vld [vmem:[%s17006_s18 + $0x600] sm:$0xf]  ;;  %v13350_v46 = vor.u32 %v15932_v49, %v13349_v12  ;;  %9165 = vmatpush.bf16.msra.mxu3 %v14950_v37  ;;  %v14567_v39 = vld [vmem:[%s17006_s18 + $0xbc0] sm:$0xf0] }
 0x4a2   : > { %v16060_v61 = vld [vmem:[%s17006_s18 + $0x63c] sm:$0xf0]  ;;  %v15079_v37 = vld [vmem:[%s17006_s18 + $0xfc0] sm:$0xf0] }
 0x4a3   : > { %v14373_v38 = vld [vmem:[%s17006_s18 + $0xa00] sm:$0xf]  ;;  %v13862_v56 = vor.u32 %v16060_v61, %v13861_v15  ;;  %9124 = vmatpush.bf16.msra.mxu0 %v13350_v46  ;;  %v16356_v15 = vld [vmem:[%s17006_s18 + $0xf84] sm:$0xf] }
 0x4a4   : > { %v16188_v16 = vld [vmem:[%s17006_s18 + $0xa3c] sm:$0xf0]  ;;  %v13479_v46 = vld [vmem:[%s17006_s18 + $0x340] sm:$0xf0] }
 0x4a5   : > { %v14885_v48 = vld [vmem:[%s17006_s18 + $0xe00] sm:$0xf]  ;;  %v14374_v2 = vor.u32 %v16188_v16, %v14373_v38  ;;  %9138 = vmatpush.bf16.msra.mxu1 %v13862_v56  ;;  %v13546_v38 = vor.u32 %v15972_v9, %v13543_v42  ;;  %v14058_v16 = vor.u32 %v16100_v60, %v14055_v4  ;;  %v16084_v56 = vld [vmem:[%s17006_s18 + $0x704] sm:$0xf]  ;;  %v13079_v9 = vld [vmem:[#allocation2 + $0x10] sm:$0xf0] }
 0x4a6   : > { %v16316_v58 = vld [vmem:[%s17006_s18 + $0xe3c] sm:$0xf0]  ;;  %v13799_v60 = vld [vmem:[%s17006_s18 + $0x5c0] sm:$0xf0] }
 0x4a7   : > { %v13285_v45 = vld [vmem:[%s17006_s18 + $0x180] sm:$0xf]  ;;  %v14886_v26 = vor.u32 %v16316_v58, %v14885_v48  ;;  %9152 = vmatpush.bf16.msra.mxu2 %v14374_v2  ;;  %v14570_v48 = vor.u32 %v16228_v14, %v14567_v39  ;;  %v15956_v58 = vld [vmem:[%s17006_s18 + $0x304] sm:$0xf]  ;;  %v15082_v2 = vor.u32 %v16356_v15, %v15079_v37 }
 0x4a8   : > { %v15916_v50 = vld [vmem:[%s17006_s18 + $0x1bc] sm:$0xf0]  ;;  %v14311_v4 = vld [vmem:[%s17006_s18 + $0x9c0] sm:$0xf0] }
 0x4a9   : > { %v13797_v29 = vld [vmem:[%s17006_s18 + $0x580] sm:$0xf]  ;;  %v13286_v35 = vor.u32 %v15916_v50, %v13285_v45  ;;  %9166 = vmatpush.bf16.msra.mxu3 %v14886_v26  ;;  %v13991_v45 = vld [vmem:[%s17006_s18 + $0x740] sm:$0xf0] }
 0x4aa   : > { %v16044_v27 = vld [vmem:[%s17006_s18 + $0x5bc] sm:$0xf0]  ;;  %v16212_v50 = vld [vmem:[%s17006_s18 + $0xb04] sm:$0xf] }
 0x4ab   : > { %v14309_v41 = vld [vmem:[%s17006_s18 + $0x980] sm:$0xf]  ;;  %v13798_v32 = vor.u32 %v16044_v27, %v13797_v29  ;;  %9125 = vmatpush.bf16.msra.mxu0 %v13286_v35  ;;  %v14503_v29 = vld [vmem:[%s17006_s18 + $0xb40] sm:$0xf0] }
 0x4ac   : > { %v16172_v1 = vld [vmem:[%s17006_s18 + $0x9bc] sm:$0xf0]  ;;  %v16340_v26 = vld [vmem:[%s17006_s18 + $0xf04] sm:$0xf] }
 0x4ad   : > { %v14821_v18 = vld [vmem:[%s17006_s18 + $0xd80] sm:$0xf]  ;;  %v14310_v21 = vor.u32 %v16172_v1, %v14309_v41  ;;  %9139 = vmatpush.bf16.msra.mxu1 %v13798_v32  ;;  %v15015_v27 = vld [vmem:[%s17006_s18 + $0xf40] sm:$0xf0]  ;;  %v13482_v41 = vor.u32 %v15956_v58, %v13479_v46 }
 0x4ae   : > { %v16300_v5 = vld [vmem:[%s17006_s18 + $0xdbc] sm:$0xf0]  ;;  %v15940_v1 = vld [vmem:[%s17006_s18 + $0x284] sm:$0xf] }
 0x4af   : > { %v13221_v19 = vld [vmem:[%s17006_s18 + $0x100] sm:$0xf]  ;;  %v14822_v55 = vor.u32 %v16300_v5, %v14821_v18  ;;  %9153 = vmatpush.bf16.msra.mxu2 %v14310_v21  ;;  %v13994_v18 = vor.u32 %v16084_v56, %v13991_v45  ;;  %v14506_v5 = vor.u32 %v16212_v50, %v14503_v29  ;;  %v13415_v35 = vld [vmem:[%s17006_s18 + $0x2c0] sm:$0xf0] }
 0x4b0   : > { %v15900_v59 = vld [vmem:[%s17006_s18 + $0x13c] sm:$0xf0]  ;;  %v16068_v32 = vld [vmem:[%s17006_s18 + $0x684] sm:$0xf] }
 0x4b1   : > { %v13733_v17 = vld [vmem:[%s17006_s18 + $0x500] sm:$0xf]  ;;  %v13222_v62 = vor.u32 %v15900_v59, %v13221_v19  ;;  %9167 = vmatpush.bf16.msra.mxu3 %v14822_v55  ;;  %v13927_v21 = vld [vmem:[%s17006_s18 + $0x6c0] sm:$0xf0]  ;;  %v15018_v19 = vor.u32 %v16340_v26, %v15015_v27 }
 0x4b2   : > { %v16028_v11 = vld [vmem:[%s17006_s18 + $0x53c] sm:$0xf0]  ;;  %v16196_v59 = vld [vmem:[%s17006_s18 + $0xa84] sm:$0xf] }
 0x4b3   : > { %v14245_v0 = vld [vmem:[%s17006_s18 + $0x900] sm:$0xf]  ;;  %v13734_v40 = vor.u32 %v16028_v11, %v13733_v17  ;;  %9126 = vmatpush.bf16.msra.mxu0 %v13222_v62  ;;  %v14439_v17 = vld [vmem:[%s17006_s18 + $0xac0] sm:$0xf0] }
 0x4b4   : > { %v16156_v30 = vld [vmem:[%s17006_s18 + $0x93c] sm:$0xf0]  ;;  %v16324_v55 = vld [vmem:[%s17006_s18 + $0xe84] sm:$0xf] }
 0x4b5   : > { %v14757_v20 = vld [vmem:[%s17006_s18 + $0xd00] sm:$0xf]  ;;  %v14246_v28 = vor.u32 %v16156_v30, %v14245_v0  ;;  %9140 = vmatpush.bf16.msra.mxu1 %v13734_v40  ;;  %v14951_v11 = vld [vmem:[%s17006_s18 + $0xec0] sm:$0xf0] }
 0x4b6   : > { %v16284_v13 = vld [vmem:[%s17006_s18 + $0xd3c] sm:$0xf0]  ;;  %v15924_v0 = vld [vmem:[%s17006_s18 + $0x204] sm:$0xf] }
 0x4b7   : > { %v13157_v8 = vld [vmem:[%s17006_s18 + $0x80] sm:$0xf]  ;;  %v14758_v57 = vor.u32 %v16284_v13, %v14757_v20  ;;  %9154 = vmatpush.bf16.msra.mxu2 %v14246_v28  ;;  %v13351_v30 = vld [vmem:[%s17006_s18 + $0x240] sm:$0xf0]  ;;  %v13418_v20 = vor.u32 %v15940_v1, %v13415_v35  ;;  %v15859_v28 = vld [vmem:[#allocation2 + $0x14] sm:$0xf0] }
 0x4b8   : > { %v15884_v51 = vld [vmem:[%s17006_s18 + $0xbc] sm:$0xf0]  ;;  %v16052_v13 = vld [vmem:[%s17006_s18 + $0x604] sm:$0xf] }
 0x4b9   : > { %v13669_v6 = vld [vmem:[%s17006_s18 + $0x480] sm:$0xf]  ;;  %v13158_v63 = vor.u32 %v15884_v51, %v13157_v8  ;;  %9168 = vmatpush.bf16.msra.mxu3 %v14758_v57  ;;  %v13863_v62 = vld [vmem:[%s17006_s18 + $0x640] sm:$0xf0]  ;;  %v13930_v8 = vor.u32 %v16068_v32, %v13927_v21  ;;  %v14442_v51 = vor.u32 %v16196_v59, %v14439_v17  ;;  %v13077_v57 = vld [vmem:[#allocation2] sm:$0xf] }
 0x4ba   : > { %v16012_v33 = vld [vmem:[%s17006_s18 + $0x4bc] sm:$0xf0]  ;;  %v13085_v40 = vld [vmem:[#allocation2 + $0x8] sm:$0xf] }
 0x4bb   : > { %v14181_v53 = vld [vmem:[%s17006_s18 + $0x880] sm:$0xf]  ;;  %v13670_v54 = vor.u32 %v16012_v33, %v13669_v6  ;;  %9127 = vmatpush.bf16.msra.mxu0 %v13158_v63  ;;  %v17496_v6 = vor.u32 %v15859_v28, %v13085_v40  ;;  %v15858_v33 = vld [vmem:[#allocation2 + $0xc] sm:$0xf0]  ;;  %v16292_v39 = vld [vmem:[%s17006_s18 + $0xd84] sm:$0xf] }
 0x4bc   : > { %v16140_v34 = vld [vmem:[%s17006_s18 + $0x8bc] sm:$0xf0]  ;;  %v17500_v63 = vor.u32 %v15858_v33, %v13077_v57  ;;  %v13735_v58 = vld [vmem:[%s17006_s18 + $0x540] sm:$0xf0]  ;;  %v15981_v57 = vld [vmem:[%s17006_s18 + $0x3c4] sm:$0xf0] }
 0x4bd   : > { %v14693_v43 = vld [vmem:[%s17006_s18 + $0xc80] sm:$0xf]  ;;  %v14182_v24 = vor.u32 %v16140_v34, %v14181_v53  ;;  %9141 = vmatpush.bf16.msra.mxu1 %v13670_v54  ;;  %v15857_v53 = vld [vmem:[#allocation2 + $0xc] sm:$0xf]  ;;  %v14954_v34 = vor.u32 %v16324_v55, %v14951_v11  ;;  %v14887_v54 = vld [vmem:[%s17006_s18 + $0xe40] sm:$0xf0] }
 0x4be   : > { %v16268_v44 = vld [vmem:[%s17006_s18 + $0xcbc] sm:$0xf0]  ;;  %v16148_v46 = vld [vmem:[%s17006_s18 + $0x904] sm:$0xf]  ;;  %v14061_v33 = vld [vmem:[%s17006_s18 + $0x788] sm:$0xf] }
 0x4bf   : > { %v13093_v36 = vld [vmem:[%s17006_s18] sm:$0xf]  ;;  %v14694_v22 = vor.u32 %v16268_v44, %v14693_v43  ;;  %9155 = vmatpush.bf16.msra.mxu2 %v14182_v24  ;;  %v16180_v43 = vld [vmem:[%s17006_s18 + $0xa04] sm:$0xf] }
 0x4c0   : > { %v15868_v25 = vld [vmem:[%s17006_s18 + $0x3c] sm:$0xf0]  ;;  %v14375_v44 = vld [vmem:[%s17006_s18 + $0xa40] sm:$0xf0] }
 0x4c1   : > { %v13605_v31 = vld [vmem:[%s17006_s18 + $0x400] sm:$0xf]  ;;  %v13094_v52 = vor.u32 %v15868_v25, %v13093_v36  ;;  %9169 = vmatpush.bf16.msra.mxu3 %v14694_v22  ;;  %v13087_v36 = vld [vmem:[#allocation2 + $0x18] sm:$0xf0]  ;;  %v16308_v25 = vld [vmem:[%s17006_s18 + $0xe04] sm:$0xf]  ;;  %v13866_v22 = vor.u32 %v16052_v13, %v13863_v62 }
 0x4c2   : > { %v15996_v10 = vld [vmem:[%s17006_s18 + $0x43c] sm:$0xf0]  ;;  %v17505_v24 = vor.u32 %v15857_v53, %v13087_v36  ;;  %v14890_v42 = vor.u32 %v16308_v25, %v14887_v54  ;;  %v14247_v56 = vld [vmem:[%s17006_s18 + $0x940] sm:$0xf0]  ;;  %v15085_v54 = vld [vmem:[%s17006_s18 + $0xf88] sm:$0xf] }
 0x4c3   : > { %v14117_v23 = vld [vmem:[%s17006_s18 + $0x800] sm:$0xf]  ;;  %v13606_v12 = vor.u32 %v15996_v10, %v13605_v31  ;;  %9128 = vmatpush.bf16.msra.mxu0 %v13094_v52  ;;  %v13354_v31 = vor.u32 %v15924_v0, %v13351_v30  ;;  %v15908_v10 = vld [vmem:[%s17006_s18 + $0x184] sm:$0xf]  ;;  %v14250_v26 = vor.u32 %v16148_v46, %v14247_v56  ;;  %v14445_v46 = vld [vmem:[%s17006_s18 + $0xa88] sm:$0xf] }
 0x4c4   : > { %v16124_v47 = vld [vmem:[%s17006_s18 + $0x83c] sm:$0xf0]  ;;  %v16164_v52 = vld [vmem:[%s17006_s18 + $0x984] sm:$0xf]  ;;  %v16205_v56 = vld [vmem:[%s17006_s18 + $0xac4] sm:$0xf0] }
 0x4c5   : > { %v14629_v3 = vld [vmem:[%s17006_s18 + $0xc00] sm:$0xf]  ;;  %v14118_v49 = vor.u32 %v16124_v47, %v14117_v23  ;;  %9142 = vmatpush.bf16.msra.mxu1 %v13606_v12  ;;  %v13287_v23 = vld [vmem:[%s17006_s18 + $0x1c0] sm:$0xf0]  ;;  %v14378_v47 = vor.u32 %v16180_v43, %v14375_v44  ;;  %v14314_v37 = vor.u32 %v16164_v52, %v14311_v4  ;;  %v14573_v43 = vld [vmem:[%s17006_s18 + $0xb88] sm:$0xf] }
 0x4c6   : > { %v16252_v7 = vld [vmem:[%s17006_s18 + $0xc3c] sm:$0xf0]  ;;  %9129 = vmatmul.bf16.vlgmr.msra.gmra.mxu0 %v17500_v63  ;;  %v14823_v12 = vld [vmem:[%s17006_s18 + $0xdc0] sm:$0xf0]  ;;  %v16237_v44 = vld [vmem:[%s17006_s18 + $0xbc4] sm:$0xf0] }
 0x4c7   : > { %v14630_v61 = vor.u32 %v16252_v7, %v14629_v3  ;;  %9156 = vmatpush.bf16.msra.mxu2 %v14118_v49  ;;  %9177 = vmatpush.bf16.msrb.mxu0 %v13546_v38  ;;  %v16036_v3 = vld [vmem:[%s17006_s18 + $0x584] sm:$0xf]  ;;  %v15856_v7 = vld [vmem:[#allocation2 + $0x4] sm:$0xf]  ;;  %v13290_v49 = vor.u32 %v15908_v10, %v13287_v23  ;;  %v14509_v52 = vld [vmem:[%s17006_s18 + $0xb08] sm:$0xf] }
 0x4c8   : > { %v17514_v14 = vor.u32 %v15856_v7, %v13079_v9  ;;  %v13802_v15 = vor.u32 %v16036_v3, %v13799_v60  ;;  %v13223_v38 = vld [vmem:[%s17006_s18 + $0x140] sm:$0xf0]  ;;  %v13485_v3 = vld [vmem:[%s17006_s18 + $0x308] sm:$0xf] }
 0x4c9   : > { %9170 = vmatpush.bf16.msra.mxu3 %v14630_v61  ;;  %9191 = vmatpush.bf16.msrb.mxu1 %v14058_v16  ;;  %v15892_v61 = vld [vmem:[%s17006_s18 + $0x104] sm:$0xf]  ;;  %v15965_v7 = vld [vmem:[%s17006_s18 + $0x344] sm:$0xf0] }
 0x4ca   : > { %9157 = vmatmul.bf16.vlgmr.msra.gmra.mxu2 %v17496_v6  ;;  %9143 = vmatmul.bf16.vlgmr.msra.gmra.mxu1 %v17514_v14  ;;  %v16020_v16 = vld [vmem:[%s17006_s18 + $0x504] sm:$0xf]  ;;  %v13226_v50 = vor.u32 %v15892_v61, %v13223_v38  ;;  %v13997_v9 = vld [vmem:[%s17006_s18 + $0x708] sm:$0xf] }
 0x4cb   : > { %9205 = vmatpush.bf16.msrb.mxu2 %v14570_v48  ;;  %9178 = vmatpush.bf16.msrb.mxu0 %v13482_v41  ;;  %v14826_v48 = vor.u32 %v16292_v39, %v14823_v12  ;;  %v14759_v45 = vld [vmem:[%s17006_s18 + $0xd40] sm:$0xf0]  ;;  %v13738_v29 = vor.u32 %v16020_v16, %v13735_v58  ;;  %v16093_v60 = vld [vmem:[%s17006_s18 + $0x744] sm:$0xf0] }
 0x4cc   : > { %9171 = vmatmul.bf16.vlgmr.msra.gmra.mxu3 %v17505_v24  ;;  %v15876_v27 = vld [vmem:[%s17006_s18 + $0x84] sm:$0xf]  ;;  %v16221_v4 = vld [vmem:[%s17006_s18 + $0xb44] sm:$0xf0] }
 0x4cd   : > { %9219 = vmatpush.bf16.msrb.mxu3 %v15082_v2  ;;  %9192 = vmatpush.bf16.msrb.mxu1 %v13994_v18  ;;  %v16276_v2 = vld [vmem:[%s17006_s18 + $0xd04] sm:$0xf]  ;;  %v15021_v39 = vld [vmem:[%s17006_s18 + $0xf08] sm:$0xf] }
 0x4ce   : > { %v13159_v41 = vld [vmem:[%s17006_s18 + $0xc0] sm:$0xf0]  ;;  %v14762_v18 = vor.u32 %v16276_v2, %v14759_v45  ;;  %v16349_v12 = vld [vmem:[%s17006_s18 + $0xf44] sm:$0xf0] }
 0x4cf   : > { %9206 = vmatpush.bf16.msrb.mxu2 %v14506_v5  ;;  %9179 = vmatpush.bf16.msrb.mxu0 %v13418_v20  ;;  %v16004_v1 = vld [vmem:[%s17006_s18 + $0x484] sm:$0xf]  ;;  %v13162_v59 = vor.u32 %v15876_v27, %v13159_v41  ;;  %v13421_v61 = vld [vmem:[%s17006_s18 + $0x288] sm:$0xf] }
 0x4d0   : > { %v13671_v5 = vld [vmem:[%s17006_s18 + $0x4c0] sm:$0xf0]  ;;  %v15949_v38 = vld [vmem:[%s17006_s18 + $0x2c4] sm:$0xf0] }
 0x4d1   : > { %9220 = vmatpush.bf16.msrb.mxu3 %v15018_v19  ;;  %9193 = vmatpush.bf16.msrb.mxu1 %v13930_v8  ;;  %v16132_v35 = vld [vmem:[%s17006_s18 + $0x884] sm:$0xf]  ;;  %v13674_v11 = vor.u32 %v16004_v1, %v13671_v5  ;;  %v13933_v16 = vld [vmem:[%s17006_s18 + $0x688] sm:$0xf] }
 0x4d2   : > { %v14183_v32 = vld [vmem:[%s17006_s18 + $0x8c0] sm:$0xf0]  ;;  %v16077_v58 = vld [vmem:[%s17006_s18 + $0x6c4] sm:$0xf0] }
 0x4d3   : > { %9207 = vmatpush.bf16.msrb.mxu2 %v14442_v51  ;;  %9180 = vmatpush.bf16.msrb.mxu0 %v13354_v31  ;;  %v16260_v21 = vld [vmem:[%s17006_s18 + $0xc84] sm:$0xf]  ;;  %v14186_v0 = vor.u32 %v16132_v35, %v14183_v32  ;;  %v13549_v51 = vld [vmem:[%s17006_s18 + $0x388] sm:$0xf] }
 0x4d4   : > { %v14695_v19 = vld [vmem:[%s17006_s18 + $0xcc0] sm:$0xf0]  ;;  %v16365_v31 = vld [vmem:[%s17006_s18 + $0xfc4] sm:$0xf0]  ;;  %v13550_v23 = vor.u32 %v15981_v57, %v13549_v51 }
 0x4d5   : > { %9221 = vmatpush.bf16.msrb.mxu3 %v14954_v34  ;;  %9194 = vmatpush.bf16.msrb.mxu1 %v13866_v22  ;;  %v15860_v17 = vld [vmem:[%s17006_s18 + $0x4] sm:$0xf]  ;;  %v14698_v62 = vor.u32 %v16260_v21, %v14695_v19  ;;  %v16109_v34 = vld [vmem:[%s17006_s18 + $0x7c4] sm:$0xf0] }
 0x4d6   : > { %v13095_v55 = vld [vmem:[%s17006_s18 + $0x40] sm:$0xf0]  ;;  %v14062_v22 = vor.u32 %v16109_v34, %v14061_v33  ;;  %v14957_v2 = vld [vmem:[%s17006_s18 + $0xe88] sm:$0xf] }
 0x4d7   : > { %9208 = vmatpush.bf16.msrb.mxu2 %v14378_v47  ;;  %9181 = vmatpush.bf16.msrb.mxu0 %v13290_v49  ;;  %v15988_v30 = vld [vmem:[%s17006_s18 + $0x404] sm:$0xf]  ;;  %v13098_v53 = vor.u32 %v15860_v17, %v13095_v55  ;;  %v14574_v47 = vor.u32 %v16237_v44, %v14573_v43  ;;  %v13486_v49 = vor.u32 %v15965_v7, %v13485_v3  ;;  %v16333_v45 = vld [vmem:[%s17006_s18 + $0xec4] sm:$0xf0] }
 0x4d8   : > { %v13607_v20 = vld [vmem:[%s17006_s18 + $0x440] sm:$0xf0]  ;;  %v13357_v27 = vld [vmem:[%s17006_s18 + $0x208] sm:$0xf] }
 0x4d9   : > { %9222 = vmatpush.bf16.msrb.mxu3 %v14890_v42  ;;  %9195 = vmatpush.bf16.msrb.mxu1 %v13802_v15  ;;  %v16116_v13 = vld [vmem:[%s17006_s18 + $0x804] sm:$0xf]  ;;  %v13610_v36 = vor.u32 %v15988_v30, %v13607_v20  ;;  %v15086_v42 = vor.u32 %v16365_v31, %v15085_v54  ;;  %v13998_v15 = vor.u32 %v16093_v60, %v13997_v9  ;;  %v15933_v41 = vld [vmem:[%s17006_s18 + $0x244] sm:$0xf0] }
 0x4da   : > { %v14119_v40 = vld [vmem:[%s17006_s18 + $0x840] sm:$0xf0]  ;;  %v13869_v1 = vld [vmem:[%s17006_s18 + $0x608] sm:$0xf] }
 0x4db   : > { %9209 = vmatpush.bf16.msrb.mxu2 %v14314_v37  ;;  %9182 = vmatpush.bf16.msrb.mxu0 %v13226_v50  ;;  %v16244_v28 = vld [vmem:[%s17006_s18 + $0xc04] sm:$0xf]  ;;  %v14122_v25 = vor.u32 %v16116_v13, %v14119_v40  ;;  %v14510_v37 = vor.u32 %v16221_v4, %v14509_v52  ;;  %v13422_v50 = vor.u32 %v15949_v38, %v13421_v61  ;;  %v16061_v5 = vld [vmem:[%s17006_s18 + $0x644] sm:$0xf0] }
 0x4dc   : > { %v14631_v8 = vld [vmem:[%s17006_s18 + $0xc40] sm:$0xf0]  ;;  %v14381_v35 = vld [vmem:[%s17006_s18 + $0xa08] sm:$0xf]  ;;  %v13870_v17 = vor.u32 %v16061_v5, %v13869_v1  ;;  %v16229_v1 = vld [vmem:[%s17006_s18 + $0xb8c] sm:$0xf] }
 0x4dd   : > { %9223 = vmatpush.bf16.msrb.mxu3 %v14826_v48  ;;  %9196 = vmatpush.bf16.msrb.mxu1 %v13738_v29  ;;  %v14634_v10 = vor.u32 %v16244_v28, %v14631_v8  ;;  %v15022_v48 = vor.u32 %v16349_v12, %v15021_v39  ;;  %v13934_v29 = vor.u32 %v16077_v58, %v13933_v16  ;;  %v16189_v32 = vld [vmem:[%s17006_s18 + $0xa44] sm:$0xf0] }
 0x4de   : > { %v14893_v21 = vld [vmem:[%s17006_s18 + $0xe08] sm:$0xf]  ;;  %v14382_v55 = vor.u32 %v16189_v32, %v14381_v35  ;;  %v16357_v32 = vld [vmem:[%s17006_s18 + $0xf8c] sm:$0xf] }
 0x4df   : > { %9210 = vmatpush.bf16.msrb.mxu2 %v14250_v26  ;;  %9183 = vmatpush.bf16.msrb.mxu0 %v13162_v59  ;;  %v14446_v26 = vor.u32 %v16205_v56, %v14445_v46  ;;  %v16317_v19 = vld [vmem:[%s17006_s18 + $0xe44] sm:$0xf0]  ;;  %v13358_v59 = vor.u32 %v15933_v41, %v13357_v27  ;;  %v14063_v41 = vld [vmem:[%s17006_s18 + $0x7c8] sm:$0xf0] }
 0x4e0   : > { %v13805_v30 = vld [vmem:[%s17006_s18 + $0x588] sm:$0xf]  ;;  %v14894_v20 = vor.u32 %v16317_v19, %v14893_v21  ;;  %v15087_v21 = vld [vmem:[%s17006_s18 + $0xfc8] sm:$0xf0] }
 0x4e1   : > { %9224 = vmatpush.bf16.msrb.mxu3 %v14762_v18  ;;  %9197 = vmatpush.bf16.msrb.mxu1 %v13674_v11  ;;  %v14958_v18 = vor.u32 %v16333_v45, %v14957_v2  ;;  %v13293_v11 = vld [vmem:[%s17006_s18 + $0x188] sm:$0xf] }
 0x4e2   : > { %v16045_v13 = vld [vmem:[%s17006_s18 + $0x5c4] sm:$0xf0] }
 0x4e3   : > { %9211 = vmatpush.bf16.msrb.mxu2 %v14186_v0  ;;  %9184 = vmatpush.bf16.msrb.mxu0 %v13098_v53  ;;  %v15917_v0 = vld [vmem:[%s17006_s18 + $0x1c4] sm:$0xf0]  ;;  %v13806_v57 = vor.u32 %v16045_v13, %v13805_v30  ;;  %v16085_v30 = vld [vmem:[%s17006_s18 + $0x70c] sm:$0xf] }
 0x4e4   : > { %v16173_v40 = vld [vmem:[%s17006_s18 + $0x9c4] sm:$0xf0]  ;;  %v13294_v51 = vor.u32 %v15917_v0, %v13293_v11  ;;  %v15957_v11 = vld [vmem:[%s17006_s18 + $0x30c] sm:$0xf] }
 0x4e5   : > { %9225 = vmatpush.bf16.msrb.mxu3 %v14698_v62  ;;  %9198 = vmatpush.bf16.msrb.mxu1 %v13610_v36  ;;  %v14317_v62 = vld [vmem:[%s17006_s18 + $0x988] sm:$0xf]  ;;  %v13487_v0 = vld [vmem:[%s17006_s18 + $0x348] sm:$0xf0] }
 0x4e6   : > { %9185 = vmatmul.bf16.vlgmr.msrb.gmra.mxu0 %v17500_v63  ;;  %v14829_v28 = vld [vmem:[%s17006_s18 + $0xd88] sm:$0xf]  ;;  %v14318_v33 = vor.u32 %v16173_v40, %v14317_v62  ;;  %v13999_v13 = vld [vmem:[%s17006_s18 + $0x748] sm:$0xf0] }
 0x4e7   : > { %9212 = vmatpush.bf16.msrb.mxu2 %v14122_v25  ;;  %9233 = vmatpush.bf16.msra.mxu0 %v13550_v23  ;;  %v16301_v8 = vld [vmem:[%s17006_s18 + $0xdc4] sm:$0xf0]  ;;  %v16213_v62 = vld [vmem:[%s17006_s18 + $0xb0c] sm:$0xf] }
 0x4e8   : > { %9199 = vmatmul.bf16.vlgmr.msrb.gmra.mxu1 %v17514_v14  ;;  %v13229_v53 = vld [vmem:[%s17006_s18 + $0x108] sm:$0xf]  ;;  %v14830_v44 = vor.u32 %v16301_v8, %v14829_v28  ;;  %v14511_v40 = vld [vmem:[%s17006_s18 + $0xb48] sm:$0xf0] }
 0x4e9   : > { %9226 = vmatpush.bf16.msrb.mxu3 %v14634_v10  ;;  %9247 = vmatpush.bf16.msra.mxu1 %v14062_v22  ;;  %v15901_v34 = vld [vmem:[%s17006_s18 + $0x144] sm:$0xf0]  ;;  %v16341_v28 = vld [vmem:[%s17006_s18 + $0xf0c] sm:$0xf] }
 0x4ea   : > { %9213 = vmatmul.bf16.vlgmr.msrb.gmra.mxu2 %v17496_v6  ;;  %v13741_v43 = vld [vmem:[%s17006_s18 + $0x508] sm:$0xf]  ;;  %v13230_v23 = vor.u32 %v15901_v34, %v13229_v53  ;;  %v15023_v8 = vld [vmem:[%s17006_s18 + $0xf48] sm:$0xf0] }
 0x4eb   : > { %9261 = vmatpush.bf16.msra.mxu2 %v14574_v47  ;;  %9234 = vmatpush.bf16.msra.mxu0 %v13486_v49  ;;  %v16029_v36 = vld [vmem:[%s17006_s18 + $0x544] sm:$0xf0]  ;;  %v15941_v53 = vld [vmem:[%s17006_s18 + $0x28c] sm:$0xf] }
 0x4ec   : > { %9227 = vmatmul.bf16.vlgmr.msrb.gmra.mxu3 %v17505_v24  ;;  %v14253_v25 = vld [vmem:[%s17006_s18 + $0x908] sm:$0xf]  ;;  %v13742_v22 = vor.u32 %v16029_v36, %v13741_v43  ;;  %v13423_v34 = vld [vmem:[%s17006_s18 + $0x2c8] sm:$0xf0] }
 0x4ed   : > { %9275 = vmatpush.bf16.msra.mxu3 %v15086_v42  ;;  %9248 = vmatpush.bf16.msra.mxu1 %v13998_v15  ;;  %v16157_v54 = vld [vmem:[%s17006_s18 + $0x944] sm:$0xf0]  ;;  %v16069_v43 = vld [vmem:[%s17006_s18 + $0x68c] sm:$0xf] }
 0x4ee   : > { %v14765_v31 = vld [vmem:[%s17006_s18 + $0xd08] sm:$0xf]  ;;  %v14254_v47 = vor.u32 %v16157_v54, %v14253_v25  ;;  %v13935_v36 = vld [vmem:[%s17006_s18 + $0x6c8] sm:$0xf0] }
 0x4ef   : > { %9262 = vmatpush.bf16.msra.mxu2 %v14510_v37  ;;  %9235 = vmatpush.bf16.msra.mxu0 %v13422_v50  ;;  %v16285_v10 = vld [vmem:[%s17006_s18 + $0xd44] sm:$0xf0]  ;;  %v15973_v50 = vld [vmem:[%s17006_s18 + $0x38c] sm:$0xf] }
 0x4f0   : > { %v13165_v3 = vld [vmem:[%s17006_s18 + $0x88] sm:$0xf]  ;;  %v14766_v42 = vor.u32 %v16285_v10, %v14765_v31  ;;  %v16197_v25 = vld [vmem:[%s17006_s18 + $0xa8c] sm:$0xf] }
 0x4f1   : > { %9276 = vmatpush.bf16.msra.mxu3 %v15022_v48  ;;  %9249 = vmatpush.bf16.msra.mxu1 %v13934_v29  ;;  %v15885_v7 = vld [vmem:[%s17006_s18 + $0xc4] sm:$0xf0]  ;;  %v13551_v29 = vld [vmem:[%s17006_s18 + $0x3c8] sm:$0xf0] }
 0x4f2   : > { %v13677_v9 = vld [vmem:[%s17006_s18 + $0x488] sm:$0xf]  ;;  %v13166_v49 = vor.u32 %v15885_v7, %v13165_v3  ;;  %v14447_v54 = vld [vmem:[%s17006_s18 + $0xac8] sm:$0xf0] }
 0x4f3   : > { %9263 = vmatpush.bf16.msra.mxu2 %v14446_v26  ;;  %9236 = vmatpush.bf16.msra.mxu0 %v13358_v59  ;;  %v16013_v60 = vld [vmem:[%s17006_s18 + $0x4c4] sm:$0xf0]  ;;  %v16101_v26 = vld [vmem:[%s17006_s18 + $0x78c] sm:$0xf]  ;;  %v13554_v59 = vor.u32 %v15973_v50, %v13551_v29 }
 0x4f4   : > { %v14189_v52 = vld [vmem:[%s17006_s18 + $0x888] sm:$0xf]  ;;  %v13678_v61 = vor.u32 %v16013_v60, %v13677_v9  ;;  %v16325_v31 = vld [vmem:[%s17006_s18 + $0xe8c] sm:$0xf] }
 0x4f5   : > { %9277 = vmatpush.bf16.msra.mxu3 %v14958_v18  ;;  %9250 = vmatpush.bf16.msra.mxu1 %v13870_v17  ;;  %v16141_v4 = vld [vmem:[%s17006_s18 + $0x8c4] sm:$0xf0]  ;;  %v14575_v18 = vld [vmem:[%s17006_s18 + $0xbc8] sm:$0xf0]  ;;  %v14066_v17 = vor.u32 %v16101_v26, %v14063_v41 }
 0x4f6   : > { %v14701_v39 = vld [vmem:[%s17006_s18 + $0xc88] sm:$0xf]  ;;  %v14190_v38 = vor.u32 %v16141_v4, %v14189_v52  ;;  %v14959_v10 = vld [vmem:[%s17006_s18 + $0xec8] sm:$0xf0] }
 0x4f7   : > { %9264 = vmatpush.bf16.msra.mxu2 %v14382_v55  ;;  %9237 = vmatpush.bf16.msra.mxu0 %v13294_v51  ;;  %v16269_v12 = vld [vmem:[%s17006_s18 + $0xcc4] sm:$0xf0]  ;;  %v14578_v55 = vor.u32 %v16229_v1, %v14575_v18  ;;  %v13490_v51 = vor.u32 %v15957_v11, %v13487_v0  ;;  %v15925_v3 = vld [vmem:[%s17006_s18 + $0x20c] sm:$0xf] }
 0x4f8   : > { %v13101_v15 = vld [vmem:[%s17006_s18 + $0x8] sm:$0xf]  ;;  %v14702_v46 = vor.u32 %v16269_v12, %v14701_v39  ;;  %v13359_v7 = vld [vmem:[%s17006_s18 + $0x248] sm:$0xf0] }
 0x4f9   : > { %9278 = vmatpush.bf16.msra.mxu3 %v14894_v20  ;;  %9251 = vmatpush.bf16.msra.mxu1 %v13806_v57  ;;  %v15869_v37 = vld [vmem:[%s17006_s18 + $0x44] sm:$0xf0]  ;;  %v15090_v20 = vor.u32 %v16357_v32, %v15087_v21  ;;  %v14002_v57 = vor.u32 %v16085_v30, %v13999_v13  ;;  %v16053_v9 = vld [vmem:[%s17006_s18 + $0x60c] sm:$0xf] }
 0x4fa   : > { %v13613_v16 = vld [vmem:[%s17006_s18 + $0x408] sm:$0xf]  ;;  %v13102_v27 = vor.u32 %v15869_v37, %v13101_v15  ;;  %v13871_v60 = vld [vmem:[%s17006_s18 + $0x648] sm:$0xf0] }
 0x4fb   : > { %9265 = vmatpush.bf16.msra.mxu2 %v14318_v33  ;;  %9238 = vmatpush.bf16.msra.mxu0 %v13230_v23  ;;  %v15997_v48 = vld [vmem:[%s17006_s18 + $0x444] sm:$0xf0]  ;;  %v14514_v33 = vor.u32 %v16213_v62, %v14511_v40  ;;  %v13426_v23 = vor.u32 %v15941_v53, %v13423_v34  ;;  %v16181_v52 = vld [vmem:[%s17006_s18 + $0xa0c] sm:$0xf]  ;;  %v13874_v15 = vor.u32 %v16053_v9, %v13871_v60  ;;  %v14581_v9 = vld [vmem:[%s17006_s18 + $0xb90] sm:$0xf] }
 0x4fc   : > { %v14125_v58 = vld [vmem:[%s17006_s18 + $0x808] sm:$0xf]  ;;  %v13614_v5 = vor.u32 %v15997_v48, %v13613_v16  ;;  %v14383_v4 = vld [vmem:[%s17006_s18 + $0xa48] sm:$0xf0] }
 0x4fd   : > { %9279 = vmatpush.bf16.msra.mxu3 %v14830_v44  ;;  %9252 = vmatpush.bf16.msra.mxu1 %v13742_v22  ;;  %v16125_v56 = vld [vmem:[%s17006_s18 + $0x844] sm:$0xf0]  ;;  %v15026_v44 = vor.u32 %v16341_v28, %v15023_v8  ;;  %v13938_v22 = vor.u32 %v16069_v43, %v13935_v36  ;;  %v16309_v39 = vld [vmem:[%s17006_s18 + $0xe0c] sm:$0xf]  ;;  %v14386_v37 = vor.u32 %v16181_v52, %v14383_v4  ;;  %v15093_v4 = vld [vmem:[%s17006_s18 + $0xf90] sm:$0xf] }
 0x4fe   : > { %v14637_v2 = vld [vmem:[%s17006_s18 + $0xc08] sm:$0xf]  ;;  %v14126_v35 = vor.u32 %v16125_v56, %v14125_v58  ;;  %v14895_v12 = vld [vmem:[%s17006_s18 + $0xe48] sm:$0xf0] }
 0x4ff   : > { %9266 = vmatpush.bf16.msra.mxu2 %v14254_v47  ;;  %v16253_v45 = vld [vmem:[%s17006_s18 + $0xc44] sm:$0xf0]  ;;  %9239 = vmatpush.bf16.msra.mxu0 %v13166_v49  ;;  %v14450_v47 = vor.u32 %v16197_v25, %v14447_v54  ;;  %v13362_v49 = vor.u32 %v15925_v3, %v13359_v7  ;;  %v16037_v16 = vld [vmem:[%s17006_s18 + $0x58c] sm:$0xf]  ;;  %v14898_v48 = vor.u32 %v16309_v39, %v14895_v12  ;;  %v16110_v7 = vld [vmem:[%s17006_s18 + $0x7cc] sm:$0xf0] }
 0x500   : > { %v14638_v19 = vor.u32 %v16253_v45, %v14637_v2  ;;  %v13807_v58 = vld [vmem:[%s17006_s18 + $0x5c8] sm:$0xf0]  ;;  %v16366_v39 = vld [vmem:[%s17006_s18 + $0xfcc] sm:$0xf0] }
 0x501   : > { %9280 = vmatpush.bf16.msra.mxu3 %v14766_v42  ;;  %9253 = vmatpush.bf16.msra.mxu1 %v13678_v61  ;;  %v14962_v42 = vor.u32 %v16325_v31, %v14959_v10  ;;  %v15909_v61 = vld [vmem:[%s17006_s18 + $0x18c] sm:$0xf]  ;;  %v13810_v29 = vor.u32 %v16037_v16, %v13807_v58  ;;  %v14005_v16 = vld [vmem:[%s17006_s18 + $0x710] sm:$0xf] }
 0x502   : > { %v14319_v56 = vld [vmem:[%s17006_s18 + $0x9c8] sm:$0xf0]  ;;  %v16094_v58 = vld [vmem:[%s17006_s18 + $0x74c] sm:$0xf0] }
 0x503   : > { %9267 = vmatpush.bf16.msra.mxu2 %v14190_v38  ;;  %9240 = vmatpush.bf16.msra.mxu0 %v13102_v27  ;;  %v13295_v38 = vld [vmem:[%s17006_s18 + $0x1c8] sm:$0xf0] }
 0x504   : > { %v16293_v2 = vld [vmem:[%s17006_s18 + $0xd8c] sm:$0xf]  ;;  %v13298_v50 = vor.u32 %v15909_v61, %v13295_v38  ;;  %v13493_v61 = vld [vmem:[%s17006_s18 + $0x310] sm:$0xf] }
 0x505   : > { %9281 = vmatpush.bf16.msra.mxu3 %v14702_v46  ;;  %9254 = vmatpush.bf16.msra.mxu1 %v13614_v5  ;;  %v16165_v46 = vld [vmem:[%s17006_s18 + $0x98c] sm:$0xf]  ;;  %v15966_v38 = vld [vmem:[%s17006_s18 + $0x34c] sm:$0xf0] }
 0x506   : > { %9241 = vmatmul.bf16.vlgmr.msra.gmra.mxu0 %v17500_v63  ;;  %v14831_v45 = vld [vmem:[%s17006_s18 + $0xdc8] sm:$0xf0]  ;;  %v14322_v26 = vor.u32 %v16165_v46, %v14319_v56  ;;  %v14517_v46 = vld [vmem:[%s17006_s18 + $0xb10] sm:$0xf] }
 0x507   : > { %9268 = vmatpush.bf16.msra.mxu2 %v14126_v35  ;;  %9289 = vmatpush.bf16.msrb.mxu0 %v13554_v59  ;;  %v15893_v27 = vld [vmem:[%s17006_s18 + $0x10c] sm:$0xf]  ;;  %v14834_v18 = vor.u32 %v16293_v2, %v14831_v45  ;;  %v16222_v56 = vld [vmem:[%s17006_s18 + $0xb4c] sm:$0xf0] }
 0x508   : > { %9255 = vmatmul.bf16.vlgmr.msra.gmra.mxu1 %v17514_v14  ;;  %v13231_v41 = vld [vmem:[%s17006_s18 + $0x148] sm:$0xf0]  ;;  %v15029_v2 = vld [vmem:[%s17006_s18 + $0xf10] sm:$0xf] }
 0x509   : > { %9282 = vmatpush.bf16.msra.mxu3 %v14638_v19  ;;  %9303 = vmatpush.bf16.msrb.mxu1 %v14066_v17  ;;  %v16021_v1 = vld [vmem:[%s17006_s18 + $0x50c] sm:$0xf]  ;;  %v13234_v59 = vor.u32 %v15893_v27, %v13231_v41  ;;  %v16350_v45 = vld [vmem:[%s17006_s18 + $0xf4c] sm:$0xf0] }
 0x50a   : > { %9269 = vmatmul.bf16.vlgmr.msra.gmra.mxu2 %v17496_v6  ;;  %v13743_v5 = vld [vmem:[%s17006_s18 + $0x548] sm:$0xf0]  ;;  %v13429_v27 = vld [vmem:[%s17006_s18 + $0x290] sm:$0xf] }
 0x50b   : > { %9317 = vmatpush.bf16.msrb.mxu2 %v14578_v55  ;;  %9290 = vmatpush.bf16.msrb.mxu0 %v13490_v51  ;;  %v16149_v35 = vld [vmem:[%s17006_s18 + $0x90c] sm:$0xf]  ;;  %v13746_v17 = vor.u32 %v16021_v1, %v13743_v5  ;;  %v15950_v41 = vld [vmem:[%s17006_s18 + $0x2cc] sm:$0xf0] }
 0x50c   : > { %9283 = vmatmul.bf16.vlgmr.msra.gmra.mxu3 %v17505_v24  ;;  %v14255_v32 = vld [vmem:[%s17006_s18 + $0x948] sm:$0xf0]  ;;  %v13941_v1 = vld [vmem:[%s17006_s18 + $0x690] sm:$0xf] }
 0x50d   : > { %9331 = vmatpush.bf16.msrb.mxu3 %v15090_v20  ;;  %9304 = vmatpush.bf16.msrb.mxu1 %v14002_v57  ;;  %v16277_v21 = vld [vmem:[%s17006_s18 + $0xd0c] sm:$0xf]  ;;  %v14258_v55 = vor.u32 %v16149_v35, %v14255_v32  ;;  %v16078_v5 = vld [vmem:[%s17006_s18 + $0x6cc] sm:$0xf0] }
 0x50e   : > { %v14767_v19 = vld [vmem:[%s17006_s18 + $0xd48] sm:$0xf0]  ;;  %v14453_v35 = vld [vmem:[%s17006_s18 + $0xa90] sm:$0xf] }
 0x50f   : > { %9318 = vmatpush.bf16.msrb.mxu2 %v14514_v33  ;;  %9291 = vmatpush.bf16.msrb.mxu0 %v13426_v23  ;;  %v15877_v11 = vld [vmem:[%s17006_s18 + $0x8c] sm:$0xf]  ;;  %v14770_v20 = vor.u32 %v16277_v21, %v14767_v19  ;;  %v13557_v23 = vld [vmem:[%s17006_s18 + $0x390] sm:$0xf] }
 0x510   : > { %v13167_v0 = vld [vmem:[%s17006_s18 + $0xc8] sm:$0xf0]  ;;  %v16206_v32 = vld [vmem:[%s17006_s18 + $0xacc] sm:$0xf0] }
 0x511   : > { %9332 = vmatpush.bf16.msrb.mxu3 %v15026_v44  ;;  %9305 = vmatpush.bf16.msrb.mxu1 %v13938_v22  ;;  %v16005_v30 = vld [vmem:[%s17006_s18 + $0x48c] sm:$0xf]  ;;  %v13170_v51 = vor.u32 %v15877_v11, %v13167_v0  ;;  %v15982_v22 = vld [vmem:[%s17006_s18 + $0x3cc] sm:$0xf0] }
 0x512   : > { %v13679_v13 = vld [vmem:[%s17006_s18 + $0x4c8] sm:$0xf0]  ;;  %v14965_v21 = vld [vmem:[%s17006_s18 + $0xe90] sm:$0xf] }
 0x513   : > { %9319 = vmatpush.bf16.msrb.mxu2 %v14450_v47  ;;  %9292 = vmatpush.bf16.msrb.mxu0 %v13362_v49  ;;  %v16133_v62 = vld [vmem:[%s17006_s18 + $0x88c] sm:$0xf]  ;;  %v13682_v53 = vor.u32 %v16005_v30, %v13679_v13  ;;  %v14069_v47 = vld [vmem:[%s17006_s18 + $0x790] sm:$0xf]  ;;  %v13558_v49 = vor.u32 %v15982_v22, %v13557_v23 }
 0x514   : > { %v14191_v40 = vld [vmem:[%s17006_s18 + $0x8c8] sm:$0xf0]  ;;  %v16334_v19 = vld [vmem:[%s17006_s18 + $0xecc] sm:$0xf0] }
 0x515   : > { %9333 = vmatpush.bf16.msrb.mxu3 %v14962_v42  ;;  %9306 = vmatpush.bf16.msrb.mxu1 %v13874_v15  ;;  %v16261_v28 = vld [vmem:[%s17006_s18 + $0xc8c] sm:$0xf]  ;;  %v14194_v34 = vor.u32 %v16133_v62, %v14191_v40  ;;  %v16238_v42 = vld [vmem:[%s17006_s18 + $0xbcc] sm:$0xf0]  ;;  %v14070_v15 = vor.u32 %v16110_v7, %v14069_v47 }
 0x516   : > { %v14703_v8 = vld [vmem:[%s17006_s18 + $0xcc8] sm:$0xf0]  ;;  %v13365_v11 = vld [vmem:[%s17006_s18 + $0x210] sm:$0xf] }
 0x517   : > { %9320 = vmatpush.bf16.msrb.mxu2 %v14386_v37  ;;  %9293 = vmatpush.bf16.msrb.mxu0 %v13298_v50  ;;  %v15861_v57 = vld [vmem:[%s17006_s18 + $0xc] sm:$0xf]  ;;  %v14706_v25 = vor.u32 %v16261_v28, %v14703_v8  ;;  %v14582_v37 = vor.u32 %v16238_v42, %v14581_v9  ;;  %v13494_v50 = vor.u32 %v15966_v38, %v13493_v61  ;;  %v15934_v0 = vld [vmem:[%s17006_s18 + $0x24c] sm:$0xf0] }
 0x518   : > { %v13103_v33 = vld [vmem:[%s17006_s18 + $0x48] sm:$0xf0]  ;;  %v13877_v30 = vld [vmem:[%s17006_s18 + $0x610] sm:$0xf] }
 0x519   : > { %9334 = vmatpush.bf16.msrb.mxu3 %v14898_v48  ;;  %9307 = vmatpush.bf16.msrb.mxu1 %v13810_v29  ;;  %v15989_v43 = vld [vmem:[%s17006_s18 + $0x40c] sm:$0xf]  ;;  %v13106_v3 = vor.u32 %v15861_v57, %v13103_v33  ;;  %v15094_v48 = vor.u32 %v16366_v39, %v15093_v4  ;;  %v14006_v29 = vor.u32 %v16094_v58, %v14005_v16  ;;  %v16062_v13 = vld [vmem:[%s17006_s18 + $0x64c] sm:$0xf0] }
 0x51a   : > { %v13615_v44 = vld [vmem:[%s17006_s18 + $0x448] sm:$0xf0]  ;;  %v14389_v62 = vld [vmem:[%s17006_s18 + $0xa10] sm:$0xf]  ;;  %v13878_v57 = vor.u32 %v16062_v13, %v13877_v30  ;;  %v16230_v30 = vld [vmem:[%s17006_s18 + $0xb94] sm:$0xf] }
 0x51b   : > { %9321 = vmatpush.bf16.msrb.mxu2 %v14322_v26  ;;  %9294 = vmatpush.bf16.msrb.mxu0 %v13234_v59  ;;  %v16117_v36 = vld [vmem:[%s17006_s18 + $0x80c] sm:$0xf]  ;;  %v13618_v60 = vor.u32 %v15989_v43, %v13615_v44  ;;  %v14518_v26 = vor.u32 %v16222_v56, %v14517_v46  ;;  %v13430_v59 = vor.u32 %v15950_v41, %v13429_v27  ;;  %v16190_v40 = vld [vmem:[%s17006_s18 + $0xa4c] sm:$0xf0] }
 0x51c   : > { %v14127_v54 = vld [vmem:[%s17006_s18 + $0x848] sm:$0xf0]  ;;  %v14901_v28 = vld [vmem:[%s17006_s18 + $0xe10] sm:$0xf]  ;;  %v14390_v33 = vor.u32 %v16190_v40, %v14389_v62  ;;  %v16358_v40 = vld [vmem:[%s17006_s18 + $0xf94] sm:$0xf] }
 0x51d   : > { %9335 = vmatpush.bf16.msrb.mxu3 %v14834_v18  ;;  %9308 = vmatpush.bf16.msrb.mxu1 %v13746_v17  ;;  %v16245_v31 = vld [vmem:[%s17006_s18 + $0xc0c] sm:$0xf]  ;;  %v14130_v52 = vor.u32 %v16117_v36, %v14127_v54  ;;  %v15030_v18 = vor.u32 %v16350_v45, %v15029_v2  ;;  %v13942_v17 = vor.u32 %v16078_v5, %v13941_v1  ;;  %v16318_v8 = vld [vmem:[%s17006_s18 + $0xe4c] sm:$0xf0] }
 0x51e   : > { %v14639_v10 = vld [vmem:[%s17006_s18 + $0xc48] sm:$0xf0]  ;;  %v13813_v43 = vld [vmem:[%s17006_s18 + $0x590] sm:$0xf]  ;;  %v14902_v44 = vor.u32 %v16318_v8, %v14901_v28  ;;  %v15095_v28 = vld [vmem:[%s17006_s18 + $0xfd0] sm:$0xf0] }
 0x51f   : > { %9322 = vmatpush.bf16.msrb.mxu2 %v14258_v55  ;;  %9295 = vmatpush.bf16.msrb.mxu0 %v13170_v51  ;;  %v14642_v12 = vor.u32 %v16245_v31, %v14639_v10  ;;  %v14454_v55 = vor.u32 %v16206_v32, %v14453_v35  ;;  %v13366_v51 = vor.u32 %v15934_v0, %v13365_v11  ;;  %v16046_v36 = vld [vmem:[%s17006_s18 + $0x5cc] sm:$0xf0]  ;;  %v14071_v0 = vld [vmem:[%s17006_s18 + $0x7d0] sm:$0xf0] }
 0x520   : > { %v16174_v54 = vld [vmem:[%s17006_s18 + $0x9cc] sm:$0xf0]  ;;  %v13814_v22 = vor.u32 %v16046_v36, %v13813_v43  ;;  %v16086_v43 = vld [vmem:[%s17006_s18 + $0x714] sm:$0xf] }
 0x521   : > { %9336 = vmatpush.bf16.msrb.mxu3 %v14770_v20  ;;  %9309 = vmatpush.bf16.msrb.mxu1 %v13682_v53  ;;  %v14966_v20 = vor.u32 %v16334_v19, %v14965_v21  ;;  %v13301_v53 = vld [vmem:[%s17006_s18 + $0x190] sm:$0xf]  ;;  %v14007_v36 = vld [vmem:[%s17006_s18 + $0x750] sm:$0xf0] }
 0x522   : > { %v14837_v31 = vld [vmem:[%s17006_s18 + $0xd90] sm:$0xf] }
 0x523   : > { %9323 = vmatpush.bf16.msrb.mxu2 %v14194_v34  ;;  %9296 = vmatpush.bf16.msrb.mxu0 %v13106_v3  ;;  %v15918_v34 = vld [vmem:[%s17006_s18 + $0x1cc] sm:$0xf0] }
 0x524   : > { %v16302_v10 = vld [vmem:[%s17006_s18 + $0xdcc] sm:$0xf0]  ;;  %v13302_v23 = vor.u32 %v15918_v34, %v13301_v53  ;;  %v15958_v53 = vld [vmem:[%s17006_s18 + $0x314] sm:$0xf] }
 0x525   : > { %9337 = vmatpush.bf16.msrb.mxu3 %v14706_v25  ;;  %9310 = vmatpush.bf16.msrb.mxu1 %v13618_v60  ;;  %v14325_v25 = vld [vmem:[%s17006_s18 + $0x990] sm:$0xf]  ;;  %v14838_v42 = vor.u32 %v16302_v10, %v14837_v31  ;;  %v13495_v34 = vld [vmem:[%s17006_s18 + $0x350] sm:$0xf0] }
 0x526   : > { %9297 = vmatmul.bf16.vlgmr.msrb.gmra.mxu0 %v17500_v63  ;;  %v14326_v47 = vor.u32 %v16174_v54, %v14325_v25  ;;  %v13237_v3 = vld [vmem:[%s17006_s18 + $0x110] sm:$0xf]  ;;  %v16214_v25 = vld [vmem:[%s17006_s18 + $0xb14] sm:$0xf] }
 0x527   : > { %9324 = vmatpush.bf16.msrb.mxu2 %v14130_v52  ;;  %9345 = vmatpush.bf16.msra.mxu0 %v13558_v49  ;;  %v15902_v7 = vld [vmem:[%s17006_s18 + $0x14c] sm:$0xf0]  ;;  %v14519_v54 = vld [vmem:[%s17006_s18 + $0xb50] sm:$0xf0] }
 0x528   : > { %9311 = vmatmul.bf16.vlgmr.msrb.gmra.mxu1 %v17514_v14  ;;  %v13749_v9 = vld [vmem:[%s17006_s18 + $0x510] sm:$0xf]  ;;  %v13238_v49 = vor.u32 %v15902_v7, %v13237_v3  ;;  %v16342_v31 = vld [vmem:[%s17006_s18 + $0xf14] sm:$0xf] }
 0x529   : > { %9338 = vmatpush.bf16.msrb.mxu3 %v14642_v12  ;;  %9359 = vmatpush.bf16.msra.mxu1 %v14070_v15  ;;  %v16030_v60 = vld [vmem:[%s17006_s18 + $0x54c] sm:$0xf0]  ;;  %v15031_v10 = vld [vmem:[%s17006_s18 + $0xf50] sm:$0xf0] }
 0x52a   : > { %9325 = vmatmul.bf16.vlgmr.msrb.gmra.mxu2 %v17496_v6  ;;  %v14261_v52 = vld [vmem:[%s17006_s18 + $0x910] sm:$0xf]  ;;  %v13750_v15 = vor.u32 %v16030_v60, %v13749_v9  ;;  %v15942_v3 = vld [vmem:[%s17006_s18 + $0x294] sm:$0xf] }
 0x52b   : > { %9373 = vmatpush.bf16.msra.mxu2 %v14582_v37  ;;  %9346 = vmatpush.bf16.msra.mxu0 %v13494_v50  ;;  %v16158_v4 = vld [vmem:[%s17006_s18 + $0x94c] sm:$0xf0]  ;;  %v13431_v7 = vld [vmem:[%s17006_s18 + $0x2d0] sm:$0xf0] }
 0x52c   : > { %9339 = vmatmul.bf16.vlgmr.msrb.gmra.mxu3 %v17505_v24  ;;  %v14773_v39 = vld [vmem:[%s17006_s18 + $0xd10] sm:$0xf]  ;;  %v14262_v37 = vor.u32 %v16158_v4, %v14261_v52  ;;  %v16070_v9 = vld [vmem:[%s17006_s18 + $0x694] sm:$0xf] }
 0x52d   : > { %9387 = vmatpush.bf16.msra.mxu3 %v15094_v48  ;;  %9360 = vmatpush.bf16.msra.mxu1 %v14006_v29  ;;  %v16286_v12 = vld [vmem:[%s17006_s18 + $0xd4c] sm:$0xf0]  ;;  %v13943_v60 = vld [vmem:[%s17006_s18 + $0x6d0] sm:$0xf0] }
 0x52e   : > { %v13173_v61 = vld [vmem:[%s17006_s18 + $0x90] sm:$0xf]  ;;  %v14774_v48 = vor.u32 %v16286_v12, %v14773_v39  ;;  %v16198_v52 = vld [vmem:[%s17006_s18 + $0xa94] sm:$0xf] }
 0x52f   : > { %9374 = vmatpush.bf16.msra.mxu2 %v14518_v26  ;;  %9347 = vmatpush.bf16.msra.mxu0 %v13430_v59  ;;  %v15886_v38 = vld [vmem:[%s17006_s18 + $0xcc] sm:$0xf0]  ;;  %v15974_v59 = vld [vmem:[%s17006_s18 + $0x394] sm:$0xf] }
 0x530   : > { %v13685_v16 = vld [vmem:[%s17006_s18 + $0x490] sm:$0xf]  ;;  %v13174_v50 = vor.u32 %v15886_v38, %v13173_v61  ;;  %v14455_v4 = vld [vmem:[%s17006_s18 + $0xad0] sm:$0xf0] }
 0x531   : > { %9388 = vmatpush.bf16.msra.mxu3 %v15030_v18  ;;  %9361 = vmatpush.bf16.msra.mxu1 %v13942_v17  ;;  %v16014_v58 = vld [vmem:[%s17006_s18 + $0x4cc] sm:$0xf0]  ;;  %v13559_v17 = vld [vmem:[%s17006_s18 + $0x3d0] sm:$0xf0] }
 0x532   : > { %v14197_v46 = vld [vmem:[%s17006_s18 + $0x890] sm:$0xf]  ;;  %v13686_v27 = vor.u32 %v16014_v58, %v13685_v16  ;;  %v16326_v39 = vld [vmem:[%s17006_s18 + $0xe94] sm:$0xf] }
 0x533   : > { %9375 = vmatpush.bf16.msra.mxu2 %v14454_v55  ;;  %9348 = vmatpush.bf16.msra.mxu0 %v13366_v51  ;;  %v16142_v56 = vld [vmem:[%s17006_s18 + $0x8cc] sm:$0xf0]  ;;  %v16102_v55 = vld [vmem:[%s17006_s18 + $0x794] sm:$0xf]  ;;  %v13562_v51 = vor.u32 %v15974_v59, %v13559_v17 }
 0x534   : > { %v14709_v2 = vld [vmem:[%s17006_s18 + $0xc90] sm:$0xf]  ;;  %v14198_v41 = vor.u32 %v16142_v56, %v14197_v46  ;;  %v14967_v12 = vld [vmem:[%s17006_s18 + $0xed0] sm:$0xf0] }
 0x535   : > { %9389 = vmatpush.bf16.msra.mxu3 %v14966_v20  ;;  %9362 = vmatpush.bf16.msra.mxu1 %v13878_v57  ;;  %v16270_v45 = vld [vmem:[%s17006_s18 + $0xccc] sm:$0xf0]  ;;  %v14583_v20 = vld [vmem:[%s17006_s18 + $0xbd0] sm:$0xf0]  ;;  %v14074_v57 = vor.u32 %v16102_v55, %v14071_v0 }
 0x536   : > { %v13109_v29 = vld [vmem:[%s17006_s18 + $0x10] sm:$0xf]  ;;  %v14710_v35 = vor.u32 %v16270_v45, %v14709_v2  ;;  %v15926_v61 = vld [vmem:[%s17006_s18 + $0x214] sm:$0xf] }
 0x537   : > { %9376 = vmatpush.bf16.msra.mxu2 %v14390_v33  ;;  %9349 = vmatpush.bf16.msra.mxu0 %v13302_v23  ;;  %v15870_v26 = vld [vmem:[%s17006_s18 + $0x4c] sm:$0xf0]  ;;  %v14586_v33 = vor.u32 %v16230_v30, %v14583_v20  ;;  %v13498_v23 = vor.u32 %v15958_v53, %v13495_v34  ;;  %v13367_v38 = vld [vmem:[%s17006_s18 + $0x250] sm:$0xf0] }
 0x538   : > { %v13621_v1 = vld [vmem:[%s17006_s18 + $0x410] sm:$0xf]  ;;  %v13110_v11 = vor.u32 %v15870_v26, %v13109_v29  ;;  %v16054_v16 = vld [vmem:[%s17006_s18 + $0x614] sm:$0xf] }
 0x539   : > { %9390 = vmatpush.bf16.msra.mxu3 %v14902_v44  ;;  %9363 = vmatpush.bf16.msra.mxu1 %v13814_v22  ;;  %v15998_v18 = vld [vmem:[%s17006_s18 + $0x44c] sm:$0xf0]  ;;  %v15098_v44 = vor.u32 %v16358_v40, %v15095_v28  ;;  %v14010_v22 = vor.u32 %v16086_v43, %v14007_v36  ;;  %v13879_v58 = vld [vmem:[%s17006_s18 + $0x650] sm:$0xf0] }
 0x53a   : > { %v14133_v5 = vld [vmem:[%s17006_s18 + $0x810] sm:$0xf]  ;;  %v13622_v13 = vor.u32 %v15998_v18, %v13621_v1  ;;  %v16182_v46 = vld [vmem:[%s17006_s18 + $0xa14] sm:$0xf]  ;;  %v13882_v26 = vor.u32 %v16054_v16, %v13879_v58 }
 0x53b   : > { %9377 = vmatpush.bf16.msra.mxu2 %v14326_v47  ;;  %9350 = vmatpush.bf16.msra.mxu0 %v13238_v49  ;;  %v16126_v32 = vld [vmem:[%s17006_s18 + $0x84c] sm:$0xf0]  ;;  %v14522_v47 = vor.u32 %v16214_v25, %v14519_v54  ;;  %v13434_v49 = vor.u32 %v15942_v3, %v13431_v7  ;;  %v14391_v56 = vld [vmem:[%s17006_s18 + $0xa50] sm:$0xf0] }
 0x53c   : > { %v14645_v21 = vld [vmem:[%s17006_s18 + $0xc10] sm:$0xf]  ;;  %v14134_v62 = vor.u32 %v16126_v32, %v14133_v5  ;;  %v16310_v2 = vld [vmem:[%s17006_s18 + $0xe14] sm:$0xf] }
 0x53d   : > { %9391 = vmatpush.bf16.msra.mxu3 %v14838_v42  ;;  %9364 = vmatpush.bf16.msra.mxu1 %v13750_v15  ;;  %v16254_v19 = vld [vmem:[%s17006_s18 + $0xc4c] sm:$0xf0]  ;;  %v15034_v42 = vor.u32 %v16342_v31, %v15031_v10  ;;  %v13946_v15 = vor.u32 %v16070_v9, %v13943_v60  ;;  %v14903_v45 = vld [vmem:[%s17006_s18 + $0xe50] sm:$0xf0] }
 0x53e   : > { %v14646_v8 = vor.u32 %v16254_v19, %v14645_v21  ;;  %v15910_v29 = vld [vmem:[%s17006_s18 + $0x194] sm:$0xf]  ;;  %v14906_v5 = vor.u32 %v16310_v2, %v14903_v45  ;;  %v15983_v2 = vld [vmem:[%s17006_s18 + $0x3d4] sm:$0xf0] }
 0x53f   : > { %9378 = vmatpush.bf16.msra.mxu2 %v14262_v37  ;;  %9351 = vmatpush.bf16.msra.mxu0 %v13174_v50  ;;  %v14458_v37 = vor.u32 %v16198_v52, %v14455_v4  ;;  %v13370_v50 = vor.u32 %v15926_v61, %v13367_v38  ;;  %v16038_v1 = vld [vmem:[%s17006_s18 + $0x594] sm:$0xf]  ;;  %v14077_v45 = vld [vmem:[%s17006_s18 + $0x798] sm:$0xf] }
 0x540   : > { %v17788_v18 = vld [vmem:[%s17014_s20] sm:$0xff] }
 0x541   : > { %9392 = vmatpush.bf16.msra.mxu3 %v14774_v48  ;;  %9365 = vmatpush.bf16.msra.mxu1 %v13686_v27  ;;  %v14970_v48 = vor.u32 %v16326_v39, %v14967_v12  ;;  %v14394_v27 = vor.u32 %v16182_v46, %v14391_v56  ;;  %v16166_v32 = vld [vmem:[%s17006_s18 + $0x994] sm:$0xf]  ;;  %v6509_v55 = vperm.slane %v17788_v18, 0  ;;  %v13565_v56 = vld [vmem:[%s17006_s18 + $0x398] sm:$0xf] }
 0x542   : > { %v14327_v21 = vld [vmem:[%s17006_s18 + $0x9d0] sm:$0xf0] }
 0x543   : > { %9379 = vmatpush.bf16.msra.mxu2 %v14198_v41  ;;  %9352 = vmatpush.bf16.msra.mxu0 %v13110_v11  ;;  %v13303_v41 = vld [vmem:[%s17006_s18 + $0x1d0] sm:$0xf0]  ;;  %v14330_v0 = vor.u32 %v16166_v32, %v14327_v21  ;;  %v15101_v21 = vld [vmem:[%s17006_s18 + $0xf98] sm:$0xf] }
 0x544   : > { %v16294_v19 = vld [vmem:[%s17006_s18 + $0xd94] sm:$0xf]  ;;  %v13306_v17 = vor.u32 %v15910_v29, %v13303_v41  ;;  %v14589_v41 = vld [vmem:[%s17006_s18 + $0xb98] sm:$0xf] }
 0x545   : > { %9393 = vmatpush.bf16.msra.mxu3 %v14710_v35  ;;  %9366 = vmatpush.bf16.msra.mxu1 %v13622_v13  ;;  %v13815_v35 = vld [vmem:[%s17006_s18 + $0x5d0] sm:$0xf0] }
 0x546   : > { %9353 = vmatmul.bf16.vlgmr.msra.gmra.mxu0 %v17500_v63  ;;  %v14839_v59 = vld [vmem:[%s17006_s18 + $0xdd0] sm:$0xf0]  ;;  %v13818_v11 = vor.u32 %v16038_v1, %v13815_v35  ;;  %v16239_v1 = vld [vmem:[%s17006_s18 + $0xbd4] sm:$0xf0] }
 0x547   : > { %9380 = vmatpush.bf16.msra.mxu2 %v14134_v62  ;;  %9401 = vmatpush.bf16.msrb.mxu0 %v13562_v51  ;;  %v15894_v30 = vld [vmem:[%s17006_s18 + $0x114] sm:$0xf]  ;;  %v14842_v62 = vor.u32 %v16294_v19, %v14839_v59  ;;  %v9144_v31 = vpop.f32.mrf.mxu1  ;;  %v16367_v19 = vld [vmem:[%s17006_s18 + $0xfd4] sm:$0xf0] }
 0x548   : > { %9367 = vmatmul.bf16.vlgmr.msra.gmra.mxu1 %v17514_v14  ;;  %v13239_v20 = vld [vmem:[%s17006_s18 + $0x150] sm:$0xf0] }
 0x549   : > { %9394 = vmatpush.bf16.msra.mxu3 %v14646_v8  ;;  %9415 = vmatpush.bf16.msrb.mxu1 %v14074_v57  ;;  %v16022_v13 = vld [vmem:[%s17006_s18 + $0x514] sm:$0xf]  ;;  %v13242_v53 = vor.u32 %v15894_v30, %v13239_v20  ;;  %v14590_v20 = vor.u32 %v16239_v1, %v14589_v41 }
 0x54a   : > { %9381 = vmatmul.bf16.vlgmr.msra.gmra.mxu2 %v17496_v6  ;;  %v13751_v40 = vld [vmem:[%s17006_s18 + $0x550] sm:$0xf0] }
 0x54b   : > { %9429 = vmatpush.bf16.msrb.mxu2 %v14586_v33  ;;  %9402 = vmatpush.bf16.msrb.mxu0 %v13498_v23  ;;  %v16150_v28 = vld [vmem:[%s17006_s18 + $0x914] sm:$0xf]  ;;  %v9130_v33 = vpop.f32.mrf.mxu0  ;;  %v13754_v43 = vor.u32 %v16022_v13, %v13751_v40  ;;  %v13501_v13 = vld [vmem:[%s17006_s18 + $0x318] sm:$0xf] }
 0x54c   : > { %9395 = vmatmul.bf16.vlgmr.msra.gmra.mxu3 %v17505_v24  ;;  %v14263_v8 = vld [vmem:[%s17006_s18 + $0x950] sm:$0xf0]  ;;  %v9131_v34 = vadd.f32 %v9130_v33, %v6509_v55  ;;  %v14013_v40 = vld [vmem:[%s17006_s18 + $0x718] sm:$0xf] }
 0x54d   : > { %9443 = vmatpush.bf16.msrb.mxu3 %v15098_v44  ;;  %9416 = vmatpush.bf16.msrb.mxu1 %v14010_v22  ;;  %v16278_v51 = vld [vmem:[%s17006_s18 + $0xd14] sm:$0xf]  ;;  %v14266_v44 = vor.u32 %v16150_v28, %v14263_v8  ;;  %v9158_v7 = vpop.f32.mrf.mxu2  ;;  %v15102_v28 = vor.u32 %v16367_v19, %v15101_v21  ;;  %v16095_v8 = vld [vmem:[%s17006_s18 + $0x754] sm:$0xf0] }
 0x54e   : > { %v14775_v57 = vld [vmem:[%s17006_s18 + $0xd50] sm:$0xf0]  ;;  %v9145_v3 = vadd.f32 %v9144_v31, %v9131_v34  ;;  %v16351_v34 = vld [vmem:[%s17006_s18 + $0xf54] sm:$0xf0] }
 0x54f   : > { %9430 = vmatpush.bf16.msrb.mxu2 %v14522_v47  ;;  %9403 = vmatpush.bf16.msrb.mxu0 %v13434_v49  ;;  %v15878_v36 = vld [vmem:[%s17006_s18 + $0x94] sm:$0xf]  ;;  %v14778_v10 = vor.u32 %v16278_v51, %v14775_v57  ;;  %v9172_v46 = vpop.f32.mrf.mxu3  ;;  %v9146_v59 = vpop.f32.mrf.mxu1  ;;  %v14525_v51 = vld [vmem:[%s17006_s18 + $0xb18] sm:$0xf] }
 0x550   : > { %v13175_v25 = vld [vmem:[%s17006_s18 + $0xd0] sm:$0xf0]  ;;  %v9159_v39 = vadd.f32 %v9158_v7, %v9145_v3  ;;  %v16223_v57 = vld [vmem:[%s17006_s18 + $0xb54] sm:$0xf0] }
 0x551   : > { %9444 = vmatpush.bf16.msrb.mxu3 %v15034_v42  ;;  %9417 = vmatpush.bf16.msrb.mxu1 %v13946_v15  ;;  %v16006_v54 = vld [vmem:[%s17006_s18 + $0x494] sm:$0xf]  ;;  %v13178_v60 = vor.u32 %v15878_v36, %v13175_v25  ;;  %v14014_v36 = vor.u32 %v16095_v8, %v14013_v40  ;;  %v14526_v25 = vor.u32 %v16223_v57, %v14525_v51  ;;  %v15951_v31 = vld [vmem:[%s17006_s18 + $0x2d4] sm:$0xf0] }
 0x552   : > { %v13687_v23 = vld [vmem:[%s17006_s18 + $0x4d0] sm:$0xf0]  ;;  %v14461_v3 = vld [vmem:[%s17006_s18 + $0xa98] sm:$0xf] }
 0x553   : > { %9431 = vmatpush.bf16.msrb.mxu2 %v14458_v37  ;;  %9404 = vmatpush.bf16.msrb.mxu0 %v13370_v50  ;;  %v16134_v22 = vld [vmem:[%s17006_s18 + $0x894] sm:$0xf]  ;;  %v13690_v12 = vor.u32 %v16006_v54, %v13687_v23  ;;  %v9173_v50 = vadd.f32 %v9172_v46, %v9159_v39  ;;  %v9132_v29 = vpop.f32.mrf.mxu0  ;;  %v13437_v54 = vld [vmem:[%s17006_s18 + $0x298] sm:$0xf] }
 0x554   : > { %v14199_v47 = vld [vmem:[%s17006_s18 + $0x8d0] sm:$0xf0]  ;;  %v16207_v7 = vld [vmem:[%s17006_s18 + $0xad4] sm:$0xf0] }
 0x555   : > { %9445 = vmatpush.bf16.msrb.mxu3 %v14970_v48  ;;  %9418 = vmatpush.bf16.msrb.mxu1 %v13882_v26  ;;  %v16262_v9 = vld [vmem:[%s17006_s18 + $0xc94] sm:$0xf]  ;;  %v14202_v49 = vor.u32 %v16134_v22, %v14199_v47  ;;  %10017 = vst [vmem:[%s17016_s0] sm:$0xff] %v9173_v50  ;;  %v16079_v47 = vld [vmem:[%s17006_s18 + $0x6d4] sm:$0xf0]  ;;  %v14462_v39 = vor.u32 %v16207_v7, %v14461_v3 }
 0x556   : > { %v14711_v42 = vld [vmem:[%s17006_s18 + $0xcd0] sm:$0xf0]  ;;  %v13309_v50 = vld [vmem:[%s17006_s18 + $0x198] sm:$0xf] }
 0x557   : > { %9432 = vmatpush.bf16.msrb.mxu2 %v14394_v27  ;;  %9405 = vmatpush.bf16.msrb.mxu0 %v13306_v17  ;;  %v15862_v52 = vld [vmem:[%s17006_s18 + $0x14] sm:$0xf]  ;;  %v14714_v38 = vor.u32 %v16262_v9, %v14711_v42  ;;  %v16111_v27 = vld [vmem:[%s17006_s18 + $0x7d4] sm:$0xf0] }
 0x558   : > { %v13111_v4 = vld [vmem:[%s17006_s18 + $0x50] sm:$0xf0]  ;;  %v14078_v30 = vor.u32 %v16111_v27, %v14077_v45  ;;  %v14973_v9 = vld [vmem:[%s17006_s18 + $0xe98] sm:$0xf] }
 0x559   : > { %9446 = vmatpush.bf16.msrb.mxu3 %v14906_v5  ;;  %9419 = vmatpush.bf16.msrb.mxu1 %v13818_v11  ;;  %v15990_v15 = vld [vmem:[%s17006_s18 + $0x414] sm:$0xf]  ;;  %v13114_v26 = vor.u32 %v15862_v52, %v13111_v4  ;;  %v9133_v5 = vadd.f32 %v9132_v29, %v6509_v55  ;;  %v13566_v11 = vor.u32 %v15983_v2, %v13565_v56  ;;  %v9160_v55 = vpop.f32.mrf.mxu2  ;;  %v16335_v42 = vld [vmem:[%s17006_s18 + $0xed4] sm:$0xf0] }
 0x55a   : > { %v13623_v37 = vld [vmem:[%s17006_s18 + $0x450] sm:$0xf0]  ;;  %v13373_v52 = vld [vmem:[%s17006_s18 + $0x218] sm:$0xf] }
 0x55b   : > { %9433 = vmatpush.bf16.msrb.mxu2 %v14330_v0  ;;  %9406 = vmatpush.bf16.msrb.mxu0 %v13242_v53  ;;  %v16118_v61 = vld [vmem:[%s17006_s18 + $0x814] sm:$0xf]  ;;  %v13626_v35 = vor.u32 %v15990_v15, %v13623_v37  ;;  %v9147_v0 = vadd.f32 %v9146_v59, %v9133_v5  ;;  %v15037_v53 = vld [vmem:[%s17006_s18 + $0xf18] sm:$0xf]  ;;  %v6510_v15 = vperm.slane %v17788_v18, 1  ;;  %v14974_v37 = vor.u32 %v16335_v42, %v14973_v9 }
 0x55c   : > { %v14135_v16 = vld [vmem:[%s17006_s18 + $0x850] sm:$0xf0]  ;;  %v15038_v22 = vor.u32 %v16351_v34, %v15037_v53  ;;  %v15919_v29 = vld [vmem:[%s17006_s18 + $0x1d4] sm:$0xf0] }
 0x55d   : > { %9447 = vmatpush.bf16.msrb.mxu3 %v14842_v62  ;;  %9420 = vmatpush.bf16.msrb.mxu1 %v13754_v43  ;;  %v16246_v48 = vld [vmem:[%s17006_s18 + $0xc14] sm:$0xf]  ;;  %v14138_v32 = vor.u32 %v16118_v61, %v14135_v16  ;;  %v15967_v62 = vld [vmem:[%s17006_s18 + $0x354] sm:$0xf0]  ;;  %v9161_v33 = vadd.f32 %v9160_v55, %v9147_v0 }
 0x55e   : > { %v14647_v58 = vld [vmem:[%s17006_s18 + $0xc50] sm:$0xf0]  ;;  %v13502_v43 = vor.u32 %v15967_v62, %v13501_v13  ;;  %v16063_v61 = vld [vmem:[%s17006_s18 + $0x654] sm:$0xf0] }
 0x55f   : > { %9434 = vmatpush.bf16.msrb.mxu2 %v14266_v44  ;;  %9407 = vmatpush.bf16.msrb.mxu0 %v13178_v60  ;;  %v14650_v17 = vor.u32 %v16246_v48, %v14647_v58  ;;  %v9174_v44 = vpop.f32.mrf.mxu3  ;;  %v13438_v60 = vor.u32 %v15951_v31, %v13437_v54  ;;  %v16191_v16 = vld [vmem:[%s17006_s18 + $0xa54] sm:$0xf0] }
 0x560   : > { %v9175_v23 = vadd.f32 %v9174_v44, %v9161_v33  ;;  %v14909_v48 = vld [vmem:[%s17006_s18 + $0xe18] sm:$0xf] }
 0x561   : > { %9448 = vmatpush.bf16.msrb.mxu3 %v14778_v10  ;;  %9421 = vmatpush.bf16.msrb.mxu1 %v13690_v12  ;;  %v13949_v10 = vld [vmem:[%s17006_s18 + $0x698] sm:$0xf] }
 0x562   : > { %10033 = vst [vmem:[%s17016_s0 + $0x80] sm:$0xff] %v9175_v23  ;;  %v13950_v4 = vor.u32 %v16079_v47, %v13949_v10  ;;  %v15935_v12 = vld [vmem:[%s17006_s18 + $0x254] sm:$0xf0] }
 0x563   : > { %9435 = vmatpush.bf16.msrb.mxu2 %v14202_v49  ;;  %9408 = vmatpush.bf16.msrb.mxu0 %v13114_v26  ;;  %v13885_v49 = vld [vmem:[%s17006_s18 + $0x618] sm:$0xf]  ;;  %v13374_v46 = vor.u32 %v15935_v12, %v13373_v52  ;;  %v9186_v56 = vpop.f32.mrf.mxu0 }
 0x564   : > { %v16319_v58 = vld [vmem:[%s17006_s18 + $0xe54] sm:$0xf0]  ;;  %v13886_v2 = vor.u32 %v16063_v61, %v13885_v49  ;;  %v9187_v27 = vadd.f32 %v9186_v56, %v6510_v15 }
 0x565   : > { %9449 = vmatpush.bf16.msrb.mxu3 %v14714_v38  ;;  %9422 = vmatpush.bf16.msrb.mxu1 %v13626_v35  ;;  %v14397_v38 = vld [vmem:[%s17006_s18 + $0xa18] sm:$0xf]  ;;  %v9200_v41 = vpop.f32.mrf.mxu1  ;;  %v14910_v1 = vor.u32 %v16319_v58, %v14909_v48 }
 0x566   : > { %9409 = vmatmul.bf16.vlgmr.msrb.gmra.mxu0 %v17500_v63  ;;  %v14398_v45 = vor.u32 %v16191_v16, %v14397_v38  ;;  %v13821_v26 = vld [vmem:[%s17006_s18 + $0x598] sm:$0xf]  ;;  %v9201_v59 = vadd.f32 %v9200_v41, %v9187_v27  ;;  %v14079_v41 = vld [vmem:[%s17006_s18 + $0x7d8] sm:$0xf0] }
 0x567   : > { %9436 = vmatpush.bf16.msrb.mxu2 %v14138_v32  ;;  %9457 = vmatpush.bf16.msra.mxu0 %v13566_v11  ;;  %v16047_v5 = vld [vmem:[%s17006_s18 + $0x5d4] sm:$0xf0] }
 0x568   : > { %9423 = vmatmul.bf16.vlgmr.msrb.gmra.mxu1 %v17514_v14  ;;  %v14333_v35 = vld [vmem:[%s17006_s18 + $0x998] sm:$0xf]  ;;  %v13822_v11 = vor.u32 %v16047_v5, %v13821_v26  ;;  %v16103_v26 = vld [vmem:[%s17006_s18 + $0x79c] sm:$0xf] }
 0x569   : > { %9450 = vmatpush.bf16.msrb.mxu3 %v14650_v17  ;;  %9471 = vmatpush.bf16.msra.mxu1 %v14078_v30  ;;  %v16175_v32 = vld [vmem:[%s17006_s18 + $0x9d4] sm:$0xf0]  ;;  %v13310_v17 = vor.u32 %v15919_v29, %v13309_v50  ;;  %v15975_v50 = vld [vmem:[%s17006_s18 + $0x39c] sm:$0xf] }
 0x56a   : > { %9437 = vmatmul.bf16.vlgmr.msrb.gmra.mxu2 %v17496_v6  ;;  %v14845_v21 = vld [vmem:[%s17006_s18 + $0xd98] sm:$0xf]  ;;  %v14334_v0 = vor.u32 %v16175_v32, %v14333_v35  ;;  %v13567_v29 = vld [vmem:[%s17006_s18 + $0x3d8] sm:$0xf0] }
 0x56b   : > { %9485 = vmatpush.bf16.msra.mxu2 %v14590_v20  ;;  %9458 = vmatpush.bf16.msra.mxu0 %v13502_v43  ;;  %v16303_v19 = vld [vmem:[%s17006_s18 + $0xdd4] sm:$0xf0]  ;;  %v14591_v5 = vld [vmem:[%s17006_s18 + $0xbd8] sm:$0xf0] }
 0x56c   : > { %9451 = vmatmul.bf16.vlgmr.msrb.gmra.mxu3 %v17505_v24  ;;  %v13245_v55 = vld [vmem:[%s17006_s18 + $0x118] sm:$0xf]  ;;  %v14846_v62 = vor.u32 %v16303_v19, %v14845_v21  ;;  %v16359_v19 = vld [vmem:[%s17006_s18 + $0xf9c] sm:$0xf] }
 0x56d   : > { %9499 = vmatpush.bf16.msra.mxu3 %v15102_v28  ;;  %9472 = vmatpush.bf16.msra.mxu1 %v14014_v36  ;;  %v15903_v30 = vld [vmem:[%s17006_s18 + $0x154] sm:$0xf0]  ;;  %v9214_v13 = vpop.f32.mrf.mxu2  ;;  %v9188_v36 = vpop.f32.mrf.mxu0 }
 0x56e   : > { %v13757_v20 = vld [vmem:[%s17006_s18 + $0x518] sm:$0xf]  ;;  %v9215_v51 = vadd.f32 %v9214_v13, %v9201_v59  ;;  %v13246_v34 = vor.u32 %v15903_v30, %v13245_v55  ;;  %v9202_v47 = vpop.f32.mrf.mxu1  ;;  %v15103_v59 = vld [vmem:[%s17006_s18 + $0xfd8] sm:$0xf0] }
 0x56f   : > { %9486 = vmatpush.bf16.msra.mxu2 %v14526_v25  ;;  %9459 = vmatpush.bf16.msra.mxu0 %v13438_v60  ;;  %v16031_v40 = vld [vmem:[%s17006_s18 + $0x554] sm:$0xf0]  ;;  %v9228_v57 = vpop.f32.mrf.mxu3  ;;  %v15959_v30 = vld [vmem:[%s17006_s18 + $0x31c] sm:$0xf] }
 0x570   : > { %v14269_v28 = vld [vmem:[%s17006_s18 + $0x918] sm:$0xf]  ;;  %v9229_v44 = vadd.f32 %v9228_v57, %v9215_v51  ;;  %v13758_v25 = vor.u32 %v16031_v40, %v13757_v20  ;;  %v13503_v20 = vld [vmem:[%s17006_s18 + $0x358] sm:$0xf0] }
 0x571   : > { %9500 = vmatpush.bf16.msra.mxu3 %v15038_v22  ;;  %9473 = vmatpush.bf16.msra.mxu1 %v13950_v4  ;;  %v16159_v8 = vld [vmem:[%s17006_s18 + $0x954] sm:$0xf0]  ;;  %v9189_v22 = vadd.f32 %v9188_v36, %v6510_v15  ;;  %v16087_v13 = vld [vmem:[%s17006_s18 + $0x71c] sm:$0xf] }
 0x572   : > { %v14781_v33 = vld [vmem:[%s17006_s18 + $0xd18] sm:$0xf]  ;;  %v14270_v54 = vor.u32 %v16159_v8, %v14269_v28  ;;  %10018 = vst [vmem:[%s17016_s0 + $0x8] sm:$0xff] %v9229_v44  ;;  %v14015_v40 = vld [vmem:[%s17006_s18 + $0x758] sm:$0xf0] }
 0x573   : > { %9487 = vmatpush.bf16.msra.mxu2 %v14462_v39  ;;  %9460 = vmatpush.bf16.msra.mxu0 %v13374_v46  ;;  %v16287_v53 = vld [vmem:[%s17006_s18 + $0xd54] sm:$0xf0]  ;;  %v9203_v52 = vadd.f32 %v9202_v47, %v9189_v22  ;;  %v16215_v28 = vld [vmem:[%s17006_s18 + $0xb1c] sm:$0xf] }
 0x574   : > { %v13181_v43 = vld [vmem:[%s17006_s18 + $0x98] sm:$0xf]  ;;  %v14782_v3 = vor.u32 %v16287_v53, %v14781_v33  ;;  %v14527_v8 = vld [vmem:[%s17006_s18 + $0xb58] sm:$0xf0]  ;;  %v13506_v33 = vor.u32 %v15959_v30, %v13503_v20  ;;  %v14018_v53 = vor.u32 %v16087_v13, %v14015_v40 }
 0x575   : > { %9501 = vmatpush.bf16.msra.mxu3 %v14974_v37  ;;  %9474 = vmatpush.bf16.msra.mxu1 %v13886_v2  ;;  %v15887_v31 = vld [vmem:[%s17006_s18 + $0xd4] sm:$0xf0]  ;;  %v9216_v16 = vpop.f32.mrf.mxu2  ;;  %v16343_v51 = vld [vmem:[%s17006_s18 + $0xf1c] sm:$0xf] }
 0x576   : > { %v13693_v10 = vld [vmem:[%s17006_s18 + $0x498] sm:$0xf]  ;;  %v13182_v4 = vor.u32 %v15887_v31, %v13181_v43  ;;  %v9217_v2 = vadd.f32 %v9216_v16, %v9203_v52  ;;  %v15039_v57 = vld [vmem:[%s17006_s18 + $0xf58] sm:$0xf0]  ;;  %v6511_v52 = vperm.slane %v17788_v18, 2 }
 0x577   : > { %9488 = vmatpush.bf16.msra.mxu2 %v14398_v45  ;;  %9461 = vmatpush.bf16.msra.mxu0 %v13310_v17  ;;  %v16015_v23 = vld [vmem:[%s17006_s18 + $0x4d4] sm:$0xf0]  ;;  %v9230_v45 = vpop.f32.mrf.mxu3  ;;  %v15943_v43 = vld [vmem:[%s17006_s18 + $0x29c] sm:$0xf] }
 0x578   : > { %v14205_v7 = vld [vmem:[%s17006_s18 + $0x898] sm:$0xf]  ;;  %v13694_v49 = vor.u32 %v16015_v23, %v13693_v10  ;;  %v9231_v35 = vadd.f32 %v9230_v45, %v9217_v2  ;;  %v13439_v44 = vld [vmem:[%s17006_s18 + $0x2d8] sm:$0xf0] }
 0x579   : > { %9502 = vmatpush.bf16.msra.mxu3 %v14910_v1  ;;  %9475 = vmatpush.bf16.msra.mxu1 %v13822_v11  ;;  %v16143_v9 = vld [vmem:[%s17006_s18 + $0x8d4] sm:$0xf0]  ;;  %v16231_v1 = vld [vmem:[%s17006_s18 + $0xb9c] sm:$0xf]  ;;  %v13570_v11 = vor.u32 %v15975_v50, %v13567_v29  ;;  %v13442_v47 = vor.u32 %v15943_v43, %v13439_v44 }
 0x57a   : > { %v14717_v42 = vld [vmem:[%s17006_s18 + $0xc98] sm:$0xf]  ;;  %v14206_v15 = vor.u32 %v16143_v9, %v14205_v7  ;;  %10034 = vst [vmem:[%s17016_s0 + $0x88] sm:$0xff] %v9231_v35  ;;  %v14594_v55 = vor.u32 %v16231_v1, %v14591_v5  ;;  %v16071_v36 = vld [vmem:[%s17006_s18 + $0x69c] sm:$0xf] }
 0x57b   : > { %9489 = vmatpush.bf16.msra.mxu2 %v14334_v0  ;;  %v16271_v60 = vld [vmem:[%s17006_s18 + $0xcd4] sm:$0xf0]  ;;  %9462 = vmatpush.bf16.msra.mxu0 %v13246_v34  ;;  %v14082_v0 = vor.u32 %v16103_v26, %v14079_v41  ;;  %v14530_v34 = vor.u32 %v16215_v28, %v14527_v8  ;;  %v16199_v31 = vld [vmem:[%s17006_s18 + $0xa9c] sm:$0xf] }
 0x57c   : > { %v13117_v39 = vld [vmem:[%s17006_s18 + $0x18] sm:$0xf]  ;;  %v14718_v48 = vor.u32 %v16271_v60, %v14717_v42  ;;  %v14463_v10 = vld [vmem:[%s17006_s18 + $0xad8] sm:$0xf0] }
 0x57d   : > { %9503 = vmatpush.bf16.msra.mxu3 %v14846_v62  ;;  %v15871_v12 = vld [vmem:[%s17006_s18 + $0x54] sm:$0xf0]  ;;  %9476 = vmatpush.bf16.msra.mxu1 %v13758_v25  ;;  %v15106_v62 = vor.u32 %v16359_v19, %v15103_v59  ;;  %v15042_v25 = vor.u32 %v16343_v51, %v15039_v57  ;;  %v16327_v23 = vld [vmem:[%s17006_s18 + $0xe9c] sm:$0xf]  ;;  %v14466_v9 = vor.u32 %v16199_v31, %v14463_v10 }
 0x57e   : > { %v13629_v37 = vld [vmem:[%s17006_s18 + $0x418] sm:$0xf]  ;;  %v13118_v27 = vor.u32 %v15871_v12, %v13117_v39  ;;  %v14975_v22 = vld [vmem:[%s17006_s18 + $0xed8] sm:$0xf0] }
 0x57f   : > { %9490 = vmatpush.bf16.msra.mxu2 %v14270_v54  ;;  %v15999_v61 = vld [vmem:[%s17006_s18 + $0x454] sm:$0xf0]  ;;  %9463 = vmatpush.bf16.msra.mxu0 %v13182_v4  ;;  %v13951_v54 = vld [vmem:[%s17006_s18 + $0x6d8] sm:$0xf0]  ;;  %v14978_v4 = vor.u32 %v16327_v23, %v14975_v22 }
 0x580   : > { %v14141_v38 = vld [vmem:[%s17006_s18 + $0x818] sm:$0xf]  ;;  %v13630_v32 = vor.u32 %v15999_v61, %v13629_v37  ;;  %v13954_v7 = vor.u32 %v16071_v36, %v13951_v54  ;;  %v13375_v42 = vld [vmem:[%s17006_s18 + $0x258] sm:$0xf0] }
 0x581   : > { %9504 = vmatpush.bf16.msra.mxu3 %v14782_v3  ;;  %v16127_v58 = vld [vmem:[%s17006_s18 + $0x854] sm:$0xf0]  ;;  %9477 = vmatpush.bf16.msra.mxu1 %v13694_v49  ;;  %v15927_v3 = vld [vmem:[%s17006_s18 + $0x21c] sm:$0xf] }
 0x582   : > { %v14653_v46 = vld [vmem:[%s17006_s18 + $0xc18] sm:$0xf]  ;;  %v14142_v21 = vor.u32 %v16127_v58, %v14141_v38  ;;  %v16055_v60 = vld [vmem:[%s17006_s18 + $0x61c] sm:$0xf]  ;;  %v13378_v61 = vor.u32 %v15927_v3, %v13375_v42 }
 0x583   : > { %v16255_v56 = vld [vmem:[%s17006_s18 + $0xc54] sm:$0xf0]  ;;  %9491 = vmatpush.bf16.msra.mxu2 %v14206_v15  ;;  %9464 = vmatpush.bf16.msra.mxu0 %v13118_v27  ;;  %v13887_v39 = vld [vmem:[%s17006_s18 + $0x658] sm:$0xf0]  ;;  %v9242_v38 = vpop.f32.mrf.mxu0 }
 0x584   : > { %v14654_v17 = vor.u32 %v16255_v56, %v14653_v46  ;;  %v16183_v12 = vld [vmem:[%s17006_s18 + $0xa1c] sm:$0xf]  ;;  %v13890_v16 = vor.u32 %v16055_v60, %v13887_v39  ;;  %v9243_v2 = vadd.f32 %v9242_v38, %v6511_v52 }
 0x585   : > { %9505 = vmatpush.bf16.msra.mxu3 %v14718_v48  ;;  %9478 = vmatpush.bf16.msra.mxu1 %v13630_v32  ;;  %v14399_v49 = vld [vmem:[%s17006_s18 + $0xa58] sm:$0xf0]  ;;  %v9256_v45 = vpop.f32.mrf.mxu1 }
 0x586   : > { %9465 = vmatmul.bf16.vlgmr.msra.gmra.mxu0 %v17500_v63  ;;  %v16311_v15 = vld [vmem:[%s17006_s18 + $0xe1c] sm:$0xf]  ;;  %v14402_v48 = vor.u32 %v16183_v12, %v14399_v49  ;;  %v9257_v5 = vadd.f32 %v9256_v45, %v9243_v2  ;;  %v16112_v45 = vld [vmem:[%s17006_s18 + $0x7dc] sm:$0xf0] }
 0x587   : > { %9492 = vmatpush.bf16.msra.mxu2 %v14142_v21  ;;  %9513 = vmatpush.bf16.msrb.mxu0 %v13570_v11  ;;  %v14911_v37 = vld [vmem:[%s17006_s18 + $0xe58] sm:$0xf0] }
 0x588   : > { %9479 = vmatmul.bf16.vlgmr.msra.gmra.mxu1 %v17514_v14  ;;  %v15911_v58 = vld [vmem:[%s17006_s18 + $0x19c] sm:$0xf]  ;;  %v14914_v50 = vor.u32 %v16311_v15, %v14911_v37 }
 0x589   : > { %9506 = vmatpush.bf16.msra.mxu3 %v14654_v17  ;;  %9527 = vmatpush.bf16.msrb.mxu1 %v14082_v0  ;;  %v13311_v46 = vld [vmem:[%s17006_s18 + $0x1d8] sm:$0xf0] }
 0x58a   : > { %9493 = vmatmul.bf16.vlgmr.msra.gmra.mxu2 %v17496_v6  ;;  %v16039_v56 = vld [vmem:[%s17006_s18 + $0x59c] sm:$0xf]  ;;  %v13314_v35 = vor.u32 %v15911_v58, %v13311_v46  ;;  %v13573_v58 = vld [vmem:[%s17006_s18 + $0x3a0] sm:$0xf] }
 0x58b   : > { %9541 = vmatpush.bf16.msrb.mxu2 %v14594_v55  ;;  %9514 = vmatpush.bf16.msrb.mxu0 %v13506_v33  ;;  %v13823_v29 = vld [vmem:[%s17006_s18 + $0x5d8] sm:$0xf0]  ;;  %v9244_v33 = vpop.f32.mrf.mxu0  ;;  %v15984_v46 = vld [vmem:[%s17006_s18 + $0x3dc] sm:$0xf0] }
 0x58c   : > { %9507 = vmatmul.bf16.vlgmr.msra.gmra.mxu3 %v17505_v24  ;;  %v16167_v26 = vld [vmem:[%s17006_s18 + $0x99c] sm:$0xf]  ;;  %v13826_v32 = vor.u32 %v16039_v56, %v13823_v29  ;;  %v14085_v56 = vld [vmem:[%s17006_s18 + $0x7a0] sm:$0xf] }
 0x58d   : > { %9555 = vmatpush.bf16.msrb.mxu3 %v15106_v62  ;;  %9528 = vmatpush.bf16.msrb.mxu1 %v14018_v53  ;;  %v14335_v27 = vld [vmem:[%s17006_s18 + $0x9d8] sm:$0xf0]  ;;  %v9270_v11 = vpop.f32.mrf.mxu2  ;;  %v9258_v54 = vpop.f32.mrf.mxu1  ;;  %v16240_v29 = vld [vmem:[%s17006_s18 + $0xbdc] sm:$0xf0] }
 0x58e   : > { %v16295_v41 = vld [vmem:[%s17006_s18 + $0xd9c] sm:$0xf]  ;;  %v14338_v21 = vor.u32 %v16167_v26, %v14335_v27  ;;  %v9271_v13 = vadd.f32 %v9270_v11, %v9257_v5  ;;  %v16368_v5 = vld [vmem:[%s17006_s18 + $0xfdc] sm:$0xf0] }
 0x58f   : > { %9542 = vmatpush.bf16.msrb.mxu2 %v14530_v34  ;;  %9515 = vmatpush.bf16.msrb.mxu0 %v13442_v47  ;;  %v14847_v1 = vld [vmem:[%s17006_s18 + $0xdd8] sm:$0xf0]  ;;  %v9284_v62 = vpop.f32.mrf.mxu3  ;;  %v14021_v11 = vld [vmem:[%s17006_s18 + $0x720] sm:$0xf] }
 0x590   : > { %v15895_v19 = vld [vmem:[%s17006_s18 + $0x11c] sm:$0xf]  ;;  %v14850_v0 = vor.u32 %v16295_v41, %v14847_v1  ;;  %v9285_v57 = vadd.f32 %v9284_v62, %v9271_v13  ;;  %v15109_v1 = vld [vmem:[%s17006_s18 + $0xfa0] sm:$0xf] }
 0x591   : > { %9556 = vmatpush.bf16.msrb.mxu3 %v15042_v25  ;;  %9529 = vmatpush.bf16.msrb.mxu1 %v13954_v7  ;;  %v13247_v59 = vld [vmem:[%s17006_s18 + $0x158] sm:$0xf0]  ;;  %v9245_v25 = vadd.f32 %v9244_v33, %v6511_v52  ;;  %v15045_v13 = vld [vmem:[%s17006_s18 + $0xf20] sm:$0xf] }
 0x592   : > { %v16023_v17 = vld [vmem:[%s17006_s18 + $0x51c] sm:$0xf]  ;;  %v13250_v8 = vor.u32 %v15895_v19, %v13247_v59  ;;  %10019 = vst [vmem:[%s17016_s0 + $0x10] sm:$0xff] %v9285_v57  ;;  %v13509_v59 = vld [vmem:[%s17006_s18 + $0x320] sm:$0xf] }
 0x593   : > { %9543 = vmatpush.bf16.msrb.mxu2 %v14466_v9  ;;  %9516 = vmatpush.bf16.msrb.mxu0 %v13378_v61  ;;  %v13759_v55 = vld [vmem:[%s17006_s18 + $0x558] sm:$0xf0]  ;;  %v9259_v3 = vadd.f32 %v9258_v54, %v9245_v25  ;;  %v16352_v62 = vld [vmem:[%s17006_s18 + $0xf5c] sm:$0xf0] }
 0x594   : > { %v16151_v30 = vld [vmem:[%s17006_s18 + $0x91c] sm:$0xf]  ;;  %v13762_v53 = vor.u32 %v16023_v17, %v13759_v55  ;;  %v15968_v17 = vld [vmem:[%s17006_s18 + $0x35c] sm:$0xf0] }
 0x595   : > { %9557 = vmatpush.bf16.msrb.mxu3 %v14978_v4  ;;  %9530 = vmatpush.bf16.msrb.mxu1 %v13890_v16  ;;  %v14271_v20 = vld [vmem:[%s17006_s18 + $0x958] sm:$0xf0]  ;;  %v9272_v49 = vpop.f32.mrf.mxu2  ;;  %v16096_v55 = vld [vmem:[%s17006_s18 + $0x75c] sm:$0xf0] }
 0x596   : > { %v16279_v40 = vld [vmem:[%s17006_s18 + $0xd1c] sm:$0xf]  ;;  %v14274_v34 = vor.u32 %v16151_v30, %v14271_v20  ;;  %v9273_v16 = vadd.f32 %v9272_v49, %v9259_v3  ;;  %v14533_v30 = vld [vmem:[%s17006_s18 + $0xb20] sm:$0xf]  ;;  %v6512_v3 = vperm.slane %v17788_v18, 3 }
 0x597   : > { %9544 = vmatpush.bf16.msrb.mxu2 %v14402_v48  ;;  %v14783_v28 = vld [vmem:[%s17006_s18 + $0xd58] sm:$0xf0]  ;;  %9517 = vmatpush.bf16.msrb.mxu0 %v13314_v35  ;;  %v9286_v48 = vpop.f32.mrf.mxu3  ;;  %v16224_v20 = vld [vmem:[%s17006_s18 + $0xb5c] sm:$0xf0] }
 0x598   : > { %v15879_v51 = vld [vmem:[%s17006_s18 + $0x9c] sm:$0xf]  ;;  %v14786_v31 = vor.u32 %v16279_v40, %v14783_v28  ;;  %v9287_v26 = vadd.f32 %v9286_v48, %v9273_v16  ;;  %v13510_v40 = vor.u32 %v15968_v17, %v13509_v59  ;;  %v14022_v28 = vor.u32 %v16096_v55, %v14021_v11  ;;  %v15952_v57 = vld [vmem:[%s17006_s18 + $0x2dc] sm:$0xf0] }
 0x599   : > { %9558 = vmatpush.bf16.msrb.mxu3 %v14914_v50  ;;  %9531 = vmatpush.bf16.msrb.mxu1 %v13826_v32  ;;  %v13183_v43 = vld [vmem:[%s17006_s18 + $0xd8] sm:$0xf0]  ;;  %v14597_v50 = vld [vmem:[%s17006_s18 + $0xba0] sm:$0xf]  ;;  %v13574_v32 = vor.u32 %v15984_v46, %v13573_v58 }
 0x59a   : > { %v16007_v44 = vld [vmem:[%s17006_s18 + $0x49c] sm:$0xf]  ;;  %v13186_v7 = vor.u32 %v15879_v51, %v13183_v43  ;;  %10035 = vst [vmem:[%s17016_s0 + $0x90] sm:$0xff] %v9287_v26  ;;  %v14598_v19 = vor.u32 %v16240_v29, %v14597_v50  ;;  %v13445_v51 = vld [vmem:[%s17006_s18 + $0x2a0] sm:$0xf] }
 0x59b   : > { %9545 = vmatpush.bf16.msrb.mxu2 %v14338_v21  ;;  %v13695_v36 = vld [vmem:[%s17006_s18 + $0x4d8] sm:$0xf0]  ;;  %9518 = vmatpush.bf16.msrb.mxu0 %v13250_v8  ;;  %v14086_v21 = vor.u32 %v16112_v45, %v14085_v56  ;;  %v14534_v8 = vor.u32 %v16224_v20, %v14533_v30  ;;  %v13957_v33 = vld [vmem:[%s17006_s18 + $0x6a0] sm:$0xf]  ;;  %v13446_v54 = vor.u32 %v15952_v57, %v13445_v51 }
 0x59c   : > { %v16135_v10 = vld [vmem:[%s17006_s18 + $0x89c] sm:$0xf]  ;;  %v13698_v60 = vor.u32 %v16007_v44, %v13695_v36  ;;  %v14469_v43 = vld [vmem:[%s17006_s18 + $0xaa0] sm:$0xf] }
 0x59d   : > { %9559 = vmatpush.bf16.msrb.mxu3 %v14850_v0  ;;  %v14207_v23 = vld [vmem:[%s17006_s18 + $0x8d8] sm:$0xf0]  ;;  %9532 = vmatpush.bf16.msrb.mxu1 %v13762_v53  ;;  %v15110_v0 = vor.u32 %v16368_v5, %v15109_v1  ;;  %v15046_v53 = vor.u32 %v16352_v62, %v15045_v13  ;;  %v16208_v44 = vld [vmem:[%s17006_s18 + $0xadc] sm:$0xf0] }
 0x59e   : > { %v16263_v22 = vld [vmem:[%s17006_s18 + $0xc9c] sm:$0xf]  ;;  %v14210_v52 = vor.u32 %v16135_v10, %v14207_v23  ;;  %v14981_v36 = vld [vmem:[%s17006_s18 + $0xea0] sm:$0xf]  ;;  %v14470_v23 = vor.u32 %v16208_v44, %v14469_v43 }
 0x59f   : > { %v14719_v47 = vld [vmem:[%s17006_s18 + $0xcd8] sm:$0xf0]  ;;  %9546 = vmatpush.bf16.msrb.mxu2 %v14274_v34  ;;  %9519 = vmatpush.bf16.msrb.mxu0 %v13186_v7  ;;  %v16080_v34 = vld [vmem:[%s17006_s18 + $0x6dc] sm:$0xf0] }
 0x5a0   : > { %v15863_v9 = vld [vmem:[%s17006_s18 + $0x1c] sm:$0xf]  ;;  %v14722_v15 = vor.u32 %v16263_v22, %v14719_v47  ;;  %v16336_v25 = vld [vmem:[%s17006_s18 + $0xedc] sm:$0xf0]  ;;  %v13958_v10 = vor.u32 %v16080_v34, %v13957_v33 }
 0x5a1   : > { %v13119_v42 = vld [vmem:[%s17006_s18 + $0x58] sm:$0xf0]  ;;  %9560 = vmatpush.bf16.msrb.mxu3 %v14786_v31  ;;  %9533 = vmatpush.bf16.msrb.mxu1 %v13698_v60  ;;  %v13381_v31 = vld [vmem:[%s17006_s18 + $0x220] sm:$0xf]  ;;  %v14982_v7 = vor.u32 %v16336_v25, %v14981_v36 }
 0x5a2   : > { %v15991_v4 = vld [vmem:[%s17006_s18 + $0x41c] sm:$0xf]  ;;  %v13122_v2 = vor.u32 %v15863_v9, %v13119_v42  ;;  %v15936_v22 = vld [vmem:[%s17006_s18 + $0x25c] sm:$0xf0] }
 0x5a3   : > { %v13631_v39 = vld [vmem:[%s17006_s18 + $0x458] sm:$0xf0]  ;;  %9547 = vmatpush.bf16.msrb.mxu2 %v14210_v52  ;;  %v13893_v47 = vld [vmem:[%s17006_s18 + $0x620] sm:$0xf] }
 0x5a4   : > { %v16119_v12 = vld [vmem:[%s17006_s18 + $0x81c] sm:$0xf]  ;;  %v13634_v27 = vor.u32 %v15991_v4, %v13631_v39  ;;  %9520 = vmatpush.bf16.msrb.mxu0 %v13122_v2  ;;  %v16064_v9 = vld [vmem:[%s17006_s18 + $0x65c] sm:$0xf0]  ;;  %v13382_v39 = vor.u32 %v15936_v22, %v13381_v31 }
 0x5a5   : > { %v14143_v37 = vld [vmem:[%s17006_s18 + $0x858] sm:$0xf0]  ;;  %9561 = vmatpush.bf16.msrb.mxu3 %v14722_v15  ;;  %v14405_v42 = vld [vmem:[%s17006_s18 + $0xa20] sm:$0xf]  ;;  %v13894_v18 = vor.u32 %v16064_v9, %v13893_v47  ;;  %v9312_v16 = vpop.f32.mrf.mxu1 }
 0x5a6   : > { %v16247_v61 = vld [vmem:[%s17006_s18 + $0xc1c] sm:$0xf]  ;;  %v14146_v41 = vor.u32 %v16119_v12, %v14143_v37  ;;  %9534 = vmatpush.bf16.msrb.mxu1 %v13634_v27  ;;  %v16192_v60 = vld [vmem:[%s17006_s18 + $0xa5c] sm:$0xf0]  ;;  %v9298_v12 = vpop.f32.mrf.mxu0 }
 0x5a7   : > { %v14655_v38 = vld [vmem:[%s17006_s18 + $0xc58] sm:$0xf0]  ;;  %9521 = vmatmul.bf16.vlgmr.msrb.gmra.mxu0 %v17500_v63  ;;  %v14917_v52 = vld [vmem:[%s17006_s18 + $0xe20] sm:$0xf]  ;;  %v14406_v49 = vor.u32 %v16192_v60, %v14405_v42 }
 0x5a8   : > { %v14658_v35 = vor.u32 %v16247_v61, %v14655_v38  ;;  %9548 = vmatpush.bf16.msrb.mxu2 %v14146_v41  ;;  %9569 = vmatpush.bf16.msra.mxu0 %v13574_v32  ;;  %v16320_v4 = vld [vmem:[%s17006_s18 + $0xe5c] sm:$0xf0]  ;;  %v9299_v38 = vadd.f32 %v9298_v12, %v6512_v3 }
 0x5a9   : > { %9535 = vmatmul.bf16.vlgmr.msrb.gmra.mxu1 %v17514_v14  ;;  %v13317_v15 = vld [vmem:[%s17006_s18 + $0x1a0] sm:$0xf]  ;;  %v14918_v48 = vor.u32 %v16320_v4, %v14917_v52 }
 0x5aa   : > { %9562 = vmatpush.bf16.msrb.mxu3 %v14658_v35  ;;  %9583 = vmatpush.bf16.msra.mxu1 %v14086_v21  ;;  %v15920_v37 = vld [vmem:[%s17006_s18 + $0x1dc] sm:$0xf0]  ;;  %v9313_v50 = vadd.f32 %v9312_v16, %v9299_v38  ;;  %v14087_v38 = vld [vmem:[%s17006_s18 + $0x7e0] sm:$0xf0] }
 0x5ab   : > { %9549 = vmatmul.bf16.vlgmr.msrb.gmra.mxu2 %v17496_v6  ;;  %v13829_v61 = vld [vmem:[%s17006_s18 + $0x5a0] sm:$0xf]  ;;  %v13318_v29 = vor.u32 %v15920_v37, %v13317_v15  ;;  %v13575_v15 = vld [vmem:[%s17006_s18 + $0x3e0] sm:$0xf0] }
 0x5ac   : > { %9597 = vmatpush.bf16.msra.mxu2 %v14598_v19  ;;  %9570 = vmatpush.bf16.msra.mxu0 %v13510_v40  ;;  %v16048_v58 = vld [vmem:[%s17006_s18 + $0x5dc] sm:$0xf0]  ;;  %v16104_v37 = vld [vmem:[%s17006_s18 + $0x7a4] sm:$0xf] }
 0x5ad   : > { %9563 = vmatmul.bf16.vlgmr.msrb.gmra.mxu3 %v17505_v24  ;;  %v14341_v46 = vld [vmem:[%s17006_s18 + $0x9a0] sm:$0xf]  ;;  %v13830_v26 = vor.u32 %v16048_v58, %v13829_v61  ;;  %v9326_v35 = vpop.f32.mrf.mxu2  ;;  %v16232_v16 = vld [vmem:[%s17006_s18 + $0xba4] sm:$0xf] }
 0x5ae   : > { %9611 = vmatpush.bf16.msra.mxu3 %v15110_v0  ;;  %9584 = vmatpush.bf16.msra.mxu1 %v14022_v28  ;;  %v16176_v56 = vld [vmem:[%s17006_s18 + $0x9dc] sm:$0xf0]  ;;  %v9327_v17 = vadd.f32 %v9326_v35, %v9313_v50  ;;  %v9300_v62 = vpop.f32.mrf.mxu0 }
 0x5af   : > { %v14853_v2 = vld [vmem:[%s17006_s18 + $0xda0] sm:$0xf]  ;;  %v14342_v27 = vor.u32 %v16176_v56, %v14341_v46  ;;  %v9340_v11 = vpop.f32.mrf.mxu3  ;;  %v9301_v33 = vadd.f32 %v9300_v62, %v6512_v3 }
 0x5b0   : > { %9598 = vmatpush.bf16.msra.mxu2 %v14534_v8  ;;  %9571 = vmatpush.bf16.msra.mxu0 %v13446_v54  ;;  %v16304_v45 = vld [vmem:[%s17006_s18 + $0xddc] sm:$0xf0]  ;;  %v9341_v13 = vadd.f32 %v9340_v11, %v9327_v17  ;;  %v15047_v17 = vld [vmem:[%s17006_s18 + $0xf60] sm:$0xf0] }
 0x5b1   : > { %v13253_v41 = vld [vmem:[%s17006_s18 + $0x120] sm:$0xf]  ;;  %v14854_v32 = vor.u32 %v16304_v45, %v14853_v2  ;;  %v16360_v2 = vld [vmem:[%s17006_s18 + $0xfa4] sm:$0xf] }
 0x5b2   : > { %9612 = vmatpush.bf16.msra.mxu3 %v15046_v53  ;;  %9585 = vmatpush.bf16.msra.mxu1 %v13958_v10  ;;  %v15904_v1 = vld [vmem:[%s17006_s18 + $0x15c] sm:$0xf0]  ;;  %v9314_v53 = vpop.f32.mrf.mxu1  ;;  %10020 = vst [vmem:[%s17016_s0 + $0x18] sm:$0xff] %v9341_v13  ;;  %v15111_v45 = vld [vmem:[%s17006_s18 + $0xfe0] sm:$0xf0] }
 0x5b3   : > { %v13765_v5 = vld [vmem:[%s17006_s18 + $0x520] sm:$0xf]  ;;  %v13254_v30 = vor.u32 %v15904_v1, %v13253_v41  ;;  %v9315_v54 = vadd.f32 %v9314_v53, %v9301_v33  ;;  %v15960_v41 = vld [vmem:[%s17006_s18 + $0x324] sm:$0xf]  ;;  %v15114_v35 = vor.u32 %v16360_v2, %v15111_v45 }
 0x5b4   : > { %9599 = vmatpush.bf16.msra.mxu2 %v14470_v23  ;;  %9572 = vmatpush.bf16.msra.mxu0 %v13382_v39  ;;  %v16032_v21 = vld [vmem:[%s17006_s18 + $0x55c] sm:$0xf0]  ;;  %v13511_v1 = vld [vmem:[%s17006_s18 + $0x360] sm:$0xf0] }
 0x5b5   : > { %v14277_v19 = vld [vmem:[%s17006_s18 + $0x920] sm:$0xf]  ;;  %v13766_v40 = vor.u32 %v16032_v21, %v13765_v5  ;;  %v9328_v42 = vpop.f32.mrf.mxu2  ;;  %v16088_v5 = vld [vmem:[%s17006_s18 + $0x724] sm:$0xf]  ;;  %v13514_v11 = vor.u32 %v15960_v41, %v13511_v1 }
 0x5b6   : > { %9613 = vmatpush.bf16.msra.mxu3 %v14982_v7  ;;  %9586 = vmatpush.bf16.msra.mxu1 %v13894_v18  ;;  %v16160_v59 = vld [vmem:[%s17006_s18 + $0x95c] sm:$0xf0]  ;;  %v9329_v12 = vadd.f32 %v9328_v42, %v9315_v54  ;;  %v16216_v21 = vld [vmem:[%s17006_s18 + $0xb24] sm:$0xf] }
 0x5b7   : > { %v14789_v0 = vld [vmem:[%s17006_s18 + $0xd20] sm:$0xf]  ;;  %v14278_v28 = vor.u32 %v16160_v59, %v14277_v19  ;;  %v9342_v18 = vpop.f32.mrf.mxu3  ;;  %v14535_v19 = vld [vmem:[%s17006_s18 + $0xb60] sm:$0xf0] }
 0x5b8   : > { %9600 = vmatpush.bf16.msra.mxu2 %v14406_v49  ;;  %v16288_v55 = vld [vmem:[%s17006_s18 + $0xd5c] sm:$0xf0]  ;;  %9573 = vmatpush.bf16.msra.mxu0 %v13318_v29  ;;  %v15976_v49 = vld [vmem:[%s17006_s18 + $0x3a4] sm:$0xf]  ;;  %v9343_v58 = vadd.f32 %v9342_v18, %v9329_v12 }
 0x5b9   : > { %v13189_v20 = vld [vmem:[%s17006_s18 + $0xa0] sm:$0xf]  ;;  %v14790_v34 = vor.u32 %v16288_v55, %v14789_v0  ;;  %v13578_v29 = vor.u32 %v15976_v49, %v13575_v15  ;;  %v16344_v59 = vld [vmem:[%s17006_s18 + $0xf24] sm:$0xf]  ;;  %v14538_v55 = vor.u32 %v16216_v21, %v14535_v19 }
 0x5ba   : > { %9614 = vmatpush.bf16.msra.mxu3 %v14918_v48  ;;  %9587 = vmatpush.bf16.msra.mxu1 %v13830_v26  ;;  %v15888_v8 = vld [vmem:[%s17006_s18 + $0xdc] sm:$0xf0]  ;;  %v14599_v48 = vld [vmem:[%s17006_s18 + $0xbe0] sm:$0xf0]  ;;  %10036 = vst [vmem:[%s17016_s0 + $0x98] sm:$0xff] %v9343_v58  ;;  %v14090_v26 = vor.u32 %v16104_v37, %v14087_v38  ;;  %v15050_v62 = vor.u32 %v16344_v59, %v15047_v17 }
 0x5bb   : > { %v13701_v51 = vld [vmem:[%s17006_s18 + $0x4a0] sm:$0xf]  ;;  %v13190_v31 = vor.u32 %v15888_v8, %v13189_v20  ;;  %v13447_v20 = vld [vmem:[%s17006_s18 + $0x2e0] sm:$0xf0] }
 0x5bc   : > { %9601 = vmatpush.bf16.msra.mxu2 %v14342_v27  ;;  %v16016_v57 = vld [vmem:[%s17006_s18 + $0x4dc] sm:$0xf0]  ;;  %9574 = vmatpush.bf16.msra.mxu0 %v13254_v30  ;;  %v14602_v27 = vor.u32 %v16232_v16, %v14599_v48  ;;  %v15944_v30 = vld [vmem:[%s17006_s18 + $0x2a4] sm:$0xf] }
 0x5bd   : > { %v14213_v43 = vld [vmem:[%s17006_s18 + $0x8a0] sm:$0xf]  ;;  %v13702_v22 = vor.u32 %v16016_v57, %v13701_v51  ;;  %v16072_v13 = vld [vmem:[%s17006_s18 + $0x6a4] sm:$0xf]  ;;  %v13450_v33 = vor.u32 %v15944_v30, %v13447_v20 }
 0x5be   : > { %9615 = vmatpush.bf16.msra.mxu3 %v14854_v32  ;;  %v16144_v44 = vld [vmem:[%s17006_s18 + $0x8dc] sm:$0xf0]  ;;  %9588 = vmatpush.bf16.msra.mxu1 %v13766_v40  ;;  %v14023_v32 = vld [vmem:[%s17006_s18 + $0x760] sm:$0xf0] }
 0x5bf   : > { %v14725_v36 = vld [vmem:[%s17006_s18 + $0xca0] sm:$0xf]  ;;  %v14214_v47 = vor.u32 %v16144_v44, %v14213_v43  ;;  %v14026_v0 = vor.u32 %v16088_v5, %v14023_v32  ;;  %v13959_v40 = vld [vmem:[%s17006_s18 + $0x6e0] sm:$0xf0] }
 0x5c0   : > { %v16272_v25 = vld [vmem:[%s17006_s18 + $0xcdc] sm:$0xf0]  ;;  %9602 = vmatpush.bf16.msra.mxu2 %v14278_v28  ;;  %9575 = vmatpush.bf16.msra.mxu0 %v13190_v31  ;;  %v16200_v28 = vld [vmem:[%s17006_s18 + $0xaa4] sm:$0xf] }
 0x5c1   : > { %v13125_v10 = vld [vmem:[%s17006_s18 + $0x20] sm:$0xf]  ;;  %v14726_v60 = vor.u32 %v16272_v25, %v14725_v36  ;;  %v14471_v8 = vld [vmem:[%s17006_s18 + $0xae0] sm:$0xf0] }
 0x5c2   : > { %v15872_v23 = vld [vmem:[%s17006_s18 + $0x5c] sm:$0xf0]  ;;  %9616 = vmatpush.bf16.msra.mxu3 %v14790_v34  ;;  %9589 = vmatpush.bf16.msra.mxu1 %v13702_v22  ;;  %v16328_v51 = vld [vmem:[%s17006_s18 + $0xea4] sm:$0xf]  ;;  %v13962_v34 = vor.u32 %v16072_v13, %v13959_v40  ;;  %v14474_v43 = vor.u32 %v16200_v28, %v14471_v8 }
 0x5c3   : > { %v13637_v3 = vld [vmem:[%s17006_s18 + $0x420] sm:$0xf]  ;;  %v13126_v61 = vor.u32 %v15872_v23, %v13125_v10  ;;  %v14983_v57 = vld [vmem:[%s17006_s18 + $0xee0] sm:$0xf0] }
 0x5c4   : > { %v16000_v7 = vld [vmem:[%s17006_s18 + $0x45c] sm:$0xf0]  ;;  %9603 = vmatpush.bf16.msra.mxu2 %v14214_v47  ;;  %v15928_v53 = vld [vmem:[%s17006_s18 + $0x224] sm:$0xf]  ;;  %v14986_v31 = vor.u32 %v16328_v51, %v14983_v57 }
 0x5c5   : > { %v14149_v9 = vld [vmem:[%s17006_s18 + $0x820] sm:$0xf]  ;;  %v13638_v46 = vor.u32 %v16000_v7, %v13637_v3  ;;  %9576 = vmatpush.bf16.msra.mxu0 %v13126_v61  ;;  %v13383_v44 = vld [vmem:[%s17006_s18 + $0x260] sm:$0xf0]  ;;  %v9368_v18 = vpop.f32.mrf.mxu1 }
 0x5c6   : > { %v16128_v52 = vld [vmem:[%s17006_s18 + $0x85c] sm:$0xf0]  ;;  %9617 = vmatpush.bf16.msra.mxu3 %v14726_v60  ;;  %v16056_v36 = vld [vmem:[%s17006_s18 + $0x624] sm:$0xf]  ;;  %v13386_v7 = vor.u32 %v15928_v53, %v13383_v44 }
 0x5c7   : > { %v14661_v4 = vld [vmem:[%s17006_s18 + $0xc20] sm:$0xf]  ;;  %v14150_v56 = vor.u32 %v16128_v52, %v14149_v9  ;;  %9590 = vmatpush.bf16.msra.mxu1 %v13638_v46  ;;  %v13895_v10 = vld [vmem:[%s17006_s18 + $0x660] sm:$0xf0]  ;;  %v9354_v9 = vpop.f32.mrf.mxu0 }
 0x5c8   : > { %v16256_v39 = vld [vmem:[%s17006_s18 + $0xc5c] sm:$0xf0]  ;;  %9577 = vmatmul.bf16.vlgmr.msra.gmra.mxu0 %v17500_v63  ;;  %v16184_v23 = vld [vmem:[%s17006_s18 + $0xa24] sm:$0xf]  ;;  %v13898_v42 = vor.u32 %v16056_v36, %v13895_v10 }
 0x5c9   : > { %v14662_v50 = vor.u32 %v16256_v39, %v14661_v4  ;;  %9604 = vmatpush.bf16.msra.mxu2 %v14150_v56  ;;  %9625 = vmatpush.bf16.msrb.mxu0 %v13578_v29  ;;  %v18071_v25 = vld [vmem:[%s17014_s20] sm:$0xff] }
 0x5ca   : > { %9591 = vmatmul.bf16.vlgmr.msra.gmra.mxu1 %v17514_v14  ;;  %v6513_v54 = vperm.slane %v18071_v25, 4  ;;  %v14407_v22 = vld [vmem:[%s17006_s18 + $0xa60] sm:$0xf0] }
 0x5cb   : > { %9618 = vmatpush.bf16.msra.mxu3 %v14662_v50  ;;  %9639 = vmatpush.bf16.msrb.mxu1 %v14090_v26  ;;  %v16312_v47 = vld [vmem:[%s17006_s18 + $0xe24] sm:$0xf]  ;;  %v14410_v60 = vor.u32 %v16184_v23, %v14407_v22 }
 0x5cc   : > { %9605 = vmatmul.bf16.vlgmr.msra.gmra.mxu2 %v17496_v6  ;;  %v14919_v3 = vld [vmem:[%s17006_s18 + $0xe60] sm:$0xf0]  ;;  %v9355_v12 = vadd.f32 %v9354_v9, %v6513_v54 }
 0x5cd   : > { %9653 = vmatpush.bf16.msrb.mxu2 %v14602_v27  ;;  %9626 = vmatpush.bf16.msrb.mxu0 %v13514_v11  ;;  %v15912_v52 = vld [vmem:[%s17006_s18 + $0x1a4] sm:$0xf]  ;;  %v14922_v49 = vor.u32 %v16312_v47, %v14919_v3  ;;  %v9382_v29 = vpop.f32.mrf.mxu2  ;;  %v9370_v40 = vpop.f32.mrf.mxu1 }
 0x5ce   : > { %9619 = vmatmul.bf16.vlgmr.msra.gmra.mxu3 %v17505_v24  ;;  %v13319_v4 = vld [vmem:[%s17006_s18 + $0x1e0] sm:$0xf0]  ;;  %v9369_v48 = vadd.f32 %v9368_v18, %v9355_v12  ;;  %v16113_v18 = vld [vmem:[%s17006_s18 + $0x7e4] sm:$0xf0] }
 0x5cf   : > { %9667 = vmatpush.bf16.msrb.mxu3 %v15114_v35  ;;  %9640 = vmatpush.bf16.msrb.mxu1 %v14026_v0  ;;  %v16040_v39 = vld [vmem:[%s17006_s18 + $0x5a4] sm:$0xf]  ;;  %v13322_v58 = vor.u32 %v15912_v52, %v13319_v4  ;;  %v9396_v35 = vpop.f32.mrf.mxu3  ;;  %v9356_v11 = vpop.f32.mrf.mxu0  ;;  %v13581_v52 = vld [vmem:[%s17006_s18 + $0x3a8] sm:$0xf] }
 0x5d0   : > { %v13831_v15 = vld [vmem:[%s17006_s18 + $0x5e0] sm:$0xf0]  ;;  %v9383_v5 = vadd.f32 %v9382_v29, %v9369_v48  ;;  %v15985_v4 = vld [vmem:[%s17006_s18 + $0x3e4] sm:$0xf0] }
 0x5d1   : > { %9654 = vmatpush.bf16.msrb.mxu2 %v14538_v55  ;;  %9627 = vmatpush.bf16.msrb.mxu0 %v13450_v33  ;;  %v16168_v37 = vld [vmem:[%s17006_s18 + $0x9a4] sm:$0xf]  ;;  %v13834_v46 = vor.u32 %v16040_v39, %v13831_v15  ;;  %v14093_v39 = vld [vmem:[%s17006_s18 + $0x7a8] sm:$0xf] }
 0x5d2   : > { %v14343_v61 = vld [vmem:[%s17006_s18 + $0x9e0] sm:$0xf0]  ;;  %v9397_v17 = vadd.f32 %v9396_v35, %v9383_v5  ;;  %v16241_v15 = vld [vmem:[%s17006_s18 + $0xbe4] sm:$0xf0] }
 0x5d3   : > { %9668 = vmatpush.bf16.msrb.mxu3 %v15050_v62  ;;  %9641 = vmatpush.bf16.msrb.mxu1 %v13962_v34  ;;  %v16296_v38 = vld [vmem:[%s17006_s18 + $0xda4] sm:$0xf]  ;;  %v14346_v56 = vor.u32 %v16168_v37, %v14343_v61  ;;  %v9357_v62 = vadd.f32 %v9356_v11, %v6513_v54  ;;  %v16369_v48 = vld [vmem:[%s17006_s18 + $0xfe4] sm:$0xf0] }
 0x5d4   : > { %v14855_v16 = vld [vmem:[%s17006_s18 + $0xde0] sm:$0xf0]  ;;  %10021 = vst [vmem:[%s17016_s0 + $0x20] sm:$0xff] %v9397_v17  ;;  %v14029_v29 = vld [vmem:[%s17006_s18 + $0x728] sm:$0xf] }
 0x5d5   : > { %9655 = vmatpush.bf16.msrb.mxu2 %v14474_v43  ;;  %9628 = vmatpush.bf16.msrb.mxu0 %v13386_v7  ;;  %v15896_v2 = vld [vmem:[%s17006_s18 + $0x124] sm:$0xf]  ;;  %v14858_v26 = vor.u32 %v16296_v38, %v14855_v16  ;;  %v9371_v53 = vadd.f32 %v9370_v40, %v9357_v62  ;;  %v9384_v22 = vpop.f32.mrf.mxu2  ;;  %v15117_v16 = vld [vmem:[%s17006_s18 + $0xfa8] sm:$0xf] }
 0x5d6   : > { %v13255_v45 = vld [vmem:[%s17006_s18 + $0x160] sm:$0xf0]  ;;  %v15053_v5 = vld [vmem:[%s17006_s18 + $0xf28] sm:$0xf] }
 0x5d7   : > { %9669 = vmatpush.bf16.msrb.mxu3 %v14986_v31  ;;  %9642 = vmatpush.bf16.msrb.mxu1 %v13898_v42  ;;  %v16024_v50 = vld [vmem:[%s17006_s18 + $0x524] sm:$0xf]  ;;  %v13258_v19 = vor.u32 %v15896_v2, %v13255_v45  ;;  %v9385_v42 = vadd.f32 %v9384_v22, %v9371_v53  ;;  %v13517_v45 = vld [vmem:[%s17006_s18 + $0x328] sm:$0xf]  ;;  %v6514_v53 = vperm.slane %v18071_v25, 5 }
 0x5d8   : > { %v13767_v27 = vld [vmem:[%s17006_s18 + $0x560] sm:$0xf0]  ;;  %v16353_v35 = vld [vmem:[%s17006_s18 + $0xf64] sm:$0xf0] }
 0x5d9   : > { %9656 = vmatpush.bf16.msrb.mxu2 %v14410_v60  ;;  %v16152_v41 = vld [vmem:[%s17006_s18 + $0x924] sm:$0xf]  ;;  %9629 = vmatpush.bf16.msrb.mxu0 %v13322_v58  ;;  %v13770_v0 = vor.u32 %v16024_v50, %v13767_v27  ;;  %v9398_v60 = vpop.f32.mrf.mxu3  ;;  %v15969_v50 = vld [vmem:[%s17006_s18 + $0x364] sm:$0xf0] }
 0x5da   : > { %v14279_v1 = vld [vmem:[%s17006_s18 + $0x960] sm:$0xf0]  ;;  %v9399_v37 = vadd.f32 %v9398_v60, %v9385_v42  ;;  %v16097_v27 = vld [vmem:[%s17006_s18 + $0x764] sm:$0xf0] }
 0x5db   : > { %9670 = vmatpush.bf16.msrb.mxu3 %v14922_v49  ;;  %v16280_v32 = vld [vmem:[%s17006_s18 + $0xd24] sm:$0xf]  ;;  %9643 = vmatpush.bf16.msrb.mxu1 %v13834_v46  ;;  %v14282_v55 = vor.u32 %v16152_v41, %v14279_v1  ;;  %v14605_v49 = vld [vmem:[%s17006_s18 + $0xba8] sm:$0xf]  ;;  %v13582_v46 = vor.u32 %v15985_v4, %v13581_v52 }
 0x5dc   : > { %v14791_v21 = vld [vmem:[%s17006_s18 + $0xd60] sm:$0xf0]  ;;  %10037 = vst [vmem:[%s17016_s0 + $0xa0] sm:$0xff] %v9399_v37  ;;  %v14606_v2 = vor.u32 %v16241_v15, %v14605_v49  ;;  %v14541_v41 = vld [vmem:[%s17006_s18 + $0xb28] sm:$0xf] }
 0x5dd   : > { %v15880_v59 = vld [vmem:[%s17006_s18 + $0xa4] sm:$0xf]  ;;  %9657 = vmatpush.bf16.msrb.mxu2 %v14346_v56  ;;  %v14794_v28 = vor.u32 %v16280_v32, %v14791_v21  ;;  %9630 = vmatpush.bf16.msrb.mxu0 %v13258_v19  ;;  %v14094_v56 = vor.u32 %v16113_v18, %v14093_v39  ;;  %v16225_v1 = vld [vmem:[%s17006_s18 + $0xb64] sm:$0xf0]  ;;  %v13518_v32 = vor.u32 %v15969_v50, %v13517_v45 }
 0x5de   : > { %v13191_v30 = vld [vmem:[%s17006_s18 + $0xe0] sm:$0xf0]  ;;  %v14030_v21 = vor.u32 %v16097_v27, %v14029_v29  ;;  %v14542_v19 = vor.u32 %v16225_v1, %v14541_v41  ;;  %v15953_v17 = vld [vmem:[%s17006_s18 + $0x2e4] sm:$0xf0] }
 0x5df   : > { %v16008_v20 = vld [vmem:[%s17006_s18 + $0x4a4] sm:$0xf]  ;;  %9671 = vmatpush.bf16.msrb.mxu3 %v14858_v26  ;;  %v13194_v34 = vor.u32 %v15880_v59, %v13191_v30  ;;  %9644 = vmatpush.bf16.msrb.mxu1 %v13770_v0  ;;  %v15118_v26 = vor.u32 %v16369_v48, %v15117_v16  ;;  %v13453_v59 = vld [vmem:[%s17006_s18 + $0x2a8] sm:$0xf]  ;;  %v15054_v0 = vor.u32 %v16353_v35, %v15053_v5 }
 0x5e0   : > { %v13703_v13 = vld [vmem:[%s17006_s18 + $0x4e0] sm:$0xf0]  ;;  %v13965_v11 = vld [vmem:[%s17006_s18 + $0x6a8] sm:$0xf]  ;;  %v13454_v40 = vor.u32 %v15953_v17, %v13453_v59 }
 0x5e1   : > { %v16136_v8 = vld [vmem:[%s17006_s18 + $0x8a4] sm:$0xf]  ;;  %9658 = vmatpush.bf16.msrb.mxu2 %v14282_v55  ;;  %v13706_v36 = vor.u32 %v16008_v20, %v13703_v13  ;;  %9631 = vmatpush.bf16.msrb.mxu0 %v13194_v34  ;;  %v16081_v55 = vld [vmem:[%s17006_s18 + $0x6e4] sm:$0xf0] }
 0x5e2   : > { %v14215_v51 = vld [vmem:[%s17006_s18 + $0x8e0] sm:$0xf0]  ;;  %v14477_v30 = vld [vmem:[%s17006_s18 + $0xaa8] sm:$0xf] }
 0x5e3   : > { %v16264_v57 = vld [vmem:[%s17006_s18 + $0xca4] sm:$0xf]  ;;  %v14218_v54 = vor.u32 %v16136_v8, %v14215_v51  ;;  %9672 = vmatpush.bf16.msrb.mxu3 %v14794_v28  ;;  %9645 = vmatpush.bf16.msrb.mxu1 %v13706_v36  ;;  %v16209_v20 = vld [vmem:[%s17006_s18 + $0xae4] sm:$0xf0]  ;;  %v13966_v8 = vor.u32 %v16081_v55, %v13965_v11 }
 0x5e4   : > { %v14727_v33 = vld [vmem:[%s17006_s18 + $0xce0] sm:$0xf0]  ;;  %v14989_v13 = vld [vmem:[%s17006_s18 + $0xea8] sm:$0xf]  ;;  %v14478_v51 = vor.u32 %v16209_v20, %v14477_v30 }
 0x5e5   : > { %v15864_v43 = vld [vmem:[%s17006_s18 + $0x24] sm:$0xf]  ;;  %v14730_v47 = vor.u32 %v16264_v57, %v14727_v33  ;;  %9659 = vmatpush.bf16.msrb.mxu2 %v14218_v54  ;;  %v16337_v62 = vld [vmem:[%s17006_s18 + $0xee4] sm:$0xf0]  ;;  %v9424_v60 = vpop.f32.mrf.mxu1 }
 0x5e6   : > { %v13127_v44 = vld [vmem:[%s17006_s18 + $0x60] sm:$0xf0]  ;;  %v13389_v28 = vld [vmem:[%s17006_s18 + $0x228] sm:$0xf]  ;;  %v14990_v34 = vor.u32 %v16337_v62, %v14989_v13 }
 0x5e7   : > { %v15992_v31 = vld [vmem:[%s17006_s18 + $0x424] sm:$0xf]  ;;  %v13130_v12 = vor.u32 %v15864_v43, %v13127_v44  ;;  %9673 = vmatpush.bf16.msrb.mxu3 %v14730_v47  ;;  %v15937_v57 = vld [vmem:[%s17006_s18 + $0x264] sm:$0xf0] }
 0x5e8   : > { %v13639_v10 = vld [vmem:[%s17006_s18 + $0x460] sm:$0xf0]  ;;  %v13901_v33 = vld [vmem:[%s17006_s18 + $0x628] sm:$0xf] }
 0x5e9   : > { %v16120_v23 = vld [vmem:[%s17006_s18 + $0x824] sm:$0xf]  ;;  %v13642_v61 = vor.u32 %v15992_v31, %v13639_v10  ;;  %9632 = vmatpush.bf16.msrb.mxu0 %v13130_v12  ;;  %v16065_v43 = vld [vmem:[%s17006_s18 + $0x664] sm:$0xf0]  ;;  %v13390_v10 = vor.u32 %v15937_v57, %v13389_v28 }
 0x5ea   : > { %v14151_v3 = vld [vmem:[%s17006_s18 + $0x860] sm:$0xf0]  ;;  %v14413_v44 = vld [vmem:[%s17006_s18 + $0xa28] sm:$0xf]  ;;  %v13902_v22 = vor.u32 %v16065_v43, %v13901_v33 }
 0x5eb   : > { %v16248_v7 = vld [vmem:[%s17006_s18 + $0xc24] sm:$0xf]  ;;  %v14154_v38 = vor.u32 %v16120_v23, %v14151_v3  ;;  %9646 = vmatpush.bf16.msrb.mxu1 %v13642_v61  ;;  %v16193_v36 = vld [vmem:[%s17006_s18 + $0xa64] sm:$0xf0]  ;;  %v9410_v23 = vpop.f32.mrf.mxu0 }
 0x5ec   : > { %v14663_v9 = vld [vmem:[%s17006_s18 + $0xc60] sm:$0xf0]  ;;  %9633 = vmatmul.bf16.vlgmr.msrb.gmra.mxu0 %v17500_v63  ;;  %v14925_v54 = vld [vmem:[%s17006_s18 + $0xe28] sm:$0xf]  ;;  %v14414_v47 = vor.u32 %v16193_v36, %v14413_v44  ;;  %v9411_v42 = vadd.f32 %v9410_v23, %v6514_v53 }
 0x5ed   : > { %v14666_v58 = vor.u32 %v16248_v7, %v14663_v9  ;;  %9660 = vmatpush.bf16.msrb.mxu2 %v14154_v38  ;;  %9681 = vmatpush.bf16.msra.mxu0 %v13582_v46  ;;  %v16321_v31 = vld [vmem:[%s17006_s18 + $0xe64] sm:$0xf0]  ;;  %v9438_v46 = vpop.f32.mrf.mxu2  ;;  %v9426_v55 = vpop.f32.mrf.mxu1 }
 0x5ee   : > { %9647 = vmatmul.bf16.vlgmr.msrb.gmra.mxu1 %v17514_v14  ;;  %v13325_v3 = vld [vmem:[%s17006_s18 + $0x1a8] sm:$0xf]  ;;  %v14926_v52 = vor.u32 %v16321_v31, %v14925_v54  ;;  %v9425_v15 = vadd.f32 %v9424_v60, %v9411_v42  ;;  %v14095_v60 = vld [vmem:[%s17006_s18 + $0x7e8] sm:$0xf0] }
 0x5ef   : > { %9674 = vmatpush.bf16.msrb.mxu3 %v14666_v58  ;;  %9695 = vmatpush.bf16.msra.mxu1 %v14094_v56  ;;  %v15921_v7 = vld [vmem:[%s17006_s18 + $0x1e4] sm:$0xf0] }
 0x5f0   : > { %9661 = vmatmul.bf16.vlgmr.msrb.gmra.mxu2 %v17496_v6  ;;  %v13837_v9 = vld [vmem:[%s17006_s18 + $0x5a8] sm:$0xf]  ;;  %v13326_v37 = vor.u32 %v15921_v7, %v13325_v3  ;;  %v9439_v29 = vadd.f32 %v9438_v46, %v9425_v15  ;;  %v15977_v3 = vld [vmem:[%s17006_s18 + $0x3ac] sm:$0xf] }
 0x5f1   : > { %9709 = vmatpush.bf16.msra.mxu2 %v14606_v2  ;;  %9682 = vmatpush.bf16.msra.mxu0 %v13518_v32  ;;  %v16049_v4 = vld [vmem:[%s17006_s18 + $0x5e4] sm:$0xf0]  ;;  %v13583_v7 = vld [vmem:[%s17006_s18 + $0x3e8] sm:$0xf0] }
 0x5f2   : > { %9675 = vmatmul.bf16.vlgmr.msrb.gmra.mxu3 %v17505_v24  ;;  %v14349_v39 = vld [vmem:[%s17006_s18 + $0x9a8] sm:$0xf]  ;;  %v13838_v61 = vor.u32 %v16049_v4, %v13837_v9  ;;  %v16105_v9 = vld [vmem:[%s17006_s18 + $0x7ac] sm:$0xf] }
 0x5f3   : > { %9723 = vmatpush.bf16.msra.mxu3 %v15118_v26  ;;  %9696 = vmatpush.bf16.msra.mxu1 %v14030_v21  ;;  %v16177_v12 = vld [vmem:[%s17006_s18 + $0x9e4] sm:$0xf0]  ;;  %v9452_v26 = vpop.f32.mrf.mxu3  ;;  %v9412_v32 = vpop.f32.mrf.mxu0  ;;  %v14607_v4 = vld [vmem:[%s17006_s18 + $0xbe8] sm:$0xf0] }
 0x5f4   : > { %v14861_v18 = vld [vmem:[%s17006_s18 + $0xda8] sm:$0xf]  ;;  %v14350_v38 = vor.u32 %v16177_v12, %v14349_v39  ;;  %v9453_v35 = vadd.f32 %v9452_v26, %v9439_v29  ;;  %v15119_v15 = vld [vmem:[%s17006_s18 + $0xfe8] sm:$0xf0] }
 0x5f5   : > { %9710 = vmatpush.bf16.msra.mxu2 %v14542_v19  ;;  %9683 = vmatpush.bf16.msra.mxu0 %v13454_v40  ;;  %v16305_v49 = vld [vmem:[%s17006_s18 + $0xde4] sm:$0xf0]  ;;  %v9440_v36 = vpop.f32.mrf.mxu2  ;;  %v16089_v46 = vld [vmem:[%s17006_s18 + $0x72c] sm:$0xf] }
 0x5f6   : > { %v13261_v16 = vld [vmem:[%s17006_s18 + $0x128] sm:$0xf]  ;;  %v14862_v56 = vor.u32 %v16305_v49, %v14861_v18  ;;  %10022 = vst [vmem:[%s17016_s0 + $0x28] sm:$0xff] %v9453_v35  ;;  %v16361_v49 = vld [vmem:[%s17006_s18 + $0xfac] sm:$0xf] }
 0x5f7   : > { %9724 = vmatpush.bf16.msra.mxu3 %v15054_v0  ;;  %9697 = vmatpush.bf16.msra.mxu1 %v13966_v8  ;;  %v15905_v48 = vld [vmem:[%s17006_s18 + $0x164] sm:$0xf0]  ;;  %v9413_v0 = vadd.f32 %v9412_v32, %v6514_v53  ;;  %v16345_v29 = vld [vmem:[%s17006_s18 + $0xf2c] sm:$0xf] }
 0x5f8   : > { %v13773_v58 = vld [vmem:[%s17006_s18 + $0x528] sm:$0xf]  ;;  %v13262_v1 = vor.u32 %v15905_v48, %v13261_v16  ;;  %v15961_v48 = vld [vmem:[%s17006_s18 + $0x32c] sm:$0xf] }
 0x5f9   : > { %9711 = vmatpush.bf16.msra.mxu2 %v14478_v51  ;;  %9684 = vmatpush.bf16.msra.mxu0 %v13390_v10  ;;  %v16033_v2 = vld [vmem:[%s17006_s18 + $0x564] sm:$0xf0]  ;;  %v9427_v28 = vadd.f32 %v9426_v55, %v9413_v0  ;;  %v15055_v26 = vld [vmem:[%s17006_s18 + $0xf68] sm:$0xf0] }
 0x5fa   : > { %v14285_v45 = vld [vmem:[%s17006_s18 + $0x928] sm:$0xf]  ;;  %v13774_v21 = vor.u32 %v16033_v2, %v13773_v58  ;;  %v13519_v58 = vld [vmem:[%s17006_s18 + $0x368] sm:$0xf0] }
 0x5fb   : > { %9725 = vmatpush.bf16.msra.mxu3 %v14990_v34  ;;  %9698 = vmatpush.bf16.msra.mxu1 %v13902_v22  ;;  %v16161_v50 = vld [vmem:[%s17006_s18 + $0x964] sm:$0xf0]  ;;  %v9441_v22 = vadd.f32 %v9440_v36, %v9427_v28  ;;  %v14031_v2 = vld [vmem:[%s17006_s18 + $0x768] sm:$0xf0]  ;;  %v6515_v28 = vperm.slane %v18071_v25, 6 }
 0x5fc   : > { %v14797_v27 = vld [vmem:[%s17006_s18 + $0xd28] sm:$0xf]  ;;  %v14286_v19 = vor.u32 %v16161_v50, %v14285_v45  ;;  %v16217_v45 = vld [vmem:[%s17006_s18 + $0xb2c] sm:$0xf] }
 0x5fd   : > { %9712 = vmatpush.bf16.msra.mxu2 %v14414_v47  ;;  %v16289_v41 = vld [vmem:[%s17006_s18 + $0xd64] sm:$0xf0]  ;;  %9685 = vmatpush.bf16.msra.mxu0 %v13326_v37  ;;  %v9454_v47 = vpop.f32.mrf.mxu3  ;;  %v14543_v50 = vld [vmem:[%s17006_s18 + $0xb68] sm:$0xf0] }
 0x5fe   : > { %v13197_v5 = vld [vmem:[%s17006_s18 + $0xa8] sm:$0xf]  ;;  %v14798_v30 = vor.u32 %v16289_v41, %v14797_v27  ;;  %v9455_v39 = vadd.f32 %v9454_v47, %v9441_v22  ;;  %v13522_v27 = vor.u32 %v15961_v48, %v13519_v58  ;;  %v14034_v41 = vor.u32 %v16089_v46, %v14031_v2  ;;  %v13455_v35 = vld [vmem:[%s17006_s18 + $0x2e8] sm:$0xf0] }
 0x5ff   : > { %9726 = vmatpush.bf16.msra.mxu3 %v14926_v52  ;;  %9699 = vmatpush.bf16.msra.mxu1 %v13838_v61  ;;  %v15889_v59 = vld [vmem:[%s17006_s18 + $0xe4] sm:$0xf0]  ;;  %v16233_v52 = vld [vmem:[%s17006_s18 + $0xbac] sm:$0xf]  ;;  %v13586_v61 = vor.u32 %v15977_v3, %v13583_v7 }
 0x600   : > { %v13709_v17 = vld [vmem:[%s17006_s18 + $0x4a8] sm:$0xf]  ;;  %v13198_v8 = vor.u32 %v15889_v59, %v13197_v5  ;;  %10038 = vst [vmem:[%s17016_s0 + $0xa8] sm:$0xff] %v9455_v39  ;;  %v14610_v16 = vor.u32 %v16233_v52, %v14607_v4  ;;  %v15945_v5 = vld [vmem:[%s17006_s18 + $0x2ac] sm:$0xf] }
 0x601   : > { %9713 = vmatpush.bf16.msra.mxu2 %v14350_v38  ;;  %v16017_v11 = vld [vmem:[%s17006_s18 + $0x4e4] sm:$0xf0]  ;;  %9686 = vmatpush.bf16.msra.mxu0 %v13262_v1  ;;  %v14098_v38 = vor.u32 %v16105_v9, %v14095_v60  ;;  %v14546_v1 = vor.u32 %v16217_v45, %v14543_v50  ;;  %v16073_v32 = vld [vmem:[%s17006_s18 + $0x6ac] sm:$0xf]  ;;  %v13458_v55 = vor.u32 %v15945_v5, %v13455_v35 }
 0x602   : > { %v14221_v20 = vld [vmem:[%s17006_s18 + $0x8a8] sm:$0xf]  ;;  %v13710_v33 = vor.u32 %v16017_v11, %v13709_v17  ;;  %v16201_v59 = vld [vmem:[%s17006_s18 + $0xaac] sm:$0xf] }
 0x603   : > { %9727 = vmatpush.bf16.msra.mxu3 %v14862_v56  ;;  %v16145_v13 = vld [vmem:[%s17006_s18 + $0x8e4] sm:$0xf0]  ;;  %9700 = vmatpush.bf16.msra.mxu1 %v13774_v21  ;;  %v15122_v56 = vor.u32 %v16361_v49, %v15119_v15  ;;  %v15058_v21 = vor.u32 %v16345_v29, %v15055_v26  ;;  %v14479_v17 = vld [vmem:[%s17006_s18 + $0xae8] sm:$0xf0] }
 0x604   : > { %v14733_v62 = vld [vmem:[%s17006_s18 + $0xca8] sm:$0xf]  ;;  %v14222_v53 = vor.u32 %v16145_v13, %v14221_v20  ;;  %v16329_v11 = vld [vmem:[%s17006_s18 + $0xeac] sm:$0xf]  ;;  %v14482_v13 = vor.u32 %v16201_v59, %v14479_v17 }
 0x605   : > { %v16273_v40 = vld [vmem:[%s17006_s18 + $0xce4] sm:$0xf0]  ;;  %9714 = vmatpush.bf16.msra.mxu2 %v14286_v19  ;;  %9687 = vmatpush.bf16.msra.mxu0 %v13198_v8  ;;  %v13967_v19 = vld [vmem:[%s17006_s18 + $0x6e8] sm:$0xf0]  ;;  %v9480_v47 = vpop.f32.mrf.mxu1 }
 0x606   : > { %v13133_v51 = vld [vmem:[%s17006_s18 + $0x28] sm:$0xf]  ;;  %v14734_v54 = vor.u32 %v16273_v40, %v14733_v62  ;;  %v14991_v0 = vld [vmem:[%s17006_s18 + $0xee8] sm:$0xf0]  ;;  %v13970_v20 = vor.u32 %v16073_v32, %v13967_v19 }
 0x607   : > { %v15873_v57 = vld [vmem:[%s17006_s18 + $0x64] sm:$0xf0]  ;;  %9728 = vmatpush.bf16.msra.mxu3 %v14798_v30  ;;  %9701 = vmatpush.bf16.msra.mxu1 %v13710_v33  ;;  %v15929_v30 = vld [vmem:[%s17006_s18 + $0x22c] sm:$0xf]  ;;  %v14994_v8 = vor.u32 %v16329_v11, %v14991_v0 }
 0x608   : > { %v13645_v34 = vld [vmem:[%s17006_s18 + $0x428] sm:$0xf]  ;;  %v13134_v42 = vor.u32 %v15873_v57, %v13133_v51  ;;  %v13391_v62 = vld [vmem:[%s17006_s18 + $0x268] sm:$0xf0] }
 0x609   : > { %v16001_v43 = vld [vmem:[%s17006_s18 + $0x464] sm:$0xf0]  ;;  %9715 = vmatpush.bf16.msra.mxu2 %v14222_v53  ;;  %v16057_v40 = vld [vmem:[%s17006_s18 + $0x62c] sm:$0xf] }
 0x60a   : > { %v14157_v44 = vld [vmem:[%s17006_s18 + $0x828] sm:$0xf]  ;;  %v13646_v12 = vor.u32 %v16001_v43, %v13645_v34  ;;  %9688 = vmatpush.bf16.msra.mxu0 %v13134_v42  ;;  %v13903_v51 = vld [vmem:[%s17006_s18 + $0x668] sm:$0xf0]  ;;  %v13394_v43 = vor.u32 %v15929_v30, %v13391_v62 }
 0x60b   : > { %v16129_v31 = vld [vmem:[%s17006_s18 + $0x864] sm:$0xf0]  ;;  %9729 = vmatpush.bf16.msra.mxu3 %v14734_v54  ;;  %v16185_v57 = vld [vmem:[%s17006_s18 + $0xa2c] sm:$0xf]  ;;  %v13906_v36 = vor.u32 %v16057_v40, %v13903_v51 }
 0x60c   : > { %v14669_v10 = vld [vmem:[%s17006_s18 + $0xc28] sm:$0xf]  ;;  %v14158_v18 = vor.u32 %v16129_v31, %v14157_v44  ;;  %9702 = vmatpush.bf16.msra.mxu1 %v13646_v12  ;;  %v14415_v33 = vld [vmem:[%s17006_s18 + $0xa68] sm:$0xf0]  ;;  %v9466_v44 = vpop.f32.mrf.mxu0 }
 0x60d   : > { %v16257_v23 = vld [vmem:[%s17006_s18 + $0xc64] sm:$0xf0]  ;;  %9689 = vmatmul.bf16.vlgmr.msra.gmra.mxu0 %v17500_v63  ;;  %v16313_v53 = vld [vmem:[%s17006_s18 + $0xe2c] sm:$0xf]  ;;  %v14418_v54 = vor.u32 %v16185_v57, %v14415_v33  ;;  %v9467_v22 = vadd.f32 %v9466_v44, %v6515_v28  ;;  %v9482_v19 = vpop.f32.mrf.mxu1 }
 0x60e   : > { %v14670_v37 = vor.u32 %v16257_v23, %v14669_v10  ;;  %9716 = vmatpush.bf16.msra.mxu2 %v14158_v18  ;;  %9737 = vmatpush.bf16.msrb.mxu0 %v13586_v61  ;;  %v14927_v34 = vld [vmem:[%s17006_s18 + $0xe68] sm:$0xf0]  ;;  %v9494_v61 = vpop.f32.mrf.mxu2 }
 0x60f   : > { %9703 = vmatmul.bf16.vlgmr.msra.gmra.mxu1 %v17514_v14  ;;  %v15913_v31 = vld [vmem:[%s17006_s18 + $0x1ac] sm:$0xf]  ;;  %v14930_v3 = vor.u32 %v16313_v53, %v14927_v34  ;;  %v9481_v4 = vadd.f32 %v9480_v47, %v9467_v22  ;;  %v16114_v47 = vld [vmem:[%s17006_s18 + $0x7ec] sm:$0xf0] }
 0x610   : > { %9730 = vmatpush.bf16.msra.mxu3 %v14670_v37  ;;  %9751 = vmatpush.bf16.msrb.mxu1 %v14098_v38  ;;  %v13327_v10 = vld [vmem:[%s17006_s18 + $0x1e8] sm:$0xf0] }
 0x611   : > { %9717 = vmatmul.bf16.vlgmr.msra.gmra.mxu2 %v17496_v6  ;;  %v16041_v23 = vld [vmem:[%s17006_s18 + $0x5ac] sm:$0xf]  ;;  %v13330_v39 = vor.u32 %v15913_v31, %v13327_v10  ;;  %v9495_v46 = vadd.f32 %v9494_v61, %v9481_v4  ;;  %v13589_v31 = vld [vmem:[%s17006_s18 + $0x3b0] sm:$0xf] }
 0x612   : > { %9765 = vmatpush.bf16.msrb.mxu2 %v14610_v16  ;;  %9738 = vmatpush.bf16.msrb.mxu0 %v13522_v27  ;;  %v13839_v7 = vld [vmem:[%s17006_s18 + $0x5e8] sm:$0xf0]  ;;  %v15986_v10 = vld [vmem:[%s17006_s18 + $0x3ec] sm:$0xf0] }
 0x613   : > { %9731 = vmatmul.bf16.vlgmr.msra.gmra.mxu3 %v17505_v24  ;;  %v16169_v9 = vld [vmem:[%s17006_s18 + $0x9ac] sm:$0xf]  ;;  %v13842_v12 = vor.u32 %v16041_v23, %v13839_v7  ;;  %v14101_v23 = vld [vmem:[%s17006_s18 + $0x7b0] sm:$0xf] }
 0x614   : > { %9779 = vmatpush.bf16.msrb.mxu3 %v15122_v56  ;;  %9752 = vmatpush.bf16.msrb.mxu1 %v14034_v41  ;;  %v14351_v42 = vld [vmem:[%s17006_s18 + $0x9e8] sm:$0xf0]  ;;  %v9508_v56 = vpop.f32.mrf.mxu3  ;;  %v9468_v27 = vpop.f32.mrf.mxu0  ;;  %v16242_v7 = vld [vmem:[%s17006_s18 + $0xbec] sm:$0xf0] }
 0x615   : > { %v16297_v60 = vld [vmem:[%s17006_s18 + $0xdac] sm:$0xf]  ;;  %v14354_v18 = vor.u32 %v16169_v9, %v14351_v42  ;;  %v9509_v26 = vadd.f32 %v9508_v56, %v9495_v46  ;;  %v16370_v4 = vld [vmem:[%s17006_s18 + $0xfec] sm:$0xf0] }
 0x616   : > { %9766 = vmatpush.bf16.msrb.mxu2 %v14546_v1  ;;  %9739 = vmatpush.bf16.msrb.mxu0 %v13458_v55  ;;  %v14863_v52 = vld [vmem:[%s17006_s18 + $0xde8] sm:$0xf0]  ;;  %v9496_v33 = vpop.f32.mrf.mxu2  ;;  %v14037_v61 = vld [vmem:[%s17006_s18 + $0x730] sm:$0xf] }
 0x617   : > { %v15897_v49 = vld [vmem:[%s17006_s18 + $0x12c] sm:$0xf]  ;;  %v14866_v38 = vor.u32 %v16297_v60, %v14863_v52  ;;  %10023 = vst [vmem:[%s17016_s0 + $0x30] sm:$0xff] %v9509_v26  ;;  %v15125_v52 = vld [vmem:[%s17006_s18 + $0xfb0] sm:$0xf] }
 0x618   : > { %9780 = vmatpush.bf16.msrb.mxu3 %v15058_v21  ;;  %9753 = vmatpush.bf16.msrb.mxu1 %v13970_v20  ;;  %v13263_v15 = vld [vmem:[%s17006_s18 + $0x168] sm:$0xf0]  ;;  %v9469_v21 = vadd.f32 %v9468_v27, %v6515_v28  ;;  %v15061_v46 = vld [vmem:[%s17006_s18 + $0xf30] sm:$0xf] }
 0x619   : > { %v16025_v37 = vld [vmem:[%s17006_s18 + $0x52c] sm:$0xf]  ;;  %v13266_v50 = vor.u32 %v15897_v49, %v13263_v15  ;;  %v13525_v15 = vld [vmem:[%s17006_s18 + $0x330] sm:$0xf] }
 0x61a   : > { %9767 = vmatpush.bf16.msrb.mxu2 %v14482_v13  ;;  %9740 = vmatpush.bf16.msrb.mxu0 %v13394_v43  ;;  %v13775_v16 = vld [vmem:[%s17006_s18 + $0x568] sm:$0xf0]  ;;  %v9483_v30 = vadd.f32 %v9482_v19, %v9469_v21  ;;  %v16354_v56 = vld [vmem:[%s17006_s18 + $0xf6c] sm:$0xf0] }
 0x61b   : > { %v16153_v48 = vld [vmem:[%s17006_s18 + $0x92c] sm:$0xf]  ;;  %v13778_v41 = vor.u32 %v16025_v37, %v13775_v16  ;;  %v15970_v37 = vld [vmem:[%s17006_s18 + $0x36c] sm:$0xf0] }
 0x61c   : > { %9781 = vmatpush.bf16.msrb.mxu3 %v14994_v8  ;;  %9754 = vmatpush.bf16.msrb.mxu1 %v13906_v36  ;;  %v14287_v58 = vld [vmem:[%s17006_s18 + $0x968] sm:$0xf0]  ;;  %v9497_v36 = vadd.f32 %v9496_v33, %v9483_v30  ;;  %v16098_v16 = vld [vmem:[%s17006_s18 + $0x76c] sm:$0xf0]  ;;  %v6516_v30 = vperm.slane %v18071_v25, 7 }
 0x61d   : > { %v16281_v2 = vld [vmem:[%s17006_s18 + $0xd2c] sm:$0xf]  ;;  %v14290_v1 = vor.u32 %v16153_v48, %v14287_v58  ;;  %v14549_v48 = vld [vmem:[%s17006_s18 + $0xb30] sm:$0xf] }
 0x61e   : > { %9768 = vmatpush.bf16.msrb.mxu2 %v14418_v54  ;;  %v14799_v45 = vld [vmem:[%s17006_s18 + $0xd68] sm:$0xf0]  ;;  %9741 = vmatpush.bf16.msrb.mxu0 %v13330_v39  ;;  %v9510_v54 = vpop.f32.mrf.mxu3  ;;  %v16226_v58 = vld [vmem:[%s17006_s18 + $0xb6c] sm:$0xf0] }
 0x61f   : > { %v15881_v29 = vld [vmem:[%s17006_s18 + $0xac] sm:$0xf]  ;;  %v14802_v59 = vor.u32 %v16281_v2, %v14799_v45  ;;  %v9511_v9 = vadd.f32 %v9510_v54, %v9497_v36  ;;  %v13526_v2 = vor.u32 %v15970_v37, %v13525_v15  ;;  %v14038_v45 = vor.u32 %v16098_v16, %v14037_v61  ;;  %v15954_v26 = vld [vmem:[%s17006_s18 + $0x2ec] sm:$0xf0] }
 0x620   : > { %9782 = vmatpush.bf16.msrb.mxu3 %v14930_v3  ;;  %9755 = vmatpush.bf16.msrb.mxu1 %v13842_v12  ;;  %v13199_v5 = vld [vmem:[%s17006_s18 + $0xe8] sm:$0xf0]  ;;  %v14613_v3 = vld [vmem:[%s17006_s18 + $0xbb0] sm:$0xf]  ;;  %v13590_v12 = vor.u32 %v15986_v10, %v13589_v31 }
 0x621   : > { %v16009_v35 = vld [vmem:[%s17006_s18 + $0x4ac] sm:$0xf]  ;;  %v13202_v20 = vor.u32 %v15881_v29, %v13199_v5  ;;  %10039 = vst [vmem:[%s17016_s0 + $0xb0] sm:$0xff] %v9511_v9  ;;  %v14614_v49 = vor.u32 %v16242_v7, %v14613_v3  ;;  %v13461_v29 = vld [vmem:[%s17006_s18 + $0x2b0] sm:$0xf] }
 0x622   : > { %9769 = vmatpush.bf16.msrb.mxu2 %v14354_v18  ;;  %v13711_v32 = vld [vmem:[%s17006_s18 + $0x4e8] sm:$0xf0]  ;;  %9742 = vmatpush.bf16.msrb.mxu0 %v13266_v50  ;;  %v14102_v18 = vor.u32 %v16114_v47, %v14101_v23  ;;  %v14550_v50 = vor.u32 %v16226_v58, %v14549_v48  ;;  %v13973_v27 = vld [vmem:[%s17006_s18 + $0x6b0] sm:$0xf]  ;;  %v13462_v19 = vor.u32 %v15954_v26, %v13461_v29 }
 0x623   : > { %v16137_v17 = vld [vmem:[%s17006_s18 + $0x8ac] sm:$0xf]  ;;  %v13714_v40 = vor.u32 %v16009_v35, %v13711_v32  ;;  %v14485_v5 = vld [vmem:[%s17006_s18 + $0xab0] sm:$0xf] }
 0x624   : > { %9783 = vmatpush.bf16.msrb.mxu3 %v14866_v38  ;;  %v14223_v11 = vld [vmem:[%s17006_s18 + $0x8e8] sm:$0xf0]  ;;  %9756 = vmatpush.bf16.msrb.mxu1 %v13778_v41  ;;  %v15126_v38 = vor.u32 %v16370_v4, %v15125_v52  ;;  %v15062_v41 = vor.u32 %v16354_v56, %v15061_v46  ;;  %v16210_v35 = vld [vmem:[%s17006_s18 + $0xaec] sm:$0xf0] }
 0x625   : > { %v16265_v0 = vld [vmem:[%s17006_s18 + $0xcac] sm:$0xf]  ;;  %v14226_v28 = vor.u32 %v16137_v17, %v14223_v11  ;;  %v14997_v32 = vld [vmem:[%s17006_s18 + $0xeb0] sm:$0xf]  ;;  %v14486_v11 = vor.u32 %v16210_v35, %v14485_v5 }
 0x626   : > { %v14735_v55 = vld [vmem:[%s17006_s18 + $0xce8] sm:$0xf0]  ;;  %9770 = vmatpush.bf16.msrb.mxu2 %v14290_v1  ;;  %9743 = vmatpush.bf16.msrb.mxu0 %v13202_v20  ;;  %v16082_v1 = vld [vmem:[%s17006_s18 + $0x6ec] sm:$0xf0]  ;;  %v9536_v36 = vpop.f32.mrf.mxu1 }
 0x627   : > { %v15865_v13 = vld [vmem:[%s17006_s18 + $0x2c] sm:$0xf]  ;;  %v14738_v53 = vor.u32 %v16265_v0, %v14735_v55  ;;  %v16338_v21 = vld [vmem:[%s17006_s18 + $0xeec] sm:$0xf0]  ;;  %v13974_v17 = vor.u32 %v16082_v1, %v13973_v27 }
 0x628   : > { %v13135_v62 = vld [vmem:[%s17006_s18 + $0x68] sm:$0xf0]  ;;  %9784 = vmatpush.bf16.msrb.mxu3 %v14802_v59  ;;  %9757 = vmatpush.bf16.msrb.mxu1 %v13714_v40  ;;  %v13397_v59 = vld [vmem:[%s17006_s18 + $0x230] sm:$0xf]  ;;  %v14998_v20 = vor.u32 %v16338_v21, %v14997_v32 }
 0x629   : > { %v15993_v8 = vld [vmem:[%s17006_s18 + $0x42c] sm:$0xf]  ;;  %v13138_v22 = vor.u32 %v15865_v13, %v13135_v62  ;;  %v15938_v0 = vld [vmem:[%s17006_s18 + $0x26c] sm:$0xf0] }
 0x62a   : > { %v13647_v51 = vld [vmem:[%s17006_s18 + $0x468] sm:$0xf0]  ;;  %9771 = vmatpush.bf16.msrb.mxu2 %v14226_v28  ;;  %v13909_v55 = vld [vmem:[%s17006_s18 + $0x630] sm:$0xf] }
 0x62b   : > { %v16121_v57 = vld [vmem:[%s17006_s18 + $0x82c] sm:$0xf]  ;;  %v13650_v42 = vor.u32 %v15993_v8, %v13647_v51  ;;  %9744 = vmatpush.bf16.msrb.mxu0 %v13138_v22  ;;  %v16066_v13 = vld [vmem:[%s17006_s18 + $0x66c] sm:$0xf0]  ;;  %v13398_v51 = vor.u32 %v15938_v0, %v13397_v59 }
 0x62c   : > { %v14159_v34 = vld [vmem:[%s17006_s18 + $0x868] sm:$0xf0]  ;;  %9785 = vmatpush.bf16.msrb.mxu3 %v14738_v53  ;;  %v14421_v62 = vld [vmem:[%s17006_s18 + $0xa30] sm:$0xf]  ;;  %v13910_v25 = vor.u32 %v16066_v13, %v13909_v55 }
 0x62d   : > { %v16249_v43 = vld [vmem:[%s17006_s18 + $0xc2c] sm:$0xf]  ;;  %v14162_v60 = vor.u32 %v16121_v57, %v14159_v34  ;;  %9758 = vmatpush.bf16.msrb.mxu1 %v13650_v42  ;;  %v16194_v40 = vld [vmem:[%s17006_s18 + $0xa6c] sm:$0xf0]  ;;  %v9522_v57 = vpop.f32.mrf.mxu0 }
 0x62e   : > { %v14671_v44 = vld [vmem:[%s17006_s18 + $0xc68] sm:$0xf0]  ;;  %9745 = vmatmul.bf16.vlgmr.msrb.gmra.mxu0 %v17500_v63  ;;  %v14933_v28 = vld [vmem:[%s17006_s18 + $0xe30] sm:$0xf]  ;;  %v14422_v33 = vor.u32 %v16194_v40, %v14421_v62 }
 0x62f   : > { %v14674_v39 = vor.u32 %v16249_v43, %v14671_v44  ;;  %9772 = vmatpush.bf16.msrb.mxu2 %v14162_v60  ;;  %9793 = vmatpush.bf16.msra.mxu0 %v13590_v12  ;;  %v16322_v8 = vld [vmem:[%s17006_s18 + $0xe6c] sm:$0xf0]  ;;  %v9523_v44 = vadd.f32 %v9522_v57, %v6516_v30 }
 0x630   : > { %9759 = vmatmul.bf16.vlgmr.msrb.gmra.mxu1 %v17514_v14  ;;  %v13333_v53 = vld [vmem:[%s17006_s18 + $0x1b0] sm:$0xf]  ;;  %v14934_v54 = vor.u32 %v16322_v8, %v14933_v28  ;;  %v9564_v61 = vpop.f32.mrf.mxu3 }
 0x631   : > { %9786 = vmatpush.bf16.msrb.mxu3 %v14674_v39  ;;  %9807 = vmatpush.bf16.msra.mxu1 %v14102_v18  ;;  %v15922_v34 = vld [vmem:[%s17006_s18 + $0x1ec] sm:$0xf0]  ;;  %v9537_v3 = vadd.f32 %v9536_v36, %v9523_v44  ;;  %v9550_v39 = vpop.f32.mrf.mxu2  ;;  %v14103_v44 = vld [vmem:[%s17006_s18 + $0x7f0] sm:$0xf0] }
 0x632   : > { %9773 = vmatmul.bf16.vlgmr.msrb.gmra.mxu2 %v17496_v6  ;;  %v13845_v43 = vld [vmem:[%s17006_s18 + $0x5b0] sm:$0xf]  ;;  %v13334_v7 = vor.u32 %v15922_v34, %v13333_v53  ;;  %v13591_v53 = vld [vmem:[%s17006_s18 + $0x3f0] sm:$0xf0] }
 0x633   : > { %9821 = vmatpush.bf16.msra.mxu2 %v14614_v49  ;;  %9794 = vmatpush.bf16.msra.mxu0 %v13526_v2  ;;  %v16050_v31 = vld [vmem:[%s17006_s18 + $0x5ec] sm:$0xf0]  ;;  %v9551_v37 = vadd.f32 %v9550_v39, %v9537_v3  ;;  %v16106_v34 = vld [vmem:[%s17006_s18 + $0x7b4] sm:$0xf] }
 0x634   : > { %9787 = vmatmul.bf16.vlgmr.msrb.gmra.mxu3 %v17505_v24  ;;  %v14357_v10 = vld [vmem:[%s17006_s18 + $0x9b0] sm:$0xf]  ;;  %v13846_v9 = vor.u32 %v16050_v31, %v13845_v43  ;;  %v16234_v36 = vld [vmem:[%s17006_s18 + $0xbb4] sm:$0xf] }
 0x635   : > { %9835 = vmatpush.bf16.msra.mxu3 %v15126_v38  ;;  %9808 = vmatpush.bf16.msra.mxu1 %v14038_v45  ;;  %v16178_v23 = vld [vmem:[%s17006_s18 + $0x9ec] sm:$0xf0]  ;;  %v9565_v46 = vadd.f32 %v9564_v61, %v9551_v37  ;;  %v9524_v56 = vpop.f32.mrf.mxu0  ;;  %v15063_v37 = vld [vmem:[%s17006_s18 + $0xf70] sm:$0xf0] }
 0x636   : > { %v14869_v22 = vld [vmem:[%s17006_s18 + $0xdb0] sm:$0xf]  ;;  %v14358_v42 = vor.u32 %v16178_v23, %v14357_v10  ;;  %v9525_v27 = vadd.f32 %v9524_v56, %v6516_v30  ;;  %v13975_v56 = vld [vmem:[%s17006_s18 + $0x6f0] sm:$0xf0] }
 0x637   : > { %9822 = vmatpush.bf16.msra.mxu2 %v14550_v50  ;;  %9795 = vmatpush.bf16.msra.mxu0 %v13462_v19  ;;  %v16306_v47 = vld [vmem:[%s17006_s18 + $0xdec] sm:$0xf0]  ;;  %10024 = vst [vmem:[%s17016_s0 + $0x38] sm:$0xff] %v9565_v46  ;;  %v16074_v46 = vld [vmem:[%s17006_s18 + $0x6b4] sm:$0xf] }
 0x638   : > { %v13269_v60 = vld [vmem:[%s17006_s18 + $0x130] sm:$0xf]  ;;  %v14870_v12 = vor.u32 %v16306_v47, %v14869_v22  ;;  %v16362_v22 = vld [vmem:[%s17006_s18 + $0xfb4] sm:$0xf] }
 0x639   : > { %9836 = vmatpush.bf16.msra.mxu3 %v15062_v41  ;;  %9809 = vmatpush.bf16.msra.mxu1 %v13974_v17  ;;  %v15906_v52 = vld [vmem:[%s17006_s18 + $0x16c] sm:$0xf0]  ;;  %v9538_v41 = vpop.f32.mrf.mxu1  ;;  %v9552_v62 = vpop.f32.mrf.mxu2  ;;  %v15127_v47 = vld [vmem:[%s17006_s18 + $0xff0] sm:$0xf0] }
 0x63a   : > { %v13781_v4 = vld [vmem:[%s17006_s18 + $0x530] sm:$0xf]  ;;  %v13270_v48 = vor.u32 %v15906_v52, %v13269_v60  ;;  %v9539_v19 = vadd.f32 %v9538_v41, %v9525_v27  ;;  %v15962_v60 = vld [vmem:[%s17006_s18 + $0x334] sm:$0xf]  ;;  %v15130_v39 = vor.u32 %v16362_v22, %v15127_v47 }
 0x63b   : > { %9823 = vmatpush.bf16.msra.mxu2 %v14486_v11  ;;  %9796 = vmatpush.bf16.msra.mxu0 %v13398_v51  ;;  %v16034_v18 = vld [vmem:[%s17006_s18 + $0x56c] sm:$0xf0]  ;;  %v13527_v52 = vld [vmem:[%s17006_s18 + $0x370] sm:$0xf0] }
 0x63c   : > { %v14293_v49 = vld [vmem:[%s17006_s18 + $0x930] sm:$0xf]  ;;  %v13782_v2 = vor.u32 %v16034_v18, %v13781_v4  ;;  %v9553_v57 = vadd.f32 %v9552_v62, %v9539_v19  ;;  %v16090_v4 = vld [vmem:[%s17006_s18 + $0x734] sm:$0xf]  ;;  %v13530_v61 = vor.u32 %v15962_v60, %v13527_v52 }
 0x63d   : > { %9837 = vmatpush.bf16.msra.mxu3 %v14998_v20  ;;  %9810 = vmatpush.bf16.msra.mxu1 %v13910_v25  ;;  %v16162_v15 = vld [vmem:[%s17006_s18 + $0x96c] sm:$0xf0]  ;;  %v9566_v25 = vpop.f32.mrf.mxu3  ;;  %v16218_v18 = vld [vmem:[%s17006_s18 + $0xb34] sm:$0xf] }
 0x63e   : > { %v14805_v38 = vld [vmem:[%s17006_s18 + $0xd30] sm:$0xf]  ;;  %v14294_v45 = vor.u32 %v16162_v15, %v14293_v49  ;;  %v9567_v31 = vadd.f32 %v9566_v25, %v9553_v57  ;;  %v14551_v49 = vld [vmem:[%s17006_s18 + $0xb70] sm:$0xf0] }
 0x63f   : > { %9824 = vmatpush.bf16.msra.mxu2 %v14422_v33  ;;  %v16290_v16 = vld [vmem:[%s17006_s18 + $0xd6c] sm:$0xf0]  ;;  %9797 = vmatpush.bf16.msra.mxu0 %v13334_v7  ;;  %v15978_v33 = vld [vmem:[%s17006_s18 + $0x3b4] sm:$0xf] }
 0x640   : > { %v13205_v58 = vld [vmem:[%s17006_s18 + $0xb0] sm:$0xf]  ;;  %v14806_v1 = vor.u32 %v16290_v16, %v14805_v38  ;;  %v13594_v7 = vor.u32 %v15978_v33, %v13591_v53  ;;  %10040 = vst [vmem:[%s17016_s0 + $0xb8] sm:$0xff] %v9567_v31  ;;  %v16346_v15 = vld [vmem:[%s17006_s18 + $0xf34] sm:$0xf] }
 0x641   : > { %9838 = vmatpush.bf16.msra.mxu3 %v14934_v54  ;;  %9811 = vmatpush.bf16.msra.mxu1 %v13846_v9  ;;  %v15890_v50 = vld [vmem:[%s17006_s18 + $0xec] sm:$0xf0]  ;;  %v14615_v54 = vld [vmem:[%s17006_s18 + $0xbf0] sm:$0xf0]  ;;  %v14106_v9 = vor.u32 %v16106_v34, %v14103_v44 }
 0x642   : > { %v13717_v29 = vld [vmem:[%s17006_s18 + $0x4b0] sm:$0xf]  ;;  %v13206_v59 = vor.u32 %v15890_v50, %v13205_v58  ;;  %v15946_v38 = vld [vmem:[%s17006_s18 + $0x2b4] sm:$0xf] }
 0x643   : > { %9825 = vmatpush.bf16.msra.mxu2 %v14358_v42  ;;  %v16018_v26 = vld [vmem:[%s17006_s18 + $0x4ec] sm:$0xf0]  ;;  %9798 = vmatpush.bf16.msra.mxu0 %v13270_v48  ;;  %v14618_v42 = vor.u32 %v16234_v36, %v14615_v54  ;;  %v14554_v48 = vor.u32 %v16218_v18, %v14551_v49  ;;  %v13463_v58 = vld [vmem:[%s17006_s18 + $0x2f0] sm:$0xf0] }
 0x644   : > { %v14229_v5 = vld [vmem:[%s17006_s18 + $0x8b0] sm:$0xf]  ;;  %v13718_v0 = vor.u32 %v16018_v26, %v13717_v29  ;;  %v14487_v50 = vld [vmem:[%s17006_s18 + $0xaf0] sm:$0xf0]  ;;  %v18350_v29 = vld [vmem:[%s17014_s20 + $0x8] sm:$0xff]  ;;  %v13466_v41 = vor.u32 %v15946_v38, %v13463_v58 }
 0x645   : > { %9839 = vmatpush.bf16.msra.mxu3 %v14870_v12  ;;  %v16146_v35 = vld [vmem:[%s17006_s18 + $0x8ec] sm:$0xf0]  ;;  %9812 = vmatpush.bf16.msra.mxu1 %v13782_v2  ;;  %v14039_v12 = vld [vmem:[%s17006_s18 + $0x770] sm:$0xf0]  ;;  %v15066_v2 = vor.u32 %v16346_v15, %v15063_v37  ;;  %v6517_v19 = vperm.slane %v18350_v29, 0 }
 0x646   : > { %v14741_v32 = vld [vmem:[%s17006_s18 + $0xcb0] sm:$0xf]  ;;  %v14230_v55 = vor.u32 %v16146_v35, %v14229_v5  ;;  %v14042_v16 = vor.u32 %v16090_v4, %v14039_v12  ;;  %v16330_v26 = vld [vmem:[%s17006_s18 + $0xeb4] sm:$0xf]  ;;  %v13978_v5 = vor.u32 %v16074_v46, %v13975_v56 }
 0x647   : > { %v16274_v21 = vld [vmem:[%s17006_s18 + $0xcec] sm:$0xf0]  ;;  %9826 = vmatpush.bf16.msra.mxu2 %v14294_v45  ;;  %9799 = vmatpush.bf16.msra.mxu0 %v13206_v59  ;;  %v16202_v45 = vld [vmem:[%s17006_s18 + $0xab4] sm:$0xf]  ;;  %v9592_v25 = vpop.f32.mrf.mxu1 }
 0x648   : > { %v13141_v17 = vld [vmem:[%s17006_s18 + $0x30] sm:$0xf]  ;;  %v14742_v40 = vor.u32 %v16274_v21, %v14741_v32  ;;  %v14999_v27 = vld [vmem:[%s17006_s18 + $0xef0] sm:$0xf0]  ;;  %v14490_v35 = vor.u32 %v16202_v45, %v14487_v50 }
 0x649   : > { %v15874_v11 = vld [vmem:[%s17006_s18 + $0x6c] sm:$0xf0]  ;;  %9840 = vmatpush.bf16.msra.mxu3 %v14806_v1  ;;  %9813 = vmatpush.bf16.msra.mxu1 %v13718_v0  ;;  %v15930_v1 = vld [vmem:[%s17006_s18 + $0x234] sm:$0xf]  ;;  %v15002_v59 = vor.u32 %v16330_v26, %v14999_v27 }
 0x64a   : > { %v13653_v30 = vld [vmem:[%s17006_s18 + $0x430] sm:$0xf]  ;;  %v13142_v43 = vor.u32 %v15874_v11, %v13141_v17  ;;  %v13399_v32 = vld [vmem:[%s17006_s18 + $0x270] sm:$0xf0] }
 0x64b   : > { %v16002_v20 = vld [vmem:[%s17006_s18 + $0x46c] sm:$0xf0]  ;;  %9827 = vmatpush.bf16.msra.mxu2 %v14230_v55  ;;  %v16058_v21 = vld [vmem:[%s17006_s18 + $0x634] sm:$0xf] }
 0x64c   : > { %v14165_v13 = vld [vmem:[%s17006_s18 + $0x830] sm:$0xf]  ;;  %v13654_v10 = vor.u32 %v16002_v20, %v13653_v30  ;;  %9800 = vmatpush.bf16.msra.mxu0 %v13142_v43  ;;  %v13911_v17 = vld [vmem:[%s17006_s18 + $0x670] sm:$0xf0]  ;;  %v13402_v20 = vor.u32 %v15930_v1, %v13399_v32 }
 0x64d   : > { %v16130_v28 = vld [vmem:[%s17006_s18 + $0x86c] sm:$0xf0]  ;;  %9841 = vmatpush.bf16.msra.mxu3 %v14742_v40  ;;  %v16186_v11 = vld [vmem:[%s17006_s18 + $0xa34] sm:$0xf]  ;;  %v13914_v62 = vor.u32 %v16058_v21, %v13911_v17 }
 0x64e   : > { %v14677_v8 = vld [vmem:[%s17006_s18 + $0xc30] sm:$0xf]  ;;  %v14166_v23 = vor.u32 %v16130_v28, %v14165_v13  ;;  %9814 = vmatpush.bf16.msra.mxu1 %v13654_v10  ;;  %v14423_v0 = vld [vmem:[%s17006_s18 + $0xa70] sm:$0xf0]  ;;  %v9578_v13 = vpop.f32.mrf.mxu0 }
 0x64f   : > { %v16258_v51 = vld [vmem:[%s17006_s18 + $0xc6c] sm:$0xf0]  ;;  %9801 = vmatmul.bf16.vlgmr.msra.gmra.mxu0 %v17500_v63  ;;  %v16314_v55 = vld [vmem:[%s17006_s18 + $0xe34] sm:$0xf]  ;;  %v14426_v40 = vor.u32 %v16186_v11, %v14423_v0  ;;  %v9579_v57 = vadd.f32 %v9578_v13, %v6517_v19 }
 0x650   : > { %v14678_v3 = vor.u32 %v16258_v51, %v14677_v8  ;;  %9828 = vmatpush.bf16.msra.mxu2 %v14166_v23  ;;  %9849 = vmatpush.bf16.msrb.mxu0 %v13594_v7  ;;  %v14935_v30 = vld [vmem:[%s17006_s18 + $0xe70] sm:$0xf0]  ;;  %v9606_v7 = vpop.f32.mrf.mxu2 }
 0x651   : > { %9815 = vmatmul.bf16.vlgmr.msra.gmra.mxu1 %v17514_v14  ;;  %v15914_v28 = vld [vmem:[%s17006_s18 + $0x1b4] sm:$0xf]  ;;  %v14938_v33 = vor.u32 %v16314_v55, %v14935_v30  ;;  %v9593_v54 = vadd.f32 %v9592_v25, %v9579_v57  ;;  %v16115_v25 = vld [vmem:[%s17006_s18 + $0x7f4] sm:$0xf0] }
 0x652   : > { %9842 = vmatpush.bf16.msra.mxu3 %v14678_v3  ;;  %9863 = vmatpush.bf16.msrb.mxu1 %v14106_v9  ;;  %v13335_v8 = vld [vmem:[%s17006_s18 + $0x1f0] sm:$0xf0] }
 0x653   : > { %9829 = vmatmul.bf16.vlgmr.msra.gmra.mxu2 %v17496_v6  ;;  %v16042_v51 = vld [vmem:[%s17006_s18 + $0x5b4] sm:$0xf]  ;;  %v13338_v31 = vor.u32 %v15914_v28, %v13335_v8  ;;  %v9607_v4 = vadd.f32 %v9606_v7, %v9593_v54  ;;  %v13597_v28 = vld [vmem:[%s17006_s18 + $0x3b8] sm:$0xf] }
 0x654   : > { %9877 = vmatpush.bf16.msrb.mxu2 %v14618_v42  ;;  %9850 = vmatpush.bf16.msrb.mxu0 %v13530_v61  ;;  %v13847_v53 = vld [vmem:[%s17006_s18 + $0x5f0] sm:$0xf0]  ;;  %v15987_v8 = vld [vmem:[%s17006_s18 + $0x3f4] sm:$0xf0] }
 0x655   : > { %9843 = vmatmul.bf16.vlgmr.msra.gmra.mxu3 %v17505_v24  ;;  %v16170_v34 = vld [vmem:[%s17006_s18 + $0x9b4] sm:$0xf]  ;;  %v13850_v10 = vor.u32 %v16042_v51, %v13847_v53  ;;  %v14109_v51 = vld [vmem:[%s17006_s18 + $0x7b8] sm:$0xf] }
 0x656   : > { %9891 = vmatpush.bf16.msrb.mxu3 %v15130_v39  ;;  %9864 = vmatpush.bf16.msrb.mxu1 %v14042_v16  ;;  %v14359_v43 = vld [vmem:[%s17006_s18 + $0x9f0] sm:$0xf0]  ;;  %v9620_v39 = vpop.f32.mrf.mxu3  ;;  %v9580_v61 = vpop.f32.mrf.mxu0  ;;  %v16243_v53 = vld [vmem:[%s17006_s18 + $0xbf4] sm:$0xf0] }
 0x657   : > { %v16298_v44 = vld [vmem:[%s17006_s18 + $0xdb4] sm:$0xf]  ;;  %v14362_v23 = vor.u32 %v16170_v34, %v14359_v43  ;;  %v9621_v37 = vadd.f32 %v9620_v39, %v9607_v4  ;;  %v9581_v56 = vadd.f32 %v9580_v61, %v6517_v19  ;;  %v16371_v54 = vld [vmem:[%s17006_s18 + $0xff4] sm:$0xf0] }
 0x658   : > { %9878 = vmatpush.bf16.msrb.mxu2 %v14554_v48  ;;  %9851 = vmatpush.bf16.msrb.mxu0 %v13466_v41  ;;  %v14871_v36 = vld [vmem:[%s17006_s18 + $0xdf0] sm:$0xf0]  ;;  %v9608_v0 = vpop.f32.mrf.mxu2  ;;  %v14045_v7 = vld [vmem:[%s17006_s18 + $0x738] sm:$0xf] }
 0x659   : > { %v15898_v22 = vld [vmem:[%s17006_s18 + $0x134] sm:$0xf]  ;;  %v14874_v9 = vor.u32 %v16298_v44, %v14871_v36  ;;  %10025 = vst [vmem:[%s17016_s0 + $0x40] sm:$0xff] %v9621_v37  ;;  %v15133_v36 = vld [vmem:[%s17006_s18 + $0xfb8] sm:$0xf] }
 0x65a   : > { %9892 = vmatpush.bf16.msrb.mxu3 %v15066_v2  ;;  %9865 = vmatpush.bf16.msrb.mxu1 %v13978_v5  ;;  %v13271_v47 = vld [vmem:[%s17006_s18 + $0x170] sm:$0xf0]  ;;  %v9594_v2 = vpop.f32.mrf.mxu1  ;;  %v15069_v4 = vld [vmem:[%s17006_s18 + $0xf38] sm:$0xf] }
 0x65b   : > { %v16026_v3 = vld [vmem:[%s17006_s18 + $0x534] sm:$0xf]  ;;  %v13274_v49 = vor.u32 %v15898_v22, %v13271_v47  ;;  %v9595_v1 = vadd.f32 %v9594_v2, %v9581_v56  ;;  %v13533_v47 = vld [vmem:[%s17006_s18 + $0x338] sm:$0xf] }
 0x65c   : > { %9879 = vmatpush.bf16.msrb.mxu2 %v14490_v35  ;;  %9852 = vmatpush.bf16.msrb.mxu0 %v13402_v20  ;;  %v13783_v42 = vld [vmem:[%s17006_s18 + $0x570] sm:$0xf0]  ;;  %v16355_v39 = vld [vmem:[%s17006_s18 + $0xf74] sm:$0xf0] }
 0x65d   : > { %v16154_v60 = vld [vmem:[%s17006_s18 + $0x934] sm:$0xf]  ;;  %v13786_v38 = vor.u32 %v16026_v3, %v13783_v42  ;;  %v15971_v3 = vld [vmem:[%s17006_s18 + $0x374] sm:$0xf0] }
 0x65e   : > { %9893 = vmatpush.bf16.msrb.mxu3 %v15002_v59  ;;  %9866 = vmatpush.bf16.msrb.mxu1 %v13914_v62  ;;  %v14295_v52 = vld [vmem:[%s17006_s18 + $0x970] sm:$0xf0]  ;;  %v9609_v62 = vadd.f32 %v9608_v0, %v9595_v1  ;;  %v16099_v42 = vld [vmem:[%s17006_s18 + $0x774] sm:$0xf0]  ;;  %v6518_v1 = vperm.slane %v18350_v29, 1 }
 0x65f   : > { %v16282_v12 = vld [vmem:[%s17006_s18 + $0xd34] sm:$0xf]  ;;  %v14298_v16 = vor.u32 %v16154_v60, %v14295_v52  ;;  %v14557_v60 = vld [vmem:[%s17006_s18 + $0xb38] sm:$0xf] }
 0x660   : > { %9880 = vmatpush.bf16.msrb.mxu2 %v14426_v40  ;;  %v14807_v18 = vld [vmem:[%s17006_s18 + $0xd70] sm:$0xf0]  ;;  %9853 = vmatpush.bf16.msrb.mxu0 %v13338_v31  ;;  %v9622_v40 = vpop.f32.mrf.mxu3  ;;  %v16227_v52 = vld [vmem:[%s17006_s18 + $0xb74] sm:$0xf0] }
 0x661   : > { %v15882_v15 = vld [vmem:[%s17006_s18 + $0xb4] sm:$0xf]  ;;  %v14810_v45 = vor.u32 %v16282_v12, %v14807_v18  ;;  %v9623_v34 = vadd.f32 %v9622_v40, %v9609_v62  ;;  %v13534_v12 = vor.u32 %v15971_v3, %v13533_v47  ;;  %v14046_v18 = vor.u32 %v16099_v42, %v14045_v7  ;;  %v15955_v37 = vld [vmem:[%s17006_s18 + $0x2f4] sm:$0xf0] }
 0x662   : > { %9894 = vmatpush.bf16.msrb.mxu3 %v14938_v33  ;;  %9867 = vmatpush.bf16.msrb.mxu1 %v13850_v10  ;;  %v13207_v48 = vld [vmem:[%s17006_s18 + $0xf0] sm:$0xf0]  ;;  %v14621_v33 = vld [vmem:[%s17006_s18 + $0xbb8] sm:$0xf]  ;;  %v13598_v10 = vor.u32 %v15987_v8, %v13597_v28 }
 0x663   : > { %v16010_v58 = vld [vmem:[%s17006_s18 + $0x4b4] sm:$0xf]  ;;  %v13210_v5 = vor.u32 %v15882_v15, %v13207_v48  ;;  %10041 = vst [vmem:[%s17016_s0 + $0xc0] sm:$0xff] %v9623_v34  ;;  %v14622_v22 = vor.u32 %v16243_v53, %v14621_v33  ;;  %v13469_v15 = vld [vmem:[%s17006_s18 + $0x2b8] sm:$0xf] }
 0x664   : > { %9881 = vmatpush.bf16.msrb.mxu2 %v14362_v23  ;;  %v13719_v46 = vld [vmem:[%s17006_s18 + $0x4f0] sm:$0xf0]  ;;  %9854 = vmatpush.bf16.msrb.mxu0 %v13274_v49  ;;  %v14110_v23 = vor.u32 %v16115_v25, %v14109_v51  ;;  %v14558_v49 = vor.u32 %v16227_v52, %v14557_v60  ;;  %v13981_v61 = vld [vmem:[%s17006_s18 + $0x6b8] sm:$0xf]  ;;  %v13470_v2 = vor.u32 %v15955_v37, %v13469_v15 }
 0x665   : > { %v16138_v50 = vld [vmem:[%s17006_s18 + $0x8b4] sm:$0xf]  ;;  %v13722_v21 = vor.u32 %v16010_v58, %v13719_v46  ;;  %v14493_v48 = vld [vmem:[%s17006_s18 + $0xab8] sm:$0xf] }
 0x666   : > { %9895 = vmatpush.bf16.msrb.mxu3 %v14874_v9  ;;  %v14231_v26 = vld [vmem:[%s17006_s18 + $0x8f0] sm:$0xf0]  ;;  %9868 = vmatpush.bf16.msrb.mxu1 %v13786_v38  ;;  %v15134_v9 = vor.u32 %v16371_v54, %v15133_v36  ;;  %v15070_v38 = vor.u32 %v16355_v39, %v15069_v4  ;;  %v16211_v58 = vld [vmem:[%s17006_s18 + $0xaf4] sm:$0xf0] }
 0x667   : > { %v16266_v27 = vld [vmem:[%s17006_s18 + $0xcb4] sm:$0xf]  ;;  %v14234_v19 = vor.u32 %v16138_v50, %v14231_v26  ;;  %v15005_v46 = vld [vmem:[%s17006_s18 + $0xeb8] sm:$0xf]  ;;  %v14494_v26 = vor.u32 %v16211_v58, %v14493_v48 }
 0x668   : > { %v14743_v41 = vld [vmem:[%s17006_s18 + $0xcf0] sm:$0xf0]  ;;  %9882 = vmatpush.bf16.msrb.mxu2 %v14298_v16  ;;  %9855 = vmatpush.bf16.msrb.mxu0 %v13210_v5  ;;  %v16083_v16 = vld [vmem:[%s17006_s18 + $0x6f4] sm:$0xf0] }
 0x669   : > { %v15866_v35 = vld [vmem:[%s17006_s18 + $0x34] sm:$0xf]  ;;  %v14746_v55 = vor.u32 %v16266_v27, %v14743_v41  ;;  %v16339_v56 = vld [vmem:[%s17006_s18 + $0xef4] sm:$0xf0]  ;;  %v13982_v50 = vor.u32 %v16083_v16, %v13981_v61 }
 0x66a   : > { %v13143_v32 = vld [vmem:[%s17006_s18 + $0x70] sm:$0xf0]  ;;  %9896 = vmatpush.bf16.msrb.mxu3 %v14810_v45  ;;  %9869 = vmatpush.bf16.msrb.mxu1 %v13722_v21  ;;  %v13405_v45 = vld [vmem:[%s17006_s18 + $0x238] sm:$0xf]  ;;  %v15006_v5 = vor.u32 %v16339_v56, %v15005_v46 }
 0x66b   : > { %v15994_v59 = vld [vmem:[%s17006_s18 + $0x434] sm:$0xf]  ;;  %v13146_v57 = vor.u32 %v15866_v35, %v13143_v32  ;;  %v15939_v27 = vld [vmem:[%s17006_s18 + $0x274] sm:$0xf0]  ;;  %v9648_v40 = vpop.f32.mrf.mxu1 }
 0x66c   : > { %v13655_v17 = vld [vmem:[%s17006_s18 + $0x470] sm:$0xf0]  ;;  %9883 = vmatpush.bf16.msrb.mxu2 %v14234_v19  ;;  %v13917_v41 = vld [vmem:[%s17006_s18 + $0x638] sm:$0xf] }
 0x66d   : > { %v16122_v11 = vld [vmem:[%s17006_s18 + $0x834] sm:$0xf]  ;;  %v13658_v43 = vor.u32 %v15994_v59, %v13655_v17  ;;  %9856 = vmatpush.bf16.msrb.mxu0 %v13146_v57  ;;  %v16067_v35 = vld [vmem:[%s17006_s18 + $0x674] sm:$0xf0]  ;;  %v13406_v17 = vor.u32 %v15939_v27, %v13405_v45 }
 0x66e   : > { %v14167_v30 = vld [vmem:[%s17006_s18 + $0x870] sm:$0xf0]  ;;  %9897 = vmatpush.bf16.msrb.mxu3 %v14746_v55  ;;  %v14429_v32 = vld [vmem:[%s17006_s18 + $0xa38] sm:$0xf]  ;;  %v13918_v0 = vor.u32 %v16067_v35, %v13917_v41 }
 0x66f   : > { %v16250_v20 = vld [vmem:[%s17006_s18 + $0xc34] sm:$0xf]  ;;  %v14170_v44 = vor.u32 %v16122_v11, %v14167_v30  ;;  %9870 = vmatpush.bf16.msrb.mxu1 %v13658_v43  ;;  %v16195_v21 = vld [vmem:[%s17006_s18 + $0xa74] sm:$0xf0]  ;;  %v9634_v11 = vpop.f32.mrf.mxu0 }
 0x670   : > { %v14679_v13 = vld [vmem:[%s17006_s18 + $0xc70] sm:$0xf0]  ;;  %9857 = vmatmul.bf16.vlgmr.msrb.gmra.mxu0 %v17500_v63  ;;  %v14941_v19 = vld [vmem:[%s17006_s18 + $0xe38] sm:$0xf]  ;;  %v14430_v55 = vor.u32 %v16195_v21, %v14429_v32  ;;  %v9635_v62 = vadd.f32 %v9634_v11, %v6518_v1 }
 0x671   : > { %v14682_v31 = vor.u32 %v16250_v20, %v14679_v13  ;;  %9884 = vmatpush.bf16.msrb.mxu2 %v14170_v44  ;;  %9905 = vmatpush.bf16.msra.mxu0 %v13598_v10  ;;  %v16323_v59 = vld [vmem:[%s17006_s18 + $0xe74] sm:$0xf0] }
 0x672   : > { %9871 = vmatmul.bf16.vlgmr.msrb.gmra.mxu1 %v17514_v14  ;;  %v13341_v30 = vld [vmem:[%s17006_s18 + $0x1b8] sm:$0xf]  ;;  %v14942_v28 = vor.u32 %v16323_v59, %v14941_v19  ;;  %v9649_v53 = vadd.f32 %v9648_v40, %v9635_v62  ;;  %v14111_v40 = vld [vmem:[%s17006_s18 + $0x7f8] sm:$0xf0] }
 0x673   : > { %9898 = vmatpush.bf16.msrb.mxu3 %v14682_v31  ;;  %9919 = vmatpush.bf16.msra.mxu1 %v14110_v23  ;;  %v15923_v20 = vld [vmem:[%s17006_s18 + $0x1f4] sm:$0xf0]  ;;  %v9662_v10 = vpop.f32.mrf.mxu2  ;;  %v9650_v16 = vpop.f32.mrf.mxu1 }
 0x674   : > { %9885 = vmatmul.bf16.vlgmr.msrb.gmra.mxu2 %v17496_v6  ;;  %v13853_v13 = vld [vmem:[%s17006_s18 + $0x5b8] sm:$0xf]  ;;  %v13342_v34 = vor.u32 %v15923_v20, %v13341_v30  ;;  %v9663_v7 = vadd.f32 %v9662_v10, %v9649_v53  ;;  %v15979_v30 = vld [vmem:[%s17006_s18 + $0x3bc] sm:$0xf] }
 0x675   : > { %9933 = vmatpush.bf16.msra.mxu2 %v14622_v22  ;;  %9906 = vmatpush.bf16.msra.mxu0 %v13534_v12  ;;  %v16051_v8 = vld [vmem:[%s17006_s18 + $0x5f4] sm:$0xf0]  ;;  %v13599_v20 = vld [vmem:[%s17006_s18 + $0x3f8] sm:$0xf0] }
 0x676   : > { %9899 = vmatmul.bf16.vlgmr.msrb.gmra.mxu3 %v17505_v24  ;;  %v14365_v51 = vld [vmem:[%s17006_s18 + $0x9b8] sm:$0xf]  ;;  %v13854_v43 = vor.u32 %v16051_v8, %v13853_v13  ;;  %v16107_v13 = vld [vmem:[%s17006_s18 + $0x7bc] sm:$0xf] }
 0x677   : > { %9947 = vmatpush.bf16.msra.mxu3 %v15134_v9  ;;  %9920 = vmatpush.bf16.msra.mxu1 %v14046_v18  ;;  %v16179_v57 = vld [vmem:[%s17006_s18 + $0x9f4] sm:$0xf0]  ;;  %v9676_v9 = vpop.f32.mrf.mxu3  ;;  %v9636_v12 = vpop.f32.mrf.mxu0  ;;  %v14623_v8 = vld [vmem:[%s17006_s18 + $0xbf8] sm:$0xf0] }
 0x678   : > { %v14877_v25 = vld [vmem:[%s17006_s18 + $0xdb8] sm:$0xf]  ;;  %v14366_v44 = vor.u32 %v16179_v57, %v14365_v51  ;;  %v9677_v39 = vadd.f32 %v9676_v9, %v9663_v7  ;;  %v15135_v53 = vld [vmem:[%s17006_s18 + $0xff8] sm:$0xf0] }
 0x679   : > { %9934 = vmatpush.bf16.msra.mxu2 %v14558_v49  ;;  %9907 = vmatpush.bf16.msra.mxu0 %v13470_v2  ;;  %v16307_v33 = vld [vmem:[%s17006_s18 + $0xdf4] sm:$0xf0]  ;;  %v16091_v10 = vld [vmem:[%s17006_s18 + $0x73c] sm:$0xf] }
 0x67a   : > { %v13277_v36 = vld [vmem:[%s17006_s18 + $0x138] sm:$0xf]  ;;  %v14878_v23 = vor.u32 %v16307_v33, %v14877_v25  ;;  %10026 = vst [vmem:[%s17016_s0 + $0x48] sm:$0xff] %v9677_v39  ;;  %v16363_v33 = vld [vmem:[%s17006_s18 + $0xfbc] sm:$0xf] }
 0x67b   : > { %9948 = vmatpush.bf16.msra.mxu3 %v15070_v38  ;;  %9921 = vmatpush.bf16.msra.mxu1 %v13982_v50  ;;  %v15907_v54 = vld [vmem:[%s17006_s18 + $0x174] sm:$0xf0]  ;;  %v9637_v38 = vadd.f32 %v9636_v12, %v6518_v1  ;;  %v9664_v21 = vpop.f32.mrf.mxu2  ;;  %v16347_v7 = vld [vmem:[%s17006_s18 + $0xf3c] sm:$0xf] }
 0x67c   : > { %v13789_v31 = vld [vmem:[%s17006_s18 + $0x538] sm:$0xf]  ;;  %v13278_v52 = vor.u32 %v15907_v54, %v13277_v36  ;;  %v15963_v54 = vld [vmem:[%s17006_s18 + $0x33c] sm:$0xf] }
 0x67d   : > { %9935 = vmatpush.bf16.msra.mxu2 %v14494_v26  ;;  %9908 = vmatpush.bf16.msra.mxu0 %v13406_v17  ;;  %v16035_v22 = vld [vmem:[%s17006_s18 + $0x574] sm:$0xf0]  ;;  %v9651_v45 = vadd.f32 %v9650_v16, %v9637_v38  ;;  %v15071_v9 = vld [vmem:[%s17006_s18 + $0xf78] sm:$0xf0] }
 0x67e   : > { %v14301_v47 = vld [vmem:[%s17006_s18 + $0x938] sm:$0xf]  ;;  %v13790_v18 = vor.u32 %v16035_v22, %v13789_v31  ;;  %v13535_v31 = vld [vmem:[%s17006_s18 + $0x378] sm:$0xf0] }
 0x67f   : > { %9949 = vmatpush.bf16.msra.mxu3 %v15006_v5  ;;  %9922 = vmatpush.bf16.msra.mxu1 %v13918_v0  ;;  %v16163_v3 = vld [vmem:[%s17006_s18 + $0x974] sm:$0xf0]  ;;  %v9665_v0 = vadd.f32 %v9664_v21, %v9651_v45  ;;  %v14047_v22 = vld [vmem:[%s17006_s18 + $0x778] sm:$0xf0]  ;;  %v6519_v45 = vperm.slane %v18350_v29, 2 }
 0x680   : > { %v14813_v42 = vld [vmem:[%s17006_s18 + $0xd38] sm:$0xf]  ;;  %v14302_v49 = vor.u32 %v16163_v3, %v14301_v47  ;;  %v16219_v47 = vld [vmem:[%s17006_s18 + $0xb3c] sm:$0xf] }
 0x681   : > { %9936 = vmatpush.bf16.msra.mxu2 %v14430_v55  ;;  %v16291_v60 = vld [vmem:[%s17006_s18 + $0xd74] sm:$0xf0]  ;;  %9909 = vmatpush.bf16.msra.mxu0 %v13342_v34  ;;  %v9678_v55 = vpop.f32.mrf.mxu3  ;;  %v14559_v3 = vld [vmem:[%s17006_s18 + $0xb78] sm:$0xf0] }
 0x682   : > { %v13213_v4 = vld [vmem:[%s17006_s18 + $0xb8] sm:$0xf]  ;;  %v14814_v48 = vor.u32 %v16291_v60, %v14813_v42  ;;  %v9679_v51 = vadd.f32 %v9678_v55, %v9665_v0  ;;  %v13538_v42 = vor.u32 %v15963_v54, %v13535_v31  ;;  %v14050_v60 = vor.u32 %v16091_v10, %v14047_v22  ;;  %v13471_v39 = vld [vmem:[%s17006_s18 + $0x2f8] sm:$0xf0] }
 0x683   : > { %9950 = vmatpush.bf16.msra.mxu3 %v14942_v28  ;;  %9923 = vmatpush.bf16.msra.mxu1 %v13854_v43  ;;  %v15891_v15 = vld [vmem:[%s17006_s18 + $0xf4] sm:$0xf0]  ;;  %v16235_v28 = vld [vmem:[%s17006_s18 + $0xbbc] sm:$0xf]  ;;  %v13602_v43 = vor.u32 %v15979_v30, %v13599_v20 }
 0x684   : > { %v13725_v37 = vld [vmem:[%s17006_s18 + $0x4b8] sm:$0xf]  ;;  %v13214_v50 = vor.u32 %v15891_v15, %v13213_v4  ;;  %10042 = vst [vmem:[%s17016_s0 + $0xc8] sm:$0xff] %v9679_v51  ;;  %v14626_v36 = vor.u32 %v16235_v28, %v14623_v8  ;;  %v15947_v4 = vld [vmem:[%s17006_s18 + $0x2bc] sm:$0xf] }
 0x685   : > { %9937 = vmatpush.bf16.msra.mxu2 %v14366_v44  ;;  %v16019_v61 = vld [vmem:[%s17006_s18 + $0x4f4] sm:$0xf0]  ;;  %9910 = vmatpush.bf16.msra.mxu0 %v13278_v52  ;;  %v14114_v44 = vor.u32 %v16107_v13, %v14111_v40  ;;  %v14562_v52 = vor.u32 %v16219_v47, %v14559_v3  ;;  %v16075_v12 = vld [vmem:[%s17006_s18 + $0x6bc] sm:$0xf]  ;;  %v13474_v16 = vor.u32 %v15947_v4, %v13471_v39 }
 0x686   : > { %v14237_v58 = vld [vmem:[%s17006_s18 + $0x8b8] sm:$0xf]  ;;  %v13726_v41 = vor.u32 %v16019_v61, %v13725_v37  ;;  %v16203_v15 = vld [vmem:[%s17006_s18 + $0xabc] sm:$0xf] }
 0x687   : > { %9951 = vmatpush.bf16.msra.mxu3 %v14878_v23  ;;  %v16147_v46 = vld [vmem:[%s17006_s18 + $0x8f4] sm:$0xf0]  ;;  %9924 = vmatpush.bf16.msra.mxu1 %v13790_v18  ;;  %v15138_v23 = vor.u32 %v16363_v33, %v15135_v53  ;;  %v15074_v18 = vor.u32 %v16347_v7, %v15071_v9  ;;  %v14495_v37 = vld [vmem:[%s17006_s18 + $0xaf8] sm:$0xf0] }
 0x688   : > { %v14749_v56 = vld [vmem:[%s17006_s18 + $0xcb8] sm:$0xf]  ;;  %v14238_v1 = vor.u32 %v16147_v46, %v14237_v58  ;;  %v16331_v61 = vld [vmem:[%s17006_s18 + $0xebc] sm:$0xf]  ;;  %v14498_v46 = vor.u32 %v16203_v15, %v14495_v37 }
 0x689   : > { %v16275_v2 = vld [vmem:[%s17006_s18 + $0xcf4] sm:$0xf0]  ;;  %9938 = vmatpush.bf16.msra.mxu2 %v14302_v49  ;;  %9911 = vmatpush.bf16.msra.mxu0 %v13214_v50  ;;  %v13983_v49 = vld [vmem:[%s17006_s18 + $0x6f8] sm:$0xf0] }
 0x68a   : > { %v13149_v26 = vld [vmem:[%s17006_s18 + $0x38] sm:$0xf]  ;;  %v14750_v19 = vor.u32 %v16275_v2, %v14749_v56  ;;  %v15007_v38 = vld [vmem:[%s17006_s18 + $0xef8] sm:$0xf0]  ;;  %v13986_v58 = vor.u32 %v16075_v12, %v13983_v49 }
 0x68b   : > { %v15875_v27 = vld [vmem:[%s17006_s18 + $0x74] sm:$0xf0]  ;;  %9952 = vmatpush.bf16.msra.mxu3 %v14814_v48  ;;  %9925 = vmatpush.bf16.msra.mxu1 %v13726_v41  ;;  %v15931_v48 = vld [vmem:[%s17006_s18 + $0x23c] sm:$0xf]  ;;  %v15010_v50 = vor.u32 %v16331_v61, %v15007_v38 }
 0x68c   : > { %v13661_v5 = vld [vmem:[%s17006_s18 + $0x438] sm:$0xf]  ;;  %v13150_v62 = vor.u32 %v15875_v27, %v13149_v26  ;;  %v13407_v56 = vld [vmem:[%s17006_s18 + $0x278] sm:$0xf0]  ;;  %v9704_v55 = vpop.f32.mrf.mxu1 }
 0x68d   : > { %v16003_v35 = vld [vmem:[%s17006_s18 + $0x474] sm:$0xf0]  ;;  %9939 = vmatpush.bf16.msra.mxu2 %v14238_v1  ;;  %v16059_v2 = vld [vmem:[%s17006_s18 + $0x63c] sm:$0xf] }
 0x68e   : > { %v14173_v32 = vld [vmem:[%s17006_s18 + $0x838] sm:$0xf]  ;;  %v13662_v57 = vor.u32 %v16003_v35, %v13661_v5  ;;  %9912 = vmatpush.bf16.msra.mxu0 %v13150_v62  ;;  %v13919_v26 = vld [vmem:[%s17006_s18 + $0x678] sm:$0xf0]  ;;  %v13410_v35 = vor.u32 %v15931_v48, %v13407_v56 }
 0x68f   : > { %v16131_v59 = vld [vmem:[%s17006_s18 + $0x874] sm:$0xf0]  ;;  %9953 = vmatpush.bf16.msra.mxu3 %v14750_v19  ;;  %v16187_v27 = vld [vmem:[%s17006_s18 + $0xa3c] sm:$0xf]  ;;  %v13922_v21 = vor.u32 %v16059_v2, %v13919_v26 }
 0x690   : > { %v14685_v17 = vld [vmem:[%s17006_s18 + $0xc38] sm:$0xf]  ;;  %v14174_v25 = vor.u32 %v16131_v59, %v14173_v32  ;;  %9926 = vmatpush.bf16.msra.mxu1 %v13662_v57  ;;  %v14431_v41 = vld [vmem:[%s17006_s18 + $0xa78] sm:$0xf0]  ;;  %v9690_v32 = vpop.f32.mrf.mxu0 }
 0x691   : > { %v16259_v11 = vld [vmem:[%s17006_s18 + $0xc74] sm:$0xf0]  ;;  %9913 = vmatmul.bf16.vlgmr.msra.gmra.mxu0 %v17500_v63  ;;  %v16315_v1 = vld [vmem:[%s17006_s18 + $0xe3c] sm:$0xf]  ;;  %v14434_v19 = vor.u32 %v16187_v27, %v14431_v41  ;;  %v9691_v0 = vadd.f32 %v9690_v32, %v6519_v45 }
 0x692   : > { %v14686_v34 = vor.u32 %v16259_v11, %v14685_v17  ;;  %9940 = vmatpush.bf16.msra.mxu2 %v14174_v25  ;;  %9961 = vmatpush.bf16.msrb.mxu0 %v13602_v43  ;;  %v14943_v5 = vld [vmem:[%s17006_s18 + $0xe78] sm:$0xf0] }
 0x693   : > { %9927 = vmatmul.bf16.vlgmr.msra.gmra.mxu1 %v17514_v14  ;;  %v15915_v59 = vld [vmem:[%s17006_s18 + $0x1bc] sm:$0xf]  ;;  %v14946_v30 = vor.u32 %v16315_v1, %v14943_v5  ;;  %v9705_v8 = vadd.f32 %v9704_v55, %v9691_v0 }
 0x694   : > { %9954 = vmatpush.bf16.msra.mxu3 %v14686_v34  ;;  %9975 = vmatpush.bf16.msrb.mxu1 %v14114_v44  ;;  %v13343_v17 = vld [vmem:[%s17006_s18 + $0x1f8] sm:$0xf0]  ;;  %v9718_v43 = vpop.f32.mrf.mxu2  ;;  %v9706_v49 = vpop.f32.mrf.mxu1 }
 0x695   : > { %9941 = vmatmul.bf16.vlgmr.msra.gmra.mxu2 %v17496_v6  ;;  %v16043_v11 = vld [vmem:[%s17006_s18 + $0x5bc] sm:$0xf]  ;;  %v13346_v51 = vor.u32 %v15915_v59, %v13343_v17  ;;  %v9719_v10 = vadd.f32 %v9718_v43, %v9705_v8  ;;  %v6521_v43 = vperm.slane %v18350_v29, 4 }
 0x696   : > { %9989 = vmatpush.bf16.msrb.mxu2 %v14626_v36  ;;  %9962 = vmatpush.bf16.msrb.mxu0 %v13538_v42  ;;  %v13855_v20 = vld [vmem:[%s17006_s18 + $0x5f8] sm:$0xf0] }
 0x697   : > { %9955 = vmatmul.bf16.vlgmr.msra.gmra.mxu3 %v17505_v24  ;;  %v16171_v13 = vld [vmem:[%s17006_s18 + $0x9bc] sm:$0xf]  ;;  %v13858_v57 = vor.u32 %v16043_v11, %v13855_v20 }
 0x698   : > { %10003 = vmatpush.bf16.msrb.mxu3 %v15138_v23  ;;  %9976 = vmatpush.bf16.msrb.mxu1 %v14050_v60  ;;  %v14367_v62 = vld [vmem:[%s17006_s18 + $0x9f8] sm:$0xf0]  ;;  %v9732_v23 = vpop.f32.mrf.mxu3  ;;  %v9692_v42 = vpop.f32.mrf.mxu0 }
 0x699   : > { %v16299_v40 = vld [vmem:[%s17006_s18 + $0xdbc] sm:$0xf]  ;;  %v14370_v25 = vor.u32 %v16171_v13, %v14367_v62  ;;  %v9733_v9 = vadd.f32 %v9732_v23, %v9719_v10 }
 0x69a   : > { %9990 = vmatpush.bf16.msrb.mxu2 %v14562_v52  ;;  %9963 = vmatpush.bf16.msrb.mxu0 %v13474_v16  ;;  %v14879_v28 = vld [vmem:[%s17006_s18 + $0xdf8] sm:$0xf0] }
 0x69b   : > { %v15899_v33 = vld [vmem:[%s17006_s18 + $0x13c] sm:$0xf]  ;;  %v14882_v44 = vor.u32 %v16299_v40, %v14879_v28  ;;  %10027 = vst [vmem:[%s17016_s0 + $0x50] sm:$0xff] %v9733_v9 }
 0x69c   : > { %10004 = vmatpush.bf16.msrb.mxu3 %v15074_v18  ;;  %9977 = vmatpush.bf16.msrb.mxu1 %v13986_v58  ;;  %v13279_v53 = vld [vmem:[%s17006_s18 + $0x178] sm:$0xf0]  ;;  %v9693_v18 = vadd.f32 %v9692_v42, %v6519_v45  ;;  %v9720_v26 = vpop.f32.mrf.mxu2 }
 0x69d   : > { %v16027_v34 = vld [vmem:[%s17006_s18 + $0x53c] sm:$0xf]  ;;  %v13282_v3 = vor.u32 %v15899_v33, %v13279_v53 }
 0x69e   : > { %9991 = vmatpush.bf16.msrb.mxu2 %v14498_v46  ;;  %9964 = vmatpush.bf16.msrb.mxu0 %v13410_v35  ;;  %v13791_v36 = vld [vmem:[%s17006_s18 + $0x578] sm:$0xf0]  ;;  %v9707_v48 = vadd.f32 %v9706_v49, %v9693_v18 }
 0x69f   : > { %v16155_v54 = vld [vmem:[%s17006_s18 + $0x93c] sm:$0xf]  ;;  %v13794_v60 = vor.u32 %v16027_v34, %v13791_v36 }
 0x6a0   : > { %10005 = vmatpush.bf16.msrb.mxu3 %v15010_v50  ;;  %9978 = vmatpush.bf16.msrb.mxu1 %v13922_v21  ;;  %v14303_v31 = vld [vmem:[%s17006_s18 + $0x978] sm:$0xf0]  ;;  %v9721_v35 = vadd.f32 %v9720_v26, %v9707_v48  ;;  %v9734_v32 = vpop.f32.mrf.mxu3 }
 0x6a1   : > { %v16283_v22 = vld [vmem:[%s17006_s18 + $0xd3c] sm:$0xf]  ;;  %v14306_v52 = vor.u32 %v16155_v54, %v14303_v31 }
 0x6a2   : > { %9992 = vmatpush.bf16.msrb.mxu2 %v14434_v19  ;;  %v14815_v47 = vld [vmem:[%s17006_s18 + $0xd78] sm:$0xf0]  ;;  %9965 = vmatpush.bf16.msrb.mxu0 %v13346_v51  ;;  %v9735_v17 = vadd.f32 %v9734_v32, %v9721_v35 }
 0x6a3   : > { %v15883_v7 = vld [vmem:[%s17006_s18 + $0xbc] sm:$0xf]  ;;  %v14818_v15 = vor.u32 %v16283_v22, %v14815_v47 }
 0x6a4   : > { %10006 = vmatpush.bf16.msrb.mxu3 %v14946_v30  ;;  %9979 = vmatpush.bf16.msrb.mxu1 %v13858_v57  ;;  %v13215_v4 = vld [vmem:[%s17006_s18 + $0xf8] sm:$0xf0]  ;;  %10043 = vst [vmem:[%s17016_s0 + $0xd0] sm:$0xff] %v9735_v17  ;;  %v6520_v30 = vperm.slane %v18350_v29, 3 }
 0x6a5   : > { %v16011_v39 = vld [vmem:[%s17006_s18 + $0x4bc] sm:$0xf]  ;;  %v13218_v58 = vor.u32 %v15883_v7, %v13215_v4 }
 0x6a6   : > { %9993 = vmatpush.bf16.msrb.mxu2 %v14370_v25  ;;  %v13727_v12 = vld [vmem:[%s17006_s18 + $0x4f8] sm:$0xf0]  ;;  %9966 = vmatpush.bf16.msrb.mxu0 %v13282_v3 }
 0x6a7   : > { %v16139_v37 = vld [vmem:[%s17006_s18 + $0x8bc] sm:$0xf]  ;;  %v13730_v46 = vor.u32 %v16011_v39, %v13727_v12  ;;  %v6522_v12 = vperm.slane %v18350_v29, 5 }
 0x6a8   : > { %10007 = vmatpush.bf16.msrb.mxu3 %v14882_v44  ;;  %v14239_v61 = vld [vmem:[%s17006_s18 + $0x8f8] sm:$0xf0]  ;;  %9980 = vmatpush.bf16.msrb.mxu1 %v13794_v60 }
 0x6a9   : > { %v16267_v38 = vld [vmem:[%s17006_s18 + $0xcbc] sm:$0xf]  ;;  %v14242_v56 = vor.u32 %v16139_v37, %v14239_v61 }
 0x6aa   : > { %v14751_v16 = vld [vmem:[%s17006_s18 + $0xcf8] sm:$0xf0]  ;;  %9994 = vmatpush.bf16.msrb.mxu2 %v14306_v52  ;;  %9967 = vmatpush.bf16.msrb.mxu0 %v13218_v58 }
 0x6ab   : > { %v15867_v2 = vld [vmem:[%s17006_s18 + $0x3c] sm:$0xf]  ;;  %v14754_v27 = vor.u32 %v16267_v38, %v14751_v16  ;;  %v9746_v20 = vpop.f32.mrf.mxu0 }
 0x6ac   : > { %v13151_v45 = vld [vmem:[%s17006_s18 + $0x78] sm:$0xf0]  ;;  %10008 = vmatpush.bf16.msrb.mxu3 %v14818_v15  ;;  %9981 = vmatpush.bf16.msrb.mxu1 %v13730_v46  ;;  %v9747_v13 = vadd.f32 %v9746_v20, %v6520_v30 }
 0x6ad   : > { %v15995_v50 = vld [vmem:[%s17006_s18 + $0x43c] sm:$0xf]  ;;  %v13154_v59 = vor.u32 %v15867_v2, %v13151_v45  ;;  %v9760_v62 = vpop.f32.mrf.mxu1 }
 0x6ae   : > { %v13663_v41 = vld [vmem:[%s17006_s18 + $0x478] sm:$0xf0]  ;;  %9995 = vmatpush.bf16.msrb.mxu2 %v14242_v56  ;;  %v9761_v40 = vadd.f32 %v9760_v62, %v9747_v13 }
 0x6af   : > { %v16123_v1 = vld [vmem:[%s17006_s18 + $0x83c] sm:$0xf]  ;;  %v13666_v11 = vor.u32 %v15995_v50, %v13663_v41  ;;  %9968 = vmatpush.bf16.msrb.mxu0 %v13154_v59  ;;  %v6523_v41 = vperm.slane %v18350_v29, 6 }
 0x6b0   : > { %v14175_v5 = vld [vmem:[%s17006_s18 + $0x878] sm:$0xf0]  ;;  %10009 = vmatpush.bf16.msrb.mxu3 %v14754_v27 }
 0x6b1   : > { %v16251_v21 = vld [vmem:[%s17006_s18 + $0xc3c] sm:$0xf]  ;;  %v14178_v0 = vor.u32 %v16123_v1, %v14175_v5  ;;  %9982 = vmatpush.bf16.msrb.mxu1 %v13666_v11 }
 0x6b2   : > { %v14687_v19 = vld [vmem:[%s17006_s18 + $0xc78] sm:$0xf0]  ;;  %9969 = vmatmul.bf16.vlgmr.msrb.gmra.mxu0 %v17500_v63 }
 0x6b3   : > { %v14690_v55 = vor.u32 %v16251_v21, %v14687_v19  ;;  %9996 = vmatpush.bf16.msrb.mxu2 %v14178_v0  ;;  %v9748_v25 = vpop.f32.mrf.mxu0 }
 0x6b4   : > { %9983 = vmatmul.bf16.vlgmr.msrb.gmra.mxu1 %v17514_v14  ;;  %v9749_v63 = vadd.f32 %v9748_v25, %v6520_v30 }
 0x6b5   : > { %10010 = vmatpush.bf16.msrb.mxu3 %v14690_v55  ;;  %v9774_v28 = vpop.f32.mrf.mxu2  ;;  %v9762_v33 = vpop.f32.mrf.mxu1 }
 0x6b6   : > { %9997 = vmatmul.bf16.vlgmr.msrb.gmra.mxu2 %v17496_v6  ;;  %v9775_v8 = vadd.f32 %v9774_v28, %v9761_v40  ;;  %v9763_v14 = vadd.f32 %v9762_v33, %v9749_v63  ;;  %v6524_v28 = vperm.slane %v18350_v29, 7 }
 0x6b7   : > { %v9788_v51 = vpop.f32.mrf.mxu3 }
 0x6b8   : > { %10011 = vmatmul.bf16.vlgmr.msrb.gmra.mxu3 %v17505_v24  ;;  %v9789_v57 = vadd.f32 %v9788_v51, %v9775_v8 }
 0x6ba   : > { %10028 = vst [vmem:[%s17016_s0 + $0x58] sm:$0xff] %v9789_v57 }
 0x6bd   : > { %v9776_v53 = vpop.f32.mrf.mxu2 }
 0x6be   : > { %v9777_v6 = vadd.f32 %v9776_v53, %v9763_v14 }
 0x6bf   : > { %v9790_v24 = vpop.f32.mrf.mxu3 }
 0x6c0   : > { %v9791_v34 = vadd.f32 %v9790_v24, %v9777_v6 }
 0x6c2   : > { %10044 = vst [vmem:[%s17016_s0 + $0xd8] sm:$0xff] %v9791_v34 }
 0x6cc   : > { %v9802_v44 = vpop.f32.mrf.mxu0 }
 0x6cd   : > { %v9803_v36 = vadd.f32 %v9802_v44, %v6521_v43 }
 0x6ce   : > { %v9816_v54 = vpop.f32.mrf.mxu1 }
 0x6cf   : > { %v9817_v31 = vadd.f32 %v9816_v54, %v9803_v36 }
 0x6d4   : > { %v9804_v3 = vpop.f32.mrf.mxu0 }
 0x6d5   : > { %v9805_v7 = vadd.f32 %v9804_v3, %v6521_v43 }
 0x6d6   : > { %v9830_v10 = vpop.f32.mrf.mxu2  ;;  %v9818_v9 = vpop.f32.mrf.mxu1 }
 0x6d7   : > { %v9831_v23 = vadd.f32 %v9830_v10, %v9817_v31  ;;  %v9819_v42 = vadd.f32 %v9818_v9, %v9805_v7 }
 0x6d8   : > { %v9844_v22 = vpop.f32.mrf.mxu3 }
 0x6d9   : > { %v9845_v47 = vadd.f32 %v9844_v22, %v9831_v23 }
 0x6db   : > { %10029 = vst [vmem:[%s17016_s0 + $0x60] sm:$0xff] %v9845_v47 }
 0x6de   : > { %v9832_v60 = vpop.f32.mrf.mxu2 }
 0x6df   : > { %v9833_v52 = vadd.f32 %v9832_v60, %v9819_v42 }
 0x6e0   : > { %v9846_v4 = vpop.f32.mrf.mxu3 }
 0x6e1   : > { %v9847_v39 = vadd.f32 %v9846_v4, %v9833_v52 }
 0x6e3   : > { %10045 = vst [vmem:[%s17016_s0 + $0xe0] sm:$0xff] %v9847_v39 }
 0x6ed   : > { %v9858_v18 = vpop.f32.mrf.mxu0 }
 0x6ee   : > { %v9859_v49 = vadd.f32 %v9858_v18, %v6522_v12 }
 0x6ef   : > { %v9872_v15 = vpop.f32.mrf.mxu1 }
 0x6f0   : > { %v9873_v37 = vadd.f32 %v9872_v15, %v9859_v49 }
 0x6f5   : > { %v9860_v58 = vpop.f32.mrf.mxu0 }
 0x6f6   : > { %v9861_v46 = vadd.f32 %v9860_v58, %v6522_v12 }
 0x6f7   : > { %v9886_v61 = vpop.f32.mrf.mxu2  ;;  %v9874_v56 = vpop.f32.mrf.mxu1 }
 0x6f8   : > { %v9887_v38 = vadd.f32 %v9886_v61, %v9873_v37  ;;  %v9875_v2 = vadd.f32 %v9874_v56, %v9861_v46 }
 0x6f9   : > { %v9900_v16 = vpop.f32.mrf.mxu3 }
 0x6fa   : > { %v9901_v48 = vadd.f32 %v9900_v16, %v9887_v38 }
 0x6fc   : > { %10030 = vst [vmem:[%s17016_s0 + $0x68] sm:$0xff] %v9901_v48 }
 0x6ff   : > { %v9888_v45 = vpop.f32.mrf.mxu2 }
 0x700   : > { %v9889_v50 = vadd.f32 %v9888_v45, %v9875_v2 }
 0x701   : > { %v9902_v26 = vpop.f32.mrf.mxu3 }
 0x702   : > { %v9903_v27 = vadd.f32 %v9902_v26, %v9889_v50 }
 0x704   : > { %10046 = vst [vmem:[%s17016_s0 + $0xe8] sm:$0xff] %v9903_v27 }
 0x70e   : > { %v9914_v1 = vpop.f32.mrf.mxu0 }
 0x70f   : > { %v9915_v5 = vadd.f32 %v9914_v1, %v6523_v41 }
 0x710   : > { %v9928_v35 = vpop.f32.mrf.mxu1 }
 0x711   : > { %v9929_v32 = vadd.f32 %v9928_v35, %v9915_v5 }
 0x716   : > { %v9916_v11 = vpop.f32.mrf.mxu0 }
 0x717   : > { %v9917_v0 = vadd.f32 %v9916_v11, %v6523_v41 }
 0x718   : > { %v9942_v21 = vpop.f32.mrf.mxu2  ;;  %v9930_v55 = vpop.f32.mrf.mxu1 }
 0x719   : > { %v9943_v19 = vadd.f32 %v9942_v21, %v9929_v32  ;;  %v9931_v30 = vadd.f32 %v9930_v55, %v9917_v0 }
 0x71a   : > { %v9956_v59 = vpop.f32.mrf.mxu3 }
 0x71b   : > { %v9957_v17 = vadd.f32 %v9956_v59, %v9943_v19 }
 0x71d   : > { %10031 = vst [vmem:[%s17016_s0 + $0x70] sm:$0xff] %v9957_v17 }
 0x720   : > { %v9944_v20 = vpop.f32.mrf.mxu2 }
 0x721   : > { %v9945_v13 = vadd.f32 %v9944_v20, %v9931_v30 }
 0x722   : > { %v9958_v62 = vpop.f32.mrf.mxu3 }
 0x723   : > { %v9959_v40 = vadd.f32 %v9958_v62, %v9945_v13 }
 0x725   : > { %10047 = vst [vmem:[%s17016_s0 + $0xf0] sm:$0xff] %v9959_v40 }
 0x72f   : > { %v9970_v8 = vpop.f32.mrf.mxu0 }
 0x730   : > { %v9971_v51 = vadd.f32 %v9970_v8, %v6524_v28 }
 0x731   : > { %v9984_v57 = vpop.f32.mrf.mxu1 }
 0x732   : > { %v9985_v25 = vadd.f32 %v9984_v57, %v9971_v51 }
 0x737   : > { %v9972_v53 = vpop.f32.mrf.mxu0 }
 0x738   : > { %v9973_v24 = vadd.f32 %v9972_v53, %v6524_v28 }
 0x739   : > { %v9998_v63 = vpop.f32.mrf.mxu2  ;;  %v9986_v34 = vpop.f32.mrf.mxu1 }
 0x73a   : > { %v9999_v33 = vadd.f32 %v9998_v63, %v9985_v25  ;;  %v9987_v29 = vadd.f32 %v9986_v34, %v9973_v24 }
 0x73b   : > { %v10012_v14 = vpop.f32.mrf.mxu3 }
 0x73c   : > { %v10013_v6 = vadd.f32 %v10012_v14, %v9999_v33 }
 0x73e   : > { %10032 = vst [vmem:[%s17016_s0 + $0x78] sm:$0xff] %v10013_v6 }
 0x741   : > { %v10000_v43 = vpop.f32.mrf.mxu2 }
 0x742   : > { %v10001_v44 = vadd.f32 %v10000_v43, %v9987_v29 }
 0x743   : > { %v10014_v36 = vpop.f32.mrf.mxu3 }
 0x744   : > { %v10015_v54 = vadd.f32 %v10014_v36, %v10001_v44 }
 0x746   : > { %10048 = vst [vmem:[%s17016_s0 + $0xf8] sm:$0xff] %v10015_v54 }
 0x747   : > { %16727 = shalt.err (!%p16724_p10)
}
 0x748   : > { %s16794_s12 = smov 2048   ;;  %s16795_s14 = smov 4096  }
 0x749   : > { %s16796_s18 = smov 128  }
 0x74a   : > { %16397 = dma.vmem_to_hbm [thread:$0]  (%p16919_p7), %s10063_s5, 4096, %s10065_s11, %s10050_s28, %s16794_s12, %s16795_s14, %s16796_s18  }
 0x74b PF: > { %s10079_s19 = sand.u32 1, %s16766_s24   ;;  %p18674_p1 = scmp.ge.s32.totalorder %s16778_s27, 2 }
 0x74c   : > { %s10080_s21 = scalar_lea.sflag [#allocation5], %s10079_s19 }
 0x74d   : > { %p16423_p8 = pnand %p18674_p1, %p16872_p6 }
 0x74f   : > { %p16424_p12 = pneg %p16423_p8 }
 0x751   : > { %16761 = dma.done.wait (%p16424_p12), %s10080_s21, 4096  }
 0x752   : > { %16763 = vsyncadd (%p16424_p12), %s10080_s21, 4294963200  ;;  %s18675_s27 = sld [smem:[#allocation21_spill]]  ;;  %s18677_s24 = smov %s16770_s25 }
 0x753   : > { %s18676_s20 = sld [smem:[#allocation22_spill]]  ;;  %s18678_s25 = smov %s16774_s26 }
 0x758   : > { %p23_p2 = scmp.ge.s32.totalorder %s18675_s27, 4  }
 0x759   : > { %s18679_s26 = smov %s18676_s20 }
 0x75a   :  { %25 = sbr.rel (!%p23_p2) target bundleno = 13 (0xd), region = 129 }
 0x75f   :  { %10086 = vsyncpa [#allocation4], 1 }
 0x760   :  { %10088 = vsyncpa [#allocation4 + $0x1], 1 }
 0x761   :  { %10089 = vsyncpa [#allocation7], 1 }
 0x762   :  { %10090 = vsyncpa [#allocation10], 1 }
 0x763   :  { %10091 = vsyncpa [#allocation13], 1 }
 0x764   :  { %10093 = vsyncpa [#allocation13 + $0x1], 1 }
 0x765   :  { %10094 = vsyncpa [#allocation5], 1 }
 0x766   :  { %10096 = vsyncpa [#allocation5 + $0x1], 1 }

</bundles_post_ra>
